<compile_context>
chip_gen: v7x
topology: tpu7x:2x2x1
jax: 0.10.0
libtpu: 0.0.40
codegen_flags: <defaults>
</compile_context>

<pallas_src>
import functools
import math

import jax
import jax.numpy as jnp
from jax.experimental import pallas as pl
from jax.experimental.pallas import tpu as pltpu

NUM_CLASSES = 2
C_PAD = 128          # decoder output padded to one full lane tile


# ---------------------------------------------------------------------------
# Fused Pallas kernel
# ---------------------------------------------------------------------------
def fused_birnn_kernel(*refs, num_layers, T, B, H):
    """Whole BiRNN forward (minus the embedding gather) in one kernel.

    Positional ref layout:
      inputs:
        emb                      (T*B, E)      bf16  (VMEM)
        per layer l, per direction (fwd then bwd):
          wih_t                  (in, 4H)      bf16  (VMEM for l=0, HBM/ANY for l>=1)
          whh_t                  (H, 4H)       bf16  (VMEM for l=0, HBM/ANY for l>=1)
          bias = b_ih + b_hh     (1, 4H)       f32   (VMEM)
        dec_w_t                  (4H, C_PAD)   bf16  (HBM/ANY)
        dec_b                    (1, C_PAD)    f32   (VMEM)
      outputs:
        out                      (B, C_PAD)    f32
      scratch:
        gx_f, gx_b               (T*B, 4H)     f32   hoisted input projections
        y0, y1                   (T*B, 2H)     f32   per-layer output ping-pong
        per layer l>=1: wih_f/whh_f/wih_b/whh_b VMEM buffers (prefetch targets)
        dec_w_buf                (4H, C_PAD)   bf16
        dma_sem                  DMA sems, one per prefetched weight
    """
    it = iter(refs)
    emb_ref = next(it)
    layer_w = []
    for _ in range(num_layers):
        lw = {}
        for d in ("f", "b"):
            lw[d] = (next(it), next(it), next(it))   # (wih, whh, bias)
        layer_w.append(lw)
    dec_w_ref = next(it)
    dec_b_ref = next(it)
    out_ref = next(it)
    gx_f = next(it)
    gx_b = next(it)
    ybufs = [next(it), next(it)]
    wbufs = []
    for _ in range(1, num_layers):
        wbufs.append((next(it), next(it), next(it), next(it)))
    dec_w_buf = next(it)
    dma_sem = next(it)

    # ---- Prefetch layer>=1 and decoder weights behind layer-0 compute ------
    sem_i = 0
    layer_copies = []
    for l in range(1, num_layers):
        srcs = (layer_w[l]["f"][0], layer_w[l]["f"][1],
                layer_w[l]["b"][0], layer_w[l]["b"][1])
        dsts = wbufs[l - 1]
        cps = []
        for src, dst in zip(srcs, dsts):
            cp = pltpu.make_async_copy(src, dst, dma_sem.at[sem_i])
            cp.start()
            cps.append(cp)
            sem_i += 1
        layer_copies.append(cps)
    dec_cp = pltpu.make_async_copy(dec_w_ref, dec_w_buf, dma_sem.at[sem_i])
    dec_cp.start()

    # ---- One bidirectional layer, fwd/bwd interleaved ----------------------
    def run_layer(x_bf16, wih_f, whh_f, b_f, wih_b, whh_b, b_b, y_out):
        # Hoisted input projection for both directions (bias pre-added),
        # staged through VMEM scratch so it is not live across the unroll.
        gx_f[...] = (jnp.dot(x_bf16, wih_f[...],
                             preferred_element_type=jnp.float32) + b_f[...])
        gx_b[...] = (jnp.dot(x_bf16, wih_b[...],
                             preferred_element_type=jnp.float32) + b_b[...])

        h_f = jnp.zeros((B, H), jnp.float32)
        c_f = jnp.zeros((B, H), jnp.float32)
        h_b = jnp.zeros((B, H), jnp.float32)
        c_b = jnp.zeros((B, H), jnp.float32)

        for s in range(T):               # static unroll; T small & fixed
            tf = s
            tb = T - 1 - s
            # Two independent recurrent matmuls issued back-to-back so the
            # second fills the MXU while the first drains.
            g_f = gx_f[pl.ds(tf * B, B), :] + jnp.dot(
                h_f.astype(jnp.bfloat16), whh_f[...],
                preferred_element_type=jnp.float32)
            g_b = gx_b[pl.ds(tb * B, B), :] + jnp.dot(
                h_b.astype(jnp.bfloat16), whh_b[...],
                preferred_element_type=jnp.float32)

            # PyTorch gate order: i, f, g, o. i/f sigmoid over contiguous slab.
            if_f = jax.nn.sigmoid(g_f[:, :2 * H])
            gg_f = jnp.tanh(g_f[:, 2 * H:3 * H])
            og_f = jax.nn.sigmoid(g_f[:, 3 * H:])
            c_f = if_f[:, H:] * c_f + if_f[:, :H] * gg_f
            h_f = og_f * jnp.tanh(c_f)
            y_out[pl.ds(tf * B, B), pl.ds(0, H)] = h_f

            if_b = jax.nn.sigmoid(g_b[:, :2 * H])
            gg_b = jnp.tanh(g_b[:, 2 * H:3 * H])
            og_b = jax.nn.sigmoid(g_b[:, 3 * H:])
            c_b = if_b[:, H:] * c_b + if_b[:, :H] * gg_b
            h_b = og_b * jnp.tanh(c_b)
            y_out[pl.ds(tb * B, B), pl.ds(H, H)] = h_b

    # ---- Layer 0 (weights auto-DMA'd into VMEM) -----------------------------
    run_layer(emb_ref[...],
              layer_w[0]["f"][0], layer_w[0]["f"][1], layer_w[0]["f"][2],
              layer_w[0]["b"][0], layer_w[0]["b"][1], layer_w[0]["b"][2],
              ybufs[0])

    # ---- Layers 1..L-1 (weights prefetched into VMEM scratch) ---------------
    for l in range(1, num_layers):
        for cp in layer_copies[l - 1]:
            cp.wait()
        wih_fb, whh_fb, wih_bb, whh_bb = wbufs[l - 1]
        x_in = ybufs[(l - 1) % 2][...].astype(jnp.bfloat16)     # (T*B, 2H)
        run_layer(x_in,
                  wih_fb, whh_fb, layer_w[l]["f"][2],
                  wih_bb, whh_bb, layer_w[l]["b"][2],
                  ybufs[l % 2])

    # ---- Decoder epilogue ----------------------------------------------------
    dec_cp.wait()
    y_last = ybufs[(num_layers - 1) % 2]
    # encoding = cat(outputs[0], outputs[-1], -1); decoder matmul split over
    # the two (B, 2H) tiles so no (B, 4H) concat value is materialized.
    enc0 = y_last[pl.ds(0, B), :].astype(jnp.bfloat16)
    enc1 = y_last[pl.ds((T - 1) * B, B), :].astype(jnp.bfloat16)
    out_ref[...] = (
        jnp.dot(enc0, dec_w_buf[pl.ds(0, 2 * H), :],
                preferred_element_type=jnp.float32)
        + jnp.dot(enc1, dec_w_buf[pl.ds(2 * H, 2 * H), :],
                  preferred_element_type=jnp.float32)
        + dec_b_ref[...])


# ---------------------------------------------------------------------------
# Parameter init (deterministic, synthetic)
# ---------------------------------------------------------------------------
def init_params(key, vocab, embed_size, num_hiddens, num_layers):
    k = 1.0 / math.sqrt(num_hiddens)
    keys = iter(jax.random.split(key, 1 + num_layers * 2 * 4 + 2))

    params = {}
    params["embedding"] = jax.random.normal(
        next(keys), (vocab, embed_size), dtype=jnp.float32)

    lstm_layers = []
    for layer in range(num_layers):
        in_size = embed_size if layer == 0 else 2 * num_hiddens
        layer_p = {}
        for direction in ("fwd", "bwd"):
            wih = jax.random.uniform(next(keys), (4 * num_hiddens, in_size),
                                     minval=-k, maxval=k, dtype=jnp.float32)
            whh = jax.random.uniform(next(keys), (4 * num_hiddens, num_hiddens),
                                     minval=-k, maxval=k, dtype=jnp.float32)
            b_ih = jax.random.uniform(next(keys), (4 * num_hiddens,),
                                      minval=-k, maxval=k, dtype=jnp.float32)
            b_hh = jax.random.uniform(next(keys), (4 * num_hiddens,),
                                      minval=-k, maxval=k, dtype=jnp.float32)
            layer_p[direction] = (
                wih.T.astype(jnp.bfloat16),                  # (in, 4H) bf16
                whh.T.astype(jnp.bfloat16),                  # (H, 4H)  bf16
                (b_ih + b_hh).reshape(1, -1),                # (1, 4H)  f32
            )
        lstm_layers.append(layer_p)
    params["lstm"] = lstm_layers

    kd = 1.0 / math.sqrt(4 * num_hiddens)
    dec_w = jax.random.uniform(next(keys), (NUM_CLASSES, 4 * num_hiddens),
                               minval=-kd, maxval=kd, dtype=jnp.float32)
    dec_b = jax.random.uniform(next(keys), (NUM_CLASSES,),
                               minval=-kd, maxval=kd, dtype=jnp.float32)
    # Pad decoder to a full 128-lane output block (sliced back outside).
    dec_w_pad = jnp.zeros((4 * num_hiddens, C_PAD), jnp.float32)
    dec_w_pad = dec_w_pad.at[:, :NUM_CLASSES].set(dec_w.T)
    dec_b_pad = jnp.zeros((1, C_PAD), jnp.float32)
    dec_b_pad = dec_b_pad.at[0, :NUM_CLASSES].set(dec_b)
    params["dec_w_t"] = dec_w_pad.astype(jnp.bfloat16)       # (4H, C_PAD) bf16
    params["dec_b"] = dec_b_pad                              # (1, C_PAD)  f32
    return params


# ---------------------------------------------------------------------------
# Forward pass (mirrors BiRNN.forward, eval mode)
# ---------------------------------------------------------------------------
@jax.jit
def birnn_forward(params, inputs):
    # inputs: (B, T) int32 -> permute(1, 0) -> (T, B) -> embedding -> (T, B, E)
    emb = jnp.take(params["embedding"], inputs.T, axis=0)
    T, B, E = emb.shape
    # Time-major flatten + pre-cast to bf16 (halves the emb DMA into the kernel).
    emb2d = emb.reshape(T * B, E).astype(jnp.bfloat16)

    num_layers = len(params["lstm"])
    H = params["lstm"][0]["fwd"][1].shape[0]         # whh_t is (H, 4H)

    vmem_spec = pl.BlockSpec(memory_space=pltpu.MemorySpace.VMEM)
    any_spec = pl.BlockSpec(memory_space=pl.ANY)     # stays in HBM, manual DMA

    flat_args = [emb2d]
    in_specs = [vmem_spec]
    for l, layer_p in enumerate(params["lstm"]):
        for direction in ("fwd", "bwd"):
            wih, whh, bias = layer_p[direction]
            flat_args += [wih, whh, bias]
            if l == 0:
                in_specs += [vmem_spec, vmem_spec, vmem_spec]
            else:
                # Big layer-l weights left in HBM; prefetched inside the kernel
                # while layer 0 computes.
                in_specs += [any_spec, any_spec, vmem_spec]
    flat_args += [params["dec_w_t"], params["dec_b"]]
    in_specs += [any_spec, vmem_spec]

    scratch_shapes = [
        pltpu.VMEM((T * B, 4 * H), jnp.float32),     # gx_f
        pltpu.VMEM((T * B, 4 * H), jnp.float32),     # gx_b
        pltpu.VMEM((T * B, 2 * H), jnp.float32),     # y0
        pltpu.VMEM((T * B, 2 * H), jnp.float32),     # y1
    ]
    for _ in range(1, num_layers):
        scratch_shapes += [
            pltpu.VMEM((2 * H, 4 * H), jnp.bfloat16),  # wih_f prefetch buf
            pltpu.VMEM((H, 4 * H), jnp.bfloat16),      # whh_f prefetch buf
            pltpu.VMEM((2 * H, 4 * H), jnp.bfloat16),  # wih_b prefetch buf
            pltpu.VMEM((H, 4 * H), jnp.bfloat16),      # whh_b prefetch buf
        ]
    scratch_shapes += [pltpu.VMEM((4 * H, C_PAD), jnp.bfloat16)]  # dec_w buf
    n_dma = 4 * (num_layers - 1) + 1
    scratch_shapes += [pltpu.SemaphoreType.DMA((n_dma,))]

    kernel = functools.partial(fused_birnn_kernel,
                               num_layers=num_layers, T=T, B=B, H=H)

    out_pad = pl.pallas_call(
        kernel,
        out_shape=jax.ShapeDtypeStruct((B, C_PAD), jnp.float32),
        in_specs=in_specs,
        out_specs=pl.BlockSpec(memory_space=pltpu.MemorySpace.VMEM),
        scratch_shapes=scratch_shapes,
    )(*flat_args)

    # PyTorch returns (outs, None); the None carries no data.
    return out_pad[:, :NUM_CLASSES]


# ---------------------------------------------------------------------------
# Main
# ---------------------------------------------------------------------------
if __name__ == "__main__":
    VOCAB = 1000
    EMBED = 128
    HIDDEN = 128
    LAYERS = 2
    BATCH = 8
    SEQ = 8

    key = jax.random.PRNGKey(0)
    pkey, ikey = jax.random.split(key)

    params = init_params(pkey, VOCAB, EMBED, HIDDEN, LAYERS)
    inputs = jax.random.randint(ikey, (BATCH, SEQ), 0, VOCAB, dtype=jnp.int32)

    logits = birnn_forward(params, inputs)
    logits = jax.block_until_ready(logits)

    assert logits.shape == (BATCH, NUM_CLASSES), logits.shape
    assert logits.dtype == jnp.float32
    assert bool(jnp.all(jnp.isfinite(logits)))
    print("KERNEL_OK")
</pallas_src>

<mosaic_0001>
module attributes {stable_mosaic.version = 11 : i64} {
  func.func @fused_birnn_kernel(%arg0: memref<64x128xbf16, #tpu.memory_space<vmem>>, %arg1: memref<128x512xbf16, #tpu.memory_space<vmem>>, %arg2: memref<128x512xbf16, #tpu.memory_space<vmem>>, %arg3: memref<1x512xf32, #tpu.memory_space<vmem>>, %arg4: memref<128x512xbf16, #tpu.memory_space<vmem>>, %arg5: memref<128x512xbf16, #tpu.memory_space<vmem>>, %arg6: memref<1x512xf32, #tpu.memory_space<vmem>>, %arg7: memref<256x512xbf16, #tpu.memory_space<any>>, %arg8: memref<128x512xbf16, #tpu.memory_space<any>>, %arg9: memref<1x512xf32, #tpu.memory_space<vmem>>, %arg10: memref<256x512xbf16, #tpu.memory_space<any>>, %arg11: memref<128x512xbf16, #tpu.memory_space<any>>, %arg12: memref<1x512xf32, #tpu.memory_space<vmem>>, %arg13: memref<512x128xbf16, #tpu.memory_space<any>>, %arg14: memref<1x128xf32, #tpu.memory_space<vmem>>, %arg15: memref<8x128xf32, #tpu.memory_space<vmem>>, %arg16: memref<64x512xf32, #tpu.memory_space<vmem>>, %arg17: memref<64x512xf32, #tpu.memory_space<vmem>>, %arg18: memref<64x256xf32, #tpu.memory_space<vmem>>, %arg19: memref<64x256xf32, #tpu.memory_space<vmem>>, %arg20: memref<256x512xbf16, #tpu.memory_space<vmem>>, %arg21: memref<128x512xbf16, #tpu.memory_space<vmem>>, %arg22: memref<256x512xbf16, #tpu.memory_space<vmem>>, %arg23: memref<128x512xbf16, #tpu.memory_space<vmem>>, %arg24: memref<512x128xbf16, #tpu.memory_space<vmem>>, %arg25: memref<5x!tpu.dma_semaphore, #tpu.memory_space<semaphore_mem>>) attributes {dimension_semantics = [], scalar_prefetch = 0 : i64, scratch_operands = 10 : i64, tpu.core_type = #tpu.core_type<tc>} {
    %c0_i32 = arith.constant 0 : i32
    %0 = tpu.memref_slice %arg25[%c0_i32] : memref<5x!tpu.dma_semaphore, #tpu.memory_space<semaphore_mem>> -> memref<1x!tpu.dma_semaphore, #tpu.memory_space<semaphore_mem>>
    %1 = tpu.memref_squeeze %0 : memref<1x!tpu.dma_semaphore, #tpu.memory_space<semaphore_mem>> -> memref<!tpu.dma_semaphore, #tpu.memory_space<semaphore_mem>>
    tpu.enqueue_dma source(%arg7 : memref<256x512xbf16, #tpu.memory_space<any>>) target(%arg20 : memref<256x512xbf16, #tpu.memory_space<vmem>>) target_semaphore(%1 : memref<!tpu.dma_semaphore, #tpu.memory_space<semaphore_mem>>)
    %c1_i32 = arith.constant 1 : i32
    %2 = tpu.memref_slice %arg25[%c1_i32] : memref<5x!tpu.dma_semaphore, #tpu.memory_space<semaphore_mem>> -> memref<1x!tpu.dma_semaphore, #tpu.memory_space<semaphore_mem>>
    %3 = tpu.memref_squeeze %2 : memref<1x!tpu.dma_semaphore, #tpu.memory_space<semaphore_mem>> -> memref<!tpu.dma_semaphore, #tpu.memory_space<semaphore_mem>>
    tpu.enqueue_dma source(%arg8 : memref<128x512xbf16, #tpu.memory_space<any>>) target(%arg21 : memref<128x512xbf16, #tpu.memory_space<vmem>>) target_semaphore(%3 : memref<!tpu.dma_semaphore, #tpu.memory_space<semaphore_mem>>)
    %c2_i32 = arith.constant 2 : i32
    %4 = tpu.memref_slice %arg25[%c2_i32] : memref<5x!tpu.dma_semaphore, #tpu.memory_space<semaphore_mem>> -> memref<1x!tpu.dma_semaphore, #tpu.memory_space<semaphore_mem>>
    %5 = tpu.memref_squeeze %4 : memref<1x!tpu.dma_semaphore, #tpu.memory_space<semaphore_mem>> -> memref<!tpu.dma_semaphore, #tpu.memory_space<semaphore_mem>>
    tpu.enqueue_dma source(%arg10 : memref<256x512xbf16, #tpu.memory_space<any>>) target(%arg22 : memref<256x512xbf16, #tpu.memory_space<vmem>>) target_semaphore(%5 : memref<!tpu.dma_semaphore, #tpu.memory_space<semaphore_mem>>)
    %c3_i32 = arith.constant 3 : i32
    %6 = tpu.memref_slice %arg25[%c3_i32] : memref<5x!tpu.dma_semaphore, #tpu.memory_space<semaphore_mem>> -> memref<1x!tpu.dma_semaphore, #tpu.memory_space<semaphore_mem>>
    %7 = tpu.memref_squeeze %6 : memref<1x!tpu.dma_semaphore, #tpu.memory_space<semaphore_mem>> -> memref<!tpu.dma_semaphore, #tpu.memory_space<semaphore_mem>>
    tpu.enqueue_dma source(%arg11 : memref<128x512xbf16, #tpu.memory_space<any>>) target(%arg23 : memref<128x512xbf16, #tpu.memory_space<vmem>>) target_semaphore(%7 : memref<!tpu.dma_semaphore, #tpu.memory_space<semaphore_mem>>)
    %c4_i32 = arith.constant 4 : i32
    %8 = tpu.memref_slice %arg25[%c4_i32] : memref<5x!tpu.dma_semaphore, #tpu.memory_space<semaphore_mem>> -> memref<1x!tpu.dma_semaphore, #tpu.memory_space<semaphore_mem>>
    %9 = tpu.memref_squeeze %8 : memref<1x!tpu.dma_semaphore, #tpu.memory_space<semaphore_mem>> -> memref<!tpu.dma_semaphore, #tpu.memory_space<semaphore_mem>>
    tpu.enqueue_dma source(%arg13 : memref<512x128xbf16, #tpu.memory_space<any>>) target(%arg24 : memref<512x128xbf16, #tpu.memory_space<vmem>>) target_semaphore(%9 : memref<!tpu.dma_semaphore, #tpu.memory_space<semaphore_mem>>)
    %c0 = arith.constant 0 : index
    %c0_0 = arith.constant 0 : index
    %10 = vector.load %arg0[%c0, %c0_0] : memref<64x128xbf16, #tpu.memory_space<vmem>>, vector<64x128xbf16>
    %c0_1 = arith.constant 0 : index
    %c0_2 = arith.constant 0 : index
    %11 = vector.load %arg1[%c0_1, %c0_2] : memref<128x512xbf16, #tpu.memory_space<vmem>>, vector<128x512xbf16>
    %cst = arith.constant dense<0.000000e+00> : vector<64x512xf32>
    %12 = tpu.matmul %10, %11, %cst {dimension_numbers = #tpu.dot_dimension_numbers<[1], [0], [0], [1], [0, 0, 1, 1], [], []>} : vector<64x128xbf16>, vector<128x512xbf16>, vector<64x512xf32> -> vector<64x512xf32>
    %c0_3 = arith.constant 0 : index
    %c0_4 = arith.constant 0 : index
    %13 = vector.load %arg3[%c0_3, %c0_4] : memref<1x512xf32, #tpu.memory_space<vmem>>, vector<1x512xf32>
    %14 = vector.broadcast %13 : vector<1x512xf32> to vector<64x512xf32>
    %15 = arith.addf %12, %14 : vector<64x512xf32>
    %c0_5 = arith.constant 0 : index
    %c0_6 = arith.constant 0 : index
    %16 = vector.load %arg16[%c0_5, %c0_6] : memref<64x512xf32, #tpu.memory_space<vmem>>, vector<64x512xf32>
    tpu.vector_store %arg16[%c0_5, %c0_6], %15 {strides = array<i32>} : memref<64x512xf32, #tpu.memory_space<vmem>>, vector<64x512xf32>,
    %c0_7 = arith.constant 0 : index
    %c0_8 = arith.constant 0 : index
    %17 = vector.load %arg4[%c0_7, %c0_8] : memref<128x512xbf16, #tpu.memory_space<vmem>>, vector<128x512xbf16>
    %cst_9 = arith.constant dense<0.000000e+00> : vector<64x512xf32>
    %18 = tpu.matmul %10, %17, %cst_9 {dimension_numbers = #tpu.dot_dimension_numbers<[1], [0], [0], [1], [0, 0, 1, 1], [], []>} : vector<64x128xbf16>, vector<128x512xbf16>, vector<64x512xf32> -> vector<64x512xf32>
    %c0_10 = arith.constant 0 : index
    %c0_11 = arith.constant 0 : index
    %19 = vector.load %arg6[%c0_10, %c0_11] : memref<1x512xf32, #tpu.memory_space<vmem>>, vector<1x512xf32>
    %20 = vector.broadcast %19 : vector<1x512xf32> to vector<64x512xf32>
    %21 = arith.addf %18, %20 : vector<64x512xf32>
    %c0_12 = arith.constant 0 : index
    %c0_13 = arith.constant 0 : index
    %22 = vector.load %arg17[%c0_12, %c0_13] : memref<64x512xf32, #tpu.memory_space<vmem>>, vector<64x512xf32>
    tpu.vector_store %arg17[%c0_12, %c0_13], %21 {strides = array<i32>} : memref<64x512xf32, #tpu.memory_space<vmem>>, vector<64x512xf32>,
    %cst_14 = arith.constant 0.000000e+00 : f32
    %23 = vector.broadcast %cst_14 : f32 to vector<8x128xf32>
    %cst_15 = arith.constant 0.000000e+00 : f32
    %24 = vector.broadcast %cst_15 : f32 to vector<8x128xf32>
    %cst_16 = arith.constant 0.000000e+00 : f32
    %25 = vector.broadcast %cst_16 : f32 to vector<8x128xf32>
    %cst_17 = arith.constant 0.000000e+00 : f32
    %26 = vector.broadcast %cst_17 : f32 to vector<8x128xf32>
    %c0_18 = arith.constant 0 : index
    %c0_19 = arith.constant 0 : index
    %27 = vector.load %arg16[%c0_18, %c0_19] : memref<64x512xf32, #tpu.memory_space<vmem>>, vector<8x512xf32>
    %28 = arith.truncf %23 : vector<8x128xf32> to vector<8x128xbf16>
    %c0_20 = arith.constant 0 : index
    %c0_21 = arith.constant 0 : index
    %29 = vector.load %arg2[%c0_20, %c0_21] : memref<128x512xbf16, #tpu.memory_space<vmem>>, vector<128x512xbf16>
    %cst_22 = arith.constant dense<0.000000e+00> : vector<8x512xf32>
    %30 = tpu.matmul %28, %29, %cst_22 {dimension_numbers = #tpu.dot_dimension_numbers<[1], [0], [0], [1], [0, 0, 1, 1], [], []>} : vector<8x128xbf16>, vector<128x512xbf16>, vector<8x512xf32> -> vector<8x512xf32>
    %31 = arith.addf %27, %30 : vector<8x512xf32>
    %c56 = arith.constant 56 : index
    %c0_23 = arith.constant 0 : index
    %32 = vector.load %arg17[%c56, %c0_23] : memref<64x512xf32, #tpu.memory_space<vmem>>, vector<8x512xf32>
    %33 = arith.truncf %25 : vector<8x128xf32> to vector<8x128xbf16>
    %c0_24 = arith.constant 0 : index
    %c0_25 = arith.constant 0 : index
    %34 = vector.load %arg5[%c0_24, %c0_25] : memref<128x512xbf16, #tpu.memory_space<vmem>>, vector<128x512xbf16>
    %cst_26 = arith.constant dense<0.000000e+00> : vector<8x512xf32>
    %35 = tpu.matmul %33, %34, %cst_26 {dimension_numbers = #tpu.dot_dimension_numbers<[1], [0], [0], [1], [0, 0, 1, 1], [], []>} : vector<8x128xbf16>, vector<128x512xbf16>, vector<8x512xf32> -> vector<8x512xf32>
    %36 = arith.addf %32, %35 : vector<8x512xf32>
    %37 = vector.extract_strided_slice %31 {offsets = [0, 0], sizes = [8, 256], strides = [1, 1]} : vector<8x512xf32> to vector<8x256xf32>
    %38 = arith.negf %37 : vector<8x256xf32>
    %39 = math.exp %38 : vector<8x256xf32>
    %cst_27 = arith.constant 1.000000e+00 : f32
    %40 = vector.broadcast %cst_27 : f32 to vector<8x256xf32>
    %41 = arith.addf %40, %39 : vector<8x256xf32>
    %42 = arith.divf %40, %41 : vector<8x256xf32>
    %43 = vector.extract_strided_slice %31 {offsets = [0, 256], sizes = [8, 128], strides = [1, 1]} : vector<8x512xf32> to vector<8x128xf32>
    %44 = math.tanh %43 : vector<8x128xf32>
    %45 = vector.extract_strided_slice %31 {offsets = [0, 384], sizes = [8, 128], strides = [1, 1]} : vector<8x512xf32> to vector<8x128xf32>
    %46 = arith.negf %45 : vector<8x128xf32>
    %47 = math.exp %46 : vector<8x128xf32>
    %cst_28 = arith.constant 1.000000e+00 : f32
    %48 = vector.broadcast %cst_28 : f32 to vector<8x128xf32>
    %49 = arith.addf %48, %47 : vector<8x128xf32>
    %50 = arith.divf %48, %49 : vector<8x128xf32>
    %51 = vector.extract_strided_slice %42 {offsets = [0, 128], sizes = [8, 128], strides = [1, 1]} : vector<8x256xf32> to vector<8x128xf32>
    %52 = arith.mulf %51, %24 : vector<8x128xf32>
    %53 = vector.extract_strided_slice %42 {offsets = [0, 0], sizes = [8, 128], strides = [1, 1]} : vector<8x256xf32> to vector<8x128xf32>
    %54 = arith.mulf %53, %44 : vector<8x128xf32>
    %55 = arith.addf %52, %54 : vector<8x128xf32>
    %56 = math.tanh %55 : vector<8x128xf32>
    %57 = arith.mulf %50, %56 : vector<8x128xf32>
    %c0_29 = arith.constant 0 : index
    %c0_30 = arith.constant 0 : index
    %58 = vector.load %arg18[%c0_29, %c0_30] : memref<64x256xf32, #tpu.memory_space<vmem>>, vector<8x128xf32>
    tpu.vector_store %arg18[%c0_29, %c0_30], %57 {strides = array<i32>} : memref<64x256xf32, #tpu.memory_space<vmem>>, vector<8x128xf32>,
    %59 = vector.extract_strided_slice %36 {offsets = [0, 0], sizes = [8, 256], strides = [1, 1]} : vector<8x512xf32> to vector<8x256xf32>
    %60 = arith.negf %59 : vector<8x256xf32>
    %61 = math.exp %60 : vector<8x256xf32>
    %cst_31 = arith.constant 1.000000e+00 : f32
    %62 = vector.broadcast %cst_31 : f32 to vector<8x256xf32>
    %63 = arith.addf %62, %61 : vector<8x256xf32>
    %64 = arith.divf %62, %63 : vector<8x256xf32>
    %65 = vector.extract_strided_slice %36 {offsets = [0, 256], sizes = [8, 128], strides = [1, 1]} : vector<8x512xf32> to vector<8x128xf32>
    %66 = math.tanh %65 : vector<8x128xf32>
    %67 = vector.extract_strided_slice %36 {offsets = [0, 384], sizes = [8, 128], strides = [1, 1]} : vector<8x512xf32> to vector<8x128xf32>
    %68 = arith.negf %67 : vector<8x128xf32>
    %69 = math.exp %68 : vector<8x128xf32>
    %cst_32 = arith.constant 1.000000e+00 : f32
    %70 = vector.broadcast %cst_32 : f32 to vector<8x128xf32>
    %71 = arith.addf %70, %69 : vector<8x128xf32>
    %72 = arith.divf %70, %71 : vector<8x128xf32>
    %73 = vector.extract_strided_slice %64 {offsets = [0, 128], sizes = [8, 128], strides = [1, 1]} : vector<8x256xf32> to vector<8x128xf32>
    %74 = arith.mulf %73, %26 : vector<8x128xf32>
    %75 = vector.extract_strided_slice %64 {offsets = [0, 0], sizes = [8, 128], strides = [1, 1]} : vector<8x256xf32> to vector<8x128xf32>
    %76 = arith.mulf %75, %66 : vector<8x128xf32>
    %77 = arith.addf %74, %76 : vector<8x128xf32>
    %78 = math.tanh %77 : vector<8x128xf32>
    %79 = arith.mulf %72, %78 : vector<8x128xf32>
    %c56_33 = arith.constant 56 : index
    %c128 = arith.constant 128 : index
    %80 = vector.load %arg18[%c56_33, %c128] : memref<64x256xf32, #tpu.memory_space<vmem>>, vector<8x128xf32>
    tpu.vector_store %arg18[%c56_33, %c128], %79 {strides = array<i32>} : memref<64x256xf32, #tpu.memory_space<vmem>>, vector<8x128xf32>,
    %c8 = arith.constant 8 : index
    %c0_34 = arith.constant 0 : index
    %81 = vector.load %arg16[%c8, %c0_34] : memref<64x512xf32, #tpu.memory_space<vmem>>, vector<8x512xf32>
    %82 = arith.truncf %57 : vector<8x128xf32> to vector<8x128xbf16>
    %c0_35 = arith.constant 0 : index
    %c0_36 = arith.constant 0 : index
    %83 = vector.load %arg2[%c0_35, %c0_36] : memref<128x512xbf16, #tpu.memory_space<vmem>>, vector<128x512xbf16>
    %cst_37 = arith.constant dense<0.000000e+00> : vector<8x512xf32>
    %84 = tpu.matmul %82, %83, %cst_37 {dimension_numbers = #tpu.dot_dimension_numbers<[1], [0], [0], [1], [0, 0, 1, 1], [], []>} : vector<8x128xbf16>, vector<128x512xbf16>, vector<8x512xf32> -> vector<8x512xf32>
    %85 = arith.addf %81, %84 : vector<8x512xf32>
    %c48 = arith.constant 48 : index
    %c0_38 = arith.constant 0 : index
    %86 = vector.load %arg17[%c48, %c0_38] : memref<64x512xf32, #tpu.memory_space<vmem>>, vector<8x512xf32>
    %87 = arith.truncf %79 : vector<8x128xf32> to vector<8x128xbf16>
    %c0_39 = arith.constant 0 : index
    %c0_40 = arith.constant 0 : index
    %88 = vector.load %arg5[%c0_39, %c0_40] : memref<128x512xbf16, #tpu.memory_space<vmem>>, vector<128x512xbf16>
    %cst_41 = arith.constant dense<0.000000e+00> : vector<8x512xf32>
    %89 = tpu.matmul %87, %88, %cst_41 {dimension_numbers = #tpu.dot_dimension_numbers<[1], [0], [0], [1], [0, 0, 1, 1], [], []>} : vector<8x128xbf16>, vector<128x512xbf16>, vector<8x512xf32> -> vector<8x512xf32>
    %90 = arith.addf %86, %89 : vector<8x512xf32>
    %91 = vector.extract_strided_slice %85 {offsets = [0, 0], sizes = [8, 256], strides = [1, 1]} : vector<8x512xf32> to vector<8x256xf32>
    %92 = arith.negf %91 : vector<8x256xf32>
    %93 = math.exp %92 : vector<8x256xf32>
    %cst_42 = arith.constant 1.000000e+00 : f32
    %94 = vector.broadcast %cst_42 : f32 to vector<8x256xf32>
    %95 = arith.addf %94, %93 : vector<8x256xf32>
    %96 = arith.divf %94, %95 : vector<8x256xf32>
    %97 = vector.extract_strided_slice %85 {offsets = [0, 256], sizes = [8, 128], strides = [1, 1]} : vector<8x512xf32> to vector<8x128xf32>
    %98 = math.tanh %97 : vector<8x128xf32>
    %99 = vector.extract_strided_slice %85 {offsets = [0, 384], sizes = [8, 128], strides = [1, 1]} : vector<8x512xf32> to vector<8x128xf32>
    %100 = arith.negf %99 : vector<8x128xf32>
    %101 = math.exp %100 : vector<8x128xf32>
    %cst_43 = arith.constant 1.000000e+00 : f32
    %102 = vector.broadcast %cst_43 : f32 to vector<8x128xf32>
    %103 = arith.addf %102, %101 : vector<8x128xf32>
    %104 = arith.divf %102, %103 : vector<8x128xf32>
    %105 = vector.extract_strided_slice %96 {offsets = [0, 128], sizes = [8, 128], strides = [1, 1]} : vector<8x256xf32> to vector<8x128xf32>
    %106 = arith.mulf %105, %55 : vector<8x128xf32>
    %107 = vector.extract_strided_slice %96 {offsets = [0, 0], sizes = [8, 128], strides = [1, 1]} : vector<8x256xf32> to vector<8x128xf32>
    %108 = arith.mulf %107, %98 : vector<8x128xf32>
    %109 = arith.addf %106, %108 : vector<8x128xf32>
    %110 = math.tanh %109 : vector<8x128xf32>
    %111 = arith.mulf %104, %110 : vector<8x128xf32>
    %c8_44 = arith.constant 8 : index
    %c0_45 = arith.constant 0 : index
    %112 = vector.load %arg18[%c8_44, %c0_45] : memref<64x256xf32, #tpu.memory_space<vmem>>, vector<8x128xf32>
    tpu.vector_store %arg18[%c8_44, %c0_45], %111 {strides = array<i32>} : memref<64x256xf32, #tpu.memory_space<vmem>>, vector<8x128xf32>,
    %113 = vector.extract_strided_slice %90 {offsets = [0, 0], sizes = [8, 256], strides = [1, 1]} : vector<8x512xf32> to vector<8x256xf32>
    %114 = arith.negf %113 : vector<8x256xf32>
    %115 = math.exp %114 : vector<8x256xf32>
    %cst_46 = arith.constant 1.000000e+00 : f32
    %116 = vector.broadcast %cst_46 : f32 to vector<8x256xf32>
    %117 = arith.addf %116, %115 : vector<8x256xf32>
    %118 = arith.divf %116, %117 : vector<8x256xf32>
    %119 = vector.extract_strided_slice %90 {offsets = [0, 256], sizes = [8, 128], strides = [1, 1]} : vector<8x512xf32> to vector<8x128xf32>
    %120 = math.tanh %119 : vector<8x128xf32>
    %121 = vector.extract_strided_slice %90 {offsets = [0, 384], sizes = [8, 128], strides = [1, 1]} : vector<8x512xf32> to vector<8x128xf32>
    %122 = arith.negf %121 : vector<8x128xf32>
    %123 = math.exp %122 : vector<8x128xf32>
    %cst_47 = arith.constant 1.000000e+00 : f32
    %124 = vector.broadcast %cst_47 : f32 to vector<8x128xf32>
    %125 = arith.addf %124, %123 : vector<8x128xf32>
    %126 = arith.divf %124, %125 : vector<8x128xf32>
    %127 = vector.extract_strided_slice %118 {offsets = [0, 128], sizes = [8, 128], strides = [1, 1]} : vector<8x256xf32> to vector<8x128xf32>
    %128 = arith.mulf %127, %77 : vector<8x128xf32>
    %129 = vector.extract_strided_slice %118 {offsets = [0, 0], sizes = [8, 128], strides = [1, 1]} : vector<8x256xf32> to vector<8x128xf32>
    %130 = arith.mulf %129, %120 : vector<8x128xf32>
    %131 = arith.addf %128, %130 : vector<8x128xf32>
    %132 = math.tanh %131 : vector<8x128xf32>
    %133 = arith.mulf %126, %132 : vector<8x128xf32>
    %c48_48 = arith.constant 48 : index
    %c128_49 = arith.constant 128 : index
    %134 = vector.load %arg18[%c48_48, %c128_49] : memref<64x256xf32, #tpu.memory_space<vmem>>, vector<8x128xf32>
    tpu.vector_store %arg18[%c48_48, %c128_49], %133 {strides = array<i32>} : memref<64x256xf32, #tpu.memory_space<vmem>>, vector<8x128xf32>,
    %c16 = arith.constant 16 : index
    %c0_50 = arith.constant 0 : index
    %135 = vector.load %arg16[%c16, %c0_50] : memref<64x512xf32, #tpu.memory_space<vmem>>, vector<8x512xf32>
    %136 = arith.truncf %111 : vector<8x128xf32> to vector<8x128xbf16>
    %c0_51 = arith.constant 0 : index
    %c0_52 = arith.constant 0 : index
    %137 = vector.load %arg2[%c0_51, %c0_52] : memref<128x512xbf16, #tpu.memory_space<vmem>>, vector<128x512xbf16>
    %cst_53 = arith.constant dense<0.000000e+00> : vector<8x512xf32>
    %138 = tpu.matmul %136, %137, %cst_53 {dimension_numbers = #tpu.dot_dimension_numbers<[1], [0], [0], [1], [0, 0, 1, 1], [], []>} : vector<8x128xbf16>, vector<128x512xbf16>, vector<8x512xf32> -> vector<8x512xf32>
    %139 = arith.addf %135, %138 : vector<8x512xf32>
    %c40 = arith.constant 40 : index
    %c0_54 = arith.constant 0 : index
    %140 = vector.load %arg17[%c40, %c0_54] : memref<64x512xf32, #tpu.memory_space<vmem>>, vector<8x512xf32>
    %141 = arith.truncf %133 : vector<8x128xf32> to vector<8x128xbf16>
    %c0_55 = arith.constant 0 : index
    %c0_56 = arith.constant 0 : index
    %142 = vector.load %arg5[%c0_55, %c0_56] : memref<128x512xbf16, #tpu.memory_space<vmem>>, vector<128x512xbf16>
    %cst_57 = arith.constant dense<0.000000e+00> : vector<8x512xf32>
    %143 = tpu.matmul %141, %142, %cst_57 {dimension_numbers = #tpu.dot_dimension_numbers<[1], [0], [0], [1], [0, 0, 1, 1], [], []>} : vector<8x128xbf16>, vector<128x512xbf16>, vector<8x512xf32> -> vector<8x512xf32>
    %144 = arith.addf %140, %143 : vector<8x512xf32>
    %145 = vector.extract_strided_slice %139 {offsets = [0, 0], sizes = [8, 256], strides = [1, 1]} : vector<8x512xf32> to vector<8x256xf32>
    %146 = arith.negf %145 : vector<8x256xf32>
    %147 = math.exp %146 : vector<8x256xf32>
    %cst_58 = arith.constant 1.000000e+00 : f32
    %148 = vector.broadcast %cst_58 : f32 to vector<8x256xf32>
    %149 = arith.addf %148, %147 : vector<8x256xf32>
    %150 = arith.divf %148, %149 : vector<8x256xf32>
    %151 = vector.extract_strided_slice %139 {offsets = [0, 256], sizes = [8, 128], strides = [1, 1]} : vector<8x512xf32> to vector<8x128xf32>
    %152 = math.tanh %151 : vector<8x128xf32>
    %153 = vector.extract_strided_slice %139 {offsets = [0, 384], sizes = [8, 128], strides = [1, 1]} : vector<8x512xf32> to vector<8x128xf32>
    %154 = arith.negf %153 : vector<8x128xf32>
    %155 = math.exp %154 : vector<8x128xf32>
    %cst_59 = arith.constant 1.000000e+00 : f32
    %156 = vector.broadcast %cst_59 : f32 to vector<8x128xf32>
    %157 = arith.addf %156, %155 : vector<8x128xf32>
    %158 = arith.divf %156, %157 : vector<8x128xf32>
    %159 = vector.extract_strided_slice %150 {offsets = [0, 128], sizes = [8, 128], strides = [1, 1]} : vector<8x256xf32> to vector<8x128xf32>
    %160 = arith.mulf %159, %109 : vector<8x128xf32>
    %161 = vector.extract_strided_slice %150 {offsets = [0, 0], sizes = [8, 128], strides = [1, 1]} : vector<8x256xf32> to vector<8x128xf32>
    %162 = arith.mulf %161, %152 : vector<8x128xf32>
    %163 = arith.addf %160, %162 : vector<8x128xf32>
    %164 = math.tanh %163 : vector<8x128xf32>
    %165 = arith.mulf %158, %164 : vector<8x128xf32>
    %c16_60 = arith.constant 16 : index
    %c0_61 = arith.constant 0 : index
    %166 = vector.load %arg18[%c16_60, %c0_61] : memref<64x256xf32, #tpu.memory_space<vmem>>, vector<8x128xf32>
    tpu.vector_store %arg18[%c16_60, %c0_61], %165 {strides = array<i32>} : memref<64x256xf32, #tpu.memory_space<vmem>>, vector<8x128xf32>,
    %167 = vector.extract_strided_slice %144 {offsets = [0, 0], sizes = [8, 256], strides = [1, 1]} : vector<8x512xf32> to vector<8x256xf32>
    %168 = arith.negf %167 : vector<8x256xf32>
    %169 = math.exp %168 : vector<8x256xf32>
    %cst_62 = arith.constant 1.000000e+00 : f32
    %170 = vector.broadcast %cst_62 : f32 to vector<8x256xf32>
    %171 = arith.addf %170, %169 : vector<8x256xf32>
    %172 = arith.divf %170, %171 : vector<8x256xf32>
    %173 = vector.extract_strided_slice %144 {offsets = [0, 256], sizes = [8, 128], strides = [1, 1]} : vector<8x512xf32> to vector<8x128xf32>
    %174 = math.tanh %173 : vector<8x128xf32>
    %175 = vector.extract_strided_slice %144 {offsets = [0, 384], sizes = [8, 128], strides = [1, 1]} : vector<8x512xf32> to vector<8x128xf32>
    %176 = arith.negf %175 : vector<8x128xf32>
    %177 = math.exp %176 : vector<8x128xf32>
    %cst_63 = arith.constant 1.000000e+00 : f32
    %178 = vector.broadcast %cst_63 : f32 to vector<8x128xf32>
    %179 = arith.addf %178, %177 : vector<8x128xf32>
    %180 = arith.divf %178, %179 : vector<8x128xf32>
    %181 = vector.extract_strided_slice %172 {offsets = [0, 128], sizes = [8, 128], strides = [1, 1]} : vector<8x256xf32> to vector<8x128xf32>
    %182 = arith.mulf %181, %131 : vector<8x128xf32>
    %183 = vector.extract_strided_slice %172 {offsets = [0, 0], sizes = [8, 128], strides = [1, 1]} : vector<8x256xf32> to vector<8x128xf32>
    %184 = arith.mulf %183, %174 : vector<8x128xf32>
    %185 = arith.addf %182, %184 : vector<8x128xf32>
    %186 = math.tanh %185 : vector<8x128xf32>
    %187 = arith.mulf %180, %186 : vector<8x128xf32>
    %c40_64 = arith.constant 40 : index
    %c128_65 = arith.constant 128 : index
    %188 = vector.load %arg18[%c40_64, %c128_65] : memref<64x256xf32, #tpu.memory_space<vmem>>, vector<8x128xf32>
    tpu.vector_store %arg18[%c40_64, %c128_65], %187 {strides = array<i32>} : memref<64x256xf32, #tpu.memory_space<vmem>>, vector<8x128xf32>,
    %c24 = arith.constant 24 : index
    %c0_66 = arith.constant 0 : index
    %189 = vector.load %arg16[%c24, %c0_66] : memref<64x512xf32, #tpu.memory_space<vmem>>, vector<8x512xf32>
    %190 = arith.truncf %165 : vector<8x128xf32> to vector<8x128xbf16>
    %c0_67 = arith.constant 0 : index
    %c0_68 = arith.constant 0 : index
    %191 = vector.load %arg2[%c0_67, %c0_68] : memref<128x512xbf16, #tpu.memory_space<vmem>>, vector<128x512xbf16>
    %cst_69 = arith.constant dense<0.000000e+00> : vector<8x512xf32>
    %192 = tpu.matmul %190, %191, %cst_69 {dimension_numbers = #tpu.dot_dimension_numbers<[1], [0], [0], [1], [0, 0, 1, 1], [], []>} : vector<8x128xbf16>, vector<128x512xbf16>, vector<8x512xf32> -> vector<8x512xf32>
    %193 = arith.addf %189, %192 : vector<8x512xf32>
    %c32 = arith.constant 32 : index
    %c0_70 = arith.constant 0 : index
    %194 = vector.load %arg17[%c32, %c0_70] : memref<64x512xf32, #tpu.memory_space<vmem>>, vector<8x512xf32>
    %195 = arith.truncf %187 : vector<8x128xf32> to vector<8x128xbf16>
    %c0_71 = arith.constant 0 : index
    %c0_72 = arith.constant 0 : index
    %196 = vector.load %arg5[%c0_71, %c0_72] : memref<128x512xbf16, #tpu.memory_space<vmem>>, vector<128x512xbf16>
    %cst_73 = arith.constant dense<0.000000e+00> : vector<8x512xf32>
    %197 = tpu.matmul %195, %196, %cst_73 {dimension_numbers = #tpu.dot_dimension_numbers<[1], [0], [0], [1], [0, 0, 1, 1], [], []>} : vector<8x128xbf16>, vector<128x512xbf16>, vector<8x512xf32> -> vector<8x512xf32>
    %198 = arith.addf %194, %197 : vector<8x512xf32>
    %199 = vector.extract_strided_slice %193 {offsets = [0, 0], sizes = [8, 256], strides = [1, 1]} : vector<8x512xf32> to vector<8x256xf32>
    %200 = arith.negf %199 : vector<8x256xf32>
    %201 = math.exp %200 : vector<8x256xf32>
    %cst_74 = arith.constant 1.000000e+00 : f32
    %202 = vector.broadcast %cst_74 : f32 to vector<8x256xf32>
    %203 = arith.addf %202, %201 : vector<8x256xf32>
    %204 = arith.divf %202, %203 : vector<8x256xf32>
    %205 = vector.extract_strided_slice %193 {offsets = [0, 256], sizes = [8, 128], strides = [1, 1]} : vector<8x512xf32> to vector<8x128xf32>
    %206 = math.tanh %205 : vector<8x128xf32>
    %207 = vector.extract_strided_slice %193 {offsets = [0, 384], sizes = [8, 128], strides = [1, 1]} : vector<8x512xf32> to vector<8x128xf32>
    %208 = arith.negf %207 : vector<8x128xf32>
    %209 = math.exp %208 : vector<8x128xf32>
    %cst_75 = arith.constant 1.000000e+00 : f32
    %210 = vector.broadcast %cst_75 : f32 to vector<8x128xf32>
    %211 = arith.addf %210, %209 : vector<8x128xf32>
    %212 = arith.divf %210, %211 : vector<8x128xf32>
    %213 = vector.extract_strided_slice %204 {offsets = [0, 128], sizes = [8, 128], strides = [1, 1]} : vector<8x256xf32> to vector<8x128xf32>
    %214 = arith.mulf %213, %163 : vector<8x128xf32>
    %215 = vector.extract_strided_slice %204 {offsets = [0, 0], sizes = [8, 128], strides = [1, 1]} : vector<8x256xf32> to vector<8x128xf32>
    %216 = arith.mulf %215, %206 : vector<8x128xf32>
    %217 = arith.addf %214, %216 : vector<8x128xf32>
    %218 = math.tanh %217 : vector<8x128xf32>
    %219 = arith.mulf %212, %218 : vector<8x128xf32>
    %c24_76 = arith.constant 24 : index
    %c0_77 = arith.constant 0 : index
    %220 = vector.load %arg18[%c24_76, %c0_77] : memref<64x256xf32, #tpu.memory_space<vmem>>, vector<8x128xf32>
    tpu.vector_store %arg18[%c24_76, %c0_77], %219 {strides = array<i32>} : memref<64x256xf32, #tpu.memory_space<vmem>>, vector<8x128xf32>,
    %221 = vector.extract_strided_slice %198 {offsets = [0, 0], sizes = [8, 256], strides = [1, 1]} : vector<8x512xf32> to vector<8x256xf32>
    %222 = arith.negf %221 : vector<8x256xf32>
    %223 = math.exp %222 : vector<8x256xf32>
    %cst_78 = arith.constant 1.000000e+00 : f32
    %224 = vector.broadcast %cst_78 : f32 to vector<8x256xf32>
    %225 = arith.addf %224, %223 : vector<8x256xf32>
    %226 = arith.divf %224, %225 : vector<8x256xf32>
    %227 = vector.extract_strided_slice %198 {offsets = [0, 256], sizes = [8, 128], strides = [1, 1]} : vector<8x512xf32> to vector<8x128xf32>
    %228 = math.tanh %227 : vector<8x128xf32>
    %229 = vector.extract_strided_slice %198 {offsets = [0, 384], sizes = [8, 128], strides = [1, 1]} : vector<8x512xf32> to vector<8x128xf32>
    %230 = arith.negf %229 : vector<8x128xf32>
    %231 = math.exp %230 : vector<8x128xf32>
    %cst_79 = arith.constant 1.000000e+00 : f32
    %232 = vector.broadcast %cst_79 : f32 to vector<8x128xf32>
    %233 = arith.addf %232, %231 : vector<8x128xf32>
    %234 = arith.divf %232, %233 : vector<8x128xf32>
    %235 = vector.extract_strided_slice %226 {offsets = [0, 128], sizes = [8, 128], strides = [1, 1]} : vector<8x256xf32> to vector<8x128xf32>
    %236 = arith.mulf %235, %185 : vector<8x128xf32>
    %237 = vector.extract_strided_slice %226 {offsets = [0, 0], sizes = [8, 128], strides = [1, 1]} : vector<8x256xf32> to vector<8x128xf32>
    %238 = arith.mulf %237, %228 : vector<8x128xf32>
    %239 = arith.addf %236, %238 : vector<8x128xf32>
    %240 = math.tanh %239 : vector<8x128xf32>
    %241 = arith.mulf %234, %240 : vector<8x128xf32>
    %c32_80 = arith.constant 32 : index
    %c128_81 = arith.constant 128 : index
    %242 = vector.load %arg18[%c32_80, %c128_81] : memref<64x256xf32, #tpu.memory_space<vmem>>, vector<8x128xf32>
    tpu.vector_store %arg18[%c32_80, %c128_81], %241 {strides = array<i32>} : memref<64x256xf32, #tpu.memory_space<vmem>>, vector<8x128xf32>,
    %c32_82 = arith.constant 32 : index
    %c0_83 = arith.constant 0 : index
    %243 = vector.load %arg16[%c32_82, %c0_83] : memref<64x512xf32, #tpu.memory_space<vmem>>, vector<8x512xf32>
    %244 = arith.truncf %219 : vector<8x128xf32> to vector<8x128xbf16>
    %c0_84 = arith.constant 0 : index
    %c0_85 = arith.constant 0 : index
    %245 = vector.load %arg2[%c0_84, %c0_85] : memref<128x512xbf16, #tpu.memory_space<vmem>>, vector<128x512xbf16>
    %cst_86 = arith.constant dense<0.000000e+00> : vector<8x512xf32>
    %246 = tpu.matmul %244, %245, %cst_86 {dimension_numbers = #tpu.dot_dimension_numbers<[1], [0], [0], [1], [0, 0, 1, 1], [], []>} : vector<8x128xbf16>, vector<128x512xbf16>, vector<8x512xf32> -> vector<8x512xf32>
    %247 = arith.addf %243, %246 : vector<8x512xf32>
    %c24_87 = arith.constant 24 : index
    %c0_88 = arith.constant 0 : index
    %248 = vector.load %arg17[%c24_87, %c0_88] : memref<64x512xf32, #tpu.memory_space<vmem>>, vector<8x512xf32>
    %249 = arith.truncf %241 : vector<8x128xf32> to vector<8x128xbf16>
    %c0_89 = arith.constant 0 : index
    %c0_90 = arith.constant 0 : index
    %250 = vector.load %arg5[%c0_89, %c0_90] : memref<128x512xbf16, #tpu.memory_space<vmem>>, vector<128x512xbf16>
    %cst_91 = arith.constant dense<0.000000e+00> : vector<8x512xf32>
    %251 = tpu.matmul %249, %250, %cst_91 {dimension_numbers = #tpu.dot_dimension_numbers<[1], [0], [0], [1], [0, 0, 1, 1], [], []>} : vector<8x128xbf16>, vector<128x512xbf16>, vector<8x512xf32> -> vector<8x512xf32>
    %252 = arith.addf %248, %251 : vector<8x512xf32>
    %253 = vector.extract_strided_slice %247 {offsets = [0, 0], sizes = [8, 256], strides = [1, 1]} : vector<8x512xf32> to vector<8x256xf32>
    %254 = arith.negf %253 : vector<8x256xf32>
    %255 = math.exp %254 : vector<8x256xf32>
    %cst_92 = arith.constant 1.000000e+00 : f32
    %256 = vector.broadcast %cst_92 : f32 to vector<8x256xf32>
    %257 = arith.addf %256, %255 : vector<8x256xf32>
    %258 = arith.divf %256, %257 : vector<8x256xf32>
    %259 = vector.extract_strided_slice %247 {offsets = [0, 256], sizes = [8, 128], strides = [1, 1]} : vector<8x512xf32> to vector<8x128xf32>
    %260 = math.tanh %259 : vector<8x128xf32>
    %261 = vector.extract_strided_slice %247 {offsets = [0, 384], sizes = [8, 128], strides = [1, 1]} : vector<8x512xf32> to vector<8x128xf32>
    %262 = arith.negf %261 : vector<8x128xf32>
    %263 = math.exp %262 : vector<8x128xf32>
    %cst_93 = arith.constant 1.000000e+00 : f32
    %264 = vector.broadcast %cst_93 : f32 to vector<8x128xf32>
    %265 = arith.addf %264, %263 : vector<8x128xf32>
    %266 = arith.divf %264, %265 : vector<8x128xf32>
    %267 = vector.extract_strided_slice %258 {offsets = [0, 128], sizes = [8, 128], strides = [1, 1]} : vector<8x256xf32> to vector<8x128xf32>
    %268 = arith.mulf %267, %217 : vector<8x128xf32>
    %269 = vector.extract_strided_slice %258 {offsets = [0, 0], sizes = [8, 128], strides = [1, 1]} : vector<8x256xf32> to vector<8x128xf32>
    %270 = arith.mulf %269, %260 : vector<8x128xf32>
    %271 = arith.addf %268, %270 : vector<8x128xf32>
    %272 = math.tanh %271 : vector<8x128xf32>
    %273 = arith.mulf %266, %272 : vector<8x128xf32>
    %c32_94 = arith.constant 32 : index
    %c0_95 = arith.constant 0 : index
    %274 = vector.load %arg18[%c32_94, %c0_95] : memref<64x256xf32, #tpu.memory_space<vmem>>, vector<8x128xf32>
    tpu.vector_store %arg18[%c32_94, %c0_95], %273 {strides = array<i32>} : memref<64x256xf32, #tpu.memory_space<vmem>>, vector<8x128xf32>,
    %275 = vector.extract_strided_slice %252 {offsets = [0, 0], sizes = [8, 256], strides = [1, 1]} : vector<8x512xf32> to vector<8x256xf32>
    %276 = arith.negf %275 : vector<8x256xf32>
    %277 = math.exp %276 : vector<8x256xf32>
    %cst_96 = arith.constant 1.000000e+00 : f32
    %278 = vector.broadcast %cst_96 : f32 to vector<8x256xf32>
    %279 = arith.addf %278, %277 : vector<8x256xf32>
    %280 = arith.divf %278, %279 : vector<8x256xf32>
    %281 = vector.extract_strided_slice %252 {offsets = [0, 256], sizes = [8, 128], strides = [1, 1]} : vector<8x512xf32> to vector<8x128xf32>
    %282 = math.tanh %281 : vector<8x128xf32>
    %283 = vector.extract_strided_slice %252 {offsets = [0, 384], sizes = [8, 128], strides = [1, 1]} : vector<8x512xf32> to vector<8x128xf32>
    %284 = arith.negf %283 : vector<8x128xf32>
    %285 = math.exp %284 : vector<8x128xf32>
    %cst_97 = arith.constant 1.000000e+00 : f32
    %286 = vector.broadcast %cst_97 : f32 to vector<8x128xf32>
    %287 = arith.addf %286, %285 : vector<8x128xf32>
    %288 = arith.divf %286, %287 : vector<8x128xf32>
    %289 = vector.extract_strided_slice %280 {offsets = [0, 128], sizes = [8, 128], strides = [1, 1]} : vector<8x256xf32> to vector<8x128xf32>
    %290 = arith.mulf %289, %239 : vector<8x128xf32>
    %291 = vector.extract_strided_slice %280 {offsets = [0, 0], sizes = [8, 128], strides = [1, 1]} : vector<8x256xf32> to vector<8x128xf32>
    %292 = arith.mulf %291, %282 : vector<8x128xf32>
    %293 = arith.addf %290, %292 : vector<8x128xf32>
    %294 = math.tanh %293 : vector<8x128xf32>
    %295 = arith.mulf %288, %294 : vector<8x128xf32>
    %c24_98 = arith.constant 24 : index
    %c128_99 = arith.constant 128 : index
    %296 = vector.load %arg18[%c24_98, %c128_99] : memref<64x256xf32, #tpu.memory_space<vmem>>, vector<8x128xf32>
    tpu.vector_store %arg18[%c24_98, %c128_99], %295 {strides = array<i32>} : memref<64x256xf32, #tpu.memory_space<vmem>>, vector<8x128xf32>,
    %c40_100 = arith.constant 40 : index
    %c0_101 = arith.constant 0 : index
    %297 = vector.load %arg16[%c40_100, %c0_101] : memref<64x512xf32, #tpu.memory_space<vmem>>, vector<8x512xf32>
    %298 = arith.truncf %273 : vector<8x128xf32> to vector<8x128xbf16>
    %c0_102 = arith.constant 0 : index
    %c0_103 = arith.constant 0 : index
    %299 = vector.load %arg2[%c0_102, %c0_103] : memref<128x512xbf16, #tpu.memory_space<vmem>>, vector<128x512xbf16>
    %cst_104 = arith.constant dense<0.000000e+00> : vector<8x512xf32>
    %300 = tpu.matmul %298, %299, %cst_104 {dimension_numbers = #tpu.dot_dimension_numbers<[1], [0], [0], [1], [0, 0, 1, 1], [], []>} : vector<8x128xbf16>, vector<128x512xbf16>, vector<8x512xf32> -> vector<8x512xf32>
    %301 = arith.addf %297, %300 : vector<8x512xf32>
    %c16_105 = arith.constant 16 : index
    %c0_106 = arith.constant 0 : index
    %302 = vector.load %arg17[%c16_105, %c0_106] : memref<64x512xf32, #tpu.memory_space<vmem>>, vector<8x512xf32>
    %303 = arith.truncf %295 : vector<8x128xf32> to vector<8x128xbf16>
    %c0_107 = arith.constant 0 : index
    %c0_108 = arith.constant 0 : index
    %304 = vector.load %arg5[%c0_107, %c0_108] : memref<128x512xbf16, #tpu.memory_space<vmem>>, vector<128x512xbf16>
    %cst_109 = arith.constant dense<0.000000e+00> : vector<8x512xf32>
    %305 = tpu.matmul %303, %304, %cst_109 {dimension_numbers = #tpu.dot_dimension_numbers<[1], [0], [0], [1], [0, 0, 1, 1], [], []>} : vector<8x128xbf16>, vector<128x512xbf16>, vector<8x512xf32> -> vector<8x512xf32>
    %306 = arith.addf %302, %305 : vector<8x512xf32>
    %307 = vector.extract_strided_slice %301 {offsets = [0, 0], sizes = [8, 256], strides = [1, 1]} : vector<8x512xf32> to vector<8x256xf32>
    %308 = arith.negf %307 : vector<8x256xf32>
    %309 = math.exp %308 : vector<8x256xf32>
    %cst_110 = arith.constant 1.000000e+00 : f32
    %310 = vector.broadcast %cst_110 : f32 to vector<8x256xf32>
    %311 = arith.addf %310, %309 : vector<8x256xf32>
    %312 = arith.divf %310, %311 : vector<8x256xf32>
    %313 = vector.extract_strided_slice %301 {offsets = [0, 256], sizes = [8, 128], strides = [1, 1]} : vector<8x512xf32> to vector<8x128xf32>
    %314 = math.tanh %313 : vector<8x128xf32>
    %315 = vector.extract_strided_slice %301 {offsets = [0, 384], sizes = [8, 128], strides = [1, 1]} : vector<8x512xf32> to vector<8x128xf32>
    %316 = arith.negf %315 : vector<8x128xf32>
    %317 = math.exp %316 : vector<8x128xf32>
    %cst_111 = arith.constant 1.000000e+00 : f32
    %318 = vector.broadcast %cst_111 : f32 to vector<8x128xf32>
    %319 = arith.addf %318, %317 : vector<8x128xf32>
    %320 = arith.divf %318, %319 : vector<8x128xf32>
    %321 = vector.extract_strided_slice %312 {offsets = [0, 128], sizes = [8, 128], strides = [1, 1]} : vector<8x256xf32> to vector<8x128xf32>
    %322 = arith.mulf %321, %271 : vector<8x128xf32>
    %323 = vector.extract_strided_slice %312 {offsets = [0, 0], sizes = [8, 128], strides = [1, 1]} : vector<8x256xf32> to vector<8x128xf32>
    %324 = arith.mulf %323, %314 : vector<8x128xf32>
    %325 = arith.addf %322, %324 : vector<8x128xf32>
    %326 = math.tanh %325 : vector<8x128xf32>
    %327 = arith.mulf %320, %326 : vector<8x128xf32>
    %c40_112 = arith.constant 40 : index
    %c0_113 = arith.constant 0 : index
    %328 = vector.load %arg18[%c40_112, %c0_113] : memref<64x256xf32, #tpu.memory_space<vmem>>, vector<8x128xf32>
    tpu.vector_store %arg18[%c40_112, %c0_113], %327 {strides = array<i32>} : memref<64x256xf32, #tpu.memory_space<vmem>>, vector<8x128xf32>,
    %329 = vector.extract_strided_slice %306 {offsets = [0, 0], sizes = [8, 256], strides = [1, 1]} : vector<8x512xf32> to vector<8x256xf32>
    %330 = arith.negf %329 : vector<8x256xf32>
    %331 = math.exp %330 : vector<8x256xf32>
    %cst_114 = arith.constant 1.000000e+00 : f32
    %332 = vector.broadcast %cst_114 : f32 to vector<8x256xf32>
    %333 = arith.addf %332, %331 : vector<8x256xf32>
    %334 = arith.divf %332, %333 : vector<8x256xf32>
    %335 = vector.extract_strided_slice %306 {offsets = [0, 256], sizes = [8, 128], strides = [1, 1]} : vector<8x512xf32> to vector<8x128xf32>
    %336 = math.tanh %335 : vector<8x128xf32>
    %337 = vector.extract_strided_slice %306 {offsets = [0, 384], sizes = [8, 128], strides = [1, 1]} : vector<8x512xf32> to vector<8x128xf32>
    %338 = arith.negf %337 : vector<8x128xf32>
    %339 = math.exp %338 : vector<8x128xf32>
    %cst_115 = arith.constant 1.000000e+00 : f32
    %340 = vector.broadcast %cst_115 : f32 to vector<8x128xf32>
    %341 = arith.addf %340, %339 : vector<8x128xf32>
    %342 = arith.divf %340, %341 : vector<8x128xf32>
    %343 = vector.extract_strided_slice %334 {offsets = [0, 128], sizes = [8, 128], strides = [1, 1]} : vector<8x256xf32> to vector<8x128xf32>
    %344 = arith.mulf %343, %293 : vector<8x128xf32>
    %345 = vector.extract_strided_slice %334 {offsets = [0, 0], sizes = [8, 128], strides = [1, 1]} : vector<8x256xf32> to vector<8x128xf32>
    %346 = arith.mulf %345, %336 : vector<8x128xf32>
    %347 = arith.addf %344, %346 : vector<8x128xf32>
    %348 = math.tanh %347 : vector<8x128xf32>
    %349 = arith.mulf %342, %348 : vector<8x128xf32>
    %c16_116 = arith.constant 16 : index
    %c128_117 = arith.constant 128 : index
    %350 = vector.load %arg18[%c16_116, %c128_117] : memref<64x256xf32, #tpu.memory_space<vmem>>, vector<8x128xf32>
    tpu.vector_store %arg18[%c16_116, %c128_117], %349 {strides = array<i32>} : memref<64x256xf32, #tpu.memory_space<vmem>>, vector<8x128xf32>,
    %c48_118 = arith.constant 48 : index
    %c0_119 = arith.constant 0 : index
    %351 = vector.load %arg16[%c48_118, %c0_119] : memref<64x512xf32, #tpu.memory_space<vmem>>, vector<8x512xf32>
    %352 = arith.truncf %327 : vector<8x128xf32> to vector<8x128xbf16>
    %c0_120 = arith.constant 0 : index
    %c0_121 = arith.constant 0 : index
    %353 = vector.load %arg2[%c0_120, %c0_121] : memref<128x512xbf16, #tpu.memory_space<vmem>>, vector<128x512xbf16>
    %cst_122 = arith.constant dense<0.000000e+00> : vector<8x512xf32>
    %354 = tpu.matmul %352, %353, %cst_122 {dimension_numbers = #tpu.dot_dimension_numbers<[1], [0], [0], [1], [0, 0, 1, 1], [], []>} : vector<8x128xbf16>, vector<128x512xbf16>, vector<8x512xf32> -> vector<8x512xf32>
    %355 = arith.addf %351, %354 : vector<8x512xf32>
    %c8_123 = arith.constant 8 : index
    %c0_124 = arith.constant 0 : index
    %356 = vector.load %arg17[%c8_123, %c0_124] : memref<64x512xf32, #tpu.memory_space<vmem>>, vector<8x512xf32>
    %357 = arith.truncf %349 : vector<8x128xf32> to vector<8x128xbf16>
    %c0_125 = arith.constant 0 : index
    %c0_126 = arith.constant 0 : index
    %358 = vector.load %arg5[%c0_125, %c0_126] : memref<128x512xbf16, #tpu.memory_space<vmem>>, vector<128x512xbf16>
    %cst_127 = arith.constant dense<0.000000e+00> : vector<8x512xf32>
    %359 = tpu.matmul %357, %358, %cst_127 {dimension_numbers = #tpu.dot_dimension_numbers<[1], [0], [0], [1], [0, 0, 1, 1], [], []>} : vector<8x128xbf16>, vector<128x512xbf16>, vector<8x512xf32> -> vector<8x512xf32>
    %360 = arith.addf %356, %359 : vector<8x512xf32>
    %361 = vector.extract_strided_slice %355 {offsets = [0, 0], sizes = [8, 256], strides = [1, 1]} : vector<8x512xf32> to vector<8x256xf32>
    %362 = arith.negf %361 : vector<8x256xf32>
    %363 = math.exp %362 : vector<8x256xf32>
    %cst_128 = arith.constant 1.000000e+00 : f32
    %364 = vector.broadcast %cst_128 : f32 to vector<8x256xf32>
    %365 = arith.addf %364, %363 : vector<8x256xf32>
    %366 = arith.divf %364, %365 : vector<8x256xf32>
    %367 = vector.extract_strided_slice %355 {offsets = [0, 256], sizes = [8, 128], strides = [1, 1]} : vector<8x512xf32> to vector<8x128xf32>
    %368 = math.tanh %367 : vector<8x128xf32>
    %369 = vector.extract_strided_slice %355 {offsets = [0, 384], sizes = [8, 128], strides = [1, 1]} : vector<8x512xf32> to vector<8x128xf32>
    %370 = arith.negf %369 : vector<8x128xf32>
    %371 = math.exp %370 : vector<8x128xf32>
    %cst_129 = arith.constant 1.000000e+00 : f32
    %372 = vector.broadcast %cst_129 : f32 to vector<8x128xf32>
    %373 = arith.addf %372, %371 : vector<8x128xf32>
    %374 = arith.divf %372, %373 : vector<8x128xf32>
    %375 = vector.extract_strided_slice %366 {offsets = [0, 128], sizes = [8, 128], strides = [1, 1]} : vector<8x256xf32> to vector<8x128xf32>
    %376 = arith.mulf %375, %325 : vector<8x128xf32>
    %377 = vector.extract_strided_slice %366 {offsets = [0, 0], sizes = [8, 128], strides = [1, 1]} : vector<8x256xf32> to vector<8x128xf32>
    %378 = arith.mulf %377, %368 : vector<8x128xf32>
    %379 = arith.addf %376, %378 : vector<8x128xf32>
    %380 = math.tanh %379 : vector<8x128xf32>
    %381 = arith.mulf %374, %380 : vector<8x128xf32>
    %c48_130 = arith.constant 48 : index
    %c0_131 = arith.constant 0 : index
    %382 = vector.load %arg18[%c48_130, %c0_131] : memref<64x256xf32, #tpu.memory_space<vmem>>, vector<8x128xf32>
    tpu.vector_store %arg18[%c48_130, %c0_131], %381 {strides = array<i32>} : memref<64x256xf32, #tpu.memory_space<vmem>>, vector<8x128xf32>,
    %383 = vector.extract_strided_slice %360 {offsets = [0, 0], sizes = [8, 256], strides = [1, 1]} : vector<8x512xf32> to vector<8x256xf32>
    %384 = arith.negf %383 : vector<8x256xf32>
    %385 = math.exp %384 : vector<8x256xf32>
    %cst_132 = arith.constant 1.000000e+00 : f32
    %386 = vector.broadcast %cst_132 : f32 to vector<8x256xf32>
    %387 = arith.addf %386, %385 : vector<8x256xf32>
    %388 = arith.divf %386, %387 : vector<8x256xf32>
    %389 = vector.extract_strided_slice %360 {offsets = [0, 256], sizes = [8, 128], strides = [1, 1]} : vector<8x512xf32> to vector<8x128xf32>
    %390 = math.tanh %389 : vector<8x128xf32>
    %391 = vector.extract_strided_slice %360 {offsets = [0, 384], sizes = [8, 128], strides = [1, 1]} : vector<8x512xf32> to vector<8x128xf32>
    %392 = arith.negf %391 : vector<8x128xf32>
    %393 = math.exp %392 : vector<8x128xf32>
    %cst_133 = arith.constant 1.000000e+00 : f32
    %394 = vector.broadcast %cst_133 : f32 to vector<8x128xf32>
    %395 = arith.addf %394, %393 : vector<8x128xf32>
    %396 = arith.divf %394, %395 : vector<8x128xf32>
    %397 = vector.extract_strided_slice %388 {offsets = [0, 128], sizes = [8, 128], strides = [1, 1]} : vector<8x256xf32> to vector<8x128xf32>
    %398 = arith.mulf %397, %347 : vector<8x128xf32>
    %399 = vector.extract_strided_slice %388 {offsets = [0, 0], sizes = [8, 128], strides = [1, 1]} : vector<8x256xf32> to vector<8x128xf32>
    %400 = arith.mulf %399, %390 : vector<8x128xf32>
    %401 = arith.addf %398, %400 : vector<8x128xf32>
    %402 = math.tanh %401 : vector<8x128xf32>
    %403 = arith.mulf %396, %402 : vector<8x128xf32>
    %c8_134 = arith.constant 8 : index
    %c128_135 = arith.constant 128 : index
    %404 = vector.load %arg18[%c8_134, %c128_135] : memref<64x256xf32, #tpu.memory_space<vmem>>, vector<8x128xf32>
    tpu.vector_store %arg18[%c8_134, %c128_135], %403 {strides = array<i32>} : memref<64x256xf32, #tpu.memory_space<vmem>>, vector<8x128xf32>,
    %c56_136 = arith.constant 56 : index
    %c0_137 = arith.constant 0 : index
    %405 = vector.load %arg16[%c56_136, %c0_137] : memref<64x512xf32, #tpu.memory_space<vmem>>, vector<8x512xf32>
    %406 = arith.truncf %381 : vector<8x128xf32> to vector<8x128xbf16>
    %c0_138 = arith.constant 0 : index
    %c0_139 = arith.constant 0 : index
    %407 = vector.load %arg2[%c0_138, %c0_139] : memref<128x512xbf16, #tpu.memory_space<vmem>>, vector<128x512xbf16>
    %cst_140 = arith.constant dense<0.000000e+00> : vector<8x512xf32>
    %408 = tpu.matmul %406, %407, %cst_140 {dimension_numbers = #tpu.dot_dimension_numbers<[1], [0], [0], [1], [0, 0, 1, 1], [], []>} : vector<8x128xbf16>, vector<128x512xbf16>, vector<8x512xf32> -> vector<8x512xf32>
    %409 = arith.addf %405, %408 : vector<8x512xf32>
    %c0_141 = arith.constant 0 : index
    %c0_142 = arith.constant 0 : index
    %410 = vector.load %arg17[%c0_141, %c0_142] : memref<64x512xf32, #tpu.memory_space<vmem>>, vector<8x512xf32>
    %411 = arith.truncf %403 : vector<8x128xf32> to vector<8x128xbf16>
    %c0_143 = arith.constant 0 : index
    %c0_144 = arith.constant 0 : index
    %412 = vector.load %arg5[%c0_143, %c0_144] : memref<128x512xbf16, #tpu.memory_space<vmem>>, vector<128x512xbf16>
    %cst_145 = arith.constant dense<0.000000e+00> : vector<8x512xf32>
    %413 = tpu.matmul %411, %412, %cst_145 {dimension_numbers = #tpu.dot_dimension_numbers<[1], [0], [0], [1], [0, 0, 1, 1], [], []>} : vector<8x128xbf16>, vector<128x512xbf16>, vector<8x512xf32> -> vector<8x512xf32>
    %414 = arith.addf %410, %413 : vector<8x512xf32>
    %415 = vector.extract_strided_slice %409 {offsets = [0, 0], sizes = [8, 256], strides = [1, 1]} : vector<8x512xf32> to vector<8x256xf32>
    %416 = arith.negf %415 : vector<8x256xf32>
    %417 = math.exp %416 : vector<8x256xf32>
    %cst_146 = arith.constant 1.000000e+00 : f32
    %418 = vector.broadcast %cst_146 : f32 to vector<8x256xf32>
    %419 = arith.addf %418, %417 : vector<8x256xf32>
    %420 = arith.divf %418, %419 : vector<8x256xf32>
    %421 = vector.extract_strided_slice %409 {offsets = [0, 256], sizes = [8, 128], strides = [1, 1]} : vector<8x512xf32> to vector<8x128xf32>
    %422 = math.tanh %421 : vector<8x128xf32>
    %423 = vector.extract_strided_slice %409 {offsets = [0, 384], sizes = [8, 128], strides = [1, 1]} : vector<8x512xf32> to vector<8x128xf32>
    %424 = arith.negf %423 : vector<8x128xf32>
    %425 = math.exp %424 : vector<8x128xf32>
    %cst_147 = arith.constant 1.000000e+00 : f32
    %426 = vector.broadcast %cst_147 : f32 to vector<8x128xf32>
    %427 = arith.addf %426, %425 : vector<8x128xf32>
    %428 = arith.divf %426, %427 : vector<8x128xf32>
    %429 = vector.extract_strided_slice %420 {offsets = [0, 128], sizes = [8, 128], strides = [1, 1]} : vector<8x256xf32> to vector<8x128xf32>
    %430 = arith.mulf %429, %379 : vector<8x128xf32>
    %431 = vector.extract_strided_slice %420 {offsets = [0, 0], sizes = [8, 128], strides = [1, 1]} : vector<8x256xf32> to vector<8x128xf32>
    %432 = arith.mulf %431, %422 : vector<8x128xf32>
    %433 = arith.addf %430, %432 : vector<8x128xf32>
    %434 = math.tanh %433 : vector<8x128xf32>
    %435 = arith.mulf %428, %434 : vector<8x128xf32>
    %c56_148 = arith.constant 56 : index
    %c0_149 = arith.constant 0 : index
    %436 = vector.load %arg18[%c56_148, %c0_149] : memref<64x256xf32, #tpu.memory_space<vmem>>, vector<8x128xf32>
    tpu.vector_store %arg18[%c56_148, %c0_149], %435 {strides = array<i32>} : memref<64x256xf32, #tpu.memory_space<vmem>>, vector<8x128xf32>,
    %437 = vector.extract_strided_slice %414 {offsets = [0, 0], sizes = [8, 256], strides = [1, 1]} : vector<8x512xf32> to vector<8x256xf32>
    %438 = arith.negf %437 : vector<8x256xf32>
    %439 = math.exp %438 : vector<8x256xf32>
    %cst_150 = arith.constant 1.000000e+00 : f32
    %440 = vector.broadcast %cst_150 : f32 to vector<8x256xf32>
    %441 = arith.addf %440, %439 : vector<8x256xf32>
    %442 = arith.divf %440, %441 : vector<8x256xf32>
    %443 = vector.extract_strided_slice %414 {offsets = [0, 256], sizes = [8, 128], strides = [1, 1]} : vector<8x512xf32> to vector<8x128xf32>
    %444 = math.tanh %443 : vector<8x128xf32>
    %445 = vector.extract_strided_slice %414 {offsets = [0, 384], sizes = [8, 128], strides = [1, 1]} : vector<8x512xf32> to vector<8x128xf32>
    %446 = arith.negf %445 : vector<8x128xf32>
    %447 = math.exp %446 : vector<8x128xf32>
    %cst_151 = arith.constant 1.000000e+00 : f32
    %448 = vector.broadcast %cst_151 : f32 to vector<8x128xf32>
    %449 = arith.addf %448, %447 : vector<8x128xf32>
    %450 = arith.divf %448, %449 : vector<8x128xf32>
    %451 = vector.extract_strided_slice %442 {offsets = [0, 128], sizes = [8, 128], strides = [1, 1]} : vector<8x256xf32> to vector<8x128xf32>
    %452 = arith.mulf %451, %401 : vector<8x128xf32>
    %453 = vector.extract_strided_slice %442 {offsets = [0, 0], sizes = [8, 128], strides = [1, 1]} : vector<8x256xf32> to vector<8x128xf32>
    %454 = arith.mulf %453, %444 : vector<8x128xf32>
    %455 = arith.addf %452, %454 : vector<8x128xf32>
    %456 = math.tanh %455 : vector<8x128xf32>
    %457 = arith.mulf %450, %456 : vector<8x128xf32>
    %c0_152 = arith.constant 0 : index
    %c128_153 = arith.constant 128 : index
    %458 = vector.load %arg18[%c0_152, %c128_153] : memref<64x256xf32, #tpu.memory_space<vmem>>, vector<8x128xf32>
    tpu.vector_store %arg18[%c0_152, %c128_153], %457 {strides = array<i32>} : memref<64x256xf32, #tpu.memory_space<vmem>>, vector<8x128xf32>,
    %c0_i32_154 = arith.constant 0 : i32
    %459 = tpu.memref_slice %arg25[%c0_i32_154] : memref<5x!tpu.dma_semaphore, #tpu.memory_space<semaphore_mem>> -> memref<1x!tpu.dma_semaphore, #tpu.memory_space<semaphore_mem>>
    %460 = tpu.memref_squeeze %459 : memref<1x!tpu.dma_semaphore, #tpu.memory_space<semaphore_mem>> -> memref<!tpu.dma_semaphore, #tpu.memory_space<semaphore_mem>>
    tpu.wait_dma2 semaphore(%460 : memref<!tpu.dma_semaphore, #tpu.memory_space<semaphore_mem>>) src(%arg7 : memref<256x512xbf16, #tpu.memory_space<any>>) dst(%arg20 : memref<256x512xbf16, #tpu.memory_space<vmem>>)
    %c1_i32_155 = arith.constant 1 : i32
    %461 = tpu.memref_slice %arg25[%c1_i32_155] : memref<5x!tpu.dma_semaphore, #tpu.memory_space<semaphore_mem>> -> memref<1x!tpu.dma_semaphore, #tpu.memory_space<semaphore_mem>>
    %462 = tpu.memref_squeeze %461 : memref<1x!tpu.dma_semaphore, #tpu.memory_space<semaphore_mem>> -> memref<!tpu.dma_semaphore, #tpu.memory_space<semaphore_mem>>
    tpu.wait_dma2 semaphore(%462 : memref<!tpu.dma_semaphore, #tpu.memory_space<semaphore_mem>>) src(%arg8 : memref<128x512xbf16, #tpu.memory_space<any>>) dst(%arg21 : memref<128x512xbf16, #tpu.memory_space<vmem>>)
    %c2_i32_156 = arith.constant 2 : i32
    %463 = tpu.memref_slice %arg25[%c2_i32_156] : memref<5x!tpu.dma_semaphore, #tpu.memory_space<semaphore_mem>> -> memref<1x!tpu.dma_semaphore, #tpu.memory_space<semaphore_mem>>
    %464 = tpu.memref_squeeze %463 : memref<1x!tpu.dma_semaphore, #tpu.memory_space<semaphore_mem>> -> memref<!tpu.dma_semaphore, #tpu.memory_space<semaphore_mem>>
    tpu.wait_dma2 semaphore(%464 : memref<!tpu.dma_semaphore, #tpu.memory_space<semaphore_mem>>) src(%arg10 : memref<256x512xbf16, #tpu.memory_space<any>>) dst(%arg22 : memref<256x512xbf16, #tpu.memory_space<vmem>>)
    %c3_i32_157 = arith.constant 3 : i32
    %465 = tpu.memref_slice %arg25[%c3_i32_157] : memref<5x!tpu.dma_semaphore, #tpu.memory_space<semaphore_mem>> -> memref<1x!tpu.dma_semaphore, #tpu.memory_space<semaphore_mem>>
    %466 = tpu.memref_squeeze %465 : memref<1x!tpu.dma_semaphore, #tpu.memory_space<semaphore_mem>> -> memref<!tpu.dma_semaphore, #tpu.memory_space<semaphore_mem>>
    tpu.wait_dma2 semaphore(%466 : memref<!tpu.dma_semaphore, #tpu.memory_space<semaphore_mem>>) src(%arg11 : memref<128x512xbf16, #tpu.memory_space<any>>) dst(%arg23 : memref<128x512xbf16, #tpu.memory_space<vmem>>)
    %c0_158 = arith.constant 0 : index
    %c0_159 = arith.constant 0 : index
    %467 = vector.load %arg18[%c0_158, %c0_159] : memref<64x256xf32, #tpu.memory_space<vmem>>, vector<64x256xf32>
    %468 = arith.truncf %467 : vector<64x256xf32> to vector<64x256xbf16>
    %c0_160 = arith.constant 0 : index
    %c0_161 = arith.constant 0 : index
    %469 = vector.load %arg20[%c0_160, %c0_161] : memref<256x512xbf16, #tpu.memory_space<vmem>>, vector<256x512xbf16>
    %cst_162 = arith.constant dense<0.000000e+00> : vector<64x512xf32>
    %470 = tpu.matmul %468, %469, %cst_162 {dimension_numbers = #tpu.dot_dimension_numbers<[1], [0], [0], [1], [0, 0, 1, 1], [], []>} : vector<64x256xbf16>, vector<256x512xbf16>, vector<64x512xf32> -> vector<64x512xf32>
    %c0_163 = arith.constant 0 : index
    %c0_164 = arith.constant 0 : index
    %471 = vector.load %arg9[%c0_163, %c0_164] : memref<1x512xf32, #tpu.memory_space<vmem>>, vector<1x512xf32>
    %472 = vector.broadcast %471 : vector<1x512xf32> to vector<64x512xf32>
    %473 = arith.addf %470, %472 : vector<64x512xf32>
    %c0_165 = arith.constant 0 : index
    %c0_166 = arith.constant 0 : index
    %474 = vector.load %arg16[%c0_165, %c0_166] : memref<64x512xf32, #tpu.memory_space<vmem>>, vector<64x512xf32>
    tpu.vector_store %arg16[%c0_165, %c0_166], %473 {strides = array<i32>} : memref<64x512xf32, #tpu.memory_space<vmem>>, vector<64x512xf32>,
    %c0_167 = arith.constant 0 : index
    %c0_168 = arith.constant 0 : index
    %475 = vector.load %arg22[%c0_167, %c0_168] : memref<256x512xbf16, #tpu.memory_space<vmem>>, vector<256x512xbf16>
    %cst_169 = arith.constant dense<0.000000e+00> : vector<64x512xf32>
    %476 = tpu.matmul %468, %475, %cst_169 {dimension_numbers = #tpu.dot_dimension_numbers<[1], [0], [0], [1], [0, 0, 1, 1], [], []>} : vector<64x256xbf16>, vector<256x512xbf16>, vector<64x512xf32> -> vector<64x512xf32>
    %c0_170 = arith.constant 0 : index
    %c0_171 = arith.constant 0 : index
    %477 = vector.load %arg12[%c0_170, %c0_171] : memref<1x512xf32, #tpu.memory_space<vmem>>, vector<1x512xf32>
    %478 = vector.broadcast %477 : vector<1x512xf32> to vector<64x512xf32>
    %479 = arith.addf %476, %478 : vector<64x512xf32>
    %c0_172 = arith.constant 0 : index
    %c0_173 = arith.constant 0 : index
    %480 = vector.load %arg17[%c0_172, %c0_173] : memref<64x512xf32, #tpu.memory_space<vmem>>, vector<64x512xf32>
    tpu.vector_store %arg17[%c0_172, %c0_173], %479 {strides = array<i32>} : memref<64x512xf32, #tpu.memory_space<vmem>>, vector<64x512xf32>,
    %cst_174 = arith.constant 0.000000e+00 : f32
    %481 = vector.broadcast %cst_174 : f32 to vector<8x128xf32>
    %cst_175 = arith.constant 0.000000e+00 : f32
    %482 = vector.broadcast %cst_175 : f32 to vector<8x128xf32>
    %cst_176 = arith.constant 0.000000e+00 : f32
    %483 = vector.broadcast %cst_176 : f32 to vector<8x128xf32>
    %cst_177 = arith.constant 0.000000e+00 : f32
    %484 = vector.broadcast %cst_177 : f32 to vector<8x128xf32>
    %c0_178 = arith.constant 0 : index
    %c0_179 = arith.constant 0 : index
    %485 = vector.load %arg16[%c0_178, %c0_179] : memref<64x512xf32, #tpu.memory_space<vmem>>, vector<8x512xf32>
    %486 = arith.truncf %481 : vector<8x128xf32> to vector<8x128xbf16>
    %c0_180 = arith.constant 0 : index
    %c0_181 = arith.constant 0 : index
    %487 = vector.load %arg21[%c0_180, %c0_181] : memref<128x512xbf16, #tpu.memory_space<vmem>>, vector<128x512xbf16>
    %cst_182 = arith.constant dense<0.000000e+00> : vector<8x512xf32>
    %488 = tpu.matmul %486, %487, %cst_182 {dimension_numbers = #tpu.dot_dimension_numbers<[1], [0], [0], [1], [0, 0, 1, 1], [], []>} : vector<8x128xbf16>, vector<128x512xbf16>, vector<8x512xf32> -> vector<8x512xf32>
    %489 = arith.addf %485, %488 : vector<8x512xf32>
    %c56_183 = arith.constant 56 : index
    %c0_184 = arith.constant 0 : index
    %490 = vector.load %arg17[%c56_183, %c0_184] : memref<64x512xf32, #tpu.memory_space<vmem>>, vector<8x512xf32>
    %491 = arith.truncf %483 : vector<8x128xf32> to vector<8x128xbf16>
    %c0_185 = arith.constant 0 : index
    %c0_186 = arith.constant 0 : index
    %492 = vector.load %arg23[%c0_185, %c0_186] : memref<128x512xbf16, #tpu.memory_space<vmem>>, vector<128x512xbf16>
    %cst_187 = arith.constant dense<0.000000e+00> : vector<8x512xf32>
    %493 = tpu.matmul %491, %492, %cst_187 {dimension_numbers = #tpu.dot_dimension_numbers<[1], [0], [0], [1], [0, 0, 1, 1], [], []>} : vector<8x128xbf16>, vector<128x512xbf16>, vector<8x512xf32> -> vector<8x512xf32>
    %494 = arith.addf %490, %493 : vector<8x512xf32>
    %495 = vector.extract_strided_slice %489 {offsets = [0, 0], sizes = [8, 256], strides = [1, 1]} : vector<8x512xf32> to vector<8x256xf32>
    %496 = arith.negf %495 : vector<8x256xf32>
    %497 = math.exp %496 : vector<8x256xf32>
    %cst_188 = arith.constant 1.000000e+00 : f32
    %498 = vector.broadcast %cst_188 : f32 to vector<8x256xf32>
    %499 = arith.addf %498, %497 : vector<8x256xf32>
    %500 = arith.divf %498, %499 : vector<8x256xf32>
    %501 = vector.extract_strided_slice %489 {offsets = [0, 256], sizes = [8, 128], strides = [1, 1]} : vector<8x512xf32> to vector<8x128xf32>
    %502 = math.tanh %501 : vector<8x128xf32>
    %503 = vector.extract_strided_slice %489 {offsets = [0, 384], sizes = [8, 128], strides = [1, 1]} : vector<8x512xf32> to vector<8x128xf32>
    %504 = arith.negf %503 : vector<8x128xf32>
    %505 = math.exp %504 : vector<8x128xf32>
    %cst_189 = arith.constant 1.000000e+00 : f32
    %506 = vector.broadcast %cst_189 : f32 to vector<8x128xf32>
    %507 = arith.addf %506, %505 : vector<8x128xf32>
    %508 = arith.divf %506, %507 : vector<8x128xf32>
    %509 = vector.extract_strided_slice %500 {offsets = [0, 128], sizes = [8, 128], strides = [1, 1]} : vector<8x256xf32> to vector<8x128xf32>
    %510 = arith.mulf %509, %482 : vector<8x128xf32>
    %511 = vector.extract_strided_slice %500 {offsets = [0, 0], sizes = [8, 128], strides = [1, 1]} : vector<8x256xf32> to vector<8x128xf32>
    %512 = arith.mulf %511, %502 : vector<8x128xf32>
    %513 = arith.addf %510, %512 : vector<8x128xf32>
    %514 = math.tanh %513 : vector<8x128xf32>
    %515 = arith.mulf %508, %514 : vector<8x128xf32>
    %c0_190 = arith.constant 0 : index
    %c0_191 = arith.constant 0 : index
    %516 = vector.load %arg19[%c0_190, %c0_191] : memref<64x256xf32, #tpu.memory_space<vmem>>, vector<8x128xf32>
    tpu.vector_store %arg19[%c0_190, %c0_191], %515 {strides = array<i32>} : memref<64x256xf32, #tpu.memory_space<vmem>>, vector<8x128xf32>,
    %517 = vector.extract_strided_slice %494 {offsets = [0, 0], sizes = [8, 256], strides = [1, 1]} : vector<8x512xf32> to vector<8x256xf32>
    %518 = arith.negf %517 : vector<8x256xf32>
    %519 = math.exp %518 : vector<8x256xf32>
    %cst_192 = arith.constant 1.000000e+00 : f32
    %520 = vector.broadcast %cst_192 : f32 to vector<8x256xf32>
    %521 = arith.addf %520, %519 : vector<8x256xf32>
    %522 = arith.divf %520, %521 : vector<8x256xf32>
    %523 = vector.extract_strided_slice %494 {offsets = [0, 256], sizes = [8, 128], strides = [1, 1]} : vector<8x512xf32> to vector<8x128xf32>
    %524 = math.tanh %523 : vector<8x128xf32>
    %525 = vector.extract_strided_slice %494 {offsets = [0, 384], sizes = [8, 128], strides = [1, 1]} : vector<8x512xf32> to vector<8x128xf32>
    %526 = arith.negf %525 : vector<8x128xf32>
    %527 = math.exp %526 : vector<8x128xf32>
    %cst_193 = arith.constant 1.000000e+00 : f32
    %528 = vector.broadcast %cst_193 : f32 to vector<8x128xf32>
    %529 = arith.addf %528, %527 : vector<8x128xf32>
    %530 = arith.divf %528, %529 : vector<8x128xf32>
    %531 = vector.extract_strided_slice %522 {offsets = [0, 128], sizes = [8, 128], strides = [1, 1]} : vector<8x256xf32> to vector<8x128xf32>
    %532 = arith.mulf %531, %484 : vector<8x128xf32>
    %533 = vector.extract_strided_slice %522 {offsets = [0, 0], sizes = [8, 128], strides = [1, 1]} : vector<8x256xf32> to vector<8x128xf32>
    %534 = arith.mulf %533, %524 : vector<8x128xf32>
    %535 = arith.addf %532, %534 : vector<8x128xf32>
    %536 = math.tanh %535 : vector<8x128xf32>
    %537 = arith.mulf %530, %536 : vector<8x128xf32>
    %c56_194 = arith.constant 56 : index
    %c128_195 = arith.constant 128 : index
    %538 = vector.load %arg19[%c56_194, %c128_195] : memref<64x256xf32, #tpu.memory_space<vmem>>, vector<8x128xf32>
    tpu.vector_store %arg19[%c56_194, %c128_195], %537 {strides = array<i32>} : memref<64x256xf32, #tpu.memory_space<vmem>>, vector<8x128xf32>,
    %c8_196 = arith.constant 8 : index
    %c0_197 = arith.constant 0 : index
    %539 = vector.load %arg16[%c8_196, %c0_197] : memref<64x512xf32, #tpu.memory_space<vmem>>, vector<8x512xf32>
    %540 = arith.truncf %515 : vector<8x128xf32> to vector<8x128xbf16>
    %c0_198 = arith.constant 0 : index
    %c0_199 = arith.constant 0 : index
    %541 = vector.load %arg21[%c0_198, %c0_199] : memref<128x512xbf16, #tpu.memory_space<vmem>>, vector<128x512xbf16>
    %cst_200 = arith.constant dense<0.000000e+00> : vector<8x512xf32>
    %542 = tpu.matmul %540, %541, %cst_200 {dimension_numbers = #tpu.dot_dimension_numbers<[1], [0], [0], [1], [0, 0, 1, 1], [], []>} : vector<8x128xbf16>, vector<128x512xbf16>, vector<8x512xf32> -> vector<8x512xf32>
    %543 = arith.addf %539, %542 : vector<8x512xf32>
    %c48_201 = arith.constant 48 : index
    %c0_202 = arith.constant 0 : index
    %544 = vector.load %arg17[%c48_201, %c0_202] : memref<64x512xf32, #tpu.memory_space<vmem>>, vector<8x512xf32>
    %545 = arith.truncf %537 : vector<8x128xf32> to vector<8x128xbf16>
    %c0_203 = arith.constant 0 : index
    %c0_204 = arith.constant 0 : index
    %546 = vector.load %arg23[%c0_203, %c0_204] : memref<128x512xbf16, #tpu.memory_space<vmem>>, vector<128x512xbf16>
    %cst_205 = arith.constant dense<0.000000e+00> : vector<8x512xf32>
    %547 = tpu.matmul %545, %546, %cst_205 {dimension_numbers = #tpu.dot_dimension_numbers<[1], [0], [0], [1], [0, 0, 1, 1], [], []>} : vector<8x128xbf16>, vector<128x512xbf16>, vector<8x512xf32> -> vector<8x512xf32>
    %548 = arith.addf %544, %547 : vector<8x512xf32>
    %549 = vector.extract_strided_slice %543 {offsets = [0, 0], sizes = [8, 256], strides = [1, 1]} : vector<8x512xf32> to vector<8x256xf32>
    %550 = arith.negf %549 : vector<8x256xf32>
    %551 = math.exp %550 : vector<8x256xf32>
    %cst_206 = arith.constant 1.000000e+00 : f32
    %552 = vector.broadcast %cst_206 : f32 to vector<8x256xf32>
    %553 = arith.addf %552, %551 : vector<8x256xf32>
    %554 = arith.divf %552, %553 : vector<8x256xf32>
    %555 = vector.extract_strided_slice %543 {offsets = [0, 256], sizes = [8, 128], strides = [1, 1]} : vector<8x512xf32> to vector<8x128xf32>
    %556 = math.tanh %555 : vector<8x128xf32>
    %557 = vector.extract_strided_slice %543 {offsets = [0, 384], sizes = [8, 128], strides = [1, 1]} : vector<8x512xf32> to vector<8x128xf32>
    %558 = arith.negf %557 : vector<8x128xf32>
    %559 = math.exp %558 : vector<8x128xf32>
    %cst_207 = arith.constant 1.000000e+00 : f32
    %560 = vector.broadcast %cst_207 : f32 to vector<8x128xf32>
    %561 = arith.addf %560, %559 : vector<8x128xf32>
    %562 = arith.divf %560, %561 : vector<8x128xf32>
    %563 = vector.extract_strided_slice %554 {offsets = [0, 128], sizes = [8, 128], strides = [1, 1]} : vector<8x256xf32> to vector<8x128xf32>
    %564 = arith.mulf %563, %513 : vector<8x128xf32>
    %565 = vector.extract_strided_slice %554 {offsets = [0, 0], sizes = [8, 128], strides = [1, 1]} : vector<8x256xf32> to vector<8x128xf32>
    %566 = arith.mulf %565, %556 : vector<8x128xf32>
    %567 = arith.addf %564, %566 : vector<8x128xf32>
    %568 = math.tanh %567 : vector<8x128xf32>
    %569 = arith.mulf %562, %568 : vector<8x128xf32>
    %c8_208 = arith.constant 8 : index
    %c0_209 = arith.constant 0 : index
    %570 = vector.load %arg19[%c8_208, %c0_209] : memref<64x256xf32, #tpu.memory_space<vmem>>, vector<8x128xf32>
    tpu.vector_store %arg19[%c8_208, %c0_209], %569 {strides = array<i32>} : memref<64x256xf32, #tpu.memory_space<vmem>>, vector<8x128xf32>,
    %571 = vector.extract_strided_slice %548 {offsets = [0, 0], sizes = [8, 256], strides = [1, 1]} : vector<8x512xf32> to vector<8x256xf32>
    %572 = arith.negf %571 : vector<8x256xf32>
    %573 = math.exp %572 : vector<8x256xf32>
    %cst_210 = arith.constant 1.000000e+00 : f32
    %574 = vector.broadcast %cst_210 : f32 to vector<8x256xf32>
    %575 = arith.addf %574, %573 : vector<8x256xf32>
    %576 = arith.divf %574, %575 : vector<8x256xf32>
    %577 = vector.extract_strided_slice %548 {offsets = [0, 256], sizes = [8, 128], strides = [1, 1]} : vector<8x512xf32> to vector<8x128xf32>
    %578 = math.tanh %577 : vector<8x128xf32>
    %579 = vector.extract_strided_slice %548 {offsets = [0, 384], sizes = [8, 128], strides = [1, 1]} : vector<8x512xf32> to vector<8x128xf32>
    %580 = arith.negf %579 : vector<8x128xf32>
    %581 = math.exp %580 : vector<8x128xf32>
    %cst_211 = arith.constant 1.000000e+00 : f32
    %582 = vector.broadcast %cst_211 : f32 to vector<8x128xf32>
    %583 = arith.addf %582, %581 : vector<8x128xf32>
    %584 = arith.divf %582, %583 : vector<8x128xf32>
    %585 = vector.extract_strided_slice %576 {offsets = [0, 128], sizes = [8, 128], strides = [1, 1]} : vector<8x256xf32> to vector<8x128xf32>
    %586 = arith.mulf %585, %535 : vector<8x128xf32>
    %587 = vector.extract_strided_slice %576 {offsets = [0, 0], sizes = [8, 128], strides = [1, 1]} : vector<8x256xf32> to vector<8x128xf32>
    %588 = arith.mulf %587, %578 : vector<8x128xf32>
    %589 = arith.addf %586, %588 : vector<8x128xf32>
    %590 = math.tanh %589 : vector<8x128xf32>
    %591 = arith.mulf %584, %590 : vector<8x128xf32>
    %c48_212 = arith.constant 48 : index
    %c128_213 = arith.constant 128 : index
    %592 = vector.load %arg19[%c48_212, %c128_213] : memref<64x256xf32, #tpu.memory_space<vmem>>, vector<8x128xf32>
    tpu.vector_store %arg19[%c48_212, %c128_213], %591 {strides = array<i32>} : memref<64x256xf32, #tpu.memory_space<vmem>>, vector<8x128xf32>,
    %c16_214 = arith.constant 16 : index
    %c0_215 = arith.constant 0 : index
    %593 = vector.load %arg16[%c16_214, %c0_215] : memref<64x512xf32, #tpu.memory_space<vmem>>, vector<8x512xf32>
    %594 = arith.truncf %569 : vector<8x128xf32> to vector<8x128xbf16>
    %c0_216 = arith.constant 0 : index
    %c0_217 = arith.constant 0 : index
    %595 = vector.load %arg21[%c0_216, %c0_217] : memref<128x512xbf16, #tpu.memory_space<vmem>>, vector<128x512xbf16>
    %cst_218 = arith.constant dense<0.000000e+00> : vector<8x512xf32>
    %596 = tpu.matmul %594, %595, %cst_218 {dimension_numbers = #tpu.dot_dimension_numbers<[1], [0], [0], [1], [0, 0, 1, 1], [], []>} : vector<8x128xbf16>, vector<128x512xbf16>, vector<8x512xf32> -> vector<8x512xf32>
    %597 = arith.addf %593, %596 : vector<8x512xf32>
    %c40_219 = arith.constant 40 : index
    %c0_220 = arith.constant 0 : index
    %598 = vector.load %arg17[%c40_219, %c0_220] : memref<64x512xf32, #tpu.memory_space<vmem>>, vector<8x512xf32>
    %599 = arith.truncf %591 : vector<8x128xf32> to vector<8x128xbf16>
    %c0_221 = arith.constant 0 : index
    %c0_222 = arith.constant 0 : index
    %600 = vector.load %arg23[%c0_221, %c0_222] : memref<128x512xbf16, #tpu.memory_space<vmem>>, vector<128x512xbf16>
    %cst_223 = arith.constant dense<0.000000e+00> : vector<8x512xf32>
    %601 = tpu.matmul %599, %600, %cst_223 {dimension_numbers = #tpu.dot_dimension_numbers<[1], [0], [0], [1], [0, 0, 1, 1], [], []>} : vector<8x128xbf16>, vector<128x512xbf16>, vector<8x512xf32> -> vector<8x512xf32>
    %602 = arith.addf %598, %601 : vector<8x512xf32>
    %603 = vector.extract_strided_slice %597 {offsets = [0, 0], sizes = [8, 256], strides = [1, 1]} : vector<8x512xf32> to vector<8x256xf32>
    %604 = arith.negf %603 : vector<8x256xf32>
    %605 = math.exp %604 : vector<8x256xf32>
    %cst_224 = arith.constant 1.000000e+00 : f32
    %606 = vector.broadcast %cst_224 : f32 to vector<8x256xf32>
    %607 = arith.addf %606, %605 : vector<8x256xf32>
    %608 = arith.divf %606, %607 : vector<8x256xf32>
    %609 = vector.extract_strided_slice %597 {offsets = [0, 256], sizes = [8, 128], strides = [1, 1]} : vector<8x512xf32> to vector<8x128xf32>
    %610 = math.tanh %609 : vector<8x128xf32>
    %611 = vector.extract_strided_slice %597 {offsets = [0, 384], sizes = [8, 128], strides = [1, 1]} : vector<8x512xf32> to vector<8x128xf32>
    %612 = arith.negf %611 : vector<8x128xf32>
    %613 = math.exp %612 : vector<8x128xf32>
    %cst_225 = arith.constant 1.000000e+00 : f32
    %614 = vector.broadcast %cst_225 : f32 to vector<8x128xf32>
    %615 = arith.addf %614, %613 : vector<8x128xf32>
    %616 = arith.divf %614, %615 : vector<8x128xf32>
    %617 = vector.extract_strided_slice %608 {offsets = [0, 128], sizes = [8, 128], strides = [1, 1]} : vector<8x256xf32> to vector<8x128xf32>
    %618 = arith.mulf %617, %567 : vector<8x128xf32>
    %619 = vector.extract_strided_slice %608 {offsets = [0, 0], sizes = [8, 128], strides = [1, 1]} : vector<8x256xf32> to vector<8x128xf32>
    %620 = arith.mulf %619, %610 : vector<8x128xf32>
    %621 = arith.addf %618, %620 : vector<8x128xf32>
    %622 = math.tanh %621 : vector<8x128xf32>
    %623 = arith.mulf %616, %622 : vector<8x128xf32>
    %c16_226 = arith.constant 16 : index
    %c0_227 = arith.constant 0 : index
    %624 = vector.load %arg19[%c16_226, %c0_227] : memref<64x256xf32, #tpu.memory_space<vmem>>, vector<8x128xf32>
    tpu.vector_store %arg19[%c16_226, %c0_227], %623 {strides = array<i32>} : memref<64x256xf32, #tpu.memory_space<vmem>>, vector<8x128xf32>,
    %625 = vector.extract_strided_slice %602 {offsets = [0, 0], sizes = [8, 256], strides = [1, 1]} : vector<8x512xf32> to vector<8x256xf32>
    %626 = arith.negf %625 : vector<8x256xf32>
    %627 = math.exp %626 : vector<8x256xf32>
    %cst_228 = arith.constant 1.000000e+00 : f32
    %628 = vector.broadcast %cst_228 : f32 to vector<8x256xf32>
    %629 = arith.addf %628, %627 : vector<8x256xf32>
    %630 = arith.divf %628, %629 : vector<8x256xf32>
    %631 = vector.extract_strided_slice %602 {offsets = [0, 256], sizes = [8, 128], strides = [1, 1]} : vector<8x512xf32> to vector<8x128xf32>
    %632 = math.tanh %631 : vector<8x128xf32>
    %633 = vector.extract_strided_slice %602 {offsets = [0, 384], sizes = [8, 128], strides = [1, 1]} : vector<8x512xf32> to vector<8x128xf32>
    %634 = arith.negf %633 : vector<8x128xf32>
    %635 = math.exp %634 : vector<8x128xf32>
    %cst_229 = arith.constant 1.000000e+00 : f32
    %636 = vector.broadcast %cst_229 : f32 to vector<8x128xf32>
    %637 = arith.addf %636, %635 : vector<8x128xf32>
    %638 = arith.divf %636, %637 : vector<8x128xf32>
    %639 = vector.extract_strided_slice %630 {offsets = [0, 128], sizes = [8, 128], strides = [1, 1]} : vector<8x256xf32> to vector<8x128xf32>
    %640 = arith.mulf %639, %589 : vector<8x128xf32>
    %641 = vector.extract_strided_slice %630 {offsets = [0, 0], sizes = [8, 128], strides = [1, 1]} : vector<8x256xf32> to vector<8x128xf32>
    %642 = arith.mulf %641, %632 : vector<8x128xf32>
    %643 = arith.addf %640, %642 : vector<8x128xf32>
    %644 = math.tanh %643 : vector<8x128xf32>
    %645 = arith.mulf %638, %644 : vector<8x128xf32>
    %c40_230 = arith.constant 40 : index
    %c128_231 = arith.constant 128 : index
    %646 = vector.load %arg19[%c40_230, %c128_231] : memref<64x256xf32, #tpu.memory_space<vmem>>, vector<8x128xf32>
    tpu.vector_store %arg19[%c40_230, %c128_231], %645 {strides = array<i32>} : memref<64x256xf32, #tpu.memory_space<vmem>>, vector<8x128xf32>,
    %c24_232 = arith.constant 24 : index
    %c0_233 = arith.constant 0 : index
    %647 = vector.load %arg16[%c24_232, %c0_233] : memref<64x512xf32, #tpu.memory_space<vmem>>, vector<8x512xf32>
    %648 = arith.truncf %623 : vector<8x128xf32> to vector<8x128xbf16>
    %c0_234 = arith.constant 0 : index
    %c0_235 = arith.constant 0 : index
    %649 = vector.load %arg21[%c0_234, %c0_235] : memref<128x512xbf16, #tpu.memory_space<vmem>>, vector<128x512xbf16>
    %cst_236 = arith.constant dense<0.000000e+00> : vector<8x512xf32>
    %650 = tpu.matmul %648, %649, %cst_236 {dimension_numbers = #tpu.dot_dimension_numbers<[1], [0], [0], [1], [0, 0, 1, 1], [], []>} : vector<8x128xbf16>, vector<128x512xbf16>, vector<8x512xf32> -> vector<8x512xf32>
    %651 = arith.addf %647, %650 : vector<8x512xf32>
    %c32_237 = arith.constant 32 : index
    %c0_238 = arith.constant 0 : index
    %652 = vector.load %arg17[%c32_237, %c0_238] : memref<64x512xf32, #tpu.memory_space<vmem>>, vector<8x512xf32>
    %653 = arith.truncf %645 : vector<8x128xf32> to vector<8x128xbf16>
    %c0_239 = arith.constant 0 : index
    %c0_240 = arith.constant 0 : index
    %654 = vector.load %arg23[%c0_239, %c0_240] : memref<128x512xbf16, #tpu.memory_space<vmem>>, vector<128x512xbf16>
    %cst_241 = arith.constant dense<0.000000e+00> : vector<8x512xf32>
    %655 = tpu.matmul %653, %654, %cst_241 {dimension_numbers = #tpu.dot_dimension_numbers<[1], [0], [0], [1], [0, 0, 1, 1], [], []>} : vector<8x128xbf16>, vector<128x512xbf16>, vector<8x512xf32> -> vector<8x512xf32>
    %656 = arith.addf %652, %655 : vector<8x512xf32>
    %657 = vector.extract_strided_slice %651 {offsets = [0, 0], sizes = [8, 256], strides = [1, 1]} : vector<8x512xf32> to vector<8x256xf32>
    %658 = arith.negf %657 : vector<8x256xf32>
    %659 = math.exp %658 : vector<8x256xf32>
    %cst_242 = arith.constant 1.000000e+00 : f32
    %660 = vector.broadcast %cst_242 : f32 to vector<8x256xf32>
    %661 = arith.addf %660, %659 : vector<8x256xf32>
    %662 = arith.divf %660, %661 : vector<8x256xf32>
    %663 = vector.extract_strided_slice %651 {offsets = [0, 256], sizes = [8, 128], strides = [1, 1]} : vector<8x512xf32> to vector<8x128xf32>
    %664 = math.tanh %663 : vector<8x128xf32>
    %665 = vector.extract_strided_slice %651 {offsets = [0, 384], sizes = [8, 128], strides = [1, 1]} : vector<8x512xf32> to vector<8x128xf32>
    %666 = arith.negf %665 : vector<8x128xf32>
    %667 = math.exp %666 : vector<8x128xf32>
    %cst_243 = arith.constant 1.000000e+00 : f32
    %668 = vector.broadcast %cst_243 : f32 to vector<8x128xf32>
    %669 = arith.addf %668, %667 : vector<8x128xf32>
    %670 = arith.divf %668, %669 : vector<8x128xf32>
    %671 = vector.extract_strided_slice %662 {offsets = [0, 128], sizes = [8, 128], strides = [1, 1]} : vector<8x256xf32> to vector<8x128xf32>
    %672 = arith.mulf %671, %621 : vector<8x128xf32>
    %673 = vector.extract_strided_slice %662 {offsets = [0, 0], sizes = [8, 128], strides = [1, 1]} : vector<8x256xf32> to vector<8x128xf32>
    %674 = arith.mulf %673, %664 : vector<8x128xf32>
    %675 = arith.addf %672, %674 : vector<8x128xf32>
    %676 = math.tanh %675 : vector<8x128xf32>
    %677 = arith.mulf %670, %676 : vector<8x128xf32>
    %c24_244 = arith.constant 24 : index
    %c0_245 = arith.constant 0 : index
    %678 = vector.load %arg19[%c24_244, %c0_245] : memref<64x256xf32, #tpu.memory_space<vmem>>, vector<8x128xf32>
    tpu.vector_store %arg19[%c24_244, %c0_245], %677 {strides = array<i32>} : memref<64x256xf32, #tpu.memory_space<vmem>>, vector<8x128xf32>,
    %679 = vector.extract_strided_slice %656 {offsets = [0, 0], sizes = [8, 256], strides = [1, 1]} : vector<8x512xf32> to vector<8x256xf32>
    %680 = arith.negf %679 : vector<8x256xf32>
    %681 = math.exp %680 : vector<8x256xf32>
    %cst_246 = arith.constant 1.000000e+00 : f32
    %682 = vector.broadcast %cst_246 : f32 to vector<8x256xf32>
    %683 = arith.addf %682, %681 : vector<8x256xf32>
    %684 = arith.divf %682, %683 : vector<8x256xf32>
    %685 = vector.extract_strided_slice %656 {offsets = [0, 256], sizes = [8, 128], strides = [1, 1]} : vector<8x512xf32> to vector<8x128xf32>
    %686 = math.tanh %685 : vector<8x128xf32>
    %687 = vector.extract_strided_slice %656 {offsets = [0, 384], sizes = [8, 128], strides = [1, 1]} : vector<8x512xf32> to vector<8x128xf32>
    %688 = arith.negf %687 : vector<8x128xf32>
    %689 = math.exp %688 : vector<8x128xf32>
    %cst_247 = arith.constant 1.000000e+00 : f32
    %690 = vector.broadcast %cst_247 : f32 to vector<8x128xf32>
    %691 = arith.addf %690, %689 : vector<8x128xf32>
    %692 = arith.divf %690, %691 : vector<8x128xf32>
    %693 = vector.extract_strided_slice %684 {offsets = [0, 128], sizes = [8, 128], strides = [1, 1]} : vector<8x256xf32> to vector<8x128xf32>
    %694 = arith.mulf %693, %643 : vector<8x128xf32>
    %695 = vector.extract_strided_slice %684 {offsets = [0, 0], sizes = [8, 128], strides = [1, 1]} : vector<8x256xf32> to vector<8x128xf32>
    %696 = arith.mulf %695, %686 : vector<8x128xf32>
    %697 = arith.addf %694, %696 : vector<8x128xf32>
    %698 = math.tanh %697 : vector<8x128xf32>
    %699 = arith.mulf %692, %698 : vector<8x128xf32>
    %c32_248 = arith.constant 32 : index
    %c128_249 = arith.constant 128 : index
    %700 = vector.load %arg19[%c32_248, %c128_249] : memref<64x256xf32, #tpu.memory_space<vmem>>, vector<8x128xf32>
    tpu.vector_store %arg19[%c32_248, %c128_249], %699 {strides = array<i32>} : memref<64x256xf32, #tpu.memory_space<vmem>>, vector<8x128xf32>,
    %c32_250 = arith.constant 32 : index
    %c0_251 = arith.constant 0 : index
    %701 = vector.load %arg16[%c32_250, %c0_251] : memref<64x512xf32, #tpu.memory_space<vmem>>, vector<8x512xf32>
    %702 = arith.truncf %677 : vector<8x128xf32> to vector<8x128xbf16>
    %c0_252 = arith.constant 0 : index
    %c0_253 = arith.constant 0 : index
    %703 = vector.load %arg21[%c0_252, %c0_253] : memref<128x512xbf16, #tpu.memory_space<vmem>>, vector<128x512xbf16>
    %cst_254 = arith.constant dense<0.000000e+00> : vector<8x512xf32>
    %704 = tpu.matmul %702, %703, %cst_254 {dimension_numbers = #tpu.dot_dimension_numbers<[1], [0], [0], [1], [0, 0, 1, 1], [], []>} : vector<8x128xbf16>, vector<128x512xbf16>, vector<8x512xf32> -> vector<8x512xf32>
    %705 = arith.addf %701, %704 : vector<8x512xf32>
    %c24_255 = arith.constant 24 : index
    %c0_256 = arith.constant 0 : index
    %706 = vector.load %arg17[%c24_255, %c0_256] : memref<64x512xf32, #tpu.memory_space<vmem>>, vector<8x512xf32>
    %707 = arith.truncf %699 : vector<8x128xf32> to vector<8x128xbf16>
    %c0_257 = arith.constant 0 : index
    %c0_258 = arith.constant 0 : index
    %708 = vector.load %arg23[%c0_257, %c0_258] : memref<128x512xbf16, #tpu.memory_space<vmem>>, vector<128x512xbf16>
    %cst_259 = arith.constant dense<0.000000e+00> : vector<8x512xf32>
    %709 = tpu.matmul %707, %708, %cst_259 {dimension_numbers = #tpu.dot_dimension_numbers<[1], [0], [0], [1], [0, 0, 1, 1], [], []>} : vector<8x128xbf16>, vector<128x512xbf16>, vector<8x512xf32> -> vector<8x512xf32>
    %710 = arith.addf %706, %709 : vector<8x512xf32>
    %711 = vector.extract_strided_slice %705 {offsets = [0, 0], sizes = [8, 256], strides = [1, 1]} : vector<8x512xf32> to vector<8x256xf32>
    %712 = arith.negf %711 : vector<8x256xf32>
    %713 = math.exp %712 : vector<8x256xf32>
    %cst_260 = arith.constant 1.000000e+00 : f32
    %714 = vector.broadcast %cst_260 : f32 to vector<8x256xf32>
    %715 = arith.addf %714, %713 : vector<8x256xf32>
    %716 = arith.divf %714, %715 : vector<8x256xf32>
    %717 = vector.extract_strided_slice %705 {offsets = [0, 256], sizes = [8, 128], strides = [1, 1]} : vector<8x512xf32> to vector<8x128xf32>
    %718 = math.tanh %717 : vector<8x128xf32>
    %719 = vector.extract_strided_slice %705 {offsets = [0, 384], sizes = [8, 128], strides = [1, 1]} : vector<8x512xf32> to vector<8x128xf32>
    %720 = arith.negf %719 : vector<8x128xf32>
    %721 = math.exp %720 : vector<8x128xf32>
    %cst_261 = arith.constant 1.000000e+00 : f32
    %722 = vector.broadcast %cst_261 : f32 to vector<8x128xf32>
    %723 = arith.addf %722, %721 : vector<8x128xf32>
    %724 = arith.divf %722, %723 : vector<8x128xf32>
    %725 = vector.extract_strided_slice %716 {offsets = [0, 128], sizes = [8, 128], strides = [1, 1]} : vector<8x256xf32> to vector<8x128xf32>
    %726 = arith.mulf %725, %675 : vector<8x128xf32>
    %727 = vector.extract_strided_slice %716 {offsets = [0, 0], sizes = [8, 128], strides = [1, 1]} : vector<8x256xf32> to vector<8x128xf32>
    %728 = arith.mulf %727, %718 : vector<8x128xf32>
    %729 = arith.addf %726, %728 : vector<8x128xf32>
    %730 = math.tanh %729 : vector<8x128xf32>
    %731 = arith.mulf %724, %730 : vector<8x128xf32>
    %c32_262 = arith.constant 32 : index
    %c0_263 = arith.constant 0 : index
    %732 = vector.load %arg19[%c32_262, %c0_263] : memref<64x256xf32, #tpu.memory_space<vmem>>, vector<8x128xf32>
    tpu.vector_store %arg19[%c32_262, %c0_263], %731 {strides = array<i32>} : memref<64x256xf32, #tpu.memory_space<vmem>>, vector<8x128xf32>,
    %733 = vector.extract_strided_slice %710 {offsets = [0, 0], sizes = [8, 256], strides = [1, 1]} : vector<8x512xf32> to vector<8x256xf32>
    %734 = arith.negf %733 : vector<8x256xf32>
    %735 = math.exp %734 : vector<8x256xf32>
    %cst_264 = arith.constant 1.000000e+00 : f32
    %736 = vector.broadcast %cst_264 : f32 to vector<8x256xf32>
    %737 = arith.addf %736, %735 : vector<8x256xf32>
    %738 = arith.divf %736, %737 : vector<8x256xf32>
    %739 = vector.extract_strided_slice %710 {offsets = [0, 256], sizes = [8, 128], strides = [1, 1]} : vector<8x512xf32> to vector<8x128xf32>
    %740 = math.tanh %739 : vector<8x128xf32>
    %741 = vector.extract_strided_slice %710 {offsets = [0, 384], sizes = [8, 128], strides = [1, 1]} : vector<8x512xf32> to vector<8x128xf32>
    %742 = arith.negf %741 : vector<8x128xf32>
    %743 = math.exp %742 : vector<8x128xf32>
    %cst_265 = arith.constant 1.000000e+00 : f32
    %744 = vector.broadcast %cst_265 : f32 to vector<8x128xf32>
    %745 = arith.addf %744, %743 : vector<8x128xf32>
    %746 = arith.divf %744, %745 : vector<8x128xf32>
    %747 = vector.extract_strided_slice %738 {offsets = [0, 128], sizes = [8, 128], strides = [1, 1]} : vector<8x256xf32> to vector<8x128xf32>
    %748 = arith.mulf %747, %697 : vector<8x128xf32>
    %749 = vector.extract_strided_slice %738 {offsets = [0, 0], sizes = [8, 128], strides = [1, 1]} : vector<8x256xf32> to vector<8x128xf32>
    %750 = arith.mulf %749, %740 : vector<8x128xf32>
    %751 = arith.addf %748, %750 : vector<8x128xf32>
    %752 = math.tanh %751 : vector<8x128xf32>
    %753 = arith.mulf %746, %752 : vector<8x128xf32>
    %c24_266 = arith.constant 24 : index
    %c128_267 = arith.constant 128 : index
    %754 = vector.load %arg19[%c24_266, %c128_267] : memref<64x256xf32, #tpu.memory_space<vmem>>, vector<8x128xf32>
    tpu.vector_store %arg19[%c24_266, %c128_267], %753 {strides = array<i32>} : memref<64x256xf32, #tpu.memory_space<vmem>>, vector<8x128xf32>,
    %c40_268 = arith.constant 40 : index
    %c0_269 = arith.constant 0 : index
    %755 = vector.load %arg16[%c40_268, %c0_269] : memref<64x512xf32, #tpu.memory_space<vmem>>, vector<8x512xf32>
    %756 = arith.truncf %731 : vector<8x128xf32> to vector<8x128xbf16>
    %c0_270 = arith.constant 0 : index
    %c0_271 = arith.constant 0 : index
    %757 = vector.load %arg21[%c0_270, %c0_271] : memref<128x512xbf16, #tpu.memory_space<vmem>>, vector<128x512xbf16>
    %cst_272 = arith.constant dense<0.000000e+00> : vector<8x512xf32>
    %758 = tpu.matmul %756, %757, %cst_272 {dimension_numbers = #tpu.dot_dimension_numbers<[1], [0], [0], [1], [0, 0, 1, 1], [], []>} : vector<8x128xbf16>, vector<128x512xbf16>, vector<8x512xf32> -> vector<8x512xf32>
    %759 = arith.addf %755, %758 : vector<8x512xf32>
    %c16_273 = arith.constant 16 : index
    %c0_274 = arith.constant 0 : index
    %760 = vector.load %arg17[%c16_273, %c0_274] : memref<64x512xf32, #tpu.memory_space<vmem>>, vector<8x512xf32>
    %761 = arith.truncf %753 : vector<8x128xf32> to vector<8x128xbf16>
    %c0_275 = arith.constant 0 : index
    %c0_276 = arith.constant 0 : index
    %762 = vector.load %arg23[%c0_275, %c0_276] : memref<128x512xbf16, #tpu.memory_space<vmem>>, vector<128x512xbf16>
    %cst_277 = arith.constant dense<0.000000e+00> : vector<8x512xf32>
    %763 = tpu.matmul %761, %762, %cst_277 {dimension_numbers = #tpu.dot_dimension_numbers<[1], [0], [0], [1], [0, 0, 1, 1], [], []>} : vector<8x128xbf16>, vector<128x512xbf16>, vector<8x512xf32> -> vector<8x512xf32>
    %764 = arith.addf %760, %763 : vector<8x512xf32>
    %765 = vector.extract_strided_slice %759 {offsets = [0, 0], sizes = [8, 256], strides = [1, 1]} : vector<8x512xf32> to vector<8x256xf32>
    %766 = arith.negf %765 : vector<8x256xf32>
    %767 = math.exp %766 : vector<8x256xf32>
    %cst_278 = arith.constant 1.000000e+00 : f32
    %768 = vector.broadcast %cst_278 : f32 to vector<8x256xf32>
    %769 = arith.addf %768, %767 : vector<8x256xf32>
    %770 = arith.divf %768, %769 : vector<8x256xf32>
    %771 = vector.extract_strided_slice %759 {offsets = [0, 256], sizes = [8, 128], strides = [1, 1]} : vector<8x512xf32> to vector<8x128xf32>
    %772 = math.tanh %771 : vector<8x128xf32>
    %773 = vector.extract_strided_slice %759 {offsets = [0, 384], sizes = [8, 128], strides = [1, 1]} : vector<8x512xf32> to vector<8x128xf32>
    %774 = arith.negf %773 : vector<8x128xf32>
    %775 = math.exp %774 : vector<8x128xf32>
    %cst_279 = arith.constant 1.000000e+00 : f32
    %776 = vector.broadcast %cst_279 : f32 to vector<8x128xf32>
    %777 = arith.addf %776, %775 : vector<8x128xf32>
    %778 = arith.divf %776, %777 : vector<8x128xf32>
    %779 = vector.extract_strided_slice %770 {offsets = [0, 128], sizes = [8, 128], strides = [1, 1]} : vector<8x256xf32> to vector<8x128xf32>
    %780 = arith.mulf %779, %729 : vector<8x128xf32>
    %781 = vector.extract_strided_slice %770 {offsets = [0, 0], sizes = [8, 128], strides = [1, 1]} : vector<8x256xf32> to vector<8x128xf32>
    %782 = arith.mulf %781, %772 : vector<8x128xf32>
    %783 = arith.addf %780, %782 : vector<8x128xf32>
    %784 = math.tanh %783 : vector<8x128xf32>
    %785 = arith.mulf %778, %784 : vector<8x128xf32>
    %c40_280 = arith.constant 40 : index
    %c0_281 = arith.constant 0 : index
    %786 = vector.load %arg19[%c40_280, %c0_281] : memref<64x256xf32, #tpu.memory_space<vmem>>, vector<8x128xf32>
    tpu.vector_store %arg19[%c40_280, %c0_281], %785 {strides = array<i32>} : memref<64x256xf32, #tpu.memory_space<vmem>>, vector<8x128xf32>,
    %787 = vector.extract_strided_slice %764 {offsets = [0, 0], sizes = [8, 256], strides = [1, 1]} : vector<8x512xf32> to vector<8x256xf32>
    %788 = arith.negf %787 : vector<8x256xf32>
    %789 = math.exp %788 : vector<8x256xf32>
    %cst_282 = arith.constant 1.000000e+00 : f32
    %790 = vector.broadcast %cst_282 : f32 to vector<8x256xf32>
    %791 = arith.addf %790, %789 : vector<8x256xf32>
    %792 = arith.divf %790, %791 : vector<8x256xf32>
    %793 = vector.extract_strided_slice %764 {offsets = [0, 256], sizes = [8, 128], strides = [1, 1]} : vector<8x512xf32> to vector<8x128xf32>
    %794 = math.tanh %793 : vector<8x128xf32>
    %795 = vector.extract_strided_slice %764 {offsets = [0, 384], sizes = [8, 128], strides = [1, 1]} : vector<8x512xf32> to vector<8x128xf32>
    %796 = arith.negf %795 : vector<8x128xf32>
    %797 = math.exp %796 : vector<8x128xf32>
    %cst_283 = arith.constant 1.000000e+00 : f32
    %798 = vector.broadcast %cst_283 : f32 to vector<8x128xf32>
    %799 = arith.addf %798, %797 : vector<8x128xf32>
    %800 = arith.divf %798, %799 : vector<8x128xf32>
    %801 = vector.extract_strided_slice %792 {offsets = [0, 128], sizes = [8, 128], strides = [1, 1]} : vector<8x256xf32> to vector<8x128xf32>
    %802 = arith.mulf %801, %751 : vector<8x128xf32>
    %803 = vector.extract_strided_slice %792 {offsets = [0, 0], sizes = [8, 128], strides = [1, 1]} : vector<8x256xf32> to vector<8x128xf32>
    %804 = arith.mulf %803, %794 : vector<8x128xf32>
    %805 = arith.addf %802, %804 : vector<8x128xf32>
    %806 = math.tanh %805 : vector<8x128xf32>
    %807 = arith.mulf %800, %806 : vector<8x128xf32>
    %c16_284 = arith.constant 16 : index
    %c128_285 = arith.constant 128 : index
    %808 = vector.load %arg19[%c16_284, %c128_285] : memref<64x256xf32, #tpu.memory_space<vmem>>, vector<8x128xf32>
    tpu.vector_store %arg19[%c16_284, %c128_285], %807 {strides = array<i32>} : memref<64x256xf32, #tpu.memory_space<vmem>>, vector<8x128xf32>,
    %c48_286 = arith.constant 48 : index
    %c0_287 = arith.constant 0 : index
    %809 = vector.load %arg16[%c48_286, %c0_287] : memref<64x512xf32, #tpu.memory_space<vmem>>, vector<8x512xf32>
    %810 = arith.truncf %785 : vector<8x128xf32> to vector<8x128xbf16>
    %c0_288 = arith.constant 0 : index
    %c0_289 = arith.constant 0 : index
    %811 = vector.load %arg21[%c0_288, %c0_289] : memref<128x512xbf16, #tpu.memory_space<vmem>>, vector<128x512xbf16>
    %cst_290 = arith.constant dense<0.000000e+00> : vector<8x512xf32>
    %812 = tpu.matmul %810, %811, %cst_290 {dimension_numbers = #tpu.dot_dimension_numbers<[1], [0], [0], [1], [0, 0, 1, 1], [], []>} : vector<8x128xbf16>, vector<128x512xbf16>, vector<8x512xf32> -> vector<8x512xf32>
    %813 = arith.addf %809, %812 : vector<8x512xf32>
    %c8_291 = arith.constant 8 : index
    %c0_292 = arith.constant 0 : index
    %814 = vector.load %arg17[%c8_291, %c0_292] : memref<64x512xf32, #tpu.memory_space<vmem>>, vector<8x512xf32>
    %815 = arith.truncf %807 : vector<8x128xf32> to vector<8x128xbf16>
    %c0_293 = arith.constant 0 : index
    %c0_294 = arith.constant 0 : index
    %816 = vector.load %arg23[%c0_293, %c0_294] : memref<128x512xbf16, #tpu.memory_space<vmem>>, vector<128x512xbf16>
    %cst_295 = arith.constant dense<0.000000e+00> : vector<8x512xf32>
    %817 = tpu.matmul %815, %816, %cst_295 {dimension_numbers = #tpu.dot_dimension_numbers<[1], [0], [0], [1], [0, 0, 1, 1], [], []>} : vector<8x128xbf16>, vector<128x512xbf16>, vector<8x512xf32> -> vector<8x512xf32>
    %818 = arith.addf %814, %817 : vector<8x512xf32>
    %819 = vector.extract_strided_slice %813 {offsets = [0, 0], sizes = [8, 256], strides = [1, 1]} : vector<8x512xf32> to vector<8x256xf32>
    %820 = arith.negf %819 : vector<8x256xf32>
    %821 = math.exp %820 : vector<8x256xf32>
    %cst_296 = arith.constant 1.000000e+00 : f32
    %822 = vector.broadcast %cst_296 : f32 to vector<8x256xf32>
    %823 = arith.addf %822, %821 : vector<8x256xf32>
    %824 = arith.divf %822, %823 : vector<8x256xf32>
    %825 = vector.extract_strided_slice %813 {offsets = [0, 256], sizes = [8, 128], strides = [1, 1]} : vector<8x512xf32> to vector<8x128xf32>
    %826 = math.tanh %825 : vector<8x128xf32>
    %827 = vector.extract_strided_slice %813 {offsets = [0, 384], sizes = [8, 128], strides = [1, 1]} : vector<8x512xf32> to vector<8x128xf32>
    %828 = arith.negf %827 : vector<8x128xf32>
    %829 = math.exp %828 : vector<8x128xf32>
    %cst_297 = arith.constant 1.000000e+00 : f32
    %830 = vector.broadcast %cst_297 : f32 to vector<8x128xf32>
    %831 = arith.addf %830, %829 : vector<8x128xf32>
    %832 = arith.divf %830, %831 : vector<8x128xf32>
    %833 = vector.extract_strided_slice %824 {offsets = [0, 128], sizes = [8, 128], strides = [1, 1]} : vector<8x256xf32> to vector<8x128xf32>
    %834 = arith.mulf %833, %783 : vector<8x128xf32>
    %835 = vector.extract_strided_slice %824 {offsets = [0, 0], sizes = [8, 128], strides = [1, 1]} : vector<8x256xf32> to vector<8x128xf32>
    %836 = arith.mulf %835, %826 : vector<8x128xf32>
    %837 = arith.addf %834, %836 : vector<8x128xf32>
    %838 = math.tanh %837 : vector<8x128xf32>
    %839 = arith.mulf %832, %838 : vector<8x128xf32>
    %c48_298 = arith.constant 48 : index
    %c0_299 = arith.constant 0 : index
    %840 = vector.load %arg19[%c48_298, %c0_299] : memref<64x256xf32, #tpu.memory_space<vmem>>, vector<8x128xf32>
    tpu.vector_store %arg19[%c48_298, %c0_299], %839 {strides = array<i32>} : memref<64x256xf32, #tpu.memory_space<vmem>>, vector<8x128xf32>,
    %841 = vector.extract_strided_slice %818 {offsets = [0, 0], sizes = [8, 256], strides = [1, 1]} : vector<8x512xf32> to vector<8x256xf32>
    %842 = arith.negf %841 : vector<8x256xf32>
    %843 = math.exp %842 : vector<8x256xf32>
    %cst_300 = arith.constant 1.000000e+00 : f32
    %844 = vector.broadcast %cst_300 : f32 to vector<8x256xf32>
    %845 = arith.addf %844, %843 : vector<8x256xf32>
    %846 = arith.divf %844, %845 : vector<8x256xf32>
    %847 = vector.extract_strided_slice %818 {offsets = [0, 256], sizes = [8, 128], strides = [1, 1]} : vector<8x512xf32> to vector<8x128xf32>
    %848 = math.tanh %847 : vector<8x128xf32>
    %849 = vector.extract_strided_slice %818 {offsets = [0, 384], sizes = [8, 128], strides = [1, 1]} : vector<8x512xf32> to vector<8x128xf32>
    %850 = arith.negf %849 : vector<8x128xf32>
    %851 = math.exp %850 : vector<8x128xf32>
    %cst_301 = arith.constant 1.000000e+00 : f32
    %852 = vector.broadcast %cst_301 : f32 to vector<8x128xf32>
    %853 = arith.addf %852, %851 : vector<8x128xf32>
    %854 = arith.divf %852, %853 : vector<8x128xf32>
    %855 = vector.extract_strided_slice %846 {offsets = [0, 128], sizes = [8, 128], strides = [1, 1]} : vector<8x256xf32> to vector<8x128xf32>
    %856 = arith.mulf %855, %805 : vector<8x128xf32>
    %857 = vector.extract_strided_slice %846 {offsets = [0, 0], sizes = [8, 128], strides = [1, 1]} : vector<8x256xf32> to vector<8x128xf32>
    %858 = arith.mulf %857, %848 : vector<8x128xf32>
    %859 = arith.addf %856, %858 : vector<8x128xf32>
    %860 = math.tanh %859 : vector<8x128xf32>
    %861 = arith.mulf %854, %860 : vector<8x128xf32>
    %c8_302 = arith.constant 8 : index
    %c128_303 = arith.constant 128 : index
    %862 = vector.load %arg19[%c8_302, %c128_303] : memref<64x256xf32, #tpu.memory_space<vmem>>, vector<8x128xf32>
    tpu.vector_store %arg19[%c8_302, %c128_303], %861 {strides = array<i32>} : memref<64x256xf32, #tpu.memory_space<vmem>>, vector<8x128xf32>,
    %c56_304 = arith.constant 56 : index
    %c0_305 = arith.constant 0 : index
    %863 = vector.load %arg16[%c56_304, %c0_305] : memref<64x512xf32, #tpu.memory_space<vmem>>, vector<8x512xf32>
    %864 = arith.truncf %839 : vector<8x128xf32> to vector<8x128xbf16>
    %c0_306 = arith.constant 0 : index
    %c0_307 = arith.constant 0 : index
    %865 = vector.load %arg21[%c0_306, %c0_307] : memref<128x512xbf16, #tpu.memory_space<vmem>>, vector<128x512xbf16>
    %cst_308 = arith.constant dense<0.000000e+00> : vector<8x512xf32>
    %866 = tpu.matmul %864, %865, %cst_308 {dimension_numbers = #tpu.dot_dimension_numbers<[1], [0], [0], [1], [0, 0, 1, 1], [], []>} : vector<8x128xbf16>, vector<128x512xbf16>, vector<8x512xf32> -> vector<8x512xf32>
    %867 = arith.addf %863, %866 : vector<8x512xf32>
    %c0_309 = arith.constant 0 : index
    %c0_310 = arith.constant 0 : index
    %868 = vector.load %arg17[%c0_309, %c0_310] : memref<64x512xf32, #tpu.memory_space<vmem>>, vector<8x512xf32>
    %869 = arith.truncf %861 : vector<8x128xf32> to vector<8x128xbf16>
    %c0_311 = arith.constant 0 : index
    %c0_312 = arith.constant 0 : index
    %870 = vector.load %arg23[%c0_311, %c0_312] : memref<128x512xbf16, #tpu.memory_space<vmem>>, vector<128x512xbf16>
    %cst_313 = arith.constant dense<0.000000e+00> : vector<8x512xf32>
    %871 = tpu.matmul %869, %870, %cst_313 {dimension_numbers = #tpu.dot_dimension_numbers<[1], [0], [0], [1], [0, 0, 1, 1], [], []>} : vector<8x128xbf16>, vector<128x512xbf16>, vector<8x512xf32> -> vector<8x512xf32>
    %872 = arith.addf %868, %871 : vector<8x512xf32>
    %873 = vector.extract_strided_slice %867 {offsets = [0, 0], sizes = [8, 256], strides = [1, 1]} : vector<8x512xf32> to vector<8x256xf32>
    %874 = arith.negf %873 : vector<8x256xf32>
    %875 = math.exp %874 : vector<8x256xf32>
    %cst_314 = arith.constant 1.000000e+00 : f32
    %876 = vector.broadcast %cst_314 : f32 to vector<8x256xf32>
    %877 = arith.addf %876, %875 : vector<8x256xf32>
    %878 = arith.divf %876, %877 : vector<8x256xf32>
    %879 = vector.extract_strided_slice %867 {offsets = [0, 256], sizes = [8, 128], strides = [1, 1]} : vector<8x512xf32> to vector<8x128xf32>
    %880 = math.tanh %879 : vector<8x128xf32>
    %881 = vector.extract_strided_slice %867 {offsets = [0, 384], sizes = [8, 128], strides = [1, 1]} : vector<8x512xf32> to vector<8x128xf32>
    %882 = arith.negf %881 : vector<8x128xf32>
    %883 = math.exp %882 : vector<8x128xf32>
    %cst_315 = arith.constant 1.000000e+00 : f32
    %884 = vector.broadcast %cst_315 : f32 to vector<8x128xf32>
    %885 = arith.addf %884, %883 : vector<8x128xf32>
    %886 = arith.divf %884, %885 : vector<8x128xf32>
    %887 = vector.extract_strided_slice %878 {offsets = [0, 128], sizes = [8, 128], strides = [1, 1]} : vector<8x256xf32> to vector<8x128xf32>
    %888 = arith.mulf %887, %837 : vector<8x128xf32>
    %889 = vector.extract_strided_slice %878 {offsets = [0, 0], sizes = [8, 128], strides = [1, 1]} : vector<8x256xf32> to vector<8x128xf32>
    %890 = arith.mulf %889, %880 : vector<8x128xf32>
    %891 = arith.addf %888, %890 : vector<8x128xf32>
    %892 = math.tanh %891 : vector<8x128xf32>
    %893 = arith.mulf %886, %892 : vector<8x128xf32>
    %c56_316 = arith.constant 56 : index
    %c0_317 = arith.constant 0 : index
    %894 = vector.load %arg19[%c56_316, %c0_317] : memref<64x256xf32, #tpu.memory_space<vmem>>, vector<8x128xf32>
    tpu.vector_store %arg19[%c56_316, %c0_317], %893 {strides = array<i32>} : memref<64x256xf32, #tpu.memory_space<vmem>>, vector<8x128xf32>,
    %895 = vector.extract_strided_slice %872 {offsets = [0, 0], sizes = [8, 256], strides = [1, 1]} : vector<8x512xf32> to vector<8x256xf32>
    %896 = arith.negf %895 : vector<8x256xf32>
    %897 = math.exp %896 : vector<8x256xf32>
    %cst_318 = arith.constant 1.000000e+00 : f32
    %898 = vector.broadcast %cst_318 : f32 to vector<8x256xf32>
    %899 = arith.addf %898, %897 : vector<8x256xf32>
    %900 = arith.divf %898, %899 : vector<8x256xf32>
    %901 = vector.extract_strided_slice %872 {offsets = [0, 256], sizes = [8, 128], strides = [1, 1]} : vector<8x512xf32> to vector<8x128xf32>
    %902 = math.tanh %901 : vector<8x128xf32>
    %903 = vector.extract_strided_slice %872 {offsets = [0, 384], sizes = [8, 128], strides = [1, 1]} : vector<8x512xf32> to vector<8x128xf32>
    %904 = arith.negf %903 : vector<8x128xf32>
    %905 = math.exp %904 : vector<8x128xf32>
    %cst_319 = arith.constant 1.000000e+00 : f32
    %906 = vector.broadcast %cst_319 : f32 to vector<8x128xf32>
    %907 = arith.addf %906, %905 : vector<8x128xf32>
    %908 = arith.divf %906, %907 : vector<8x128xf32>
    %909 = vector.extract_strided_slice %900 {offsets = [0, 128], sizes = [8, 128], strides = [1, 1]} : vector<8x256xf32> to vector<8x128xf32>
    %910 = arith.mulf %909, %859 : vector<8x128xf32>
    %911 = vector.extract_strided_slice %900 {offsets = [0, 0], sizes = [8, 128], strides = [1, 1]} : vector<8x256xf32> to vector<8x128xf32>
    %912 = arith.mulf %911, %902 : vector<8x128xf32>
    %913 = arith.addf %910, %912 : vector<8x128xf32>
    %914 = math.tanh %913 : vector<8x128xf32>
    %915 = arith.mulf %908, %914 : vector<8x128xf32>
    %c0_320 = arith.constant 0 : index
    %c128_321 = arith.constant 128 : index
    %916 = vector.load %arg19[%c0_320, %c128_321] : memref<64x256xf32, #tpu.memory_space<vmem>>, vector<8x128xf32>
    tpu.vector_store %arg19[%c0_320, %c128_321], %915 {strides = array<i32>} : memref<64x256xf32, #tpu.memory_space<vmem>>, vector<8x128xf32>,
    %c4_i32_322 = arith.constant 4 : i32
    %917 = tpu.memref_slice %arg25[%c4_i32_322] : memref<5x!tpu.dma_semaphore, #tpu.memory_space<semaphore_mem>> -> memref<1x!tpu.dma_semaphore, #tpu.memory_space<semaphore_mem>>
    %918 = tpu.memref_squeeze %917 : memref<1x!tpu.dma_semaphore, #tpu.memory_space<semaphore_mem>> -> memref<!tpu.dma_semaphore, #tpu.memory_space<semaphore_mem>>
    tpu.wait_dma2 semaphore(%918 : memref<!tpu.dma_semaphore, #tpu.memory_space<semaphore_mem>>) src(%arg13 : memref<512x128xbf16, #tpu.memory_space<any>>) dst(%arg24 : memref<512x128xbf16, #tpu.memory_space<vmem>>)
    %c0_323 = arith.constant 0 : index
    %c0_324 = arith.constant 0 : index
    %919 = vector.load %arg19[%c0_323, %c0_324] : memref<64x256xf32, #tpu.memory_space<vmem>>, vector<8x256xf32>
    %920 = arith.truncf %919 : vector<8x256xf32> to vector<8x256xbf16>
    %c56_325 = arith.constant 56 : index
    %c0_326 = arith.constant 0 : index
    %921 = vector.load %arg19[%c56_325, %c0_326] : memref<64x256xf32, #tpu.memory_space<vmem>>, vector<8x256xf32>
    %922 = arith.truncf %921 : vector<8x256xf32> to vector<8x256xbf16>
    %c0_327 = arith.constant 0 : index
    %c0_328 = arith.constant 0 : index
    %923 = vector.load %arg24[%c0_327, %c0_328] : memref<512x128xbf16, #tpu.memory_space<vmem>>, vector<256x128xbf16>
    %cst_329 = arith.constant dense<0.000000e+00> : vector<8x128xf32>
    %924 = tpu.matmul %920, %923, %cst_329 {dimension_numbers = #tpu.dot_dimension_numbers<[1], [0], [0], [1], [0, 0, 1, 1], [], []>} : vector<8x256xbf16>, vector<256x128xbf16>, vector<8x128xf32> -> vector<8x128xf32>
    %c256 = arith.constant 256 : index
    %c0_330 = arith.constant 0 : index
    %925 = vector.load %arg24[%c256, %c0_330] : memref<512x128xbf16, #tpu.memory_space<vmem>>, vector<256x128xbf16>
    %cst_331 = arith.constant dense<0.000000e+00> : vector<8x128xf32>
    %926 = tpu.matmul %922, %925, %cst_331 {dimension_numbers = #tpu.dot_dimension_numbers<[1], [0], [0], [1], [0, 0, 1, 1], [], []>} : vector<8x256xbf16>, vector<256x128xbf16>, vector<8x128xf32> -> vector<8x128xf32>
    %927 = arith.addf %924, %926 : vector<8x128xf32>
    %c0_332 = arith.constant 0 : index
    %c0_333 = arith.constant 0 : index
    %928 = vector.load %arg14[%c0_332, %c0_333] : memref<1x128xf32, #tpu.memory_space<vmem>>, vector<1x128xf32>
    %929 = vector.broadcast %928 : vector<1x128xf32> to vector<8x128xf32>
    %930 = arith.addf %927, %929 : vector<8x128xf32>
    %c0_334 = arith.constant 0 : index
    %c0_335 = arith.constant 0 : index
    %931 = vector.load %arg15[%c0_334, %c0_335] : memref<8x128xf32, #tpu.memory_space<vmem>>, vector<8x128xf32>
    tpu.vector_store %arg15[%c0_334, %c0_335], %930 {strides = array<i32>} : memref<8x128xf32, #tpu.memory_space<vmem>>, vector<8x128xf32>,
    return
  }
}

</mosaic_0001>

<bundles_post_ra>
// kernel: birnn_forward.1
= control target key start
LH: loop header
LB: loop body
LE: loop exit
PB: predicated region body
PF: predicated region fallthrough
CT: control target
= control target key end

     0   :  { %20 = vsyncpa [#allocation13], 0  ;;  %s14106_s0 = inlined_call_operand.vmem [shape: bf16[64,128], index: 0, kind: input, shape index: {}]   ;;  %s14107_s1 = inlined_call_operand.vmem [shape: bf16[128,512], index: 1, kind: input, shape index: {}]   ;;  %s14108_s2 = inlined_call_operand.hbm [shape: bf16[128,512], index: 2, kind: input, shape index: {}]   ;;  %s14109_s3 = inlined_call_operand.vmem [shape: f32[1,512], index: 3, kind: input, shape index: {}]   ;;  %s14110_s4 = inlined_call_operand.hbm [shape: bf16[128,512], index: 4, kind: input, shape index: {}]   ;;  %s14111_s5 = inlined_call_operand.hbm [shape: bf16[128,512], index: 5, kind: input, shape index: {}]   ;;  %s14112_s6 = inlined_call_operand.vmem [shape: f32[1,512], index: 6, kind: input, shape index: {}]   ;;  %s14113_s7 = inlined_call_operand.hbm [shape: bf16[256,512], index: 7, kind: input, shape index: {}]   ;;  %s14114_s8 = inlined_call_operand.hbm [shape: bf16[128,512], index: 8, kind: input, shape index: {}]   ;;  %s14115_s9 = inlined_call_operand.vmem [shape: f32[1,512], index: 9, kind: input, shape index: {}]   ;;  %s14116_s10 = inlined_call_operand.hbm [shape: bf16[256,512], index: 10, kind: input, shape index: {}]   ;;  %s14117_s11 = inlined_call_operand.hbm [shape: bf16[128,512], index: 11, kind: input, shape index: {}]   ;;  %s14118_s12 = inlined_call_operand.vmem [shape: f32[1,512], index: 12, kind: input, shape index: {}]   ;;  %s14119_s13 = inlined_call_operand.hbm [shape: bf16[512,128], index: 13, kind: input, shape index: {}]   ;;  %s14120_s14 = inlined_call_operand.vmem [shape: f32[1,128], index: 14, kind: input, shape index: {}]   ;;  %s14121_s15 = inlined_call_operand.vmem [shape: f32[8,128], index: 15, kind: output, shape index: {}]  }
   0x1   :  { %21 = vsyncpa [#allocation15], 0  ;;  %s10935_s18 = smov [#allocation14]   ;;  %s10936_s20 = smov [#allocation12]  }
   0x2   :  { %s45_s19 = sshll.u32 %s10935_s18, 4  ;;  %s31_s21 = sshll.u32 %s10936_s20, 4  ;;  %s46_s19 = int_to_ptr.vmem [resolvable:$true] %s45_s19  ;;  %s11039_s21 = int_to_ptr.vmem [resolvable:$true] %s31_s21 }
   0x3   :  { %s10833_s24 = scalar_lea.hbm %s14110_s4, 4096 }
   0x4   :  { %p10834_p0 = scmp.ne.s32.totalorder %s14110_s4, %s10833_s24  ;;  %p10837_p1 = scmp.lt.u32.totalorder %s10833_s24, %s14110_s4 }
   0x6   :  { %p10839_p2 = pnand %p10837_p1, %p10834_p0 }
   0x8   :  { %10842 = shalt.err (!%p10839_p2)
}
   0x9   :  { %s10843_s29 = scalar_lea.vmem %s46_s19, 4096  ;;  %p10848_p4 = scmp.lt.s32.totalorder %s46_s19, %s46_s19 }
   0xa   :  { %p10844_p3 = scmp.ne.s32.totalorder %s46_s19, %s10843_s29  ;;  %p10849_p5 = scmp.lt.s32.totalorder %s10843_s29, %s10843_s29 }
   0xc   :  { %p10850_p6 = por %p10849_p5, %p10848_p4 }
   0xe   :  { %p10851_p7 = pnand %p10850_p6, %p10844_p3 }
  0x10   :  { %10854 = shalt.err (!%p10851_p7)
}
  0x11   :  { %s10937_s30 = smov 256   ;;  %s10938_s16 = smov 16  }
  0x12   :  { %51 = dma.hbm_to_vmem [thread:$0]  %s14110_s4, 4096, %s46_s19, [#allocation15], %s10937_s30, %s10937_s30, %s10938_s16  }
  0x13   :  { %s10855_s23 = scalar_lea.hbm %s14108_s2, 4096 }
  0x14   :  { %p10856_p8 = scmp.ne.s32.totalorder %s14108_s2, %s10855_s23  ;;  %p10859_p9 = scmp.lt.u32.totalorder %s10855_s23, %s14108_s2 }
  0x16   :  { %p10861_p10 = pnand %p10859_p9, %p10856_p8 }
  0x18   :  { %10864 = shalt.err (!%p10861_p10)
}
  0x19   :  { %s10865_s28 = scalar_lea.vmem %s11039_s21, 4096  ;;  %p10870_p12 = scmp.lt.s32.totalorder %s11039_s21, %s11039_s21 }
  0x1a   :  { %p10866_p11 = scmp.ne.s32.totalorder %s11039_s21, %s10865_s28  ;;  %p10871_p13 = scmp.lt.s32.totalorder %s10865_s28, %s10865_s28 }
  0x1c   :  { %p10872_p0 = por %p10871_p13, %p10870_p12 }
  0x1e   :  { %p10873_p1 = pnand %p10872_p0, %p10866_p11 }
  0x20   :  { %10876 = shalt.err (!%p10873_p1)
}
  0x21   :  { %37 = dma.hbm_to_vmem [thread:$0]  %s14108_s2, 4096, %s11039_s21, [#allocation13], %s10937_s30, %s10937_s30, %s10938_s16  }
  0x22   :  { %s10939_s29 = smov [#allocation16]   ;;  %s10877_s22 = scalar_lea.hbm %s14111_s5, 4096 }
  0x23   :  { %s57_s17 = sshll.u32 %s10939_s29, 4  ;;  %p10878_p2 = scmp.ne.s32.totalorder %s14111_s5, %s10877_s22  ;;  %s58_s17 = int_to_ptr.vmem [resolvable:$true] %s57_s17 }
  0x24   :  { %p10881_p3 = scmp.lt.u32.totalorder %s10877_s22, %s14111_s5 }
  0x26   :  { %p10883_p4 = pnand %p10881_p3, %p10878_p2 }
  0x28   :  { %10886 = shalt.err (!%p10883_p4)
}
  0x29   :  { %s10887_s27 = scalar_lea.vmem %s58_s17, 4096  ;;  %p10892_p6 = scmp.lt.s32.totalorder %s58_s17, %s58_s17 }
  0x2a   :  { %p10888_p5 = scmp.ne.s32.totalorder %s58_s17, %s10887_s27  ;;  %p10893_p7 = scmp.lt.s32.totalorder %s10887_s27, %s10887_s27 }
  0x2c   :  { %p10894_p8 = por %p10893_p7, %p10892_p6 }
  0x2e   :  { %p10895_p9 = pnand %p10894_p8, %p10888_p5 }
  0x30   :  { %10898 = shalt.err (!%p10895_p9)
}
  0x31   :  { %63 = dma.hbm_to_vmem [thread:$0]  %s14111_s5, 4096, %s58_s17, [#allocation15], %s10937_s30, %s10937_s30, %s10938_s16  }
  0x32   :  { %10921 = dma.done.wait [#allocation13], 4096  }
  0x33   :  { %10922 = vsyncadd [#allocation13], 4294963200 }
  0x34   :  { %10923 = dma.done.wait [#allocation15], 8192  }
  0x35   :  { %10924 = vsyncadd [#allocation15], 4294959104  ;;  %s86_s28 = sld [smem:[#allocation0]]   ;;  %s10940_s4 = smov 512   ;;  %v14122_v0 = vmov 0  }
  0x36   :  { %98 = sst [smem:[#allocation18]] %s10940_s4  ;;  %512 = vmatprep.mubr.bf16.mxu0 %v14122_v0  ;;  %585 = vmatprep.mubr.bf16.mxu1 %v14122_v0  ;;  %s10942_s19 = smov 4  }
  0x37   :  { %100 = sst [smem:[#allocation18 + $0x1]] %s10940_s4  ;;  %s10943_s29 = smov 64  }
  0x38   :  { %102 = sst [smem:[#allocation18 + $0x2]] %s10942_s19  ;;  %s10944_s5 = smov [#allocation6]  }
  0x39   :  { %104 = sst [smem:[#allocation18 + $0x3]] %s10943_s29  ;;  %s94_s16 = sshll.u32 %s10944_s5, 4  ;;  %s95_s16 = int_to_ptr.vmem [resolvable:$true] %s94_s16 }
  0x3a   :  { %110 = sst [smem:[#allocation18 + $0x6]] %s10937_s30  ;;  %s10945_s20 = smov 128  }
  0x3b   :  { %112 = sst [smem:[#allocation18 + $0x7]] %s10943_s29  ;;  %s9079_s17 = sshll.u32 %s86_s28, 26 }
  0x3c   :  { %114 = sst [smem:[#allocation18 + $0x8]] %s10942_s19  ;;  %s11100_s18 = sadd.s32 134217728, %s9079_s17 }
  0x3d   :  { %106 = sst [smem:[#allocation18 + $0x4]] %s10945_s20  ;;  %s10946_s22 = smov 2  }
  0x3e   :  { %108 = sst [smem:[#allocation18 + $0x5]] %s10946_s22  ;;  %s10947_s23 = smov [#allocation11]  }
  0x3f   :  { %s10948_s24 = smov [#allocation17]   ;;  %s10949_s27 = smov [#allocation7]  }
  0x40   :  { %116 = dma.general %s14113_s7, 8192, %s95_s16, %s10947_s23, %s10948_s24, [#allocation18], %s11100_s18, 0  }
  0x41   :  { %133 = sst [smem:[#allocation20]] %s10940_s4  ;;  %s129_s2 = sshll.u32 %s10949_s27, 4  ;;  %s130_s2 = int_to_ptr.vmem [resolvable:$true] %s129_s2 }
  0x42   :  { %135 = sst [smem:[#allocation20 + $0x1]] %s10940_s4  ;;  %s10950_s7 = smov [#allocation11 + $0x1]  }
  0x43   :  { %137 = sst [smem:[#allocation20 + $0x2]] %s10942_s19  ;;  %s10951_s21 = smov [#allocation19]  }
  0x44   :  { %139 = sst [smem:[#allocation20 + $0x3]] %s10943_s29  ;;  %s10952_s16 = smov [#allocation8]  }
  0x45   :  { %141 = sst [smem:[#allocation20 + $0x4]] %s10945_s20  ;;  %s164_s17 = sshll.u32 %s10952_s16, 4  ;;  %s165_s17 = int_to_ptr.vmem [resolvable:$true] %s164_s17 }
  0x46   :  { %143 = sst [smem:[#allocation20 + $0x5]] %s10946_s22  ;;  %s10954_s23 = smov [#allocation21]  }
  0x47   :  { %145 = sst [smem:[#allocation20 + $0x6]] %s10937_s30  ;;  %s10955_s26 = smov [#allocation9]  }
  0x48   :  { %147 = sst [smem:[#allocation20 + $0x7]] %s10943_s29  ;;  %s199_s27 = sshll.u32 %s10955_s26, 4  ;;  %s200_s27 = int_to_ptr.vmem [resolvable:$true] %s199_s27 }
  0x49   :  { %149 = sst [smem:[#allocation20 + $0x8]] %s10942_s19 }
  0x4a   :  { %151 = dma.general %s14114_s8, 4096, %s130_s2, %s10950_s7, %s10951_s21, [#allocation20], %s11100_s18, 0  }
  0x4b   :  { %168 = sst [smem:[#allocation22]] %s10940_s4  ;;  %s10953_s8 = smov [#allocation11 + $0x2]  }
  0x4c   :  { %170 = sst [smem:[#allocation22 + $0x1]] %s10940_s4  ;;  %s10957_s2 = smov [#allocation23]  }
  0x4d   :  { %172 = sst [smem:[#allocation22 + $0x2]] %s10942_s19 }
  0x4e   :  { %174 = sst [smem:[#allocation22 + $0x3]] %s10943_s29 }
  0x4f   :  { %176 = sst [smem:[#allocation22 + $0x4]] %s10945_s20 }
  0x50   :  { %178 = sst [smem:[#allocation22 + $0x5]] %s10946_s22 }
  0x51   :  { %180 = sst [smem:[#allocation22 + $0x6]] %s10937_s30 }
  0x52   :  { %182 = sst [smem:[#allocation22 + $0x7]] %s10943_s29 }
  0x53   :  { %184 = sst [smem:[#allocation22 + $0x8]] %s10942_s19 }
  0x54   :  { %186 = dma.general %s14116_s10, 8192, %s165_s17, %s10953_s8, %s10954_s23, [#allocation22], %s11100_s18, 0  }
  0x55   :  { %203 = sst [smem:[#allocation24]] %s10940_s4  ;;  %s10956_s10 = smov [#allocation11 + $0x3]  }
  0x56   :  { %205 = sst [smem:[#allocation24 + $0x1]] %s10940_s4 }
  0x57   :  { %207 = sst [smem:[#allocation24 + $0x2]] %s10942_s19 }
  0x58   :  { %209 = sst [smem:[#allocation24 + $0x3]] %s10943_s29 }
  0x59   :  { %211 = sst [smem:[#allocation24 + $0x4]] %s10945_s20 }
  0x5a   :  { %213 = sst [smem:[#allocation24 + $0x5]] %s10946_s22 }
  0x5b   :  { %215 = sst [smem:[#allocation24 + $0x6]] %s10937_s30 }
  0x5c   :  { %217 = sst [smem:[#allocation24 + $0x7]] %s10943_s29 }
  0x5d   :  { %219 = sst [smem:[#allocation24 + $0x8]] %s10942_s19 }
  0x5e   :  { %221 = dma.general %s14117_s11, 4096, %s200_s27, %s10956_s10, %s10957_s2, [#allocation24], %s11100_s18, 0  }
  0x5f   :  { %v9837_v1 = vld [vmem:[%s14107_s1 + $0x4] ss:$16 sps:$4 sm:$0xff]   ;;  %v9839_v2 = vld [vmem:[%s14107_s1 + $0xc] ss:$16 sps:$4 sm:$0xff]   ;;  %v9841_v3 = vld [vmem:[%s14107_s1] ss:$16 sps:$4 sm:$0xff]  }
  0x60   :  { %480 = vmatprep.subr.bf16.mxu0 %v9837_v1  ;;  %v9842_v4 = vld [vmem:[%s14107_s1 + $0x8] ss:$16 sps:$4 sm:$0xff]   ;;  %553 = vmatprep.subr.bf16.mxu1 %v9839_v2  ;;  %v9843_v5 = vld [vmem:[%s14107_s1 + $0x24] ss:$16 sps:$4 sm:$0xff]   ;;  %v9845_v6 = vld [vmem:[%s14107_s1 + $0x2c] ss:$16 sps:$4 sm:$0xff]  }
  0x61   :  { %481 = vmatpush1.bf16.msra.mxu0 %v9841_v3  ;;  %554 = vmatpush1.bf16.msra.mxu1 %v9842_v4  ;;  %v9847_v7 = vld [vmem:[%s14107_s1 + $0x20] ss:$16 sps:$4 sm:$0xff]   ;;  %v9848_v8 = vld [vmem:[%s14107_s1 + $0x28] ss:$16 sps:$4 sm:$0xff]   ;;  %v9849_v9 = vld [vmem:[%s14107_s1 + $0x44] ss:$16 sps:$4 sm:$0xff]  }
  0x62   :  { %482 = vmatprep.subr.bf16.mxu0 %v9843_v5  ;;  %555 = vmatprep.subr.bf16.mxu1 %v9845_v6  ;;  %v9851_v10 = vld [vmem:[%s14107_s1 + $0x4c] ss:$16 sps:$4 sm:$0xff]   ;;  %v9853_v11 = vld [vmem:[%s14107_s1 + $0x40] ss:$16 sps:$4 sm:$0xff]   ;;  %v9854_v12 = vld [vmem:[%s14107_s1 + $0x48] ss:$16 sps:$4 sm:$0xff]  }
  0x63   :  { %v9855_v13 = vld [vmem:[%s14107_s1 + $0x64] ss:$16 sps:$4 sm:$0xff]   ;;  %v9857_v14 = vld [vmem:[%s14107_s1 + $0x6c] ss:$16 sps:$4 sm:$0xff]   ;;  %v9859_v15 = vld [vmem:[%s14107_s1 + $0x60] ss:$16 sps:$4 sm:$0xff]  }
  0x64   :  { %v9860_v16 = vld [vmem:[%s14107_s1 + $0x68] ss:$16 sps:$4 sm:$0xff]   ;;  %v9861_v17 = vld [vmem:[%s14107_s1 + $0x84] ss:$16 sps:$4 sm:$0xff]   ;;  %v9863_v18 = vld [vmem:[%s14107_s1 + $0x8c] ss:$16 sps:$4 sm:$0xff]  }
  0x65   :  { %483 = vmatpush1.bf16.msra.mxu0 %v9847_v7  ;;  %556 = vmatpush1.bf16.msra.mxu1 %v9848_v8  ;;  %v9865_v19 = vld [vmem:[%s14107_s1 + $0x80] ss:$16 sps:$4 sm:$0xff]   ;;  %v9866_v20 = vld [vmem:[%s14107_s1 + $0x88] ss:$16 sps:$4 sm:$0xff]   ;;  %v9867_v21 = vld [vmem:[%s14107_s1 + $0xa4] ss:$16 sps:$4 sm:$0xff]  }
  0x66   :  { %484 = vmatprep.subr.bf16.mxu0 %v9849_v9  ;;  %557 = vmatprep.subr.bf16.mxu1 %v9851_v10  ;;  %v9869_v22 = vld [vmem:[%s14107_s1 + $0xac] ss:$16 sps:$4 sm:$0xff]   ;;  %v9871_v23 = vld [vmem:[%s14107_s1 + $0xa0] ss:$16 sps:$4 sm:$0xff]   ;;  %v9872_v24 = vld [vmem:[%s14107_s1 + $0xa8] ss:$16 sps:$4 sm:$0xff]  }
  0x67   :  { %v9873_v25 = vld [vmem:[%s14107_s1 + $0xc4] ss:$16 sps:$4 sm:$0xff]   ;;  %v9875_v26 = vld [vmem:[%s14107_s1 + $0xcc] ss:$16 sps:$4 sm:$0xff]   ;;  %v9877_v27 = vld [vmem:[%s14107_s1 + $0xc0] ss:$16 sps:$4 sm:$0xff]  }
  0x68   :  { %v9878_v28 = vld [vmem:[%s14107_s1 + $0xc8] ss:$16 sps:$4 sm:$0xff]   ;;  %v9879_v29 = vld [vmem:[%s14107_s1 + $0xe4] ss:$16 sps:$4 sm:$0xff]   ;;  %v9881_v30 = vld [vmem:[%s14107_s1 + $0xec] ss:$16 sps:$4 sm:$0xff]  }
  0x69   :  { %485 = vmatpush1.bf16.msra.mxu0 %v9853_v11  ;;  %558 = vmatpush1.bf16.msra.mxu1 %v9854_v12  ;;  %v9883_v31 = vld [vmem:[%s14107_s1 + $0xe0] ss:$16 sps:$4 sm:$0xff]   ;;  %v9884_v32 = vld [vmem:[%s14107_s1 + $0xe8] ss:$16 sps:$4 sm:$0xff]   ;;  %v9888_v33 = vld [vmem:[#allocation14 + $0x4] ss:$16 sps:$4 sm:$0xff]  }
  0x6a   :  { %486 = vmatprep.subr.bf16.mxu0 %v9855_v13  ;;  %559 = vmatprep.subr.bf16.mxu1 %v9857_v14  ;;  %v9891_v34 = vld [vmem:[#allocation14 + $0xc] ss:$16 sps:$4 sm:$0xff]   ;;  %v11246_v35 = vld [vmem:[%s14106_s0] sm:$0xff]   ;;  %v9889_v37 = vld [vmem:[#allocation14 + $0x8] ss:$16 sps:$4 sm:$0xff]   ;;  %s10899_s18 = scalar_lea.hbm %s14119_s13, 4096 }
  0x6b   :  { %v9886_v36 = vld [vmem:[#allocation14] ss:$16 sps:$4 sm:$0xff]   ;;  %v9894_v38 = vld [vmem:[#allocation14 + $0x24] ss:$16 sps:$4 sm:$0xff]   ;;  %v9897_v39 = vld [vmem:[#allocation14 + $0x2c] ss:$16 sps:$4 sm:$0xff]   ;;  %p10900_p10 = scmp.ne.s32.totalorder %s14119_s13, %s10899_s18  ;;  %p10903_p11 = scmp.lt.u32.totalorder %s10899_s18, %s14119_s13 }
  0x6c   :  { %v9892_v40 = vld [vmem:[#allocation14 + $0x20] ss:$16 sps:$4 sm:$0xff]   ;;  %v9895_v41 = vld [vmem:[#allocation14 + $0x28] ss:$16 sps:$4 sm:$0xff]   ;;  %v9901_v42 = vld [vmem:[#allocation14 + $0x44] ss:$16 sps:$4 sm:$0xff]  }
  0x6d   :  { %487 = vmatpush1.bf16.msra.mxu0 %v9859_v15  ;;  %560 = vmatpush1.bf16.msra.mxu1 %v9860_v16  ;;  %v9904_v43 = vld [vmem:[#allocation14 + $0x4c] ss:$16 sps:$4 sm:$0xff]   ;;  %v9899_v45 = vld [vmem:[#allocation14 + $0x40] ss:$16 sps:$4 sm:$0xff]   ;;  %v9902_v46 = vld [vmem:[#allocation14 + $0x48] ss:$16 sps:$4 sm:$0xff]   ;;  %p10905_p12 = pnand %p10903_p11, %p10900_p10 }
  0x6e   :  { %488 = vmatprep.subr.bf16.mxu0 %v9861_v17  ;;  %561 = vmatprep.subr.bf16.mxu1 %v9863_v18  ;;  %v11255_v44 = vld [vmem:[%s14106_s0 + $0x8] sm:$0xff]   ;;  %v9907_v47 = vld [vmem:[#allocation14 + $0x64] ss:$16 sps:$4 sm:$0xff]   ;;  %v9905_v49 = vld [vmem:[#allocation14 + $0x60] ss:$16 sps:$4 sm:$0xff]  }
  0x6f   :  { %v9910_v48 = vld [vmem:[#allocation14 + $0x6c] ss:$16 sps:$4 sm:$0xff]   ;;  %v9908_v50 = vld [vmem:[#allocation14 + $0x68] ss:$16 sps:$4 sm:$0xff]   ;;  %v9914_v51 = vld [vmem:[#allocation14 + $0x84] ss:$16 sps:$4 sm:$0xff]  }
  0x70   :  { %v9917_v52 = vld [vmem:[#allocation14 + $0x8c] ss:$16 sps:$4 sm:$0xff]   ;;  %v11264_v53 = vld [vmem:[%s14106_s0 + $0x10] sm:$0xff]   ;;  %v9915_v55 = vld [vmem:[#allocation14 + $0x88] ss:$16 sps:$4 sm:$0xff]  }
  0x71   :  { %489 = vmatpush1.bf16.msra.mxu0 %v9865_v19  ;;  %562 = vmatpush1.bf16.msra.mxu1 %v9866_v20  ;;  %v9912_v54 = vld [vmem:[#allocation14 + $0x80] ss:$16 sps:$4 sm:$0xff]   ;;  %v9920_v56 = vld [vmem:[#allocation14 + $0xa4] ss:$16 sps:$4 sm:$0xff]   ;;  %v9923_v57 = vld [vmem:[#allocation14 + $0xac] ss:$16 sps:$4 sm:$0xff]  }
  0x72   :  { %490 = vmatprep.subr.bf16.mxu0 %v9867_v21  ;;  %563 = vmatprep.subr.bf16.mxu1 %v9869_v22  ;;  %v9918_v58 = vld [vmem:[#allocation14 + $0xa0] ss:$16 sps:$4 sm:$0xff]   ;;  %v9921_v59 = vld [vmem:[#allocation14 + $0xa8] ss:$16 sps:$4 sm:$0xff]   ;;  %v9927_v60 = vld [vmem:[#allocation14 + $0xc4] ss:$16 sps:$4 sm:$0xff]  }
  0x73   :  { %v9930_v61 = vld [vmem:[#allocation14 + $0xcc] ss:$16 sps:$4 sm:$0xff]   ;;  %v9925_v63 = vld [vmem:[#allocation14 + $0xc0] ss:$16 sps:$4 sm:$0xff]   ;;  %v9928_v1 = vld [vmem:[#allocation14 + $0xc8] ss:$16 sps:$4 sm:$0xff]  }
  0x74   :  { %v11273_v62 = vld [vmem:[%s14106_s0 + $0x18] sm:$0xff]   ;;  %v9933_v2 = vld [vmem:[#allocation14 + $0xe4] ss:$16 sps:$4 sm:$0xff]   ;;  %v9931_v4 = vld [vmem:[#allocation14 + $0xe0] ss:$16 sps:$4 sm:$0xff]  }
  0x75   :  { %491 = vmatpush1.bf16.msra.mxu0 %v9871_v23  ;;  %564 = vmatpush1.bf16.msra.mxu1 %v9872_v24  ;;  %v9936_v3 = vld [vmem:[#allocation14 + $0xec] ss:$16 sps:$4 sm:$0xff]   ;;  %v9934_v5 = vld [vmem:[#allocation14 + $0xe8] ss:$16 sps:$4 sm:$0xff]   ;;  %v11277_v6 = vld [vmem:[#allocation12 + $0x4] ss:$16 sps:$4 sm:$0xff]  }
  0x76   :  { %492 = vmatprep.subr.bf16.mxu0 %v9873_v25  ;;  %565 = vmatprep.subr.bf16.mxu1 %v9875_v26  ;;  %v11279_v7 = vld [vmem:[#allocation12 + $0xc] ss:$16 sps:$4 sm:$0xff]   ;;  %v11283_v8 = vld [vmem:[#allocation12] ss:$16 sps:$4 sm:$0xff]   ;;  %v11285_v9 = vld [vmem:[#allocation12 + $0x8] ss:$16 sps:$4 sm:$0xff]  }
  0x77   :  { %v11287_v10 = vld [vmem:[#allocation12 + $0x24] ss:$16 sps:$4 sm:$0xff]   ;;  %v11291_v11 = vld [vmem:[#allocation12 + $0x2c] ss:$16 sps:$4 sm:$0xff]   ;;  %v11295_v12 = vld [vmem:[#allocation12 + $0x20] ss:$16 sps:$4 sm:$0xff]  }
  0x78   :  { %v11297_v13 = vld [vmem:[#allocation12 + $0x28] ss:$16 sps:$4 sm:$0xff]   ;;  %v11301_v14 = vld [vmem:[#allocation12 + $0x44] ss:$16 sps:$4 sm:$0xff]   ;;  %v11305_v15 = vld [vmem:[#allocation12 + $0x4c] ss:$16 sps:$4 sm:$0xff]  }
  0x79   :  { %493 = vmatpush1.bf16.msra.mxu0 %v9877_v27  ;;  %566 = vmatpush1.bf16.msra.mxu1 %v9878_v28  ;;  %v11309_v16 = vld [vmem:[#allocation12 + $0x40] ss:$16 sps:$4 sm:$0xff]   ;;  %v11311_v17 = vld [vmem:[#allocation12 + $0x48] ss:$16 sps:$4 sm:$0xff]   ;;  %v11315_v18 = vld [vmem:[#allocation12 + $0x64] ss:$16 sps:$4 sm:$0xff]  }
  0x7a   :  { %494 = vmatprep.subr.bf16.mxu0 %v9879_v29  ;;  %567 = vmatprep.subr.bf16.mxu1 %v9881_v30  ;;  %v11319_v19 = vld [vmem:[#allocation12 + $0x6c] ss:$16 sps:$4 sm:$0xff]   ;;  %v11323_v20 = vld [vmem:[#allocation12 + $0x60] ss:$16 sps:$4 sm:$0xff]   ;;  %v11325_v21 = vld [vmem:[#allocation12 + $0x68] ss:$16 sps:$4 sm:$0xff]  }
  0x7b   :  { %v11329_v22 = vld [vmem:[#allocation12 + $0x84] ss:$16 sps:$4 sm:$0xff]   ;;  %v11333_v23 = vld [vmem:[#allocation12 + $0x8c] ss:$16 sps:$4 sm:$0xff]   ;;  %v11337_v24 = vld [vmem:[#allocation12 + $0x80] ss:$16 sps:$4 sm:$0xff]  }
  0x7c   :  { %v11339_v25 = vld [vmem:[#allocation12 + $0x88] ss:$16 sps:$4 sm:$0xff]   ;;  %v11343_v26 = vld [vmem:[#allocation12 + $0xa4] ss:$16 sps:$4 sm:$0xff]   ;;  %v11347_v27 = vld [vmem:[#allocation12 + $0xac] ss:$16 sps:$4 sm:$0xff]  }
  0x7d   :  { %495 = vmatpush1.bf16.msra.mxu0 %v9883_v31  ;;  %568 = vmatpush1.bf16.msra.mxu1 %v9884_v32  ;;  %v11351_v28 = vld [vmem:[#allocation12 + $0xa0] ss:$16 sps:$4 sm:$0xff]   ;;  %v11353_v29 = vld [vmem:[#allocation12 + $0xa8] ss:$16 sps:$4 sm:$0xff]   ;;  %v11357_v30 = vld [vmem:[#allocation12 + $0xc4] ss:$16 sps:$4 sm:$0xff]  }
  0x7e   :  { %872 = vmatprep.subr.bf16.mxu0 %v9888_v33  ;;  %945 = vmatprep.subr.bf16.mxu1 %v9891_v34  ;;  %v11361_v31 = vld [vmem:[#allocation12 + $0xcc] ss:$16 sps:$4 sm:$0xff]   ;;  %v11365_v32 = vld [vmem:[#allocation12 + $0xc0] ss:$16 sps:$4 sm:$0xff]   ;;  %v11369_v33 = vld [vmem:[#allocation12 + $0xc8] ss:$16 sps:$4 sm:$0xff]  }
  0x7f   :  { %v11373_v34 = vld [vmem:[#allocation12 + $0xe4] ss:$16 sps:$4 sm:$0xff]  }
  0x80   :  { %513 = vmatmul.mubr.bf16.vlgmr.msra.gmra.mrb[0].mxu0 %v11246_v35  ;;  %586 = vmatmul.mubr.bf16.vlgmr.msra.gmra.mrb[0].mxu1 %v11246_v35 }
  0x81   :  { %873 = vmatpush1.bf16.msra.mxu0 %v9886_v36  ;;  %946 = vmatpush1.bf16.msra.mxu1 %v9889_v37  ;;  %v11377_v36 = vld [vmem:[#allocation12 + $0xe0] ss:$16 sps:$4 sm:$0xff]   ;;  %v11379_v37 = vld [vmem:[#allocation12 + $0xe8] ss:$16 sps:$4 sm:$0xff]  }
  0x82   :  { %874 = vmatprep.subr.bf16.mxu0 %v9894_v38  ;;  %947 = vmatprep.subr.bf16.mxu1 %v9897_v39  ;;  %v11383_v38 = vld [vmem:[#allocation16 + $0x4] ss:$16 sps:$4 sm:$0xff]   ;;  %v11385_v39 = vld [vmem:[#allocation16 + $0xc] ss:$16 sps:$4 sm:$0xff]  }
  0x83   :  { %522 = vmatprep.mubr.bf16.mxu0 %v14122_v0  ;;  %595 = vmatprep.mubr.bf16.mxu1 %v14122_v0 }
  0x85   :  { %875 = vmatpush1.bf16.msra.mxu0 %v9892_v40  ;;  %948 = vmatpush1.bf16.msra.mxu1 %v9895_v41  ;;  %v11393_v40 = vld [vmem:[#allocation16] ss:$16 sps:$4 sm:$0xff]   ;;  %v11395_v41 = vld [vmem:[#allocation16 + $0x8] ss:$16 sps:$4 sm:$0xff]  }
  0x86   :  { %876 = vmatprep.subr.bf16.mxu0 %v9901_v42  ;;  %949 = vmatprep.subr.bf16.mxu1 %v9904_v43  ;;  %v11397_v42 = vld [vmem:[#allocation16 + $0x24] ss:$16 sps:$4 sm:$0xff]   ;;  %v11399_v43 = vld [vmem:[#allocation16 + $0x2c] ss:$16 sps:$4 sm:$0xff]  }
  0x88   :  { %523 = vmatmul.mubr.bf16.gmra.mrb[4].mxu0 %v11255_v44  ;;  %596 = vmatmul.mubr.bf16.gmra.mrb[4].mxu1 %v11255_v44 }
  0x89   :  { %877 = vmatpush1.bf16.msra.mxu0 %v9899_v45  ;;  %950 = vmatpush1.bf16.msra.mxu1 %v9902_v46  ;;  %v11407_v45 = vld [vmem:[#allocation16 + $0x28] ss:$16 sps:$4 sm:$0xff]   ;;  %v11411_v46 = vld [vmem:[#allocation16 + $0x44] ss:$16 sps:$4 sm:$0xff]  }
  0x8a   :  { %878 = vmatprep.subr.bf16.mxu0 %v9907_v47  ;;  %951 = vmatprep.subr.bf16.mxu1 %v9910_v48  ;;  %v11413_v47 = vld [vmem:[#allocation16 + $0x4c] ss:$16 sps:$4 sm:$0xff]   ;;  %v11419_v48 = vld [vmem:[#allocation16 + $0x40] ss:$16 sps:$4 sm:$0xff]  }
  0x8b   :  { %532 = vmatprep.mubr.bf16.mxu0 %v14122_v0  ;;  %605 = vmatprep.mubr.bf16.mxu1 %v14122_v0 }
  0x8d   :  { %879 = vmatpush1.bf16.msra.mxu0 %v9905_v49  ;;  %952 = vmatpush1.bf16.msra.mxu1 %v9908_v50  ;;  %v11421_v49 = vld [vmem:[#allocation16 + $0x48] ss:$16 sps:$4 sm:$0xff]   ;;  %v11425_v50 = vld [vmem:[#allocation16 + $0x64] ss:$16 sps:$4 sm:$0xff]  }
  0x8e   :  { %880 = vmatprep.subr.bf16.mxu0 %v9914_v51  ;;  %953 = vmatprep.subr.bf16.mxu1 %v9917_v52  ;;  %v11427_v51 = vld [vmem:[#allocation16 + $0x6c] ss:$16 sps:$4 sm:$0xff]   ;;  %v11433_v52 = vld [vmem:[#allocation16 + $0x60] ss:$16 sps:$4 sm:$0xff]  }
  0x90   :  { %533 = vmatmul.mubr.bf16.gmra.mrb[8].mxu0 %v11264_v53  ;;  %606 = vmatmul.mubr.bf16.gmra.mrb[8].mxu1 %v11264_v53 }
  0x91   :  { %881 = vmatpush1.bf16.msra.mxu0 %v9912_v54  ;;  %954 = vmatpush1.bf16.msra.mxu1 %v9915_v55  ;;  %v11437_v54 = vld [vmem:[#allocation16 + $0x84] ss:$16 sps:$4 sm:$0xff]   ;;  %v11439_v55 = vld [vmem:[#allocation16 + $0x8c] ss:$16 sps:$4 sm:$0xff]  }
  0x92   :  { %882 = vmatprep.subr.bf16.mxu0 %v9920_v56  ;;  %955 = vmatprep.subr.bf16.mxu1 %v9923_v57  ;;  %v11445_v56 = vld [vmem:[#allocation16 + $0x80] ss:$16 sps:$4 sm:$0xff]   ;;  %v11447_v57 = vld [vmem:[#allocation16 + $0x88] ss:$16 sps:$4 sm:$0xff]  }
  0x93   :  { %542 = vmatprep.mubr.bf16.mxu0 %v14122_v0  ;;  %615 = vmatprep.mubr.bf16.mxu1 %v14122_v0 }
  0x95   :  { %883 = vmatpush1.bf16.msra.mxu0 %v9918_v58  ;;  %956 = vmatpush1.bf16.msra.mxu1 %v9921_v59  ;;  %v11449_v58 = vld [vmem:[#allocation16 + $0xa4] ss:$16 sps:$4 sm:$0xff]   ;;  %v11451_v59 = vld [vmem:[#allocation16 + $0xac] ss:$16 sps:$4 sm:$0xff]  }
  0x96   :  { %884 = vmatprep.subr.bf16.mxu0 %v9927_v60  ;;  %957 = vmatprep.subr.bf16.mxu1 %v9930_v61  ;;  %v11457_v60 = vld [vmem:[#allocation16 + $0xa0] ss:$16 sps:$4 sm:$0xff]   ;;  %v11459_v61 = vld [vmem:[#allocation16 + $0xa8] ss:$16 sps:$4 sm:$0xff]  }
  0x98   :  { %543 = vmatmul.mubr.bf16.gmra.mrb[12].mxu0 %v11273_v62  ;;  %616 = vmatmul.mubr.bf16.gmra.mrb[12].mxu1 %v11273_v62 }
  0x99   :  { %885 = vmatpush1.bf16.msra.mxu0 %v9925_v63  ;;  %958 = vmatpush1.bf16.msra.mxu1 %v9928_v1  ;;  %v11463_v63 = vld [vmem:[#allocation16 + $0xcc] ss:$16 sps:$4 sm:$0xff]   ;;  %v11469_v1 = vld [vmem:[#allocation16 + $0xc0] ss:$16 sps:$4 sm:$0xff]  }
  0x9a   :  { %886 = vmatprep.subr.bf16.mxu0 %v9933_v2  ;;  %959 = vmatprep.subr.bf16.mxu1 %v9936_v3  ;;  %14238 = vst [vmem:[#allocation36_spill] sm:$0xff] %v11463_v63  ;;  %v11471_v2 = vld [vmem:[#allocation16 + $0xc8] ss:$16 sps:$4 sm:$0xff]   ;;  %v11473_v3 = vld [vmem:[#allocation16 + $0xe4] ss:$16 sps:$4 sm:$0xff]  }
  0x9b   :  { %904 = vmatprep.mubr.bf16.mxu0 %v14122_v0  ;;  %977 = vmatprep.mubr.bf16.mxu1 %v14122_v0 }
  0x9d   :  { %887 = vmatpush1.bf16.msra.mxu0 %v9931_v4  ;;  %960 = vmatpush1.bf16.msra.mxu1 %v9934_v5  ;;  %v11475_v4 = vld [vmem:[#allocation16 + $0xec] ss:$16 sps:$4 sm:$0xff]   ;;  %v11481_v5 = vld [vmem:[#allocation16 + $0xe0] ss:$16 sps:$4 sm:$0xff]  }
  0x9e   :  { %1246 = vmatprep.subr.bf16.mxu0 %v11277_v6  ;;  %1287 = vmatprep.subr.bf16.mxu1 %v11279_v7 }
  0xa0   :  { %905 = vmatmul.mubr.bf16.vlgmr.msra.gmra.mrb[16].mxu0 %v11246_v35  ;;  %978 = vmatmul.mubr.bf16.vlgmr.msra.gmra.mrb[16].mxu1 %v11246_v35  ;;  %v11375_v35 = vld [vmem:[#allocation12 + $0xec] ss:$16 sps:$4 sm:$0xff]  }
  0xa1   :  { %1247 = vmatpush1.bf16.msra.mxu0 %v11283_v8  ;;  %1288 = vmatpush1.bf16.msra.mxu1 %v11285_v9 }
  0xa2   :  { %1248 = vmatprep.subr.bf16.mxu0 %v11287_v10  ;;  %1289 = vmatprep.subr.bf16.mxu1 %v11291_v11 }
  0xa3   :  { %914 = vmatprep.mubr.bf16.mxu0 %v14122_v0  ;;  %987 = vmatprep.mubr.bf16.mxu1 %v14122_v0 }
  0xa5   :  { %1249 = vmatpush1.bf16.msra.mxu0 %v11295_v12  ;;  %1290 = vmatpush1.bf16.msra.mxu1 %v11297_v13 }
  0xa6   :  { %1250 = vmatprep.subr.bf16.mxu0 %v11301_v14  ;;  %1291 = vmatprep.subr.bf16.mxu1 %v11305_v15 }
  0xa8   :  { %915 = vmatmul.mubr.bf16.gmra.mrb[20].mxu0 %v11255_v44  ;;  %988 = vmatmul.mubr.bf16.gmra.mrb[20].mxu1 %v11255_v44  ;;  %v11405_v44 = vld [vmem:[#allocation16 + $0x20] ss:$16 sps:$4 sm:$0xff]  }
  0xa9   :  { %1251 = vmatpush1.bf16.msra.mxu0 %v11309_v16  ;;  %1292 = vmatpush1.bf16.msra.mxu1 %v11311_v17 }
  0xaa   :  { %1252 = vmatprep.subr.bf16.mxu0 %v11315_v18  ;;  %1293 = vmatprep.subr.bf16.mxu1 %v11319_v19 }
  0xab   :  { %924 = vmatprep.mubr.bf16.mxu0 %v14122_v0  ;;  %997 = vmatprep.mubr.bf16.mxu1 %v14122_v0 }
  0xad   :  { %1253 = vmatpush1.bf16.msra.mxu0 %v11323_v20  ;;  %1294 = vmatpush1.bf16.msra.mxu1 %v11325_v21 }
  0xae   :  { %1254 = vmatprep.subr.bf16.mxu0 %v11329_v22  ;;  %1295 = vmatprep.subr.bf16.mxu1 %v11333_v23 }
  0xb0   :  { %925 = vmatmul.mubr.bf16.gmra.mrb[24].mxu0 %v11264_v53  ;;  %998 = vmatmul.mubr.bf16.gmra.mrb[24].mxu1 %v11264_v53  ;;  %v11435_v53 = vld [vmem:[#allocation16 + $0x68] ss:$16 sps:$4 sm:$0xff]  }
  0xb1   :  { %1255 = vmatpush1.bf16.msra.mxu0 %v11337_v24  ;;  %1296 = vmatpush1.bf16.msra.mxu1 %v11339_v25 }
  0xb2   :  { %1256 = vmatprep.subr.bf16.mxu0 %v11343_v26  ;;  %1297 = vmatprep.subr.bf16.mxu1 %v11347_v27 }
  0xb3   :  { %934 = vmatprep.mubr.bf16.mxu0 %v14122_v0  ;;  %1007 = vmatprep.mubr.bf16.mxu1 %v14122_v0 }
  0xb5   :  { %1257 = vmatpush1.bf16.msra.mxu0 %v11351_v28  ;;  %1298 = vmatpush1.bf16.msra.mxu1 %v11353_v29 }
  0xb6   :  { %1258 = vmatprep.subr.bf16.mxu0 %v11357_v30  ;;  %1299 = vmatprep.subr.bf16.mxu1 %v11361_v31 }
  0xb8   :  { %935 = vmatmul.mubr.bf16.gmra.mrb[28].mxu0 %v11273_v62  ;;  %1008 = vmatmul.mubr.bf16.gmra.mrb[28].mxu1 %v11273_v62  ;;  %v11461_v62 = vld [vmem:[#allocation16 + $0xc4] ss:$16 sps:$4 sm:$0xff]  }
  0xb9   :  { %1259 = vmatpush1.bf16.msra.mxu0 %v11365_v32  ;;  %1300 = vmatpush1.bf16.msra.mxu1 %v11369_v33 }
  0xba   :  { %1260 = vmatprep.subr.bf16.mxu0 %v11373_v34  ;;  %1301 = vmatprep.subr.bf16.mxu1 %v11375_v35 }
  0xbb   :  { %1278 = vmatprep.mubr.bf16.mxu0 %v14122_v0  ;;  %1319 = vmatprep.mubr.bf16.mxu1 %v14122_v0 }
  0xbd   :  { %1261 = vmatpush1.bf16.msra.mxu0 %v11377_v36  ;;  %1302 = vmatpush1.bf16.msra.mxu1 %v11379_v37 }
  0xbe   :  { %1528 = vmatprep.subr.bf16.mxu0 %v11383_v38  ;;  %1569 = vmatprep.subr.bf16.mxu1 %v11385_v39 }
  0xc0   :  { %1279 = vmatmul.mubr.bf16.vlgmr.msra.gmra.mrb[32].mxu0 %v14122_v0  ;;  %1320 = vmatmul.mubr.bf16.vlgmr.msra.gmra.mrb[32].mxu1 %v14122_v0 }
  0xc1   :  { %1529 = vmatpush1.bf16.msra.mxu0 %v11393_v40  ;;  %1570 = vmatpush1.bf16.msra.mxu1 %v11395_v41 }
  0xc2   :  { %1530 = vmatprep.subr.bf16.mxu0 %v11397_v42  ;;  %1571 = vmatprep.subr.bf16.mxu1 %v11399_v43 }
  0xc3   :  { %1560 = vmatprep.mubr.bf16.mxu0 %v14122_v0  ;;  %1601 = vmatprep.mubr.bf16.mxu1 %v14122_v0  ;;  %v11483_v0 = vld [vmem:[#allocation16 + $0xe8] ss:$16 sps:$4 sm:$0xff]  }
  0xc5   :  { %1531 = vmatpush1.bf16.msra.mxu0 %v11405_v44  ;;  %1572 = vmatpush1.bf16.msra.mxu1 %v11407_v45 }
  0xc6   :  { %1532 = vmatprep.subr.bf16.mxu0 %v11411_v46  ;;  %1573 = vmatprep.subr.bf16.mxu1 %v11413_v47 }
  0xc9   :  { %1533 = vmatpush1.bf16.msra.mxu0 %v11419_v48  ;;  %1574 = vmatpush1.bf16.msra.mxu1 %v11421_v49 }
  0xca   :  { %1534 = vmatprep.subr.bf16.mxu0 %v11425_v50  ;;  %1575 = vmatprep.subr.bf16.mxu1 %v11427_v51 }
  0xcd   :  { %1535 = vmatpush1.bf16.msra.mxu0 %v11433_v52  ;;  %1576 = vmatpush1.bf16.msra.mxu1 %v11435_v53 }
  0xce   :  { %1536 = vmatprep.subr.bf16.mxu0 %v11437_v54  ;;  %1577 = vmatprep.subr.bf16.mxu1 %v11439_v55 }
  0xd1   :  { %1537 = vmatpush1.bf16.msra.mxu0 %v11445_v56  ;;  %1578 = vmatpush1.bf16.msra.mxu1 %v11447_v57 }
  0xd2   :  { %1538 = vmatprep.subr.bf16.mxu0 %v11449_v58  ;;  %1579 = vmatprep.subr.bf16.mxu1 %v11451_v59 }
  0xd5   :  { %1539 = vmatpush1.bf16.msra.mxu0 %v11457_v60  ;;  %1580 = vmatpush1.bf16.msra.mxu1 %v11459_v61 }
  0xd6   :  { %1540 = vmatprep.subr.bf16.mxu0 %v11461_v62  ;;  %1581 = vmatprep.subr.bf16.mxu1 %v11463_v63  ;;  %v14239_v63 = vmov 0  }
  0xd9   :  { %1541 = vmatpush1.bf16.msra.mxu0 %v11469_v1  ;;  %1582 = vmatpush1.bf16.msra.mxu1 %v11471_v2 }
  0xda   :  { %1542 = vmatprep.subr.bf16.mxu0 %v11473_v3  ;;  %1583 = vmatprep.subr.bf16.mxu1 %v11475_v4 }
  0xdd   :  { %1543 = vmatpush1.bf16.msra.mxu0 %v11481_v5  ;;  %1584 = vmatpush1.bf16.msra.mxu1 %v11483_v0 }
  0xde   :  { %1861 = vmatprep.subr.bf16.mxu0 %v11277_v6  ;;  %1902 = vmatprep.subr.bf16.mxu1 %v11279_v7  ;;  %v276_v6 = vlaneseq }
  0xe0   :  { %1561 = vmatmul.mubr.bf16.vlgmr.msra.gmra.mrb[36].mxu0 %v14239_v63  ;;  %1602 = vmatmul.mubr.bf16.vlgmr.msra.gmra.mrb[36].mxu1 %v14239_v63  ;;  %v277_v7 = vshrl.u32 %v276_v6, 7 }
  0xe1   :  { %1862 = vmatpush1.bf16.msra.mxu0 %v11283_v8  ;;  %1903 = vmatpush1.bf16.msra.mxu1 %v11285_v9 }
  0xe2   :  { %1863 = vmatprep.subr.bf16.mxu0 %v11287_v10  ;;  %1904 = vmatprep.subr.bf16.mxu1 %v11291_v11  ;;  %v11529_v8 = vsub.s32 0, %v277_v7  ;;  %v11531_v9 = vsub.s32 2, %v277_v7  ;;  %v274_v10 = vld [vmem:[%s14109_s3] sm:$0xf]  ;;  %v11536_v11 = vsub.s32 3, %v277_v7 }
  0xe3   :  { %1893 = vmatprep.mubr.bf16.mxu0 %v14239_v63  ;;  %1934 = vmatprep.mubr.bf16.mxu1 %v14239_v63 }
  0xe4   :  { %14240 = vst [vmem:[#allocation37_spill] sm:$0xff] %v11529_v8  ;;  %14241 = vst [vmem:[#allocation38_spill] sm:$0xff] %v11531_v9 }
  0xe5   :  { %1864 = vmatpush1.bf16.msra.mxu0 %v11295_v12  ;;  %1905 = vmatpush1.bf16.msra.mxu1 %v11297_v13  ;;  %14242 = vst [vmem:[#allocation39_spill] sm:$0xff] %v11536_v11  ;;  %v11538_v12 = vsub.s32 1, %v277_v7  ;;  %v11541_v13 = vrot.slane %v274_v10, %v11529_v8 }
  0xe6   :  { %1865 = vmatprep.subr.bf16.mxu0 %v11301_v14  ;;  %1906 = vmatprep.subr.bf16.mxu1 %v11305_v15  ;;  %v11544_v14 = vrot.slane %v274_v10, %v11531_v9 }
  0xe7   :  { %14243 = vst [vmem:[#allocation40_spill] sm:$0xff] %v11538_v12 }
  0xe9   :  { %1866 = vmatpush1.bf16.msra.mxu0 %v11309_v16  ;;  %1907 = vmatpush1.bf16.msra.mxu1 %v11311_v17  ;;  %v11551_v17 = vrot.slane %v274_v10, %v11536_v11 }
  0xea   :  { %1867 = vmatprep.subr.bf16.mxu0 %v11315_v18  ;;  %1908 = vmatprep.subr.bf16.mxu1 %v11319_v19 }
  0xed   :  { %1868 = vmatpush1.bf16.msra.mxu0 %v11323_v20  ;;  %1909 = vmatpush1.bf16.msra.mxu1 %v11325_v21  ;;  %v11558_v20 = vrot.slane %v274_v10, %v11538_v12 }
  0xee   :  { %1869 = vmatprep.subr.bf16.mxu0 %v11329_v22  ;;  %1910 = vmatprep.subr.bf16.mxu1 %v11333_v23 }
  0xf1   :  { %1870 = vmatpush1.bf16.msra.mxu0 %v11337_v24  ;;  %1911 = vmatpush1.bf16.msra.mxu1 %v11339_v25 }
  0xf2   :  { %1871 = vmatprep.subr.bf16.mxu0 %v11343_v26  ;;  %1912 = vmatprep.subr.bf16.mxu1 %v11347_v27 }
  0xf5   :  { %1872 = vmatpush1.bf16.msra.mxu0 %v11351_v28  ;;  %1913 = vmatpush1.bf16.msra.mxu1 %v11353_v29 }
  0xf6   :  { %1873 = vmatprep.subr.bf16.mxu0 %v11357_v30  ;;  %1914 = vmatprep.subr.bf16.mxu1 %v11361_v31 }
  0xf9   :  { %1874 = vmatpush1.bf16.msra.mxu0 %v11365_v32  ;;  %1915 = vmatpush1.bf16.msra.mxu1 %v11369_v33 }
  0xfa   :  { %1875 = vmatprep.subr.bf16.mxu0 %v11373_v34  ;;  %1916 = vmatprep.subr.bf16.mxu1 %v11375_v35 }
  0xfd   :  { %1876 = vmatpush1.bf16.msra.mxu0 %v11377_v36  ;;  %1917 = vmatpush1.bf16.msra.mxu1 %v11379_v37 }
  0xfe   :  { %2144 = vmatprep.subr.bf16.mxu0 %v11383_v38  ;;  %2185 = vmatprep.subr.bf16.mxu1 %v11385_v39 }
 0x153   :  { %v11546_v15 = vpop.f32.mrb[0].mxu0  ;;  %v11548_v16 = vpop.f32.mrb[0].mxu1 }
 0x154   :  { %v11553_v18 = vpop.f32.mrb[1].mxu0  ;;  %v11555_v19 = vpop.f32.mrb[1].mxu1 }
 0x155   :  { %v518_v21 = vpop.f32.mrb[2].mxu0  ;;  %v591_v22 = vpop.f32.mrb[2].mxu1 }
 0x156   :  { %v11561_v23 = vadd.f32 %v518_v21, %v11541_v13  ;;  %v520_v24 = vpop.f32.mrb[3].mxu0  ;;  %v11564_v25 = vadd.f32 %v591_v22, %v11544_v14  ;;  %v593_v26 = vpop.f32.mrb[3].mxu1 }
 0x157   :  { %v11567_v27 = vadd.f32 %v520_v24, %v11558_v20  ;;  %v11570_v28 = vadd.f32 %v593_v26, %v11551_v17 }
 0x159   :  { %14244 = vst [vmem:[#allocation41_spill] sm:$0xff] %v11570_v28 }
 0x15b   :  { %v524_v29 = vpop.f32.mrb[4].mxu0  ;;  %v597_v30 = vpop.f32.mrb[4].mxu1 }
 0x15c   :  { %v11573_v31 = vadd.f32 %v524_v29, %v11541_v13  ;;  %v526_v32 = vpop.f32.mrb[5].mxu0  ;;  %v11576_v33 = vadd.f32 %v597_v30, %v11544_v14  ;;  %v599_v34 = vpop.f32.mrb[5].mxu1 }
 0x15d   :  { %v11579_v35 = vadd.f32 %v526_v32, %v11558_v20  ;;  %v528_v36 = vpop.f32.mrb[6].mxu0  ;;  %v11582_v37 = vadd.f32 %v599_v34, %v11551_v17  ;;  %v601_v38 = vpop.f32.mrb[6].mxu1 }
 0x15e   :  { %14245 = vst [vmem:[#allocation42_spill] sm:$0xff] %v11573_v31  ;;  %14246 = vst [vmem:[#allocation43_spill] sm:$0xff] %v11576_v33  ;;  %v11585_v39 = vadd.f32 %v528_v36, %v11541_v13  ;;  %v530_v6 = vpop.f32.mrb[7].mxu0  ;;  %v11588_v7 = vadd.f32 %v601_v38, %v11544_v14  ;;  %v603_v10 = vpop.f32.mrb[7].mxu1 }
 0x15f   :  { %14247 = vst [vmem:[#allocation44_spill] sm:$0xff] %v11579_v35  ;;  %14248 = vst [vmem:[#allocation45_spill] sm:$0xff] %v11582_v37  ;;  %v11591_v21 = vadd.f32 %v530_v6, %v11558_v20  ;;  %v11594_v22 = vadd.f32 %v603_v10, %v11551_v17 }
 0x160   :  { %14249 = vst [vmem:[#allocation46_spill] sm:$0xff] %v11585_v39  ;;  %14250 = vst [vmem:[#allocation47_spill] sm:$0xff] %v11588_v7 }
 0x161   :  { %14251 = vst [vmem:[#allocation48_spill] sm:$0xff] %v11591_v21  ;;  %14252 = vst [vmem:[#allocation49_spill] sm:$0xff] %v11594_v22 }
 0x163   :  { %v534_v24 = vpop.f32.mrb[8].mxu0  ;;  %v607_v26 = vpop.f32.mrb[8].mxu1 }
 0x164   :  { %v11597_v29 = vadd.f32 %v534_v24, %v11541_v13  ;;  %v536_v30 = vpop.f32.mrb[9].mxu0  ;;  %v11600_v32 = vadd.f32 %v607_v26, %v11544_v14  ;;  %v609_v34 = vpop.f32.mrb[9].mxu1 }
 0x165   :  { %v11603_v36 = vadd.f32 %v536_v30, %v11558_v20  ;;  %v538_v38 = vpop.f32.mrb[10].mxu0  ;;  %v11606_v6 = vadd.f32 %v609_v34, %v11551_v17  ;;  %v611_v21 = vpop.f32.mrb[10].mxu1 }
 0x166   :  { %14253 = vst [vmem:[#allocation50_spill] sm:$0xff] %v11597_v29  ;;  %14254 = vst [vmem:[#allocation51_spill] sm:$0xff] %v11600_v32  ;;  %v11609_v10 = vadd.f32 %v538_v38, %v11541_v13  ;;  %v540_v22 = vpop.f32.mrb[11].mxu0  ;;  %v11612_v24 = vadd.f32 %v611_v21, %v11544_v14  ;;  %v613_v29 = vpop.f32.mrb[11].mxu1 }
 0x167   :  { %14255 = vst [vmem:[#allocation52_spill] sm:$0xff] %v11603_v36  ;;  %14256 = vst [vmem:[#allocation53_spill] sm:$0xff] %v11606_v6  ;;  %v11615_v26 = vadd.f32 %v540_v22, %v11558_v20  ;;  %v11618_v32 = vadd.f32 %v613_v29, %v11551_v17  ;;  %v690_v22 = vld [vmem:[%s14112_s6] sm:$0xf]  ;;  %s10958_s6 = smov [#allocation10]  }
 0x168   :  { %14257 = vst [vmem:[#allocation54_spill] sm:$0xff] %v11609_v10  ;;  %14258 = vst [vmem:[#allocation55_spill] sm:$0xff] %v11612_v24  ;;  %s230_s29 = sshll.u32 %s10958_s6, 4  ;;  %s231_s29 = int_to_ptr.vmem [resolvable:$true] %s230_s29 }
 0x169   :  { %14259 = vst [vmem:[#allocation56_spill] sm:$0xff] %v11615_v26  ;;  %14260 = vst [vmem:[#allocation57_spill] sm:$0xff] %v11618_v32  ;;  %v11648_v26 = vrot.slane %v690_v22, %v11529_v8 }
 0x16b   :  { %v544_v30 = vpop.f32.mrb[12].mxu0  ;;  %v617_v36 = vpop.f32.mrb[12].mxu1 }
 0x16c   :  { %v11621_v34 = vadd.f32 %v544_v30, %v11541_v13  ;;  %v546_v6 = vpop.f32.mrb[13].mxu0  ;;  %v11624_v38 = vadd.f32 %v617_v36, %v11544_v14  ;;  %v619_v10 = vpop.f32.mrb[13].mxu1 }
 0x16d   :  { %v11627_v21 = vadd.f32 %v546_v6, %v11558_v20  ;;  %v548_v24 = vpop.f32.mrb[14].mxu0  ;;  %v11633_v29 = vadd.f32 %v619_v10, %v11551_v17  ;;  %v621_v32 = vpop.f32.mrb[14].mxu1  ;;  %v11651_v10 = vrot.slane %v690_v22, %v11531_v9 }
 0x16e   :  { %14261 = vst [vmem:[#allocation58_spill] sm:$0xff] %v11621_v34  ;;  %14262 = vst [vmem:[#allocation59_spill] sm:$0xff] %v11624_v38  ;;  %v11636_v30 = vadd.f32 %v548_v24, %v11541_v13  ;;  %v550_v34 = vpop.f32.mrb[15].mxu0  ;;  %v11639_v36 = vadd.f32 %v621_v32, %v11544_v14  ;;  %v623_v38 = vpop.f32.mrb[15].mxu1  ;;  %v11654_v24 = vrot.slane %v690_v22, %v11538_v12 }
 0x16f   :  { %14263 = vst [vmem:[#allocation60_spill] sm:$0xff] %v11627_v21  ;;  %14264 = vst [vmem:[#allocation61_spill] sm:$0xff] %v11633_v29  ;;  %v11642_v6 = vadd.f32 %v550_v34, %v11558_v20  ;;  %v11645_v21 = vadd.f32 %v623_v38, %v11551_v17 }
 0x170   :  { %14265 = vst [vmem:[#allocation62_spill] sm:$0xff] %v11636_v30  ;;  %14266 = vst [vmem:[#allocation63_spill] sm:$0xff] %v11639_v36  ;;  %v11657_v30 = vrot.slane %v690_v22, %v11536_v11 }
 0x171   :  { %14267 = vst [vmem:[#allocation64_spill] sm:$0xff] %v11642_v6  ;;  %14268 = vst [vmem:[#allocation65_spill] sm:$0xff] %v11645_v21 }
 0x173   :  { %v906_v32 = vpop.f32.mrb[16].mxu0  ;;  %v979_v36 = vpop.f32.mrb[16].mxu1 }
 0x174   :  { %v11660_v34 = vadd.f32 %v906_v32, %v11648_v26  ;;  %v908_v6 = vpop.f32.mrb[17].mxu0  ;;  %v11663_v38 = vadd.f32 %v979_v36, %v11651_v10  ;;  %v981_v8 = vpop.f32.mrb[17].mxu1 }
 0x175   :  { %v11666_v21 = vadd.f32 %v908_v6, %v11654_v24  ;;  %v910_v9 = vpop.f32.mrb[18].mxu0  ;;  %v11669_v12 = vadd.f32 %v981_v8, %v11657_v30  ;;  %v983_v29 = vpop.f32.mrb[18].mxu1 }
 0x176   :  { %14269 = vst [vmem:[#allocation66_spill] sm:$0xff] %v11660_v34  ;;  %14270 = vst [vmem:[#allocation67_spill] sm:$0xff] %v11663_v38  ;;  %v11672_v22 = vadd.f32 %v910_v9, %v11648_v26  ;;  %v912_v11 = vpop.f32.mrb[19].mxu0  ;;  %v11675_v32 = vadd.f32 %v983_v29, %v11651_v10  ;;  %v985_v34 = vpop.f32.mrb[19].mxu1 }
 0x177   :  { %14271 = vst [vmem:[#allocation68_spill] sm:$0xff] %v11666_v21  ;;  %14272 = vst [vmem:[#allocation69_spill] sm:$0xff] %v11669_v12  ;;  %v11678_v36 = vadd.f32 %v912_v11, %v11654_v24  ;;  %v11681_v38 = vadd.f32 %v985_v34, %v11657_v30 }
 0x178   :  { %14273 = vst [vmem:[#allocation70_spill] sm:$0xff] %v11672_v22  ;;  %14274 = vst [vmem:[#allocation71_spill] sm:$0xff] %v11675_v32 }
 0x179   :  { %14275 = vst [vmem:[#allocation72_spill] sm:$0xff] %v11678_v36  ;;  %14276 = vst [vmem:[#allocation73_spill] sm:$0xff] %v11681_v38 }
 0x17b   :  { %v916_v6 = vpop.f32.mrb[20].mxu0  ;;  %v989_v21 = vpop.f32.mrb[20].mxu1 }
 0x17c   :  { %v11684_v8 = vadd.f32 %v916_v6, %v11648_v26  ;;  %v918_v12 = vpop.f32.mrb[21].mxu0  ;;  %v11687_v9 = vadd.f32 %v989_v21, %v11651_v10  ;;  %v991_v22 = vpop.f32.mrb[21].mxu1 }
 0x17d   :  { %v11690_v29 = vadd.f32 %v918_v12, %v11654_v24  ;;  %v920_v32 = vpop.f32.mrb[22].mxu0  ;;  %v11693_v11 = vadd.f32 %v991_v22, %v11657_v30  ;;  %v993_v36 = vpop.f32.mrb[22].mxu1 }
 0x17e   :  { %14277 = vst [vmem:[#allocation74_spill] sm:$0xff] %v11684_v8  ;;  %14278 = vst [vmem:[#allocation75_spill] sm:$0xff] %v11687_v9  ;;  %v11696_v34 = vadd.f32 %v920_v32, %v11648_v26  ;;  %v922_v38 = vpop.f32.mrb[23].mxu0  ;;  %v11699_v6 = vadd.f32 %v993_v36, %v11651_v10  ;;  %v995_v8 = vpop.f32.mrb[23].mxu1 }
 0x17f   :  { %14279 = vst [vmem:[#allocation76_spill] sm:$0xff] %v11690_v29  ;;  %14280 = vst [vmem:[#allocation77_spill] sm:$0xff] %v11693_v11  ;;  %v11702_v21 = vadd.f32 %v922_v38, %v11654_v24  ;;  %v11705_v9 = vadd.f32 %v995_v8, %v11657_v30 }
 0x180   :  { %14281 = vst [vmem:[#allocation78_spill] sm:$0xff] %v11696_v34  ;;  %14282 = vst [vmem:[#allocation79_spill] sm:$0xff] %v11699_v6 }
 0x181   :  { %14283 = vst [vmem:[#allocation80_spill] sm:$0xff] %v11702_v21  ;;  %14284 = vst [vmem:[#allocation81_spill] sm:$0xff] %v11705_v9 }
 0x183   :  { %v926_v12 = vpop.f32.mrb[24].mxu0  ;;  %v999_v29 = vpop.f32.mrb[24].mxu1 }
 0x184   :  { %v11708_v22 = vadd.f32 %v926_v12, %v11648_v26  ;;  %v928_v11 = vpop.f32.mrb[25].mxu0  ;;  %v11711_v32 = vadd.f32 %v999_v29, %v11651_v10  ;;  %v1001_v34 = vpop.f32.mrb[25].mxu1 }
 0x185   :  { %v11714_v36 = vadd.f32 %v928_v11, %v11654_v24  ;;  %v930_v6 = vpop.f32.mrb[26].mxu0  ;;  %v11717_v38 = vadd.f32 %v1001_v34, %v11657_v30  ;;  %v1003_v21 = vpop.f32.mrb[26].mxu1 }
 0x186   :  { %14285 = vst [vmem:[#allocation82_spill] sm:$0xff] %v11708_v22  ;;  %14286 = vst [vmem:[#allocation83_spill] sm:$0xff] %v11711_v32  ;;  %v11720_v8 = vadd.f32 %v930_v6, %v11648_v26  ;;  %v932_v9 = vpop.f32.mrb[27].mxu0  ;;  %v11723_v12 = vadd.f32 %v1003_v21, %v11651_v10  ;;  %v1005_v22 = vpop.f32.mrb[27].mxu1 }
 0x187   :  { %14287 = vst [vmem:[#allocation84_spill] sm:$0xff] %v11714_v36  ;;  %14288 = vst [vmem:[#allocation85_spill] sm:$0xff] %v11717_v38  ;;  %v11726_v29 = vadd.f32 %v932_v9, %v11654_v24  ;;  %v11729_v32 = vadd.f32 %v1005_v22, %v11657_v30 }
 0x188   :  { %14289 = vst [vmem:[#allocation86_spill] sm:$0xff] %v11720_v8  ;;  %14290 = vst [vmem:[#allocation87_spill] sm:$0xff] %v11723_v12  ;;  %v515_v12 = vadd.f32 %v11546_v15, %v11541_v13 }
 0x189   :  { %14291 = vst [vmem:[#allocation88_spill] sm:$0xff] %v11726_v29  ;;  %14292 = vst [vmem:[#allocation89_spill] sm:$0xff] %v11729_v32 }
 0x18b   :  { %v936_v11 = vpop.f32.mrb[28].mxu0  ;;  %v1009_v36 = vpop.f32.mrb[28].mxu1 }
 0x18c   :  { %v11732_v34 = vadd.f32 %v936_v11, %v11648_v26  ;;  %v938_v38 = vpop.f32.mrb[29].mxu0  ;;  %v11735_v6 = vadd.f32 %v1009_v36, %v11651_v10  ;;  %v1011_v7 = vpop.f32.mrb[29].mxu1  ;;  %v588_v11 = vadd.f32 %v11548_v16, %v11544_v14  ;;  %v517_v36 = vadd.f32 %v11553_v18, %v11558_v20 }
 0x18d   :  { %v11738_v21 = vadd.f32 %v938_v38, %v11654_v24  ;;  %v940_v39 = vpop.f32.mrb[30].mxu0  ;;  %v11741_v9 = vadd.f32 %v1011_v7, %v11657_v30  ;;  %v1013_v29 = vpop.f32.mrb[30].mxu1  ;;  %v590_v38 = vadd.f32 %v11555_v19, %v11551_v17 }
 0x18e   :  { %14293 = vst [vmem:[#allocation90_spill] sm:$0xff] %v11732_v34  ;;  %14294 = vst [vmem:[#allocation91_spill] sm:$0xff] %v11735_v6  ;;  %v942_v22 = vpop.f32.mrb[31].mxu0  ;;  %v1015_v32 = vpop.f32.mrb[31].mxu1 }
 0x18f   :  { %14295 = vst [vmem:[#allocation92_spill] sm:$0xff] %v11738_v21  ;;  %14296 = vst [vmem:[#allocation93_spill] sm:$0xff] %v11741_v9 }
 0x193   :  { %v1280_v8 = vpop.f32.mrb[32].mxu0  ;;  %v1321_v37 = vpop.f32.mrb[32].mxu1 }
 0x194   :  { %v1328_v35 = vadd.f32 %v1280_v8, %v515_v12  ;;  %v1330_v7 = vadd.f32 %v1321_v37, %v588_v11  ;;  %v1282_v33 = vpop.f32.mrb[33].mxu0  ;;  %v1323_v31 = vpop.f32.mrb[33].mxu1 }
 0x195   :  { %v1329_v9 = vadd.f32 %v1282_v33, %v517_v36  ;;  %v1331_v21 = vadd.f32 %v1323_v31, %v590_v38  ;;  %v1284_v6 = vpop.f32.mrb[34].mxu0  ;;  %v1325_v34 = vpop.f32.mrb[34].mxu1 }
 0x196   :  { %v9219_v13 = vmul.f32 -1.442695, %v1328_v35  ;;  %v1285_v15 = vpop.f32.mrb[35].mxu0  ;;  %v1326_v28 = vpop.f32.mrb[35].mxu1  ;;  %v1014_v6 = vadd.f32 %v1013_v29, %v11651_v10 }
 0x197   :  { %v9220_v14 = vmul.f32 -1.442695, %v1329_v9  ;;  %v9221_v16 = vmul.f32 -1.442695, %v1331_v21  ;;  %v941_v28 = vadd.f32 %v940_v39, %v11648_v26  ;;  %v943_v21 = vadd.f32 %v942_v22, %v11654_v24 }
 0x198   :  { %10321 = vpow2.f32 %v9219_v13  ;;  %v1016_v9 = vadd.f32 %v1015_v32, %v11657_v30 }
 0x199   :  { %10323 = vpow2.f32 %v9220_v14 }
 0x19a   :  { %10325 = vpow2.f32 %v9221_v16 }
 0x19b   :  { %10327 = vtanh.f32 %v1330_v7 }
 0x1a2   :  { %v10322_v18 = vpop.eup %10321 }
 0x1a3   :  { %v10324_v20 = vpop.eup %10323  ;;  %v1620_v17 = vadd.f32 1.0, %v10322_v18 }
 0x1a4   :  { %v1621_v19 = vadd.f32 1.0, %v10324_v20  ;;  %v10326_v37 = vpop.eup %10325 }
 0x1a5   :  { %10329 = vrcp.f32 %v1620_v17  ;;  %v10328_v33 = vpop.eup %10327  ;;  %v1630_v35 = vadd.f32 1.0, %v10326_v37 }
 0x1a6   :  { %10331 = vrcp.f32 %v1621_v19 }
 0x1a7   :  { %10333 = vrcp.f32 %v1630_v35 }
 0x1af   :  { %v10330_v31 = vpop.eup %10329 }
 0x1b0   :  { %v10332_v8 = vpop.eup %10331  ;;  %v1634_v12 = vmul.f32 %v10330_v31, %v10328_v33 }
 0x1b1   :  { %v1633_v34 = vmul.f32 0.0, %v10332_v8  ;;  %v10334_v30 = vpop.eup %10333 }
 0x1b3   :  { %v11755_v11 = vadd.f32 %v1634_v12, %v1633_v34  ;;  %v1562_v36 = vpop.f32.mrb[36].mxu0  ;;  %v1603_v38 = vpop.f32.mrb[36].mxu1  ;;  %v11855_v34 = vld [vmem:[#allocation12 + $0x80] ss:$16 sps:$4 sm:$0xff]  }
 0x1b4   :  { %v1610_v7 = vadd.f32 %v1562_v36, %v941_v28  ;;  %v1612_v13 = vadd.f32 %v1603_v38, %v1014_v6  ;;  %v1564_v15 = vpop.f32.mrb[37].mxu0  ;;  %v1605_v14 = vpop.f32.mrb[37].mxu1  ;;  %v11857_v28 = vld [vmem:[#allocation12 + $0x88] ss:$16 sps:$4 sm:$0xff]   ;;  %v11863_v6 = vld [vmem:[#allocation12 + $0xa4] ss:$16 sps:$4 sm:$0xff]  }
 0x1b5   :  { %10335 = vtanh.f32 %v11755_v11  ;;  %v1611_v16 = vadd.f32 %v1564_v15, %v943_v21  ;;  %v1613_v18 = vadd.f32 %v1605_v14, %v1016_v9  ;;  %v1566_v39 = vpop.f32.mrb[38].mxu0  ;;  %v1607_v26 = vpop.f32.mrb[38].mxu1  ;;  %v11865_v21 = vld [vmem:[#allocation12 + $0xac] ss:$16 sps:$4 sm:$0xff]   ;;  %v11867_v9 = vld [vmem:[#allocation12 + $0xa0] ss:$16 sps:$4 sm:$0xff]  }
 0x1b6   :  { %v9222_v10 = vmul.f32 -1.442695, %v1610_v7  ;;  %v1567_v29 = vpop.f32.mrb[39].mxu0  ;;  %v1608_v24 = vpop.f32.mrb[39].mxu1  ;;  %v11869_v36 = vld [vmem:[#allocation12 + $0xa8] ss:$16 sps:$4 sm:$0xff]  }
 0x1b7   :  { %v9223_v22 = vmul.f32 -1.442695, %v1611_v16  ;;  %v9224_v20 = vmul.f32 -1.442695, %v1613_v18  ;;  %v11875_v38 = vld [vmem:[#allocation12 + $0xc4] ss:$16 sps:$4 sm:$0xff]  }
 0x1b8   :  { %10337 = vpow2.f32 %v9222_v10  ;;  %v11877_v7 = vld [vmem:[#allocation12 + $0xcc] ss:$16 sps:$4 sm:$0xff]   ;;  %v11881_v15 = vld [vmem:[#allocation12 + $0xc8] ss:$16 sps:$4 sm:$0xff]   ;;  %v11887_v14 = vld [vmem:[#allocation12 + $0xe4] ss:$16 sps:$4 sm:$0xff]  }
 0x1b9   :  { %10339 = vpow2.f32 %v9223_v22  ;;  %v11889_v16 = vld [vmem:[#allocation12 + $0xec] ss:$16 sps:$4 sm:$0xff]   ;;  %v11891_v18 = vld [vmem:[#allocation12 + $0xe0] ss:$16 sps:$4 sm:$0xff]   ;;  %v11893_v39 = vld [vmem:[#allocation12 + $0xe8] ss:$16 sps:$4 sm:$0xff]  }
 0x1ba   :  { %10341 = vpow2.f32 %v9224_v20  ;;  %v11899_v26 = vld [vmem:[#allocation16 + $0x4] ss:$16 sps:$4 sm:$0xff]   ;;  %v11901_v10 = vld [vmem:[#allocation16 + $0xc] ss:$16 sps:$4 sm:$0xff]  }
 0x1bb   :  { %10343 = vtanh.f32 %v1612_v13  ;;  %v11879_v13 = vld [vmem:[#allocation12 + $0xc0] ss:$16 sps:$4 sm:$0xff]  }
 0x1bf   :  { %v10336_v32 = vpop.eup %10335 }
 0x1c0   :  { %v11758_v17 = vmul.f32 %v10336_v32, %v10334_v30 }
 0x1c2   :  { %14297 = vst [vmem:[#allocation94_spill] sm:$0xff] %v11758_v17  ;;  %v10338_v19 = vpop.eup %10337  ;;  %v1668_v37 = vpack.c.bf16 %v11758_v17, %v11758_v17  ;;  %v11978_v17 = vld [vmem:[#allocation16 + $0xac] ss:$16 sps:$4 sm:$0xff]  }
 0x1c3   :  { %v10340_v33 = vpop.eup %10339  ;;  %v1645_v31 = vadd.f32 1.0, %v10338_v19 }
 0x1c4   :  { %v1646_v8 = vadd.f32 1.0, %v10340_v33  ;;  %1894 = vmatmul.mubr.bf16.vlgmr.msra.gmra.mrb[40].mxu0 %v1668_v37  ;;  %1935 = vmatmul.mubr.bf16.vlgmr.msra.gmra.mrb[40].mxu1 %v1668_v37  ;;  %v14300_v37 = vld [vmem:[#allocation41_spill] sm:$0xff] }
 0x1c5   :  { %10345 = vrcp.f32 %v1645_v31  ;;  %2145 = vmatpush1.bf16.msra.mxu0 %v11393_v40  ;;  %2186 = vmatpush1.bf16.msra.mxu1 %v11395_v41  ;;  %v10342_v40 = vpop.eup %10341 }
 0x1c6   :  { %10347 = vrcp.f32 %v1646_v8  ;;  %2146 = vmatprep.subr.bf16.mxu0 %v11397_v42  ;;  %2187 = vmatprep.subr.bf16.mxu1 %v11399_v43  ;;  %v10344_v41 = vpop.eup %10343 }
 0x1c7   :  { %2176 = vmatprep.mubr.bf16.mxu0 %v14239_v63  ;;  %2217 = vmatprep.mubr.bf16.mxu1 %v14239_v63 }
 0x1c9   :  { %2147 = vmatpush1.bf16.msra.mxu0 %v11405_v44  ;;  %2188 = vmatpush1.bf16.msra.mxu1 %v11407_v45  ;;  %v1655_v44 = vadd.f32 1.0, %v10342_v40 }
 0x1ca   :  { %2148 = vmatprep.subr.bf16.mxu0 %v11411_v46  ;;  %2189 = vmatprep.subr.bf16.mxu1 %v11413_v47  ;;  %v14298_v46 = vld [vmem:[#allocation36_spill] sm:$0xff] }
 0x1cb   :  { %10349 = vrcp.f32 %v1655_v44 }
 0x1cd   :  { %2149 = vmatpush1.bf16.msra.mxu0 %v11419_v48  ;;  %2190 = vmatpush1.bf16.msra.mxu1 %v11421_v49 }
 0x1ce   :  { %2150 = vmatprep.subr.bf16.mxu0 %v11425_v50  ;;  %2191 = vmatprep.subr.bf16.mxu1 %v11427_v51  ;;  %v11803_v51 = vld [vmem:[#allocation12 + $0x4] ss:$16 sps:$4 sm:$0xff]  }
 0x1cf   :  { %v10346_v42 = vpop.eup %10345 }
 0x1d0   :  { %v10348_v43 = vpop.eup %10347  ;;  %v1659_v12 = vmul.f32 %v10346_v42, %v10344_v41 }
 0x1d1   :  { %v1658_v35 = vmul.f32 0.0, %v10348_v43  ;;  %2151 = vmatpush1.bf16.msra.mxu0 %v11433_v52  ;;  %2192 = vmatpush1.bf16.msra.mxu1 %v11435_v53  ;;  %v11805_v52 = vld [vmem:[#allocation12 + $0xc] ss:$16 sps:$4 sm:$0xff]   ;;  %v11807_v53 = vld [vmem:[#allocation12] ss:$16 sps:$4 sm:$0xff]  }
 0x1d2   :  { %2152 = vmatprep.subr.bf16.mxu0 %v11437_v54  ;;  %2193 = vmatprep.subr.bf16.mxu1 %v11439_v55  ;;  %v11809_v54 = vld [vmem:[#allocation12 + $0x8] ss:$16 sps:$4 sm:$0xff]   ;;  %v11817_v55 = vld [vmem:[#allocation12 + $0x2c] ss:$16 sps:$4 sm:$0xff]  }
 0x1d3   :  { %v11780_v45 = vadd.f32 %v1659_v12, %v1658_v35 }
 0x1d5   :  { %10351 = vtanh.f32 %v11780_v45  ;;  %2153 = vmatpush1.bf16.msra.mxu0 %v11445_v56  ;;  %2194 = vmatpush1.bf16.msra.mxu1 %v11447_v57  ;;  %v10350_v47 = vpop.eup %10349  ;;  %v11819_v56 = vld [vmem:[#allocation12 + $0x20] ss:$16 sps:$4 sm:$0xff]   ;;  %v11821_v57 = vld [vmem:[#allocation12 + $0x28] ss:$16 sps:$4 sm:$0xff]  }
 0x1d6   :  { %2154 = vmatprep.subr.bf16.mxu0 %v11449_v58  ;;  %2195 = vmatprep.subr.bf16.mxu1 %v11451_v59  ;;  %v11827_v58 = vld [vmem:[#allocation12 + $0x44] ss:$16 sps:$4 sm:$0xff]   ;;  %v11829_v59 = vld [vmem:[#allocation12 + $0x4c] ss:$16 sps:$4 sm:$0xff]  }
 0x1d9   :  { %2155 = vmatpush1.bf16.msra.mxu0 %v11457_v60  ;;  %2196 = vmatpush1.bf16.msra.mxu1 %v11459_v61  ;;  %v11831_v60 = vld [vmem:[#allocation12 + $0x40] ss:$16 sps:$4 sm:$0xff]   ;;  %v11833_v61 = vld [vmem:[#allocation12 + $0x48] ss:$16 sps:$4 sm:$0xff]  }
 0x1da   :  { %2156 = vmatprep.subr.bf16.mxu0 %v11461_v62  ;;  %2197 = vmatprep.subr.bf16.mxu1 %v14298_v46  ;;  %v11839_v62 = vld [vmem:[#allocation12 + $0x64] ss:$16 sps:$4 sm:$0xff]  }
 0x1dd   :  { %2157 = vmatpush1.bf16.msra.mxu0 %v11469_v1  ;;  %2198 = vmatpush1.bf16.msra.mxu1 %v11471_v2  ;;  %v11841_v1 = vld [vmem:[#allocation12 + $0x6c] ss:$16 sps:$4 sm:$0xff]   ;;  %v11843_v2 = vld [vmem:[#allocation12 + $0x60] ss:$16 sps:$4 sm:$0xff]  }
 0x1de   :  { %2158 = vmatprep.subr.bf16.mxu0 %v11473_v3  ;;  %2199 = vmatprep.subr.bf16.mxu1 %v11475_v4  ;;  %v11845_v3 = vld [vmem:[#allocation12 + $0x68] ss:$16 sps:$4 sm:$0xff]   ;;  %v11851_v4 = vld [vmem:[#allocation12 + $0x84] ss:$16 sps:$4 sm:$0xff]  }
 0x1df   :  { %v10352_v48 = vpop.eup %10351 }
 0x1e0   :  { %v11795_v49 = vmul.f32 %v10352_v48, %v10350_v47 }
 0x1e1   :  { %2159 = vmatpush1.bf16.msra.mxu0 %v11481_v5  ;;  %2200 = vmatpush1.bf16.msra.mxu1 %v11483_v0  ;;  %v11815_v0 = vld [vmem:[#allocation12 + $0x24] ss:$16 sps:$4 sm:$0xff]   ;;  %v11853_v5 = vld [vmem:[#allocation12 + $0x8c] ss:$16 sps:$4 sm:$0xff]  }
 0x1e2   :  { %14299 = vst [vmem:[#allocation36_spill] sm:$0xff] %v11795_v49  ;;  %v1951_v50 = vpack.c.bf16 %v11795_v49, %v11795_v49  ;;  %2477 = vmatprep.subr.bf16.mxu0 %v11803_v51  ;;  %2518 = vmatprep.subr.bf16.mxu1 %v11805_v52  ;;  %v11972_v49 = vld [vmem:[#allocation16 + $0x88] ss:$16 sps:$4 sm:$0xff]  }
 0x1e4   :  { %2177 = vmatmul.mubr.bf16.vlgmr.msra.gmra.mrb[44].mxu0 %v1951_v50  ;;  %2218 = vmatmul.mubr.bf16.vlgmr.msra.gmra.mrb[44].mxu1 %v1951_v50 }
 0x1e5   :  { %2509 = vmatprep.mubr.bf16.mxu0 %v14239_v63  ;;  %2550 = vmatprep.mubr.bf16.mxu1 %v14239_v63 }
 0x1e6   :  { %2478 = vmatpush1.bf16.msra.mxu0 %v11807_v53  ;;  %2519 = vmatpush1.bf16.msra.mxu1 %v11809_v54 }
 0x1e7   :  { %2479 = vmatprep.subr.bf16.mxu0 %v11815_v0  ;;  %2520 = vmatprep.subr.bf16.mxu1 %v11817_v55 }
 0x1ea   :  { %2480 = vmatpush1.bf16.msra.mxu0 %v11819_v56  ;;  %2521 = vmatpush1.bf16.msra.mxu1 %v11821_v57 }
 0x1eb   :  { %2481 = vmatprep.subr.bf16.mxu0 %v11827_v58  ;;  %2522 = vmatprep.subr.bf16.mxu1 %v11829_v59 }
 0x1ee   :  { %2482 = vmatpush1.bf16.msra.mxu0 %v11831_v60  ;;  %2523 = vmatpush1.bf16.msra.mxu1 %v11833_v61 }
 0x1ef   :  { %2483 = vmatprep.subr.bf16.mxu0 %v11839_v62  ;;  %2524 = vmatprep.subr.bf16.mxu1 %v11841_v1 }
 0x1f2   :  { %2484 = vmatpush1.bf16.msra.mxu0 %v11843_v2  ;;  %2525 = vmatpush1.bf16.msra.mxu1 %v11845_v3 }
 0x1f3   :  { %2485 = vmatprep.subr.bf16.mxu0 %v11851_v4  ;;  %2526 = vmatprep.subr.bf16.mxu1 %v11853_v5 }
 0x1f6   :  { %2486 = vmatpush1.bf16.msra.mxu0 %v11855_v34  ;;  %2527 = vmatpush1.bf16.msra.mxu1 %v11857_v28 }
 0x1f7   :  { %2487 = vmatprep.subr.bf16.mxu0 %v11863_v6  ;;  %2528 = vmatprep.subr.bf16.mxu1 %v11865_v21 }
 0x1fa   :  { %2488 = vmatpush1.bf16.msra.mxu0 %v11867_v9  ;;  %2529 = vmatpush1.bf16.msra.mxu1 %v11869_v36 }
 0x1fb   :  { %2489 = vmatprep.subr.bf16.mxu0 %v11875_v38  ;;  %2530 = vmatprep.subr.bf16.mxu1 %v11877_v7 }
 0x1fe   :  { %2490 = vmatpush1.bf16.msra.mxu0 %v11879_v13  ;;  %2531 = vmatpush1.bf16.msra.mxu1 %v11881_v15 }
 0x1ff   :  { %2491 = vmatprep.subr.bf16.mxu0 %v11887_v14  ;;  %2532 = vmatprep.subr.bf16.mxu1 %v11889_v16 }
 0x202   :  { %2492 = vmatpush1.bf16.msra.mxu0 %v11891_v18  ;;  %2533 = vmatpush1.bf16.msra.mxu1 %v11893_v39 }
 0x203   :  { %2760 = vmatprep.subr.bf16.mxu0 %v11899_v26  ;;  %2801 = vmatprep.subr.bf16.mxu1 %v11901_v10 }
 0x297   :  { %v1895_v29 = vpop.f32.mrb[40].mxu0  ;;  %v1936_v24 = vpop.f32.mrb[40].mxu1 }
 0x298   :  { %v1943_v22 = vadd.f32 %v1895_v29, %v11561_v23  ;;  %v1945_v30 = vadd.f32 %v1936_v24, %v11564_v25  ;;  %v1897_v32 = vpop.f32.mrb[41].mxu0  ;;  %v1938_v20 = vpop.f32.mrb[41].mxu1 }
 0x299   :  { %v1944_v19 = vadd.f32 %v1897_v32, %v11567_v27  ;;  %v1946_v33 = vadd.f32 %v1938_v20, %v14300_v37  ;;  %v1899_v31 = vpop.f32.mrb[42].mxu0  ;;  %v1940_v8 = vpop.f32.mrb[42].mxu1 }
 0x29a   :  { %v9289_v40 = vmul.f32 -1.442695, %v1943_v22  ;;  %v1900_v41 = vpop.f32.mrb[43].mxu0  ;;  %v1941_v42 = vpop.f32.mrb[43].mxu1 }
 0x29b   :  { %v9290_v43 = vmul.f32 -1.442695, %v1944_v19  ;;  %v9291_v12 = vmul.f32 -1.442695, %v1946_v33  ;;  %v14301_v19 = vld [vmem:[#allocation90_spill] sm:$0xff]  ;;  %v14302_v33 = vld [vmem:[#allocation91_spill] sm:$0xff] }
 0x29c   :  { %10353 = vpow2.f32 %v9289_v40  ;;  %v14303_v40 = vld [vmem:[#allocation92_spill] sm:$0xff]  ;;  %v14304_v42 = vld [vmem:[#allocation93_spill] sm:$0xff]  ;;  %14306 = vst [vmem:[#allocation90_spill] sm:$0xff] %v11972_v49 }
 0x29d   :  { %10355 = vpow2.f32 %v9290_v43  ;;  %14308 = vst [vmem:[#allocation92_spill] sm:$0xff] %v11978_v17 }
 0x29e   :  { %10357 = vpow2.f32 %v9291_v12 }
 0x29f   :  { %10359 = vtanh.f32 %v1945_v30 }
 0x2a6   :  { %v10354_v44 = vpop.eup %10353 }
 0x2a7   :  { %v10356_v35 = vpop.eup %10355  ;;  %v2236_v23 = vadd.f32 1.0, %v10354_v44 }
 0x2a8   :  { %v2237_v25 = vadd.f32 1.0, %v10356_v35  ;;  %v10358_v27 = vpop.eup %10357 }
 0x2a9   :  { %10361 = vrcp.f32 %v2236_v23  ;;  %v10360_v46 = vpop.eup %10359  ;;  %v2246_v29 = vadd.f32 1.0, %v10358_v27 }
 0x2aa   :  { %10363 = vrcp.f32 %v2237_v25 }
 0x2ab   :  { %10365 = vrcp.f32 %v2246_v29  ;;  %v11921_v29 = vld [vmem:[#allocation16 + $0x8] ss:$16 sps:$4 sm:$0xff]  }
 0x2b3   :  { %v10362_v47 = vpop.eup %10361 }
 0x2b4   :  { %v10364_v48 = vpop.eup %10363  ;;  %v2250_v50 = vmul.f32 %v10362_v47, %v10360_v46 }
 0x2b5   :  { %v2249_v24 = vmul.f32 %v10364_v48, %v11755_v11  ;;  %v10366_v27 = vpop.eup %10365 }
 0x2b7   :  { %v11910_v22 = vadd.f32 %v2250_v50, %v2249_v24  ;;  %v2178_v32 = vpop.f32.mrb[44].mxu0  ;;  %v2219_v20 = vpop.f32.mrb[44].mxu1  ;;  %v11919_v50 = vld [vmem:[#allocation16] ss:$16 sps:$4 sm:$0xff]  }
 0x2b8   :  { %v2226_v37 = vadd.f32 %v2178_v32, %v14301_v19  ;;  %v2228_v30 = vadd.f32 %v2219_v20, %v14302_v33  ;;  %v2180_v31 = vpop.f32.mrb[45].mxu0  ;;  %v2221_v8 = vpop.f32.mrb[45].mxu1  ;;  %v11925_v20 = vld [vmem:[#allocation16 + $0x24] ss:$16 sps:$4 sm:$0xff]   ;;  %v11927_v19 = vld [vmem:[#allocation16 + $0x2c] ss:$16 sps:$4 sm:$0xff]  }
 0x2b9   :  { %v2227_v41 = vadd.f32 %v2180_v31, %v14303_v40  ;;  %v2229_v43 = vadd.f32 %v2221_v8, %v14304_v42  ;;  %v2182_v12 = vpop.f32.mrb[46].mxu0  ;;  %v2223_v44 = vpop.f32.mrb[46].mxu1  ;;  %10367 = vtanh.f32 %v11910_v22  ;;  %v11931_v8 = vld [vmem:[#allocation16 + $0x20] ss:$16 sps:$4 sm:$0xff]   ;;  %v11933_v40 = vld [vmem:[#allocation16 + $0x28] ss:$16 sps:$4 sm:$0xff]  }
 0x2ba   :  { %v9292_v11 = vmul.f32 -1.442695, %v2226_v37  ;;  %v2183_v35 = vpop.f32.mrb[47].mxu0  ;;  %v2224_v23 = vpop.f32.mrb[47].mxu1  ;;  %v11945_v42 = vld [vmem:[#allocation16 + $0x40] ss:$16 sps:$4 sm:$0xff]  }
 0x2bb   :  { %v9293_v25 = vmul.f32 -1.442695, %v2227_v41  ;;  %v9294_v47 = vmul.f32 -1.442695, %v2229_v43  ;;  %v11937_v41 = vld [vmem:[#allocation16 + $0x44] ss:$16 sps:$4 sm:$0xff]  }
 0x2bc   :  { %10369 = vpow2.f32 %v9292_v11  ;;  %v11947_v43 = vld [vmem:[#allocation16 + $0x48] ss:$16 sps:$4 sm:$0xff]   ;;  %v11951_v12 = vld [vmem:[#allocation16 + $0x64] ss:$16 sps:$4 sm:$0xff]   ;;  %v11953_v44 = vld [vmem:[#allocation16 + $0x6c] ss:$16 sps:$4 sm:$0xff]  }
 0x2bd   :  { %10371 = vpow2.f32 %v9293_v25  ;;  %v11957_v35 = vld [vmem:[#allocation16 + $0x60] ss:$16 sps:$4 sm:$0xff]   ;;  %v11959_v23 = vld [vmem:[#allocation16 + $0x68] ss:$16 sps:$4 sm:$0xff]  }
 0x2be   :  { %10373 = vpow2.f32 %v9294_v47 }
 0x2bf   :  { %10375 = vtanh.f32 %v2228_v30  ;;  %v11939_v30 = vld [vmem:[#allocation16 + $0x4c] ss:$16 sps:$4 sm:$0xff]  }
 0x2c3   :  { %v10368_v46 = vpop.eup %10367 }
 0x2c4   :  { %v11917_v48 = vmul.f32 %v10368_v46, %v10366_v27  ;;  %v11963_v27 = vld [vmem:[#allocation16 + $0x84] ss:$16 sps:$4 sm:$0xff]   ;;  %v11965_v46 = vld [vmem:[#allocation16 + $0x8c] ss:$16 sps:$4 sm:$0xff]  }
 0x2c6   :  { %14305 = vst [vmem:[#allocation41_spill] sm:$0xff] %v11917_v48  ;;  %v10370_v24 = vpop.eup %10369  ;;  %v2284_v32 = vpack.c.bf16 %v11917_v48, %v11917_v48  ;;  %v11976_v48 = vld [vmem:[#allocation16 + $0xa4] ss:$16 sps:$4 sm:$0xff]  }
 0x2c7   :  { %v10372_v37 = vpop.eup %10371  ;;  %v2261_v33 = vadd.f32 1.0, %v10370_v24  ;;  %14307 = vst [vmem:[#allocation91_spill] sm:$0xff] %v11976_v48 }
 0x2c8   :  { %v2262_v31 = vadd.f32 1.0, %v10372_v37  ;;  %2510 = vmatmul.mubr.bf16.vlgmr.msra.gmra.mrb[48].mxu0 %v2284_v32  ;;  %2551 = vmatmul.mubr.bf16.vlgmr.msra.gmra.mrb[48].mxu1 %v2284_v32  ;;  %v10374_v11 = vpop.eup %10373 }
 0x2c9   :  { %10377 = vrcp.f32 %v2261_v33  ;;  %2761 = vmatpush1.bf16.msra.mxu0 %v11919_v50  ;;  %2802 = vmatpush1.bf16.msra.mxu1 %v11921_v29  ;;  %v10376_v25 = vpop.eup %10375  ;;  %v2271_v37 = vadd.f32 1.0, %v10374_v11  ;;  %v11986_v11 = vld [vmem:[#allocation16 + $0xa8] ss:$16 sps:$4 sm:$0xff]  }
 0x2ca   :  { %10379 = vrcp.f32 %v2262_v31  ;;  %2762 = vmatprep.subr.bf16.mxu0 %v11925_v20  ;;  %2803 = vmatprep.subr.bf16.mxu1 %v11927_v19  ;;  %v11970_v31 = vld [vmem:[#allocation16 + $0x80] ss:$16 sps:$4 sm:$0xff]   ;;  %14310 = vst [vmem:[#allocation95_spill] sm:$0xff] %v11986_v11 }
 0x2cb   :  { %2792 = vmatprep.mubr.bf16.mxu0 %v14239_v63  ;;  %2833 = vmatprep.mubr.bf16.mxu1 %v14239_v63  ;;  %10381 = vrcp.f32 %v2271_v37  ;;  %v11999_v37 = vld [vmem:[#allocation16 + $0xc8] ss:$16 sps:$4 sm:$0xff]  }
 0x2cd   :  { %2763 = vmatpush1.bf16.msra.mxu0 %v11931_v8  ;;  %2804 = vmatpush1.bf16.msra.mxu1 %v11933_v40 }
 0x2ce   :  { %2764 = vmatprep.subr.bf16.mxu0 %v11937_v41  ;;  %2805 = vmatprep.subr.bf16.mxu1 %v11939_v30 }
 0x2d1   :  { %2765 = vmatpush1.bf16.msra.mxu0 %v11945_v42  ;;  %2806 = vmatpush1.bf16.msra.mxu1 %v11947_v43 }
 0x2d2   :  { %2766 = vmatprep.subr.bf16.mxu0 %v11951_v12  ;;  %2807 = vmatprep.subr.bf16.mxu1 %v11953_v44 }
 0x2d3   :  { %v10378_v47 = vpop.eup %10377 }
 0x2d4   :  { %v10380_v24 = vpop.eup %10379  ;;  %v2275_v32 = vmul.f32 %v10378_v47, %v10376_v25  ;;  %v11991_v47 = vld [vmem:[#allocation16 + $0xc4] ss:$16 sps:$4 sm:$0xff]  }
 0x2d5   :  { %v2274_v33 = vmul.f32 %v10380_v24, %v11780_v45  ;;  %2767 = vmatpush1.bf16.msra.mxu0 %v11957_v35  ;;  %2808 = vmatpush1.bf16.msra.mxu1 %v11959_v23  ;;  %v11984_v45 = vld [vmem:[#allocation16 + $0xa0] ss:$16 sps:$4 sm:$0xff]   ;;  %14311 = vst [vmem:[#allocation96_spill] sm:$0xff] %v11991_v47  ;;  %v11993_v24 = vld [vmem:[#allocation16 + $0xcc] ss:$16 sps:$4 sm:$0xff]  }
 0x2d6   :  { %2768 = vmatprep.subr.bf16.mxu0 %v11963_v27  ;;  %2809 = vmatprep.subr.bf16.mxu1 %v11965_v46  ;;  %14309 = vst [vmem:[#allocation93_spill] sm:$0xff] %v11984_v45 }
 0x2d7   :  { %v11980_v25 = vadd.f32 %v2275_v32, %v2274_v33  ;;  %v11997_v32 = vld [vmem:[#allocation16 + $0xc0] ss:$16 sps:$4 sm:$0xff]   ;;  %v12003_v33 = vld [vmem:[#allocation16 + $0xe4] ss:$16 sps:$4 sm:$0xff]  }
 0x2d8   :  { %14312 = vst [vmem:[#allocation97_spill] sm:$0xff] %v11997_v32 }
 0x2d9   :  { %2769 = vmatpush1.bf16.msra.mxu0 %v11970_v31  ;;  %2810 = vmatpush1.bf16.msra.mxu1 %v11972_v49  ;;  %10383 = vtanh.f32 %v11980_v25 }
 0x2da   :  { %2770 = vmatprep.subr.bf16.mxu0 %v11976_v48  ;;  %2811 = vmatprep.subr.bf16.mxu1 %v11978_v17  ;;  %v12005_v48 = vld [vmem:[#allocation16 + $0xec] ss:$16 sps:$4 sm:$0xff]   ;;  %v12009_v17 = vld [vmem:[#allocation16 + $0xe0] ss:$16 sps:$4 sm:$0xff]  }
 0x2dd   :  { %2771 = vmatpush1.bf16.msra.mxu0 %v11984_v45  ;;  %2812 = vmatpush1.bf16.msra.mxu1 %v11986_v11  ;;  %v12011_v45 = vld [vmem:[#allocation16 + $0xe8] ss:$16 sps:$4 sm:$0xff]   ;;  %v10382_v11 = vpop.eup %10381 }
 0x2de   :  { %2772 = vmatprep.subr.bf16.mxu0 %v11991_v47  ;;  %2813 = vmatprep.subr.bf16.mxu1 %v11993_v24 }
 0x2e1   :  { %2773 = vmatpush1.bf16.msra.mxu0 %v11997_v32  ;;  %2814 = vmatpush1.bf16.msra.mxu1 %v11999_v37 }
 0x2e2   :  { %2774 = vmatprep.subr.bf16.mxu0 %v12003_v33  ;;  %2815 = vmatprep.subr.bf16.mxu1 %v12005_v48 }
 0x2e3   :  { %v10384_v47 = vpop.eup %10383 }
 0x2e4   :  { %v12015_v49 = vmul.f32 %v10384_v47, %v10382_v11  ;;  %v14319_v47 = vld [vmem:[#allocation87_spill] sm:$0xff] }
 0x2e5   :  { %2775 = vmatpush1.bf16.msra.mxu0 %v12009_v17  ;;  %2816 = vmatpush1.bf16.msra.mxu1 %v12011_v45 }
 0x2e6   :  { %14313 = vst [vmem:[#allocation98_spill] sm:$0xff] %v12015_v49  ;;  %v2567_v32 = vpack.c.bf16 %v12015_v49, %v12015_v49  ;;  %3093 = vmatprep.subr.bf16.mxu0 %v11803_v51  ;;  %3134 = vmatprep.subr.bf16.mxu1 %v11805_v52  ;;  %v12282_v49 = vld [vmem:[#allocation16 + $0x80] ss:$16 sps:$4 sm:$0xff]  }
 0x2e8   :  { %2793 = vmatmul.mubr.bf16.vlgmr.msra.gmra.mrb[52].mxu0 %v2567_v32  ;;  %2834 = vmatmul.mubr.bf16.vlgmr.msra.gmra.mrb[52].mxu1 %v2567_v32 }
 0x2e9   :  { %3094 = vmatpush1.bf16.msra.mxu0 %v11807_v53  ;;  %3135 = vmatpush1.bf16.msra.mxu1 %v11809_v54  ;;  %v14314_v53 = vld [vmem:[#allocation42_spill] sm:$0xff] }
 0x2ea   :  { %3095 = vmatprep.subr.bf16.mxu0 %v11815_v0  ;;  %3136 = vmatprep.subr.bf16.mxu1 %v11817_v55  ;;  %v14315_v0 = vld [vmem:[#allocation43_spill] sm:$0xff] }
 0x2eb   :  { %3125 = vmatprep.mubr.bf16.mxu0 %v14239_v63  ;;  %3166 = vmatprep.mubr.bf16.mxu1 %v14239_v63 }
 0x2ed   :  { %3096 = vmatpush1.bf16.msra.mxu0 %v11819_v56  ;;  %3137 = vmatpush1.bf16.msra.mxu1 %v11821_v57 }
 0x2ee   :  { %3097 = vmatprep.subr.bf16.mxu0 %v11827_v58  ;;  %3138 = vmatprep.subr.bf16.mxu1 %v11829_v59  ;;  %v14316_v58 = vld [vmem:[#allocation44_spill] sm:$0xff] }
 0x2f1   :  { %3098 = vmatpush1.bf16.msra.mxu0 %v11831_v60  ;;  %3139 = vmatpush1.bf16.msra.mxu1 %v11833_v61  ;;  %v14317_v60 = vld [vmem:[#allocation45_spill] sm:$0xff] }
 0x2f2   :  { %3099 = vmatprep.subr.bf16.mxu0 %v11839_v62  ;;  %3140 = vmatprep.subr.bf16.mxu1 %v11841_v1 }
 0x2f5   :  { %3100 = vmatpush1.bf16.msra.mxu0 %v11843_v2  ;;  %3141 = vmatpush1.bf16.msra.mxu1 %v11845_v3 }
 0x2f6   :  { %3101 = vmatprep.subr.bf16.mxu0 %v11851_v4  ;;  %3142 = vmatprep.subr.bf16.mxu1 %v11853_v5 }
 0x2f9   :  { %3102 = vmatpush1.bf16.msra.mxu0 %v11855_v34  ;;  %3143 = vmatpush1.bf16.msra.mxu1 %v11857_v28 }
 0x2fa   :  { %3103 = vmatprep.subr.bf16.mxu0 %v11863_v6  ;;  %3144 = vmatprep.subr.bf16.mxu1 %v11865_v21 }
 0x2fd   :  { %3104 = vmatpush1.bf16.msra.mxu0 %v11867_v9  ;;  %3145 = vmatpush1.bf16.msra.mxu1 %v11869_v36 }
 0x2fe   :  { %3105 = vmatprep.subr.bf16.mxu0 %v11875_v38  ;;  %3146 = vmatprep.subr.bf16.mxu1 %v11877_v7 }
 0x301   :  { %3106 = vmatpush1.bf16.msra.mxu0 %v11879_v13  ;;  %3147 = vmatpush1.bf16.msra.mxu1 %v11881_v15 }
 0x302   :  { %3107 = vmatprep.subr.bf16.mxu0 %v11887_v14  ;;  %3148 = vmatprep.subr.bf16.mxu1 %v11889_v16 }
 0x305   :  { %3108 = vmatpush1.bf16.msra.mxu0 %v11891_v18  ;;  %3149 = vmatpush1.bf16.msra.mxu1 %v11893_v39 }
 0x306   :  { %3376 = vmatprep.subr.bf16.mxu0 %v11899_v26  ;;  %3417 = vmatprep.subr.bf16.mxu1 %v11901_v10  ;;  %v14318_v10 = vld [vmem:[#allocation86_spill] sm:$0xff] }
 0x39b   :  { %v2511_v51 = vpop.f32.mrb[48].mxu0  ;;  %v2552_v52 = vpop.f32.mrb[48].mxu1 }
 0x39c   :  { %v2559_v54 = vadd.f32 %v2511_v51, %v14314_v53  ;;  %v2561_v55 = vadd.f32 %v2552_v52, %v14315_v0  ;;  %v2513_v56 = vpop.f32.mrb[49].mxu0  ;;  %v2554_v57 = vpop.f32.mrb[49].mxu1  ;;  %v14320_v53 = vld [vmem:[#allocation88_spill] sm:$0xff]  ;;  %v14321_v0 = vld [vmem:[#allocation89_spill] sm:$0xff] }
 0x39d   :  { %v2560_v59 = vadd.f32 %v2513_v56, %v14316_v58  ;;  %v2562_v61 = vadd.f32 %v2554_v57, %v14317_v60  ;;  %v2515_v62 = vpop.f32.mrb[50].mxu0  ;;  %v2556_v1 = vpop.f32.mrb[50].mxu1 }
 0x39e   :  { %v9359_v2 = vmul.f32 -1.442695, %v2559_v54  ;;  %v2516_v3 = vpop.f32.mrb[51].mxu0  ;;  %v2557_v4 = vpop.f32.mrb[51].mxu1 }
 0x39f   :  { %v9360_v5 = vmul.f32 -1.442695, %v2560_v59  ;;  %v9361_v34 = vmul.f32 -1.442695, %v2562_v61 }
 0x3a0   :  { %10385 = vpow2.f32 %v9359_v2 }
 0x3a1   :  { %10387 = vpow2.f32 %v9360_v5 }
 0x3a2   :  { %10389 = vpow2.f32 %v9361_v34 }
 0x3a3   :  { %10391 = vtanh.f32 %v2561_v55 }
 0x3aa   :  { %v10386_v28 = vpop.eup %10385 }
 0x3ab   :  { %v10388_v6 = vpop.eup %10387  ;;  %v2852_v21 = vadd.f32 1.0, %v10386_v28 }
 0x3ac   :  { %v2853_v9 = vadd.f32 1.0, %v10388_v6  ;;  %v10390_v36 = vpop.eup %10389 }
 0x3ad   :  { %10393 = vrcp.f32 %v2852_v21  ;;  %v10392_v38 = vpop.eup %10391  ;;  %v2862_v14 = vadd.f32 1.0, %v10390_v36  ;;  %v12131_v21 = vld [vmem:[#allocation12 + $0x20] ss:$16 sps:$4 sm:$0xff]   ;;  %v12139_v36 = vld [vmem:[#allocation12 + $0x44] ss:$16 sps:$4 sm:$0xff]  }
 0x3ae   :  { %10395 = vrcp.f32 %v2853_v9  ;;  %v12133_v9 = vld [vmem:[#allocation12 + $0x28] ss:$16 sps:$4 sm:$0xff]  }
 0x3af   :  { %10397 = vrcp.f32 %v2862_v14  ;;  %v12153_v14 = vld [vmem:[#allocation12 + $0x6c] ss:$16 sps:$4 sm:$0xff]  }
 0x3b7   :  { %v10394_v7 = vpop.eup %10393 }
 0x3b8   :  { %v10396_v13 = vpop.eup %10395  ;;  %v2866_v15 = vmul.f32 %v10394_v7, %v10392_v38  ;;  %v12141_v38 = vld [vmem:[#allocation12 + $0x4c] ss:$16 sps:$4 sm:$0xff]   ;;  %v12143_v7 = vld [vmem:[#allocation12 + $0x40] ss:$16 sps:$4 sm:$0xff]  }
 0x3b9   :  { %v2865_v16 = vmul.f32 %v10396_v13, %v11910_v22  ;;  %v10398_v61 = vpop.eup %10397  ;;  %v12145_v13 = vld [vmem:[#allocation12 + $0x48] ss:$16 sps:$4 sm:$0xff]  }
 0x3bb   :  { %v12062_v18 = vadd.f32 %v2866_v15, %v2865_v16  ;;  %v2794_v39 = vpop.f32.mrb[52].mxu0  ;;  %v2835_v26 = vpop.f32.mrb[52].mxu1  ;;  %v12151_v15 = vld [vmem:[#allocation12 + $0x64] ss:$16 sps:$4 sm:$0xff]   ;;  %v12155_v16 = vld [vmem:[#allocation12 + $0x60] ss:$16 sps:$4 sm:$0xff]  }
 0x3bc   :  { %v2842_v11 = vadd.f32 %v2794_v39, %v14318_v10  ;;  %v2844_v32 = vadd.f32 %v2835_v26, %v14319_v47  ;;  %v2796_v51 = vpop.f32.mrb[53].mxu0  ;;  %v2837_v52 = vpop.f32.mrb[53].mxu1  ;;  %v12157_v39 = vld [vmem:[#allocation12 + $0x68] ss:$16 sps:$4 sm:$0xff]   ;;  %v12163_v26 = vld [vmem:[#allocation12 + $0x84] ss:$16 sps:$4 sm:$0xff]  }
 0x3bd   :  { %v2843_v54 = vadd.f32 %v2796_v51, %v14320_v53  ;;  %v2845_v55 = vadd.f32 %v2837_v52, %v14321_v0  ;;  %v2798_v56 = vpop.f32.mrb[54].mxu0  ;;  %v2839_v57 = vpop.f32.mrb[54].mxu1  ;;  %10399 = vtanh.f32 %v12062_v18  ;;  %v12165_v10 = vld [vmem:[#allocation12 + $0x8c] ss:$16 sps:$4 sm:$0xff]   ;;  %v12169_v47 = vld [vmem:[#allocation12 + $0x88] ss:$16 sps:$4 sm:$0xff]  }
 0x3be   :  { %v9362_v22 = vmul.f32 -1.442695, %v2842_v11  ;;  %v2799_v58 = vpop.f32.mrb[55].mxu0  ;;  %v2840_v59 = vpop.f32.mrb[55].mxu1  ;;  %v12167_v11 = vld [vmem:[#allocation12 + $0x80] ss:$16 sps:$4 sm:$0xff]  }
 0x3bf   :  { %v9363_v60 = vmul.f32 -1.442695, %v2843_v54  ;;  %v9364_v1 = vmul.f32 -1.442695, %v2845_v55  ;;  %v12177_v51 = vld [vmem:[#allocation12 + $0xac] ss:$16 sps:$4 sm:$0xff]  }
 0x3c0   :  { %10401 = vpow2.f32 %v9362_v22  ;;  %v12179_v52 = vld [vmem:[#allocation12 + $0xa0] ss:$16 sps:$4 sm:$0xff]   ;;  %v12181_v53 = vld [vmem:[#allocation12 + $0xa8] ss:$16 sps:$4 sm:$0xff]   ;;  %v12187_v54 = vld [vmem:[#allocation12 + $0xc4] ss:$16 sps:$4 sm:$0xff]  }
 0x3c1   :  { %10403 = vpow2.f32 %v9363_v60  ;;  %v12189_v0 = vld [vmem:[#allocation12 + $0xcc] ss:$16 sps:$4 sm:$0xff]   ;;  %v12191_v55 = vld [vmem:[#allocation12 + $0xc0] ss:$16 sps:$4 sm:$0xff]   ;;  %v12193_v56 = vld [vmem:[#allocation12 + $0xc8] ss:$16 sps:$4 sm:$0xff]  }
 0x3c2   :  { %10405 = vpow2.f32 %v9364_v1  ;;  %v12199_v57 = vld [vmem:[#allocation12 + $0xe4] ss:$16 sps:$4 sm:$0xff]   ;;  %v12201_v22 = vld [vmem:[#allocation12 + $0xec] ss:$16 sps:$4 sm:$0xff]   ;;  %v12203_v58 = vld [vmem:[#allocation12 + $0xe0] ss:$16 sps:$4 sm:$0xff]  }
 0x3c3   :  { %10407 = vtanh.f32 %v2844_v32  ;;  %v12175_v32 = vld [vmem:[#allocation12 + $0xa4] ss:$16 sps:$4 sm:$0xff]   ;;  %v12205_v59 = vld [vmem:[#allocation12 + $0xe8] ss:$16 sps:$4 sm:$0xff]  }
 0x3c4   :  { %v12211_v60 = vld [vmem:[#allocation16 + $0x4] ss:$16 sps:$4 sm:$0xff]  }
 0x3c7   :  { %v10400_v62 = vpop.eup %10399 }
 0x3c8   :  { %v12069_v2 = vmul.f32 %v10400_v62, %v10398_v61  ;;  %v12213_v61 = vld [vmem:[#allocation16 + $0xc] ss:$16 sps:$4 sm:$0xff]  }
 0x3ca   :  { %14322 = vst [vmem:[#allocation42_spill] sm:$0xff] %v12069_v2  ;;  %v10402_v3 = vpop.eup %10401  ;;  %v2900_v4 = vpack.c.bf16 %v12069_v2, %v12069_v2  ;;  %v12290_v2 = vld [vmem:[#allocation16 + $0xac] ss:$16 sps:$4 sm:$0xff]  }
 0x3cb   :  { %v10404_v5 = vpop.eup %10403  ;;  %v2877_v34 = vadd.f32 1.0, %v10402_v3  ;;  %v14331_v3 = vld [vmem:[#allocation46_spill] sm:$0xff]  ;;  %14342 = vst [vmem:[#allocation87_spill] sm:$0xff] %v12290_v2 }
 0x3cc   :  { %v2878_v28 = vadd.f32 1.0, %v10404_v5  ;;  %3126 = vmatmul.mubr.bf16.vlgmr.msra.gmra.mrb[56].mxu0 %v2900_v4  ;;  %3167 = vmatmul.mubr.bf16.vlgmr.msra.gmra.mrb[56].mxu1 %v2900_v4  ;;  %v14332_v5 = vld [vmem:[#allocation47_spill] sm:$0xff] }
 0x3cd   :  { %10409 = vrcp.f32 %v2877_v34  ;;  %3377 = vmatpush1.bf16.msra.mxu0 %v11919_v50  ;;  %3418 = vmatpush1.bf16.msra.mxu1 %v11921_v29  ;;  %v10406_v50 = vpop.eup %10405 }
 0x3ce   :  { %10411 = vrcp.f32 %v2878_v28  ;;  %3378 = vmatprep.subr.bf16.mxu0 %v11925_v20  ;;  %3419 = vmatprep.subr.bf16.mxu1 %v11927_v19  ;;  %v10408_v29 = vpop.eup %10407 }
 0x3cf   :  { %3408 = vmatprep.mubr.bf16.mxu0 %v14239_v63  ;;  %3449 = vmatprep.mubr.bf16.mxu1 %v14239_v63 }
 0x3d1   :  { %3379 = vmatpush1.bf16.msra.mxu0 %v11931_v8  ;;  %3420 = vmatpush1.bf16.msra.mxu1 %v11933_v40  ;;  %v2887_v8 = vadd.f32 1.0, %v10406_v50 }
 0x3d2   :  { %3380 = vmatprep.subr.bf16.mxu0 %v11937_v41  ;;  %3421 = vmatprep.subr.bf16.mxu1 %v11939_v30  ;;  %v14323_v30 = vld [vmem:[#allocation90_spill] sm:$0xff] }
 0x3d3   :  { %10413 = vrcp.f32 %v2887_v8 }
 0x3d5   :  { %3381 = vmatpush1.bf16.msra.mxu0 %v11945_v42  ;;  %3422 = vmatpush1.bf16.msra.mxu1 %v11947_v43  ;;  %v14324_v42 = vld [vmem:[#allocation91_spill] sm:$0xff]  ;;  %v14325_v43 = vld [vmem:[#allocation92_spill] sm:$0xff] }
 0x3d6   :  { %3382 = vmatprep.subr.bf16.mxu0 %v11951_v12  ;;  %3423 = vmatprep.subr.bf16.mxu1 %v11953_v44  ;;  %v14326_v12 = vld [vmem:[#allocation93_spill] sm:$0xff]  ;;  %v14327_v44 = vld [vmem:[#allocation95_spill] sm:$0xff] }
 0x3d7   :  { %v10410_v20 = vpop.eup %10409 }
 0x3d8   :  { %v10412_v19 = vpop.eup %10411  ;;  %v2891_v6 = vmul.f32 %v10410_v20, %v10408_v29  ;;  %v14333_v29 = vld [vmem:[#allocation48_spill] sm:$0xff] }
 0x3d9   :  { %v2890_v40 = vmul.f32 %v10412_v19, %v11980_v25  ;;  %3383 = vmatpush1.bf16.msra.mxu0 %v11957_v35  ;;  %3424 = vmatpush1.bf16.msra.mxu1 %v11959_v23  ;;  %v14328_v35 = vld [vmem:[#allocation96_spill] sm:$0xff]  ;;  %v14329_v23 = vld [vmem:[#allocation97_spill] sm:$0xff] }
 0x3da   :  { %3384 = vmatprep.subr.bf16.mxu0 %v11963_v27  ;;  %3425 = vmatprep.subr.bf16.mxu1 %v11965_v46  ;;  %v14334_v19 = vld [vmem:[#allocation49_spill] sm:$0xff] }
 0x3db   :  { %v12092_v41 = vadd.f32 %v2891_v6, %v2890_v40 }
 0x3dd   :  { %3385 = vmatpush1.bf16.msra.mxu0 %v11970_v31  ;;  %3426 = vmatpush1.bf16.msra.mxu1 %v14323_v30  ;;  %10415 = vtanh.f32 %v12092_v41  ;;  %v10414_v27 = vpop.eup %10413 }
 0x3de   :  { %3386 = vmatprep.subr.bf16.mxu0 %v14324_v42  ;;  %3427 = vmatprep.subr.bf16.mxu1 %v14325_v43 }
 0x3e1   :  { %3387 = vmatpush1.bf16.msra.mxu0 %v14326_v12  ;;  %3428 = vmatpush1.bf16.msra.mxu1 %v14327_v44 }
 0x3e2   :  { %3388 = vmatprep.subr.bf16.mxu0 %v14328_v35  ;;  %3429 = vmatprep.subr.bf16.mxu1 %v11993_v24  ;;  %v12115_v24 = vld [vmem:[#allocation12 + $0x4] ss:$16 sps:$4 sm:$0xff]  }
 0x3e5   :  { %3389 = vmatpush1.bf16.msra.mxu0 %v14329_v23  ;;  %3430 = vmatpush1.bf16.msra.mxu1 %v11999_v37  ;;  %v12117_v37 = vld [vmem:[#allocation12 + $0xc] ss:$16 sps:$4 sm:$0xff]  }
 0x3e6   :  { %3390 = vmatprep.subr.bf16.mxu0 %v12003_v33  ;;  %3431 = vmatprep.subr.bf16.mxu1 %v12005_v48  ;;  %v12119_v48 = vld [vmem:[#allocation12] ss:$16 sps:$4 sm:$0xff]   ;;  %v12121_v33 = vld [vmem:[#allocation12 + $0x8] ss:$16 sps:$4 sm:$0xff]  }
 0x3e7   :  { %v10416_v46 = vpop.eup %10415 }
 0x3e8   :  { %v12107_v31 = vmul.f32 %v10416_v46, %v10414_v27 }
 0x3e9   :  { %3391 = vmatpush1.bf16.msra.mxu0 %v12009_v17  ;;  %3432 = vmatpush1.bf16.msra.mxu1 %v12011_v45  ;;  %v12127_v17 = vld [vmem:[#allocation12 + $0x24] ss:$16 sps:$4 sm:$0xff]   ;;  %v12129_v45 = vld [vmem:[#allocation12 + $0x2c] ss:$16 sps:$4 sm:$0xff]  }
 0x3ea   :  { %14330 = vst [vmem:[#allocation43_spill] sm:$0xff] %v12107_v31  ;;  %v3183_v25 = vpack.c.bf16 %v12107_v31, %v12107_v31  ;;  %3709 = vmatprep.subr.bf16.mxu0 %v12115_v24  ;;  %3750 = vmatprep.subr.bf16.mxu1 %v12117_v37  ;;  %v12284_v31 = vld [vmem:[#allocation16 + $0x88] ss:$16 sps:$4 sm:$0xff]  }
 0x3eb   :  { %14340 = vst [vmem:[#allocation45_spill] sm:$0xff] %v12284_v31 }
 0x3ec   :  { %3409 = vmatmul.mubr.bf16.vlgmr.msra.gmra.mrb[60].mxu0 %v3183_v25  ;;  %3450 = vmatmul.mubr.bf16.vlgmr.msra.gmra.mrb[60].mxu1 %v3183_v25 }
 0x3ed   :  { %3741 = vmatprep.mubr.bf16.mxu0 %v14239_v63  ;;  %3782 = vmatprep.mubr.bf16.mxu1 %v14239_v63 }
 0x3ee   :  { %3710 = vmatpush1.bf16.msra.mxu0 %v12119_v48  ;;  %3751 = vmatpush1.bf16.msra.mxu1 %v12121_v33 }
 0x3ef   :  { %3711 = vmatprep.subr.bf16.mxu0 %v12127_v17  ;;  %3752 = vmatprep.subr.bf16.mxu1 %v12129_v45 }
 0x3f2   :  { %3712 = vmatpush1.bf16.msra.mxu0 %v12131_v21  ;;  %3753 = vmatpush1.bf16.msra.mxu1 %v12133_v9 }
 0x3f3   :  { %3713 = vmatprep.subr.bf16.mxu0 %v12139_v36  ;;  %3754 = vmatprep.subr.bf16.mxu1 %v12141_v38 }
 0x3f6   :  { %3714 = vmatpush1.bf16.msra.mxu0 %v12143_v7  ;;  %3755 = vmatpush1.bf16.msra.mxu1 %v12145_v13 }
 0x3f7   :  { %3715 = vmatprep.subr.bf16.mxu0 %v12151_v15  ;;  %3756 = vmatprep.subr.bf16.mxu1 %v12153_v14 }
 0x3fa   :  { %3716 = vmatpush1.bf16.msra.mxu0 %v12155_v16  ;;  %3757 = vmatpush1.bf16.msra.mxu1 %v12157_v39 }
 0x3fb   :  { %3717 = vmatprep.subr.bf16.mxu0 %v12163_v26  ;;  %3758 = vmatprep.subr.bf16.mxu1 %v12165_v10 }
 0x3fe   :  { %3718 = vmatpush1.bf16.msra.mxu0 %v12167_v11  ;;  %3759 = vmatpush1.bf16.msra.mxu1 %v12169_v47 }
 0x3ff   :  { %3719 = vmatprep.subr.bf16.mxu0 %v12175_v32  ;;  %3760 = vmatprep.subr.bf16.mxu1 %v12177_v51 }
 0x402   :  { %3720 = vmatpush1.bf16.msra.mxu0 %v12179_v52  ;;  %3761 = vmatpush1.bf16.msra.mxu1 %v12181_v53 }
 0x403   :  { %3721 = vmatprep.subr.bf16.mxu0 %v12187_v54  ;;  %3762 = vmatprep.subr.bf16.mxu1 %v12189_v0 }
 0x406   :  { %3722 = vmatpush1.bf16.msra.mxu0 %v12191_v55  ;;  %3763 = vmatpush1.bf16.msra.mxu1 %v12193_v56 }
 0x407   :  { %3723 = vmatprep.subr.bf16.mxu0 %v12199_v57  ;;  %3764 = vmatprep.subr.bf16.mxu1 %v12201_v22 }
 0x40a   :  { %3724 = vmatpush1.bf16.msra.mxu0 %v12203_v58  ;;  %3765 = vmatpush1.bf16.msra.mxu1 %v12205_v59 }
 0x40b   :  { %3992 = vmatprep.subr.bf16.mxu0 %v12211_v60  ;;  %4033 = vmatprep.subr.bf16.mxu1 %v12213_v61 }
 0x49f   :  { %v3127_v62 = vpop.f32.mrb[56].mxu0  ;;  %v3168_v1 = vpop.f32.mrb[56].mxu1 }
 0x4a0   :  { %v3175_v4 = vadd.f32 %v3127_v62, %v14331_v3  ;;  %v3177_v34 = vadd.f32 %v3168_v1, %v14332_v5  ;;  %v3129_v28 = vpop.f32.mrb[57].mxu0  ;;  %v3170_v50 = vpop.f32.mrb[57].mxu1 }
 0x4a1   :  { %v3176_v20 = vadd.f32 %v3129_v28, %v14333_v29  ;;  %v3178_v6 = vadd.f32 %v3170_v50, %v14334_v19  ;;  %v3131_v8 = vpop.f32.mrb[58].mxu0  ;;  %v3172_v40 = vpop.f32.mrb[58].mxu1  ;;  %v14335_v19 = vld [vmem:[#allocation82_spill] sm:$0xff] }
 0x4a2   :  { %v9429_v30 = vmul.f32 -1.442695, %v3175_v4  ;;  %v3132_v42 = vpop.f32.mrb[59].mxu0  ;;  %v3173_v43 = vpop.f32.mrb[59].mxu1  ;;  %v14336_v8 = vld [vmem:[#allocation83_spill] sm:$0xff] }
 0x4a3   :  { %v9430_v12 = vmul.f32 -1.442695, %v3176_v20  ;;  %v9431_v44 = vmul.f32 -1.442695, %v3178_v6  ;;  %v14337_v42 = vld [vmem:[#allocation84_spill] sm:$0xff] }
 0x4a4   :  { %10417 = vpow2.f32 %v9429_v30 }
 0x4a5   :  { %10419 = vpow2.f32 %v9430_v12  ;;  %v14338_v12 = vld [vmem:[#allocation85_spill] sm:$0xff] }
 0x4a6   :  { %10421 = vpow2.f32 %v9431_v44 }
 0x4a7   :  { %10423 = vtanh.f32 %v3177_v34 }
 0x4ae   :  { %v10418_v35 = vpop.eup %10417 }
 0x4af   :  { %v10420_v23 = vpop.eup %10419  ;;  %v3468_v27 = vadd.f32 1.0, %v10418_v35 }
 0x4b0   :  { %v3469_v46 = vadd.f32 1.0, %v10420_v23  ;;  %v10422_v25 = vpop.eup %10421 }
 0x4b1   :  { %10425 = vrcp.f32 %v3468_v27  ;;  %v10424_v62 = vpop.eup %10423  ;;  %v3478_v4 = vadd.f32 1.0, %v10422_v25 }
 0x4b2   :  { %10427 = vrcp.f32 %v3469_v46 }
 0x4b3   :  { %10429 = vrcp.f32 %v3478_v4  ;;  %v12231_v4 = vld [vmem:[#allocation16] ss:$16 sps:$4 sm:$0xff]  }
 0x4bb   :  { %v10426_v1 = vpop.eup %10425 }
 0x4bc   :  { %v10428_v3 = vpop.eup %10427  ;;  %v3482_v5 = vmul.f32 %v10426_v1, %v10424_v62 }
 0x4bd   :  { %v3481_v28 = vmul.f32 %v10428_v3, %v12062_v18  ;;  %v10430_v62 = vpop.eup %10429 }
 0x4bf   :  { %v12222_v50 = vadd.f32 %v3482_v5, %v3481_v28  ;;  %v3410_v29 = vpop.f32.mrb[60].mxu0  ;;  %v3451_v20 = vpop.f32.mrb[60].mxu1  ;;  %v12233_v28 = vld [vmem:[#allocation16 + $0x8] ss:$16 sps:$4 sm:$0xff]  }
 0x4c0   :  { %v3458_v6 = vadd.f32 %v3410_v29, %v14335_v19  ;;  %v3460_v34 = vadd.f32 %v3451_v20, %v14336_v8  ;;  %v3412_v40 = vpop.f32.mrb[61].mxu0  ;;  %v3453_v30 = vpop.f32.mrb[61].mxu1  ;;  %v12237_v19 = vld [vmem:[#allocation16 + $0x24] ss:$16 sps:$4 sm:$0xff]  }
 0x4c1   :  { %v3459_v43 = vadd.f32 %v3412_v40, %v14337_v42  ;;  %v3461_v44 = vadd.f32 %v3453_v30, %v14338_v12  ;;  %v3414_v35 = vpop.f32.mrb[62].mxu0  ;;  %v3455_v23 = vpop.f32.mrb[62].mxu1  ;;  %10431 = vtanh.f32 %v12222_v50  ;;  %v12243_v42 = vld [vmem:[#allocation16 + $0x20] ss:$16 sps:$4 sm:$0xff]   ;;  %v12249_v12 = vld [vmem:[#allocation16 + $0x44] ss:$16 sps:$4 sm:$0xff]  }
 0x4c2   :  { %v9432_v18 = vmul.f32 -1.442695, %v3458_v6  ;;  %v3415_v27 = vpop.f32.mrb[63].mxu0  ;;  %v3456_v46 = vpop.f32.mrb[63].mxu1  ;;  %v12239_v6 = vld [vmem:[#allocation16 + $0x2c] ss:$16 sps:$4 sm:$0xff]  }
 0x4c3   :  { %v9433_v25 = vmul.f32 -1.442695, %v3459_v43  ;;  %v9434_v3 = vmul.f32 -1.442695, %v3461_v44  ;;  %v12245_v43 = vld [vmem:[#allocation16 + $0x28] ss:$16 sps:$4 sm:$0xff]  }
 0x4c4   :  { %10433 = vpow2.f32 %v9432_v18  ;;  %v12257_v44 = vld [vmem:[#allocation16 + $0x40] ss:$16 sps:$4 sm:$0xff]   ;;  %v12259_v35 = vld [vmem:[#allocation16 + $0x48] ss:$16 sps:$4 sm:$0xff]   ;;  %v12263_v23 = vld [vmem:[#allocation16 + $0x64] ss:$16 sps:$4 sm:$0xff]  }
 0x4c5   :  { %10435 = vpow2.f32 %v9433_v25  ;;  %v12265_v18 = vld [vmem:[#allocation16 + $0x6c] ss:$16 sps:$4 sm:$0xff]   ;;  %v12269_v46 = vld [vmem:[#allocation16 + $0x60] ss:$16 sps:$4 sm:$0xff]   ;;  %v12271_v25 = vld [vmem:[#allocation16 + $0x68] ss:$16 sps:$4 sm:$0xff]  }
 0x4c6   :  { %10437 = vpow2.f32 %v9434_v3  ;;  %v12277_v3 = vld [vmem:[#allocation16 + $0x8c] ss:$16 sps:$4 sm:$0xff]  }
 0x4c7   :  { %10439 = vtanh.f32 %v3460_v34  ;;  %v12251_v34 = vld [vmem:[#allocation16 + $0x4c] ss:$16 sps:$4 sm:$0xff]  }
 0x4cb   :  { %v10432_v1 = vpop.eup %10431 }
 0x4cc   :  { %v12229_v5 = vmul.f32 %v10432_v1, %v10430_v62  ;;  %v12275_v1 = vld [vmem:[#allocation16 + $0x84] ss:$16 sps:$4 sm:$0xff]  }
 0x4ce   :  { %14339 = vst [vmem:[#allocation44_spill] sm:$0xff] %v12229_v5  ;;  %v10434_v29 = vpop.eup %10433  ;;  %v3516_v20 = vpack.c.bf16 %v12229_v5, %v12229_v5  ;;  %v12288_v5 = vld [vmem:[#allocation16 + $0xa4] ss:$16 sps:$4 sm:$0xff]  }
 0x4cf   :  { %v10436_v8 = vpop.eup %10435  ;;  %v3493_v40 = vadd.f32 1.0, %v10434_v29  ;;  %14341 = vst [vmem:[#allocation86_spill] sm:$0xff] %v12288_v5 }
 0x4d0   :  { %v3494_v30 = vadd.f32 1.0, %v10436_v8  ;;  %3742 = vmatmul.mubr.bf16.vlgmr.msra.gmra.mrb[64].mxu0 %v3516_v20  ;;  %3783 = vmatmul.mubr.bf16.vlgmr.msra.gmra.mrb[64].mxu1 %v3516_v20  ;;  %v10438_v27 = vpop.eup %10437 }
 0x4d1   :  { %10441 = vrcp.f32 %v3493_v40  ;;  %3993 = vmatpush1.bf16.msra.mxu0 %v12231_v4  ;;  %4034 = vmatpush1.bf16.msra.mxu1 %v12233_v28  ;;  %v10440_v62 = vpop.eup %10439  ;;  %v3503_v40 = vadd.f32 1.0, %v10438_v27  ;;  %v12298_v27 = vld [vmem:[#allocation16 + $0xa8] ss:$16 sps:$4 sm:$0xff]  }
 0x4d2   :  { %10443 = vrcp.f32 %v3494_v30  ;;  %3994 = vmatprep.subr.bf16.mxu0 %v12237_v19  ;;  %4035 = vmatprep.subr.bf16.mxu1 %v12239_v6  ;;  %14344 = vst [vmem:[#allocation89_spill] sm:$0xff] %v12298_v27 }
 0x4d3   :  { %4024 = vmatprep.mubr.bf16.mxu0 %v14239_v63  ;;  %4065 = vmatprep.mubr.bf16.mxu1 %v14239_v63  ;;  %10445 = vrcp.f32 %v3503_v40  ;;  %v12311_v40 = vld [vmem:[#allocation16 + $0xc8] ss:$16 sps:$4 sm:$0xff]  }
 0x4d5   :  { %3995 = vmatpush1.bf16.msra.mxu0 %v12243_v42  ;;  %4036 = vmatpush1.bf16.msra.mxu1 %v12245_v43 }
 0x4d6   :  { %3996 = vmatprep.subr.bf16.mxu0 %v12249_v12  ;;  %4037 = vmatprep.subr.bf16.mxu1 %v12251_v34 }
 0x4d9   :  { %3997 = vmatpush1.bf16.msra.mxu0 %v12257_v44  ;;  %4038 = vmatpush1.bf16.msra.mxu1 %v12259_v35 }
 0x4da   :  { %3998 = vmatprep.subr.bf16.mxu0 %v12263_v23  ;;  %4039 = vmatprep.subr.bf16.mxu1 %v12265_v18 }
 0x4db   :  { %v10442_v29 = vpop.eup %10441 }
 0x4dc   :  { %v10444_v20 = vpop.eup %10443  ;;  %v3507_v8 = vmul.f32 %v10442_v29, %v10440_v62  ;;  %v12303_v29 = vld [vmem:[#allocation16 + $0xc4] ss:$16 sps:$4 sm:$0xff]  }
 0x4dd   :  { %v3506_v30 = vmul.f32 %v10444_v20, %v12092_v41  ;;  %3999 = vmatpush1.bf16.msra.mxu0 %v12269_v46  ;;  %4040 = vmatpush1.bf16.msra.mxu1 %v12271_v25  ;;  %v12296_v41 = vld [vmem:[#allocation16 + $0xa0] ss:$16 sps:$4 sm:$0xff]   ;;  %14345 = vst [vmem:[#allocation90_spill] sm:$0xff] %v12303_v29  ;;  %v12305_v20 = vld [vmem:[#allocation16 + $0xcc] ss:$16 sps:$4 sm:$0xff]  }
 0x4de   :  { %4000 = vmatprep.subr.bf16.mxu0 %v12275_v1  ;;  %4041 = vmatprep.subr.bf16.mxu1 %v12277_v3  ;;  %14343 = vst [vmem:[#allocation88_spill] sm:$0xff] %v12296_v41 }
 0x4df   :  { %v12292_v62 = vadd.f32 %v3507_v8, %v3506_v30  ;;  %v12309_v8 = vld [vmem:[#allocation16 + $0xc0] ss:$16 sps:$4 sm:$0xff]   ;;  %v12315_v30 = vld [vmem:[#allocation16 + $0xe4] ss:$16 sps:$4 sm:$0xff]  }
 0x4e0   :  { %14346 = vst [vmem:[#allocation91_spill] sm:$0xff] %v12309_v8 }
 0x4e1   :  { %4001 = vmatpush1.bf16.msra.mxu0 %v12282_v49  ;;  %4042 = vmatpush1.bf16.msra.mxu1 %v12284_v31  ;;  %10447 = vtanh.f32 %v12292_v62 }
 0x4e2   :  { %4002 = vmatprep.subr.bf16.mxu0 %v12288_v5  ;;  %4043 = vmatprep.subr.bf16.mxu1 %v12290_v2  ;;  %v12317_v5 = vld [vmem:[#allocation16 + $0xec] ss:$16 sps:$4 sm:$0xff]   ;;  %v12321_v2 = vld [vmem:[#allocation16 + $0xe0] ss:$16 sps:$4 sm:$0xff]  }
 0x4e5   :  { %4003 = vmatpush1.bf16.msra.mxu0 %v12296_v41  ;;  %4044 = vmatpush1.bf16.msra.mxu1 %v12298_v27  ;;  %v12323_v41 = vld [vmem:[#allocation16 + $0xe8] ss:$16 sps:$4 sm:$0xff]   ;;  %v10446_v27 = vpop.eup %10445 }
 0x4e6   :  { %4004 = vmatprep.subr.bf16.mxu0 %v12303_v29  ;;  %4045 = vmatprep.subr.bf16.mxu1 %v12305_v20 }
 0x4e9   :  { %4005 = vmatpush1.bf16.msra.mxu0 %v12309_v8  ;;  %4046 = vmatpush1.bf16.msra.mxu1 %v12311_v40 }
 0x4ea   :  { %4006 = vmatprep.subr.bf16.mxu0 %v12315_v30  ;;  %4047 = vmatprep.subr.bf16.mxu1 %v12317_v5 }
 0x4eb   :  { %v10448_v29 = vpop.eup %10447 }
 0x4ec   :  { %v12327_v31 = vmul.f32 %v10448_v29, %v10446_v27  ;;  %v14353_v29 = vld [vmem:[#allocation79_spill] sm:$0xff] }
 0x4ed   :  { %4007 = vmatpush1.bf16.msra.mxu0 %v12321_v2  ;;  %4048 = vmatpush1.bf16.msra.mxu1 %v12323_v41 }
 0x4ee   :  { %14347 = vst [vmem:[#allocation92_spill] sm:$0xff] %v12327_v31  ;;  %v3799_v8 = vpack.c.bf16 %v12327_v31, %v12327_v31  ;;  %4325 = vmatprep.subr.bf16.mxu0 %v12115_v24  ;;  %4366 = vmatprep.subr.bf16.mxu1 %v12117_v37  ;;  %v12600_v31 = vld [vmem:[#allocation16 + $0xa4] ss:$16 sps:$4 sm:$0xff]  }
 0x4ef   :  { %14375 = vst [vmem:[#allocation46_spill] sm:$0xff] %v12600_v31 }
 0x4f0   :  { %4025 = vmatmul.mubr.bf16.vlgmr.msra.gmra.mrb[68].mxu0 %v3799_v8  ;;  %4066 = vmatmul.mubr.bf16.vlgmr.msra.gmra.mrb[68].mxu1 %v3799_v8 }
 0x4f1   :  { %4326 = vmatpush1.bf16.msra.mxu0 %v12119_v48  ;;  %4367 = vmatpush1.bf16.msra.mxu1 %v12121_v33  ;;  %v14348_v48 = vld [vmem:[#allocation50_spill] sm:$0xff] }
 0x4f2   :  { %4327 = vmatprep.subr.bf16.mxu0 %v12127_v17  ;;  %4368 = vmatprep.subr.bf16.mxu1 %v12129_v45  ;;  %v14349_v17 = vld [vmem:[#allocation51_spill] sm:$0xff] }
 0x4f3   :  { %4357 = vmatprep.mubr.bf16.mxu0 %v14239_v63  ;;  %4398 = vmatprep.mubr.bf16.mxu1 %v14239_v63 }
 0x4f5   :  { %4328 = vmatpush1.bf16.msra.mxu0 %v12131_v21  ;;  %4369 = vmatpush1.bf16.msra.mxu1 %v12133_v9 }
 0x4f6   :  { %4329 = vmatprep.subr.bf16.mxu0 %v12139_v36  ;;  %4370 = vmatprep.subr.bf16.mxu1 %v12141_v38  ;;  %v14350_v36 = vld [vmem:[#allocation52_spill] sm:$0xff] }
 0x4f9   :  { %4330 = vmatpush1.bf16.msra.mxu0 %v12143_v7  ;;  %4371 = vmatpush1.bf16.msra.mxu1 %v12145_v13  ;;  %v14351_v7 = vld [vmem:[#allocation53_spill] sm:$0xff] }
 0x4fa   :  { %4331 = vmatprep.subr.bf16.mxu0 %v12151_v15  ;;  %4372 = vmatprep.subr.bf16.mxu1 %v12153_v14 }
 0x4fd   :  { %4332 = vmatpush1.bf16.msra.mxu0 %v12155_v16  ;;  %4373 = vmatpush1.bf16.msra.mxu1 %v12157_v39 }
 0x4fe   :  { %4333 = vmatprep.subr.bf16.mxu0 %v12163_v26  ;;  %4374 = vmatprep.subr.bf16.mxu1 %v12165_v10 }
 0x501   :  { %4334 = vmatpush1.bf16.msra.mxu0 %v12167_v11  ;;  %4375 = vmatpush1.bf16.msra.mxu1 %v12169_v47 }
 0x502   :  { %4335 = vmatprep.subr.bf16.mxu0 %v12175_v32  ;;  %4376 = vmatprep.subr.bf16.mxu1 %v12177_v51 }
 0x505   :  { %4336 = vmatpush1.bf16.msra.mxu0 %v12179_v52  ;;  %4377 = vmatpush1.bf16.msra.mxu1 %v12181_v53 }
 0x506   :  { %4337 = vmatprep.subr.bf16.mxu0 %v12187_v54  ;;  %4378 = vmatprep.subr.bf16.mxu1 %v12189_v0 }
 0x509   :  { %4338 = vmatpush1.bf16.msra.mxu0 %v12191_v55  ;;  %4379 = vmatpush1.bf16.msra.mxu1 %v12193_v56 }
 0x50a   :  { %4339 = vmatprep.subr.bf16.mxu0 %v12199_v57  ;;  %4380 = vmatprep.subr.bf16.mxu1 %v12201_v22 }
 0x50d   :  { %4340 = vmatpush1.bf16.msra.mxu0 %v12203_v58  ;;  %4381 = vmatpush1.bf16.msra.mxu1 %v12205_v59 }
 0x50e   :  { %4608 = vmatprep.subr.bf16.mxu0 %v12211_v60  ;;  %4649 = vmatprep.subr.bf16.mxu1 %v12213_v61  ;;  %v14352_v61 = vld [vmem:[#allocation78_spill] sm:$0xff] }
 0x5a3   :  { %v3743_v24 = vpop.f32.mrb[64].mxu0  ;;  %v3784_v37 = vpop.f32.mrb[64].mxu1 }
 0x5a4   :  { %v3791_v33 = vadd.f32 %v3743_v24, %v14348_v48  ;;  %v3793_v45 = vadd.f32 %v3784_v37, %v14349_v17  ;;  %v3745_v21 = vpop.f32.mrb[65].mxu0  ;;  %v3786_v9 = vpop.f32.mrb[65].mxu1  ;;  %v14354_v48 = vld [vmem:[#allocation80_spill] sm:$0xff]  ;;  %v14355_v17 = vld [vmem:[#allocation81_spill] sm:$0xff] }
 0x5a5   :  { %v3792_v38 = vadd.f32 %v3745_v21, %v14350_v36  ;;  %v3794_v13 = vadd.f32 %v3786_v9, %v14351_v7  ;;  %v3747_v15 = vpop.f32.mrb[66].mxu0  ;;  %v3788_v14 = vpop.f32.mrb[66].mxu1 }
 0x5a6   :  { %v9499_v16 = vmul.f32 -1.442695, %v3791_v33  ;;  %v3748_v39 = vpop.f32.mrb[67].mxu0  ;;  %v3789_v26 = vpop.f32.mrb[67].mxu1 }
 0x5a7   :  { %v9500_v10 = vmul.f32 -1.442695, %v3792_v38  ;;  %v9501_v11 = vmul.f32 -1.442695, %v3794_v13 }
 0x5a8   :  { %10449 = vpow2.f32 %v9499_v16 }
 0x5a9   :  { %10451 = vpow2.f32 %v9500_v10 }
 0x5aa   :  { %10453 = vpow2.f32 %v9501_v11 }
 0x5ab   :  { %10455 = vtanh.f32 %v3793_v45 }
 0x5b2   :  { %v10450_v47 = vpop.eup %10449 }
 0x5b3   :  { %v10452_v32 = vpop.eup %10451  ;;  %v4084_v51 = vadd.f32 1.0, %v10450_v47 }
 0x5b4   :  { %v4085_v52 = vadd.f32 1.0, %v10452_v32  ;;  %v10454_v53 = vpop.eup %10453 }
 0x5b5   :  { %10457 = vrcp.f32 %v4084_v51  ;;  %v10456_v54 = vpop.eup %10455  ;;  %v4094_v57 = vadd.f32 1.0, %v10454_v53  ;;  %v12443_v51 = vld [vmem:[#allocation12 + $0x20] ss:$16 sps:$4 sm:$0xff]   ;;  %v12451_v53 = vld [vmem:[#allocation12 + $0x44] ss:$16 sps:$4 sm:$0xff]  }
 0x5b6   :  { %10459 = vrcp.f32 %v4085_v52  ;;  %v12445_v52 = vld [vmem:[#allocation12 + $0x28] ss:$16 sps:$4 sm:$0xff]  }
 0x5b7   :  { %10461 = vrcp.f32 %v4094_v57  ;;  %v12465_v57 = vld [vmem:[#allocation12 + $0x6c] ss:$16 sps:$4 sm:$0xff]  }
 0x5bf   :  { %v10458_v0 = vpop.eup %10457 }
 0x5c0   :  { %v10460_v55 = vpop.eup %10459  ;;  %v4098_v56 = vmul.f32 %v10458_v0, %v10456_v54  ;;  %v12453_v54 = vld [vmem:[#allocation12 + $0x4c] ss:$16 sps:$4 sm:$0xff]   ;;  %v12455_v0 = vld [vmem:[#allocation12 + $0x40] ss:$16 sps:$4 sm:$0xff]  }
 0x5c1   :  { %v4097_v22 = vmul.f32 %v10460_v55, %v12222_v50  ;;  %v10462_v13 = vpop.eup %10461  ;;  %v12457_v55 = vld [vmem:[#allocation12 + $0x48] ss:$16 sps:$4 sm:$0xff]  }
 0x5c3   :  { %v12374_v58 = vadd.f32 %v4098_v56, %v4097_v22  ;;  %v4026_v59 = vpop.f32.mrb[68].mxu0  ;;  %v4067_v60 = vpop.f32.mrb[68].mxu1  ;;  %v12463_v56 = vld [vmem:[#allocation12 + $0x64] ss:$16 sps:$4 sm:$0xff]   ;;  %v12467_v22 = vld [vmem:[#allocation12 + $0x60] ss:$16 sps:$4 sm:$0xff]  }
 0x5c4   :  { %v4074_v27 = vadd.f32 %v4026_v59, %v14352_v61  ;;  %v4076_v8 = vadd.f32 %v4067_v60, %v14353_v29  ;;  %v4028_v24 = vpop.f32.mrb[69].mxu0  ;;  %v4069_v37 = vpop.f32.mrb[69].mxu1  ;;  %v12469_v59 = vld [vmem:[#allocation12 + $0x68] ss:$16 sps:$4 sm:$0xff]   ;;  %v12475_v60 = vld [vmem:[#allocation12 + $0x84] ss:$16 sps:$4 sm:$0xff]  }
 0x5c5   :  { %v4075_v33 = vadd.f32 %v4028_v24, %v14354_v48  ;;  %v4077_v45 = vadd.f32 %v4069_v37, %v14355_v17  ;;  %v4030_v21 = vpop.f32.mrb[70].mxu0  ;;  %v4071_v9 = vpop.f32.mrb[70].mxu1  ;;  %10463 = vtanh.f32 %v12374_v58  ;;  %v12477_v61 = vld [vmem:[#allocation12 + $0x8c] ss:$16 sps:$4 sm:$0xff]   ;;  %v12481_v29 = vld [vmem:[#allocation12 + $0x88] ss:$16 sps:$4 sm:$0xff]  }
 0x5c6   :  { %v9502_v50 = vmul.f32 -1.442695, %v4074_v27  ;;  %v4031_v36 = vpop.f32.mrb[71].mxu0  ;;  %v4072_v38 = vpop.f32.mrb[71].mxu1  ;;  %v12479_v27 = vld [vmem:[#allocation12 + $0x80] ss:$16 sps:$4 sm:$0xff]  }
 0x5c7   :  { %v9503_v7 = vmul.f32 -1.442695, %v4075_v33  ;;  %v9504_v14 = vmul.f32 -1.442695, %v4077_v45  ;;  %v12489_v24 = vld [vmem:[#allocation12 + $0xac] ss:$16 sps:$4 sm:$0xff]  }
 0x5c8   :  { %10465 = vpow2.f32 %v9502_v50  ;;  %v12491_v37 = vld [vmem:[#allocation12 + $0xa0] ss:$16 sps:$4 sm:$0xff]   ;;  %v12493_v48 = vld [vmem:[#allocation12 + $0xa8] ss:$16 sps:$4 sm:$0xff]   ;;  %v12499_v33 = vld [vmem:[#allocation12 + $0xc4] ss:$16 sps:$4 sm:$0xff]  }
 0x5c9   :  { %10467 = vpow2.f32 %v9503_v7  ;;  %v12501_v17 = vld [vmem:[#allocation12 + $0xcc] ss:$16 sps:$4 sm:$0xff]   ;;  %v12503_v45 = vld [vmem:[#allocation12 + $0xc0] ss:$16 sps:$4 sm:$0xff]   ;;  %v12505_v21 = vld [vmem:[#allocation12 + $0xc8] ss:$16 sps:$4 sm:$0xff]  }
 0x5ca   :  { %10469 = vpow2.f32 %v9504_v14  ;;  %v12511_v9 = vld [vmem:[#allocation12 + $0xe4] ss:$16 sps:$4 sm:$0xff]   ;;  %v12513_v50 = vld [vmem:[#allocation12 + $0xec] ss:$16 sps:$4 sm:$0xff]   ;;  %v12515_v36 = vld [vmem:[#allocation12 + $0xe0] ss:$16 sps:$4 sm:$0xff]  }
 0x5cb   :  { %10471 = vtanh.f32 %v4076_v8  ;;  %v12487_v8 = vld [vmem:[#allocation12 + $0xa4] ss:$16 sps:$4 sm:$0xff]   ;;  %v12517_v38 = vld [vmem:[#allocation12 + $0xe8] ss:$16 sps:$4 sm:$0xff]  }
 0x5cc   :  { %v12523_v7 = vld [vmem:[#allocation16 + $0x4] ss:$16 sps:$4 sm:$0xff]  }
 0x5cf   :  { %v10464_v15 = vpop.eup %10463 }
 0x5d0   :  { %v12381_v16 = vmul.f32 %v10464_v15, %v10462_v13  ;;  %v12525_v13 = vld [vmem:[#allocation16 + $0xc] ss:$16 sps:$4 sm:$0xff]  }
 0x5d2   :  { %14356 = vst [vmem:[#allocation93_spill] sm:$0xff] %v12381_v16  ;;  %v10466_v39 = vpop.eup %10465  ;;  %v4132_v26 = vpack.c.bf16 %v12381_v16, %v12381_v16  ;;  %v12596_v16 = vld [vmem:[#allocation16 + $0x88] ss:$16 sps:$4 sm:$0xff]  }
 0x5d3   :  { %v10468_v10 = vpop.eup %10467  ;;  %v4109_v11 = vadd.f32 1.0, %v10466_v39  ;;  %v14365_v39 = vld [vmem:[#allocation54_spill] sm:$0xff]  ;;  %14374 = vst [vmem:[#allocation97_spill] sm:$0xff] %v12596_v16 }
 0x5d4   :  { %v4110_v47 = vadd.f32 1.0, %v10468_v10  ;;  %4358 = vmatmul.mubr.bf16.vlgmr.msra.gmra.mrb[72].mxu0 %v4132_v26  ;;  %4399 = vmatmul.mubr.bf16.vlgmr.msra.gmra.mrb[72].mxu1 %v4132_v26  ;;  %v14366_v10 = vld [vmem:[#allocation55_spill] sm:$0xff] }
 0x5d5   :  { %10473 = vrcp.f32 %v4109_v11  ;;  %4609 = vmatpush1.bf16.msra.mxu0 %v12231_v4  ;;  %4650 = vmatpush1.bf16.msra.mxu1 %v12233_v28  ;;  %v10470_v4 = vpop.eup %10469 }
 0x5d6   :  { %10475 = vrcp.f32 %v4110_v47  ;;  %4610 = vmatprep.subr.bf16.mxu0 %v12237_v19  ;;  %4651 = vmatprep.subr.bf16.mxu1 %v12239_v6  ;;  %v10472_v28 = vpop.eup %10471 }
 0x5d7   :  { %4640 = vmatprep.mubr.bf16.mxu0 %v14239_v63  ;;  %4681 = vmatprep.mubr.bf16.mxu1 %v14239_v63 }
 0x5d9   :  { %4611 = vmatpush1.bf16.msra.mxu0 %v12243_v42  ;;  %4652 = vmatpush1.bf16.msra.mxu1 %v12245_v43  ;;  %v4119_v42 = vadd.f32 1.0, %v10470_v4 }
 0x5da   :  { %4612 = vmatprep.subr.bf16.mxu0 %v12249_v12  ;;  %4653 = vmatprep.subr.bf16.mxu1 %v12251_v34  ;;  %v14357_v34 = vld [vmem:[#allocation45_spill] sm:$0xff] }
 0x5db   :  { %10477 = vrcp.f32 %v4119_v42 }
 0x5dd   :  { %4613 = vmatpush1.bf16.msra.mxu0 %v12257_v44  ;;  %4654 = vmatpush1.bf16.msra.mxu1 %v12259_v35  ;;  %v14358_v44 = vld [vmem:[#allocation86_spill] sm:$0xff]  ;;  %v14359_v35 = vld [vmem:[#allocation87_spill] sm:$0xff] }
 0x5de   :  { %4614 = vmatprep.subr.bf16.mxu0 %v12263_v23  ;;  %4655 = vmatprep.subr.bf16.mxu1 %v12265_v18  ;;  %v14360_v23 = vld [vmem:[#allocation88_spill] sm:$0xff]  ;;  %v14361_v18 = vld [vmem:[#allocation89_spill] sm:$0xff] }
 0x5df   :  { %v10474_v19 = vpop.eup %10473 }
 0x5e0   :  { %v10476_v6 = vpop.eup %10475  ;;  %v4123_v32 = vmul.f32 %v10474_v19, %v10472_v28  ;;  %v14367_v28 = vld [vmem:[#allocation56_spill] sm:$0xff] }
 0x5e1   :  { %v4122_v43 = vmul.f32 %v10476_v6, %v12292_v62  ;;  %4615 = vmatpush1.bf16.msra.mxu0 %v12269_v46  ;;  %4656 = vmatpush1.bf16.msra.mxu1 %v12271_v25  ;;  %v14362_v46 = vld [vmem:[#allocation90_spill] sm:$0xff]  ;;  %v14363_v25 = vld [vmem:[#allocation91_spill] sm:$0xff]  ;;  %v14368_v6 = vld [vmem:[#allocation57_spill] sm:$0xff] }
 0x5e2   :  { %4616 = vmatprep.subr.bf16.mxu0 %v12275_v1  ;;  %4657 = vmatprep.subr.bf16.mxu1 %v12277_v3 }
 0x5e3   :  { %v12404_v12 = vadd.f32 %v4123_v32, %v4122_v43 }
 0x5e5   :  { %4617 = vmatpush1.bf16.msra.mxu0 %v12282_v49  ;;  %4658 = vmatpush1.bf16.msra.mxu1 %v14357_v34  ;;  %10479 = vtanh.f32 %v12404_v12  ;;  %v10478_v49 = vpop.eup %10477 }
 0x5e6   :  { %4618 = vmatprep.subr.bf16.mxu0 %v14358_v44  ;;  %4659 = vmatprep.subr.bf16.mxu1 %v14359_v35 }
 0x5e9   :  { %4619 = vmatpush1.bf16.msra.mxu0 %v14360_v23  ;;  %4660 = vmatpush1.bf16.msra.mxu1 %v14361_v18 }
 0x5ea   :  { %4620 = vmatprep.subr.bf16.mxu0 %v14362_v46  ;;  %4661 = vmatprep.subr.bf16.mxu1 %v12305_v20  ;;  %v12427_v20 = vld [vmem:[#allocation12 + $0x4] ss:$16 sps:$4 sm:$0xff]  }
 0x5ed   :  { %4621 = vmatpush1.bf16.msra.mxu0 %v14363_v25  ;;  %4662 = vmatpush1.bf16.msra.mxu1 %v12311_v40  ;;  %v12429_v40 = vld [vmem:[#allocation12 + $0xc] ss:$16 sps:$4 sm:$0xff]  }
 0x5ee   :  { %4622 = vmatprep.subr.bf16.mxu0 %v12315_v30  ;;  %4663 = vmatprep.subr.bf16.mxu1 %v12317_v5  ;;  %v12431_v5 = vld [vmem:[#allocation12] ss:$16 sps:$4 sm:$0xff]   ;;  %v12433_v30 = vld [vmem:[#allocation12 + $0x8] ss:$16 sps:$4 sm:$0xff]  }
 0x5ef   :  { %v10480_v1 = vpop.eup %10479 }
 0x5f0   :  { %v12419_v3 = vmul.f32 %v10480_v1, %v10478_v49 }
 0x5f1   :  { %4623 = vmatpush1.bf16.msra.mxu0 %v12321_v2  ;;  %4664 = vmatpush1.bf16.msra.mxu1 %v12323_v41  ;;  %v12439_v2 = vld [vmem:[#allocation12 + $0x24] ss:$16 sps:$4 sm:$0xff]   ;;  %v12441_v41 = vld [vmem:[#allocation12 + $0x2c] ss:$16 sps:$4 sm:$0xff]  }
 0x5f2   :  { %14364 = vst [vmem:[#allocation95_spill] sm:$0xff] %v12419_v3  ;;  %v4415_v62 = vpack.c.bf16 %v12419_v3, %v12419_v3  ;;  %4941 = vmatprep.subr.bf16.mxu0 %v12427_v20  ;;  %4982 = vmatprep.subr.bf16.mxu1 %v12429_v40  ;;  %v12602_v3 = vld [vmem:[#allocation16 + $0xac] ss:$16 sps:$4 sm:$0xff]  }
 0x5f3   :  { %14376 = vst [vmem:[#allocation47_spill] sm:$0xff] %v12602_v3 }
 0x5f4   :  { %4641 = vmatmul.mubr.bf16.vlgmr.msra.gmra.mrb[76].mxu0 %v4415_v62  ;;  %4682 = vmatmul.mubr.bf16.vlgmr.msra.gmra.mrb[76].mxu1 %v4415_v62 }
 0x5f5   :  { %4973 = vmatprep.mubr.bf16.mxu0 %v14239_v63  ;;  %5014 = vmatprep.mubr.bf16.mxu1 %v14239_v63 }
 0x5f6   :  { %4942 = vmatpush1.bf16.msra.mxu0 %v12431_v5  ;;  %4983 = vmatpush1.bf16.msra.mxu1 %v12433_v30 }
 0x5f7   :  { %4943 = vmatprep.subr.bf16.mxu0 %v12439_v2  ;;  %4984 = vmatprep.subr.bf16.mxu1 %v12441_v41 }
 0x5fa   :  { %4944 = vmatpush1.bf16.msra.mxu0 %v12443_v51  ;;  %4985 = vmatpush1.bf16.msra.mxu1 %v12445_v52 }
 0x5fb   :  { %4945 = vmatprep.subr.bf16.mxu0 %v12451_v53  ;;  %4986 = vmatprep.subr.bf16.mxu1 %v12453_v54 }
 0x5fe   :  { %4946 = vmatpush1.bf16.msra.mxu0 %v12455_v0  ;;  %4987 = vmatpush1.bf16.msra.mxu1 %v12457_v55 }
 0x5ff   :  { %4947 = vmatprep.subr.bf16.mxu0 %v12463_v56  ;;  %4988 = vmatprep.subr.bf16.mxu1 %v12465_v57 }
 0x602   :  { %4948 = vmatpush1.bf16.msra.mxu0 %v12467_v22  ;;  %4989 = vmatpush1.bf16.msra.mxu1 %v12469_v59 }
 0x603   :  { %4949 = vmatprep.subr.bf16.mxu0 %v12475_v60  ;;  %4990 = vmatprep.subr.bf16.mxu1 %v12477_v61 }
 0x606   :  { %4950 = vmatpush1.bf16.msra.mxu0 %v12479_v27  ;;  %4991 = vmatpush1.bf16.msra.mxu1 %v12481_v29 }
 0x607   :  { %4951 = vmatprep.subr.bf16.mxu0 %v12487_v8  ;;  %4992 = vmatprep.subr.bf16.mxu1 %v12489_v24 }
 0x60a   :  { %4952 = vmatpush1.bf16.msra.mxu0 %v12491_v37  ;;  %4993 = vmatpush1.bf16.msra.mxu1 %v12493_v48 }
 0x60b   :  { %4953 = vmatprep.subr.bf16.mxu0 %v12499_v33  ;;  %4994 = vmatprep.subr.bf16.mxu1 %v12501_v17 }
 0x60e   :  { %4954 = vmatpush1.bf16.msra.mxu0 %v12503_v45  ;;  %4995 = vmatpush1.bf16.msra.mxu1 %v12505_v21 }
 0x60f   :  { %4955 = vmatprep.subr.bf16.mxu0 %v12511_v9  ;;  %4996 = vmatprep.subr.bf16.mxu1 %v12513_v50 }
 0x612   :  { %4956 = vmatpush1.bf16.msra.mxu0 %v12515_v36  ;;  %4997 = vmatpush1.bf16.msra.mxu1 %v12517_v38 }
 0x613   :  { %5224 = vmatprep.subr.bf16.mxu0 %v12523_v7  ;;  %5265 = vmatprep.subr.bf16.mxu1 %v12525_v13 }
 0x6a7   :  { %v4359_v15 = vpop.f32.mrb[72].mxu0  ;;  %v4400_v14 = vpop.f32.mrb[72].mxu1 }
 0x6a8   :  { %v4407_v26 = vadd.f32 %v4359_v15, %v14365_v39  ;;  %v4409_v11 = vadd.f32 %v4400_v14, %v14366_v10  ;;  %v4361_v47 = vpop.f32.mrb[73].mxu0  ;;  %v4402_v4 = vpop.f32.mrb[73].mxu1 }
 0x6a9   :  { %v4408_v19 = vadd.f32 %v4361_v47, %v14367_v28  ;;  %v4410_v32 = vadd.f32 %v4402_v4, %v14368_v6  ;;  %v4363_v42 = vpop.f32.mrb[74].mxu0  ;;  %v4404_v43 = vpop.f32.mrb[74].mxu1  ;;  %v14369_v6 = vld [vmem:[#allocation74_spill] sm:$0xff] }
 0x6aa   :  { %v9569_v34 = vmul.f32 -1.442695, %v4407_v26  ;;  %v4364_v44 = vpop.f32.mrb[75].mxu0  ;;  %v4405_v35 = vpop.f32.mrb[75].mxu1  ;;  %v14370_v42 = vld [vmem:[#allocation75_spill] sm:$0xff] }
 0x6ab   :  { %v9570_v23 = vmul.f32 -1.442695, %v4408_v19  ;;  %v9571_v18 = vmul.f32 -1.442695, %v4410_v32  ;;  %v14371_v44 = vld [vmem:[#allocation76_spill] sm:$0xff] }
 0x6ac   :  { %10481 = vpow2.f32 %v9569_v34 }
 0x6ad   :  { %10483 = vpow2.f32 %v9570_v23  ;;  %v14372_v23 = vld [vmem:[#allocation77_spill] sm:$0xff] }
 0x6ae   :  { %10485 = vpow2.f32 %v9571_v18 }
 0x6af   :  { %10487 = vtanh.f32 %v4409_v11 }
 0x6b6   :  { %v10482_v46 = vpop.eup %10481 }
 0x6b7   :  { %v10484_v25 = vpop.eup %10483  ;;  %v4700_v49 = vadd.f32 1.0, %v10482_v46 }
 0x6b8   :  { %v4701_v1 = vadd.f32 1.0, %v10484_v25  ;;  %v10486_v62 = vpop.eup %10485 }
 0x6b9   :  { %10489 = vrcp.f32 %v4700_v49  ;;  %v10488_v15 = vpop.eup %10487  ;;  %v4710_v26 = vadd.f32 1.0, %v10486_v62 }
 0x6ba   :  { %10491 = vrcp.f32 %v4701_v1 }
 0x6bb   :  { %10493 = vrcp.f32 %v4710_v26  ;;  %v12543_v26 = vld [vmem:[#allocation16] ss:$16 sps:$4 sm:$0xff]  }
 0x6c3   :  { %v10490_v14 = vpop.eup %10489 }
 0x6c4   :  { %v10492_v39 = vpop.eup %10491  ;;  %v4714_v10 = vmul.f32 %v10490_v14, %v10488_v15 }
 0x6c5   :  { %v4713_v47 = vmul.f32 %v10492_v39, %v12374_v58  ;;  %v10494_v15 = vpop.eup %10493 }
 0x6c7   :  { %v12534_v4 = vadd.f32 %v4714_v10, %v4713_v47  ;;  %v4642_v28 = vpop.f32.mrb[76].mxu0  ;;  %v4683_v19 = vpop.f32.mrb[76].mxu1  ;;  %v12545_v47 = vld [vmem:[#allocation16 + $0x8] ss:$16 sps:$4 sm:$0xff]  }
 0x6c8   :  { %v4690_v32 = vadd.f32 %v4642_v28, %v14369_v6  ;;  %v4692_v11 = vadd.f32 %v4683_v19, %v14370_v42  ;;  %v4644_v43 = vpop.f32.mrb[77].mxu0  ;;  %v4685_v34 = vpop.f32.mrb[77].mxu1  ;;  %v12549_v6 = vld [vmem:[#allocation16 + $0x24] ss:$16 sps:$4 sm:$0xff]  }
 0x6c9   :  { %v4691_v35 = vadd.f32 %v4644_v43, %v14371_v44  ;;  %v4693_v18 = vadd.f32 %v4685_v34, %v14372_v23  ;;  %v4646_v46 = vpop.f32.mrb[78].mxu0  ;;  %v4687_v25 = vpop.f32.mrb[78].mxu1  ;;  %10495 = vtanh.f32 %v12534_v4  ;;  %v12555_v44 = vld [vmem:[#allocation16 + $0x20] ss:$16 sps:$4 sm:$0xff]   ;;  %v12561_v23 = vld [vmem:[#allocation16 + $0x44] ss:$16 sps:$4 sm:$0xff]  }
 0x6ca   :  { %v9572_v58 = vmul.f32 -1.442695, %v4690_v32  ;;  %v4647_v49 = vpop.f32.mrb[79].mxu0  ;;  %v4688_v1 = vpop.f32.mrb[79].mxu1  ;;  %v12551_v32 = vld [vmem:[#allocation16 + $0x2c] ss:$16 sps:$4 sm:$0xff]  }
 0x6cb   :  { %v9573_v62 = vmul.f32 -1.442695, %v4691_v35  ;;  %v9574_v39 = vmul.f32 -1.442695, %v4693_v18  ;;  %v12557_v35 = vld [vmem:[#allocation16 + $0x28] ss:$16 sps:$4 sm:$0xff]  }
 0x6cc   :  { %10497 = vpow2.f32 %v9572_v58  ;;  %v12569_v18 = vld [vmem:[#allocation16 + $0x40] ss:$16 sps:$4 sm:$0xff]   ;;  %v12571_v46 = vld [vmem:[#allocation16 + $0x48] ss:$16 sps:$4 sm:$0xff]   ;;  %v12575_v25 = vld [vmem:[#allocation16 + $0x64] ss:$16 sps:$4 sm:$0xff]  }
 0x6cd   :  { %10499 = vpow2.f32 %v9573_v62  ;;  %v12577_v58 = vld [vmem:[#allocation16 + $0x6c] ss:$16 sps:$4 sm:$0xff]   ;;  %v12581_v1 = vld [vmem:[#allocation16 + $0x60] ss:$16 sps:$4 sm:$0xff]   ;;  %v12583_v62 = vld [vmem:[#allocation16 + $0x68] ss:$16 sps:$4 sm:$0xff]  }
 0x6ce   :  { %10501 = vpow2.f32 %v9574_v39  ;;  %v12589_v39 = vld [vmem:[#allocation16 + $0x8c] ss:$16 sps:$4 sm:$0xff]  }
 0x6cf   :  { %10503 = vtanh.f32 %v4692_v11  ;;  %v12563_v11 = vld [vmem:[#allocation16 + $0x4c] ss:$16 sps:$4 sm:$0xff]  }
 0x6d3   :  { %v10496_v14 = vpop.eup %10495 }
 0x6d4   :  { %v12541_v10 = vmul.f32 %v10496_v14, %v10494_v15  ;;  %v12587_v14 = vld [vmem:[#allocation16 + $0x84] ss:$16 sps:$4 sm:$0xff]  }
 0x6d6   :  { %14373 = vst [vmem:[#allocation96_spill] sm:$0xff] %v12541_v10  ;;  %v10498_v28 = vpop.eup %10497  ;;  %v4748_v19 = vpack.c.bf16 %v12541_v10, %v12541_v10  ;;  %v12594_v10 = vld [vmem:[#allocation16 + $0x80] ss:$16 sps:$4 sm:$0xff]  }
 0x6d7   :  { %v10500_v42 = vpop.eup %10499  ;;  %v4725_v43 = vadd.f32 1.0, %v10498_v28 }
 0x6d8   :  { %v4726_v34 = vadd.f32 1.0, %v10500_v42  ;;  %4974 = vmatmul.mubr.bf16.vlgmr.msra.gmra.mrb[80].mxu0 %v4748_v19  ;;  %5015 = vmatmul.mubr.bf16.vlgmr.msra.gmra.mrb[80].mxu1 %v4748_v19  ;;  %v10502_v49 = vpop.eup %10501 }
 0x6d9   :  { %10505 = vrcp.f32 %v4725_v43  ;;  %5225 = vmatpush1.bf16.msra.mxu0 %v12543_v26  ;;  %5266 = vmatpush1.bf16.msra.mxu1 %v12545_v47  ;;  %v10504_v15 = vpop.eup %10503  ;;  %v4735_v43 = vadd.f32 1.0, %v10502_v49  ;;  %v12610_v49 = vld [vmem:[#allocation16 + $0xa8] ss:$16 sps:$4 sm:$0xff]  }
 0x6da   :  { %10507 = vrcp.f32 %v4726_v34  ;;  %5226 = vmatprep.subr.bf16.mxu0 %v12549_v6  ;;  %5267 = vmatprep.subr.bf16.mxu1 %v12551_v32  ;;  %14378 = vst [vmem:[#allocation49_spill] sm:$0xff] %v12610_v49 }
 0x6db   :  { %5256 = vmatprep.mubr.bf16.mxu0 %v14239_v63  ;;  %5297 = vmatprep.mubr.bf16.mxu1 %v14239_v63  ;;  %10509 = vrcp.f32 %v4735_v43  ;;  %v12623_v43 = vld [vmem:[#allocation16 + $0xc8] ss:$16 sps:$4 sm:$0xff]  }
 0x6dd   :  { %5227 = vmatpush1.bf16.msra.mxu0 %v12555_v44  ;;  %5268 = vmatpush1.bf16.msra.mxu1 %v12557_v35 }
 0x6de   :  { %5228 = vmatprep.subr.bf16.mxu0 %v12561_v23  ;;  %5269 = vmatprep.subr.bf16.mxu1 %v12563_v11 }
 0x6e1   :  { %5229 = vmatpush1.bf16.msra.mxu0 %v12569_v18  ;;  %5270 = vmatpush1.bf16.msra.mxu1 %v12571_v46 }
 0x6e2   :  { %5230 = vmatprep.subr.bf16.mxu0 %v12575_v25  ;;  %5271 = vmatprep.subr.bf16.mxu1 %v12577_v58 }
 0x6e3   :  { %v10506_v28 = vpop.eup %10505 }
 0x6e4   :  { %v10508_v19 = vpop.eup %10507  ;;  %v4739_v42 = vmul.f32 %v10506_v28, %v10504_v15  ;;  %v12615_v28 = vld [vmem:[#allocation16 + $0xc4] ss:$16 sps:$4 sm:$0xff]  }
 0x6e5   :  { %v4738_v34 = vmul.f32 %v10508_v19, %v12404_v12  ;;  %5231 = vmatpush1.bf16.msra.mxu0 %v12581_v1  ;;  %5272 = vmatpush1.bf16.msra.mxu1 %v12583_v62  ;;  %v12608_v12 = vld [vmem:[#allocation16 + $0xa0] ss:$16 sps:$4 sm:$0xff]   ;;  %14379 = vst [vmem:[#allocation82_spill] sm:$0xff] %v12615_v28  ;;  %v12617_v19 = vld [vmem:[#allocation16 + $0xcc] ss:$16 sps:$4 sm:$0xff]  }
 0x6e6   :  { %5232 = vmatprep.subr.bf16.mxu0 %v12587_v14  ;;  %5273 = vmatprep.subr.bf16.mxu1 %v12589_v39  ;;  %14377 = vst [vmem:[#allocation48_spill] sm:$0xff] %v12608_v12 }
 0x6e7   :  { %v12604_v15 = vadd.f32 %v4739_v42, %v4738_v34  ;;  %v12621_v42 = vld [vmem:[#allocation16 + $0xc0] ss:$16 sps:$4 sm:$0xff]   ;;  %v12627_v34 = vld [vmem:[#allocation16 + $0xe4] ss:$16 sps:$4 sm:$0xff]  }
 0x6e8   :  { %14380 = vst [vmem:[#allocation83_spill] sm:$0xff] %v12621_v42 }
 0x6e9   :  { %5233 = vmatpush1.bf16.msra.mxu0 %v12594_v10  ;;  %5274 = vmatpush1.bf16.msra.mxu1 %v12596_v16  ;;  %10511 = vtanh.f32 %v12604_v15 }
 0x6ea   :  { %5234 = vmatprep.subr.bf16.mxu0 %v12600_v31  ;;  %5275 = vmatprep.subr.bf16.mxu1 %v12602_v3  ;;  %v12629_v31 = vld [vmem:[#allocation16 + $0xec] ss:$16 sps:$4 sm:$0xff]   ;;  %v12633_v3 = vld [vmem:[#allocation16 + $0xe0] ss:$16 sps:$4 sm:$0xff]  }
 0x6ed   :  { %5235 = vmatpush1.bf16.msra.mxu0 %v12608_v12  ;;  %5276 = vmatpush1.bf16.msra.mxu1 %v12610_v49  ;;  %v12635_v12 = vld [vmem:[#allocation16 + $0xe8] ss:$16 sps:$4 sm:$0xff]   ;;  %v10510_v49 = vpop.eup %10509 }
 0x6ee   :  { %5236 = vmatprep.subr.bf16.mxu0 %v12615_v28  ;;  %5277 = vmatprep.subr.bf16.mxu1 %v12617_v19 }
 0x6f1   :  { %5237 = vmatpush1.bf16.msra.mxu0 %v12621_v42  ;;  %5278 = vmatpush1.bf16.msra.mxu1 %v12623_v43 }
 0x6f2   :  { %5238 = vmatprep.subr.bf16.mxu0 %v12627_v34  ;;  %5279 = vmatprep.subr.bf16.mxu1 %v12629_v31 }
 0x6f3   :  { %v10512_v28 = vpop.eup %10511 }
 0x6f4   :  { %v12639_v16 = vmul.f32 %v10512_v28, %v10510_v49  ;;  %v14386_v28 = vld [vmem:[#allocation71_spill] sm:$0xff] }
 0x6f5   :  { %5239 = vmatpush1.bf16.msra.mxu0 %v12633_v3  ;;  %5280 = vmatpush1.bf16.msra.mxu1 %v12635_v12 }
 0x6f6   :  { %v5031_v42 = vpack.c.bf16 %v12639_v16, %v12639_v16  ;;  %5557 = vmatprep.subr.bf16.mxu0 %v12427_v20  ;;  %5598 = vmatprep.subr.bf16.mxu1 %v12429_v40 }
 0x6f8   :  { %5257 = vmatmul.mubr.bf16.vlgmr.msra.gmra.mrb[84].mxu0 %v5031_v42  ;;  %5298 = vmatmul.mubr.bf16.vlgmr.msra.gmra.mrb[84].mxu1 %v5031_v42 }
 0x6f9   :  { %5558 = vmatpush1.bf16.msra.mxu0 %v12431_v5  ;;  %5599 = vmatpush1.bf16.msra.mxu1 %v12433_v30  ;;  %v14381_v5 = vld [vmem:[#allocation58_spill] sm:$0xff] }
 0x6fa   :  { %5559 = vmatprep.subr.bf16.mxu0 %v12439_v2  ;;  %5600 = vmatprep.subr.bf16.mxu1 %v12441_v41  ;;  %v14382_v2 = vld [vmem:[#allocation59_spill] sm:$0xff] }
 0x6fb   :  { %5589 = vmatprep.mubr.bf16.mxu0 %v14239_v63  ;;  %5630 = vmatprep.mubr.bf16.mxu1 %v14239_v63 }
 0x6fd   :  { %5560 = vmatpush1.bf16.msra.mxu0 %v12443_v51  ;;  %5601 = vmatpush1.bf16.msra.mxu1 %v12445_v52 }
 0x6fe   :  { %5561 = vmatprep.subr.bf16.mxu0 %v12451_v53  ;;  %5602 = vmatprep.subr.bf16.mxu1 %v12453_v54  ;;  %v14383_v53 = vld [vmem:[#allocation60_spill] sm:$0xff] }
 0x701   :  { %5562 = vmatpush1.bf16.msra.mxu0 %v12455_v0  ;;  %5603 = vmatpush1.bf16.msra.mxu1 %v12457_v55  ;;  %v14384_v0 = vld [vmem:[#allocation61_spill] sm:$0xff] }
 0x702   :  { %5563 = vmatprep.subr.bf16.mxu0 %v12463_v56  ;;  %5604 = vmatprep.subr.bf16.mxu1 %v12465_v57 }
 0x705   :  { %5564 = vmatpush1.bf16.msra.mxu0 %v12467_v22  ;;  %5605 = vmatpush1.bf16.msra.mxu1 %v12469_v59 }
 0x706   :  { %5565 = vmatprep.subr.bf16.mxu0 %v12475_v60  ;;  %5606 = vmatprep.subr.bf16.mxu1 %v12477_v61 }
 0x709   :  { %5566 = vmatpush1.bf16.msra.mxu0 %v12479_v27  ;;  %5607 = vmatpush1.bf16.msra.mxu1 %v12481_v29 }
 0x70a   :  { %5567 = vmatprep.subr.bf16.mxu0 %v12487_v8  ;;  %5608 = vmatprep.subr.bf16.mxu1 %v12489_v24 }
 0x70d   :  { %5568 = vmatpush1.bf16.msra.mxu0 %v12491_v37  ;;  %5609 = vmatpush1.bf16.msra.mxu1 %v12493_v48 }
 0x70e   :  { %5569 = vmatprep.subr.bf16.mxu0 %v12499_v33  ;;  %5610 = vmatprep.subr.bf16.mxu1 %v12501_v17 }
 0x711   :  { %5570 = vmatpush1.bf16.msra.mxu0 %v12503_v45  ;;  %5611 = vmatpush1.bf16.msra.mxu1 %v12505_v21 }
 0x712   :  { %5571 = vmatprep.subr.bf16.mxu0 %v12511_v9  ;;  %5612 = vmatprep.subr.bf16.mxu1 %v12513_v50 }
 0x715   :  { %5572 = vmatpush1.bf16.msra.mxu0 %v12515_v36  ;;  %5613 = vmatpush1.bf16.msra.mxu1 %v12517_v38 }
 0x716   :  { %5840 = vmatprep.subr.bf16.mxu0 %v12523_v7  ;;  %5881 = vmatprep.subr.bf16.mxu1 %v12525_v13  ;;  %v14385_v13 = vld [vmem:[#allocation70_spill] sm:$0xff] }
 0x7ab   :  { %v4975_v20 = vpop.f32.mrb[80].mxu0  ;;  %v5016_v40 = vpop.f32.mrb[80].mxu1 }
 0x7ac   :  { %v5023_v30 = vadd.f32 %v4975_v20, %v14381_v5  ;;  %v5025_v41 = vadd.f32 %v5016_v40, %v14382_v2  ;;  %v4977_v51 = vpop.f32.mrb[81].mxu0  ;;  %v5018_v52 = vpop.f32.mrb[81].mxu1  ;;  %v14387_v5 = vld [vmem:[#allocation72_spill] sm:$0xff]  ;;  %v14388_v2 = vld [vmem:[#allocation73_spill] sm:$0xff] }
 0x7ad   :  { %v5024_v54 = vadd.f32 %v4977_v51, %v14383_v53  ;;  %v5026_v55 = vadd.f32 %v5018_v52, %v14384_v0  ;;  %v4979_v56 = vpop.f32.mrb[82].mxu0  ;;  %v5020_v57 = vpop.f32.mrb[82].mxu1 }
 0x7ae   :  { %v9639_v22 = vmul.f32 -1.442695, %v5023_v30  ;;  %v4980_v59 = vpop.f32.mrb[83].mxu0  ;;  %v5021_v60 = vpop.f32.mrb[83].mxu1 }
 0x7af   :  { %v9640_v61 = vmul.f32 -1.442695, %v5024_v54  ;;  %v9641_v27 = vmul.f32 -1.442695, %v5026_v55 }
 0x7b0   :  { %10513 = vpow2.f32 %v9639_v22 }
 0x7b1   :  { %10515 = vpow2.f32 %v9640_v61 }
 0x7b2   :  { %10517 = vpow2.f32 %v9641_v27 }
 0x7b3   :  { %10519 = vtanh.f32 %v5025_v41 }
 0x7ba   :  { %v10514_v29 = vpop.eup %10513 }
 0x7bb   :  { %v10516_v8 = vpop.eup %10515  ;;  %v5316_v24 = vadd.f32 1.0, %v10514_v29 }
 0x7bc   :  { %v5317_v37 = vadd.f32 1.0, %v10516_v8  ;;  %v10518_v48 = vpop.eup %10517 }
 0x7bd   :  { %10521 = vrcp.f32 %v5316_v24  ;;  %v10520_v33 = vpop.eup %10519  ;;  %v5326_v9 = vadd.f32 1.0, %v10518_v48 }
 0x7be   :  { %10523 = vrcp.f32 %v5317_v37 }
 0x7bf   :  { %10525 = vrcp.f32 %v5326_v9 }
 0x7c7   :  { %v10522_v17 = vpop.eup %10521 }
 0x7c8   :  { %v10524_v45 = vpop.eup %10523  ;;  %v5330_v21 = vmul.f32 %v10522_v17, %v10520_v33 }
 0x7c9   :  { %v5329_v50 = vmul.f32 %v10524_v45, %v12534_v4  ;;  %v10526_v55 = vpop.eup %10525 }
 0x7cb   :  { %v12686_v36 = vadd.f32 %v5330_v21, %v5329_v50  ;;  %v5258_v38 = vpop.f32.mrb[84].mxu0  ;;  %v5299_v7 = vpop.f32.mrb[84].mxu1 }
 0x7cc   :  { %v5306_v49 = vadd.f32 %v5258_v38, %v14385_v13  ;;  %v5308_v42 = vadd.f32 %v5299_v7, %v14386_v28  ;;  %v5260_v20 = vpop.f32.mrb[85].mxu0  ;;  %v5301_v40 = vpop.f32.mrb[85].mxu1 }
 0x7cd   :  { %v5307_v30 = vadd.f32 %v5260_v20, %v14387_v5  ;;  %v5309_v41 = vadd.f32 %v5301_v40, %v14388_v2  ;;  %v5262_v51 = vpop.f32.mrb[86].mxu0  ;;  %v5303_v52 = vpop.f32.mrb[86].mxu1  ;;  %10527 = vtanh.f32 %v12686_v36 }
 0x7ce   :  { %v9642_v4 = vmul.f32 -1.442695, %v5306_v49  ;;  %v5263_v53 = vpop.f32.mrb[87].mxu0  ;;  %v5304_v54 = vpop.f32.mrb[87].mxu1 }
 0x7cf   :  { %v9643_v0 = vmul.f32 -1.442695, %v5307_v30  ;;  %v9644_v57 = vmul.f32 -1.442695, %v5309_v41 }
 0x7d0   :  { %10529 = vpow2.f32 %v9642_v4 }
 0x7d1   :  { %10531 = vpow2.f32 %v9643_v0 }
 0x7d2   :  { %10533 = vpow2.f32 %v9644_v57 }
 0x7d3   :  { %10535 = vtanh.f32 %v5308_v42 }
 0x7d7   :  { %v10528_v56 = vpop.eup %10527 }
 0x7d8   :  { %v12693_v22 = vmul.f32 %v10528_v56, %v10526_v55 }
 0x7da   :  { %v10530_v59 = vpop.eup %10529  ;;  %v5364_v60 = vpack.c.bf16 %v12693_v22, %v12693_v22 }
 0x7db   :  { %v10532_v61 = vpop.eup %10531  ;;  %v5341_v27 = vadd.f32 1.0, %v10530_v59 }
 0x7dc   :  { %v5342_v29 = vadd.f32 1.0, %v10532_v61  ;;  %5590 = vmatmul.mubr.bf16.vlgmr.msra.gmra.mrb[88].mxu0 %v5364_v60  ;;  %5631 = vmatmul.mubr.bf16.vlgmr.msra.gmra.mrb[88].mxu1 %v5364_v60 }
 0x7dd   :  { %10537 = vrcp.f32 %v5341_v27  ;;  %5841 = vmatpush1.bf16.msra.mxu0 %v12543_v26  ;;  %5882 = vmatpush1.bf16.msra.mxu1 %v12545_v47  ;;  %v10534_v26 = vpop.eup %10533 }
 0x7de   :  { %10539 = vrcp.f32 %v5342_v29  ;;  %5842 = vmatprep.subr.bf16.mxu0 %v12549_v6  ;;  %5883 = vmatprep.subr.bf16.mxu1 %v12551_v32  ;;  %v10536_v47 = vpop.eup %10535 }
 0x7df   :  { %5872 = vmatprep.mubr.bf16.mxu0 %v14239_v63  ;;  %5913 = vmatprep.mubr.bf16.mxu1 %v14239_v63 }
 0x7e1   :  { %5843 = vmatpush1.bf16.msra.mxu0 %v12555_v44  ;;  %5884 = vmatpush1.bf16.msra.mxu1 %v12557_v35  ;;  %v5351_v44 = vadd.f32 1.0, %v10534_v26 }
 0x7e2   :  { %5844 = vmatprep.subr.bf16.mxu0 %v12561_v23  ;;  %5885 = vmatprep.subr.bf16.mxu1 %v12563_v11  ;;  %v14389_v11 = vld [vmem:[#allocation97_spill] sm:$0xff] }
 0x7e3   :  { %10541 = vrcp.f32 %v5351_v44 }
 0x7e5   :  { %5845 = vmatpush1.bf16.msra.mxu0 %v12569_v18  ;;  %5886 = vmatpush1.bf16.msra.mxu1 %v12571_v46  ;;  %v14390_v18 = vld [vmem:[#allocation46_spill] sm:$0xff]  ;;  %v14391_v46 = vld [vmem:[#allocation47_spill] sm:$0xff] }
 0x7e6   :  { %5846 = vmatprep.subr.bf16.mxu0 %v12575_v25  ;;  %5887 = vmatprep.subr.bf16.mxu1 %v12577_v58  ;;  %v14392_v25 = vld [vmem:[#allocation48_spill] sm:$0xff]  ;;  %v14393_v58 = vld [vmem:[#allocation49_spill] sm:$0xff] }
 0x7e7   :  { %v10538_v6 = vpop.eup %10537 }
 0x7e8   :  { %v10540_v32 = vpop.eup %10539  ;;  %v5355_v8 = vmul.f32 %v10538_v6, %v10536_v47 }
 0x7e9   :  { %v5354_v35 = vmul.f32 %v10540_v32, %v12604_v15  ;;  %5847 = vmatpush1.bf16.msra.mxu0 %v12581_v1  ;;  %5888 = vmatpush1.bf16.msra.mxu1 %v12583_v62  ;;  %v14394_v1 = vld [vmem:[#allocation82_spill] sm:$0xff]  ;;  %v14395_v62 = vld [vmem:[#allocation83_spill] sm:$0xff] }
 0x7ea   :  { %5848 = vmatprep.subr.bf16.mxu0 %v12587_v14  ;;  %5889 = vmatprep.subr.bf16.mxu1 %v12589_v39 }
 0x7eb   :  { %v12716_v23 = vadd.f32 %v5355_v8, %v5354_v35 }
 0x7ed   :  { %5849 = vmatpush1.bf16.msra.mxu0 %v12594_v10  ;;  %5890 = vmatpush1.bf16.msra.mxu1 %v14389_v11  ;;  %10543 = vtanh.f32 %v12716_v23  ;;  %v10542_v10 = vpop.eup %10541 }
 0x7ee   :  { %5850 = vmatprep.subr.bf16.mxu0 %v14390_v18  ;;  %5891 = vmatprep.subr.bf16.mxu1 %v14391_v46 }
 0x7f1   :  { %5851 = vmatpush1.bf16.msra.mxu0 %v14392_v25  ;;  %5892 = vmatpush1.bf16.msra.mxu1 %v14393_v58 }
 0x7f2   :  { %5852 = vmatprep.subr.bf16.mxu0 %v14394_v1  ;;  %5893 = vmatprep.subr.bf16.mxu1 %v12617_v19 }
 0x7f5   :  { %5853 = vmatpush1.bf16.msra.mxu0 %v14395_v62  ;;  %5894 = vmatpush1.bf16.msra.mxu1 %v12623_v43 }
 0x7f6   :  { %5854 = vmatprep.subr.bf16.mxu0 %v12627_v34  ;;  %5895 = vmatprep.subr.bf16.mxu1 %v12629_v31 }
 0x7f7   :  { %v10544_v14 = vpop.eup %10543 }
 0x7f8   :  { %v12731_v39 = vmul.f32 %v10544_v14, %v10542_v10 }
 0x7f9   :  { %5855 = vmatpush1.bf16.msra.mxu0 %v12633_v3  ;;  %5896 = vmatpush1.bf16.msra.mxu1 %v12635_v12 }
 0x7fa   :  { %v5647_v15 = vpack.c.bf16 %v12731_v39, %v12731_v39 }
 0x7fc   :  { %5873 = vmatmul.mubr.bf16.vlgmr.msra.gmra.mrb[92].mxu0 %v5647_v15  ;;  %5914 = vmatmul.mubr.bf16.vlgmr.msra.gmra.mrb[92].mxu1 %v5647_v15 }
 0x7fd   :  { %10908 = shalt.err (!%p10905_p12)  }
 0x7fe   :  { %s10909_s25 = scalar_lea.vmem %s231_s29, 4096  ;;  %p10914_p0 = scmp.lt.s32.totalorder %s231_s29, %s231_s29 }
 0x7ff   :  { %p10910_p13 = scmp.ne.s32.totalorder %s231_s29, %s10909_s25  ;;  %p10915_p1 = scmp.lt.s32.totalorder %s10909_s25, %s10909_s25 }
 0x801   :  { %p10916_p2 = por %p10915_p1, %p10914_p0 }
 0x803   :  { %p10917_p3 = pnand %p10916_p2, %p10910_p13 }
 0x805   :  { %10920 = shalt.err (!%p10917_p3)  }
 0x806   :  { %233 = dma.hbm_to_vmem [thread:$0]  %s14119_s13, 4096, %s231_s29, [#allocation11 + $0x4]  ;;  %v14396_v12 = vld [vmem:[#allocation62_spill] sm:$0xff]  ;;  %v14397_v43 = vld [vmem:[#allocation63_spill] sm:$0xff]  ;;  %v14398_v48 = vld [vmem:[#allocation64_spill] sm:$0xff] }
 0x807   :  { %v14399_v17 = vld [vmem:[#allocation65_spill] sm:$0xff]  ;;  %v14400_v55 = vld [vmem:[#allocation66_spill] sm:$0xff]  ;;  %v14401_v57 = vld [vmem:[#allocation67_spill] sm:$0xff] }
 0x808   :  { %v14402_v27 = vld [vmem:[#allocation68_spill] sm:$0xff]  ;;  %v14403_v26 = vld [vmem:[#allocation69_spill] sm:$0xff] }
 0x8af   :  { %v5591_v31 = vpop.f32.mrb[88].mxu0  ;;  %v5632_v3 = vpop.f32.mrb[88].mxu1 }
 0x8b0   :  { %v5639_v19 = vadd.f32 %v5591_v31, %v14396_v12  ;;  %v5641_v34 = vadd.f32 %v5632_v3, %v14397_v43  ;;  %v5593_v24 = vpop.f32.mrb[89].mxu0  ;;  %v5634_v37 = vpop.f32.mrb[89].mxu1 }
 0x8b1   :  { %v5640_v33 = vadd.f32 %v5593_v24, %v14398_v48  ;;  %v5642_v45 = vadd.f32 %v5634_v37, %v14399_v17  ;;  %v5595_v21 = vpop.f32.mrb[90].mxu0  ;;  %v5636_v9 = vpop.f32.mrb[90].mxu1 }
 0x8b2   :  { %v9709_v50 = vmul.f32 -1.442695, %v5639_v19  ;;  %v5596_v38 = vpop.f32.mrb[91].mxu0  ;;  %v5637_v7 = vpop.f32.mrb[91].mxu1 }
 0x8b3   :  { %v9710_v13 = vmul.f32 -1.442695, %v5640_v33  ;;  %v9711_v49 = vmul.f32 -1.442695, %v5642_v45 }
 0x8b4   :  { %10545 = vpow2.f32 %v9709_v50 }
 0x8b5   :  { %10547 = vpow2.f32 %v9710_v13 }
 0x8b6   :  { %10549 = vpow2.f32 %v9711_v49 }
 0x8b7   :  { %10551 = vtanh.f32 %v5641_v34 }
 0x8be   :  { %v10546_v28 = vpop.eup %10545 }
 0x8bf   :  { %v10548_v42 = vpop.eup %10547  ;;  %v5932_v20 = vadd.f32 1.0, %v10546_v28 }
 0x8c0   :  { %v5933_v40 = vadd.f32 1.0, %v10548_v42  ;;  %v10550_v5 = vpop.eup %10549 }
 0x8c1   :  { %10553 = vrcp.f32 %v5932_v20  ;;  %v10552_v30 = vpop.eup %10551  ;;  %v5942_v52 = vadd.f32 1.0, %v10550_v5 }
 0x8c2   :  { %10555 = vrcp.f32 %v5933_v40 }
 0x8c3   :  { %10557 = vrcp.f32 %v5942_v52 }
 0x8cb   :  { %v10554_v2 = vpop.eup %10553 }
 0x8cc   :  { %v10556_v41 = vpop.eup %10555  ;;  %v5946_v51 = vmul.f32 %v10554_v2, %v10552_v30 }
 0x8cd   :  { %v5945_v4 = vmul.f32 %v10556_v41, %v12686_v36  ;;  %v10558_v11 = vpop.eup %10557 }
 0x8cf   :  { %v5947_v53 = vadd.f32 %v5946_v51, %v5945_v4  ;;  %v5874_v54 = vpop.f32.mrb[92].mxu0  ;;  %v5915_v0 = vpop.f32.mrb[92].mxu1 }
 0x8d0   :  { %v5922_v56 = vadd.f32 %v5874_v54, %v14400_v55  ;;  %v5924_v59 = vadd.f32 %v5915_v0, %v14401_v57  ;;  %v5876_v60 = vpop.f32.mrb[93].mxu0  ;;  %v5917_v61 = vpop.f32.mrb[93].mxu1 }
 0x8d1   :  { %10559 = vtanh.f32 %v5947_v53  ;;  %v5923_v29 = vadd.f32 %v5876_v60, %v14402_v27  ;;  %v5925_v47 = vadd.f32 %v5917_v61, %v14403_v26  ;;  %v5878_v6 = vpop.f32.mrb[94].mxu0  ;;  %v5919_v32 = vpop.f32.mrb[94].mxu1 }
 0x8d2   :  { %v9712_v8 = vmul.f32 -1.442695, %v5922_v56  ;;  %v5879_v44 = vpop.f32.mrb[95].mxu0  ;;  %v5920_v36 = vpop.f32.mrb[95].mxu1 }
 0x8d3   :  { %v9713_v35 = vmul.f32 -1.442695, %v5923_v29  ;;  %v9714_v46 = vmul.f32 -1.442695, %v5925_v47 }
 0x8d4   :  { %10561 = vpow2.f32 %v9712_v8 }
 0x8d5   :  { %10563 = vpow2.f32 %v9713_v35 }
 0x8d6   :  { %10565 = vpow2.f32 %v9714_v46 }
 0x8d7   :  { %10567 = vtanh.f32 %v5924_v59 }
 0x8db   :  { %v10560_v18 = vpop.eup %10559 }
 0x8dc   :  { %v12758_v25 = vmul.f32 %v10560_v18, %v10558_v11 }
 0x8de   :  { %v10562_v58 = vpop.eup %10561 }
 0x8df   :  { %v10564_v1 = vpop.eup %10563  ;;  %v5957_v62 = vadd.f32 1.0, %v10562_v58 }
 0x8e0   :  { %v5958_v10 = vadd.f32 1.0, %v10564_v1  ;;  %v10566_v14 = vpop.eup %10565 }
 0x8e1   :  { %10569 = vrcp.f32 %v5957_v62  ;;  %v10568_v15 = vpop.eup %10567  ;;  %v5967_v19 = vadd.f32 1.0, %v10566_v14 }
 0x8e2   :  { %10571 = vrcp.f32 %v5958_v10 }
 0x8e3   :  { %10573 = vrcp.f32 %v5967_v19 }
 0x8eb   :  { %v10570_v31 = vpop.eup %10569 }
 0x8ec   :  { %v10572_v3 = vpop.eup %10571  ;;  %v5971_v12 = vmul.f32 %v10570_v31, %v10568_v15 }
 0x8ed   :  { %v5970_v43 = vmul.f32 %v10572_v3, %v12716_v23  ;;  %v10574_v24 = vpop.eup %10573 }
 0x8ef   :  { %v5972_v34 = vadd.f32 %v5971_v12, %v5970_v43 }
 0x8f1   :  { %10575 = vtanh.f32 %v5972_v34 }
 0x8fb   :  { %v10576_v37 = vpop.eup %10575 }
 0x8fc   :  { %v5974_v48 = vmul.f32 %v10576_v37, %v10574_v24 }
 0x8fd   :  { %10925 = dma.done.wait [#allocation11], 8192 }
 0x8fe   :  { %10926 = vsyncadd [#allocation11], 4294959104 }
 0x8ff   :  { %10927 = dma.done.wait [#allocation11 + $0x1], 4096 }
 0x900   :  { %10928 = vsyncadd [#allocation11 + $0x1], 4294963200 }
 0x901   :  { %10929 = dma.done.wait [#allocation11 + $0x2], 8192 }
 0x902   :  { %10930 = vsyncadd [#allocation11 + $0x2], 4294959104 }
 0x903   :  { %10931 = dma.done.wait [#allocation11 + $0x3], 4096 }
 0x904   :  { %10932 = vsyncadd [#allocation11 + $0x3], 4294963200  ;;  %v12762_v33 = vpack.c.bf16 %v12731_v39, %v5974_v48  ;;  %v6013_v23 = vld [vmem:[#allocation6 + $0x8] sm:$0xff]  ;;  %v6015_v17 = vld [vmem:[#allocation6 + $0x18] sm:$0xff] }
 0x905   :  { %v6012_v45 = vld [vmem:[#allocation6] sm:$0xff]  ;;  %6098 = vmatprep.subr.bf16.mxu0 %v6013_v23  ;;  %6171 = vmatprep.subr.bf16.mxu1 %v6015_v17  ;;  %v6014_v21 = vld [vmem:[#allocation6 + $0x10] sm:$0xff]  ;;  %v6017_v9 = vld [vmem:[#allocation6 + $0x28] sm:$0xff] }
 0x906   :  { %6130 = vmatprep.mubr.bf16.mxu0 %v12762_v33  ;;  %6203 = vmatprep.mubr.bf16.mxu1 %v12762_v33  ;;  %v6019_v50 = vld [vmem:[#allocation6 + $0x38] sm:$0xff]  ;;  %v6016_v38 = vld [vmem:[#allocation6 + $0x20] sm:$0xff]  ;;  %v6018_v7 = vld [vmem:[#allocation6 + $0x30] sm:$0xff] }
 0x907   :  { %6099 = vmatpush1.bf16.msra.mxu0 %v6012_v45  ;;  %6172 = vmatpush1.bf16.msra.mxu1 %v6014_v21  ;;  %v6021_v39 = vld [vmem:[#allocation6 + $0x48] sm:$0xff]  ;;  %v6023_v13 = vld [vmem:[#allocation6 + $0x58] sm:$0xff]  ;;  %v6020_v49 = vld [vmem:[#allocation6 + $0x40] sm:$0xff] }
 0x908   :  { %6100 = vmatprep.subr.bf16.mxu0 %v6017_v9  ;;  %6173 = vmatprep.subr.bf16.mxu1 %v6019_v50  ;;  %v6022_v28 = vld [vmem:[#allocation6 + $0x50] sm:$0xff]  ;;  %v6025_v42 = vld [vmem:[#allocation6 + $0x68] sm:$0xff]  ;;  %v6027_v20 = vld [vmem:[#allocation6 + $0x78] sm:$0xff] }
 0x909   :  { %v6024_v40 = vld [vmem:[#allocation6 + $0x60] sm:$0xff]  ;;  %v6026_v5 = vld [vmem:[#allocation6 + $0x70] sm:$0xff]  ;;  %v6029_v30 = vld [vmem:[#allocation6 + $0x88] sm:$0xff] }
 0x90a   :  { %v6031_v2 = vld [vmem:[#allocation6 + $0x98] sm:$0xff]  ;;  %v6028_v41 = vld [vmem:[#allocation6 + $0x80] sm:$0xff]  ;;  %v6030_v51 = vld [vmem:[#allocation6 + $0x90] sm:$0xff] }
 0x90b   :  { %6101 = vmatpush1.bf16.msra.mxu0 %v6016_v38  ;;  %6174 = vmatpush1.bf16.msra.mxu1 %v6018_v7  ;;  %v6033_v52 = vld [vmem:[#allocation6 + $0xa8] sm:$0xff]  ;;  %v6035_v4 = vld [vmem:[#allocation6 + $0xb8] sm:$0xff]  ;;  %v6032_v53 = vld [vmem:[#allocation6 + $0xa0] sm:$0xff] }
 0x90c   :  { %6102 = vmatprep.subr.bf16.mxu0 %v6021_v39  ;;  %6175 = vmatprep.subr.bf16.mxu1 %v6023_v13  ;;  %v6034_v54 = vld [vmem:[#allocation6 + $0xb0] sm:$0xff]  ;;  %v6037_v0 = vld [vmem:[#allocation6 + $0xc8] sm:$0xff]  ;;  %v6039_v55 = vld [vmem:[#allocation6 + $0xd8] sm:$0xff] }
 0x90d   :  { %v6036_v56 = vld [vmem:[#allocation6 + $0xc0] sm:$0xff]  ;;  %v6038_v57 = vld [vmem:[#allocation6 + $0xd0] sm:$0xff]  ;;  %v6041_v59 = vld [vmem:[#allocation6 + $0xe8] sm:$0xff] }
 0x90e   :  { %v6043_v60 = vld [vmem:[#allocation6 + $0xf8] sm:$0xff]  ;;  %v6040_v61 = vld [vmem:[#allocation6 + $0xe0] sm:$0xff]  ;;  %v6042_v27 = vld [vmem:[#allocation6 + $0xf0] sm:$0xff] }
 0x90f   :  { %6103 = vmatpush1.bf16.msra.mxu0 %v6020_v49  ;;  %6176 = vmatpush1.bf16.msra.mxu1 %v6022_v28  ;;  %v6045_v29 = vld [vmem:[#allocation6 + $0x108] sm:$0xff]  ;;  %v6047_v26 = vld [vmem:[#allocation6 + $0x118] sm:$0xff]  ;;  %v6044_v47 = vld [vmem:[#allocation6 + $0x100] sm:$0xff] }
 0x910   :  { %6104 = vmatprep.subr.bf16.mxu0 %v6025_v42  ;;  %6177 = vmatprep.subr.bf16.mxu1 %v6027_v20  ;;  %v6046_v6 = vld [vmem:[#allocation6 + $0x110] sm:$0xff]  ;;  %v6049_v32 = vld [vmem:[#allocation6 + $0x128] sm:$0xff]  ;;  %v6051_v8 = vld [vmem:[#allocation6 + $0x138] sm:$0xff] }
 0x911   :  { %v6048_v44 = vld [vmem:[#allocation6 + $0x120] sm:$0xff]  ;;  %v6050_v36 = vld [vmem:[#allocation6 + $0x130] sm:$0xff]  ;;  %v6053_v35 = vld [vmem:[#allocation6 + $0x148] sm:$0xff] }
 0x912   :  { %v6055_v11 = vld [vmem:[#allocation6 + $0x158] sm:$0xff]  ;;  %v6052_v18 = vld [vmem:[#allocation6 + $0x140] sm:$0xff]  ;;  %v6054_v46 = vld [vmem:[#allocation6 + $0x150] sm:$0xff] }
 0x913   :  { %6105 = vmatpush1.bf16.msra.mxu0 %v6024_v40  ;;  %6178 = vmatpush1.bf16.msra.mxu1 %v6026_v5  ;;  %v6057_v58 = vld [vmem:[#allocation6 + $0x168] sm:$0xff]  ;;  %v6059_v1 = vld [vmem:[#allocation6 + $0x178] sm:$0xff]  ;;  %v6056_v62 = vld [vmem:[#allocation6 + $0x160] sm:$0xff] }
 0x914   :  { %6106 = vmatprep.subr.bf16.mxu0 %v6029_v30  ;;  %6179 = vmatprep.subr.bf16.mxu1 %v6031_v2  ;;  %v6058_v10 = vld [vmem:[#allocation6 + $0x170] sm:$0xff]  ;;  %v6061_v14 = vld [vmem:[#allocation6 + $0x188] sm:$0xff]  ;;  %v6063_v15 = vld [vmem:[#allocation6 + $0x198] sm:$0xff] }
 0x915   :  { %v6060_v31 = vld [vmem:[#allocation6 + $0x180] sm:$0xff]  ;;  %v6062_v3 = vld [vmem:[#allocation6 + $0x190] sm:$0xff]  ;;  %v6065_v12 = vld [vmem:[#allocation6 + $0x1a8] sm:$0xff] }
 0x916   :  { %v6067_v19 = vld [vmem:[#allocation6 + $0x1b8] sm:$0xff]  ;;  %v6064_v43 = vld [vmem:[#allocation6 + $0x1a0] sm:$0xff]  ;;  %v6066_v34 = vld [vmem:[#allocation6 + $0x1b0] sm:$0xff] }
 0x917   :  { %6107 = vmatpush1.bf16.msra.mxu0 %v6028_v41  ;;  %6180 = vmatpush1.bf16.msra.mxu1 %v6030_v51  ;;  %v6069_v24 = vld [vmem:[#allocation6 + $0x1c8] sm:$0xff]  ;;  %v6071_v37 = vld [vmem:[#allocation6 + $0x1d8] sm:$0xff]  ;;  %v6068_v48 = vld [vmem:[#allocation6 + $0x1c0] sm:$0xff] }
 0x918   :  { %6108 = vmatprep.subr.bf16.mxu0 %v6033_v52  ;;  %6181 = vmatprep.subr.bf16.mxu1 %v6035_v4  ;;  %v6070_v23 = vld [vmem:[#allocation6 + $0x1d0] sm:$0xff]  ;;  %v6073_v17 = vld [vmem:[#allocation6 + $0x1e8] sm:$0xff]  ;;  %v6075_v45 = vld [vmem:[#allocation6 + $0x1f8] sm:$0xff] }
 0x919   :  { %v6072_v21 = vld [vmem:[#allocation6 + $0x1e0] sm:$0xff]  ;;  %v6074_v9 = vld [vmem:[#allocation6 + $0x1f0] sm:$0xff]  ;;  %v6277_v50 = vld [vmem:[#allocation8 + $0x8] sm:$0xff] }
 0x91a   :  { %v6279_v38 = vld [vmem:[#allocation8 + $0x18] sm:$0xff]  ;;  %v14404_v7 = vld [vmem:[#allocation94_spill] sm:$0xff]  ;;  %v14405_v39 = vld [vmem:[#allocation41_spill] sm:$0xff] }
 0x91b   :  { %6109 = vmatpush1.bf16.msra.mxu0 %v6032_v53  ;;  %6182 = vmatpush1.bf16.msra.mxu1 %v6034_v54  ;;  %v12768_v13 = vpack.c.bf16 %v14405_v39, %v14404_v7  ;;  %v6276_v49 = vld [vmem:[#allocation8] sm:$0xff]  ;;  %v6278_v28 = vld [vmem:[#allocation8 + $0x10] sm:$0xff]  ;;  %v6281_v42 = vld [vmem:[#allocation8 + $0x28] sm:$0xff] }
 0x91c   :  { %6110 = vmatprep.subr.bf16.mxu0 %v6037_v0  ;;  %6183 = vmatprep.subr.bf16.mxu1 %v6039_v55  ;;  %v6283_v20 = vld [vmem:[#allocation8 + $0x38] sm:$0xff]  ;;  %v6280_v30 = vld [vmem:[#allocation8 + $0x20] sm:$0xff]  ;;  %v6282_v2 = vld [vmem:[#allocation8 + $0x30] sm:$0xff] }
 0x91d   :  { %v14406_v40 = vld [vmem:[#allocation95_spill] sm:$0xff]  ;;  %v6285_v41 = vld [vmem:[#allocation8 + $0x48] sm:$0xff]  ;;  %v14407_v52 = vld [vmem:[#allocation42_spill] sm:$0xff] }
 0x91e   :  { %v12772_v5 = vpack.c.bf16 %v14406_v40, %v12639_v16  ;;  %v6287_v51 = vld [vmem:[#allocation8 + $0x58] sm:$0xff]  ;;  %v14408_v4 = vld [vmem:[#allocation44_spill] sm:$0xff]  ;;  %v6286_v54 = vld [vmem:[#allocation8 + $0x50] sm:$0xff] }
 0x91f   :  { %6111 = vmatpush1.bf16.msra.mxu0 %v6036_v56  ;;  %6184 = vmatpush1.bf16.msra.mxu1 %v6038_v57  ;;  %v12780_v16 = vpack.c.bf16 %v14408_v4, %v14407_v52  ;;  %v6284_v53 = vld [vmem:[#allocation8 + $0x40] sm:$0xff]  ;;  %v6289_v0 = vld [vmem:[#allocation8 + $0x68] sm:$0xff]  ;;  %v6291_v55 = vld [vmem:[#allocation8 + $0x78] sm:$0xff] }
 0x920   :  { %6112 = vmatprep.subr.bf16.mxu0 %v6041_v59  ;;  %6185 = vmatprep.subr.bf16.mxu1 %v6043_v60  ;;  %v14409_v56 = vld [vmem:[#allocation92_spill] sm:$0xff]  ;;  %v14410_v57 = vld [vmem:[#allocation43_spill] sm:$0xff]  ;;  %v6322_v7 = vld [vmem:[#allocation8 + $0x170] sm:$0xff] }
 0x921   :  { %v12784_v59 = vpack.c.bf16 %v14410_v57, %v14409_v56  ;;  %v6288_v60 = vld [vmem:[#allocation8 + $0x60] sm:$0xff]  ;;  %v6325_v39 = vld [vmem:[#allocation8 + $0x188] sm:$0xff]  ;;  %v6331_v40 = vld [vmem:[#allocation8 + $0x1b8] sm:$0xff] }
 0x922   :  { %v6332_v52 = vld [vmem:[#allocation8 + $0x1c0] sm:$0xff]  ;;  %v6334_v4 = vld [vmem:[#allocation8 + $0x1d0] sm:$0xff]  ;;  %v12810_v56 = vld [vmem:[#allocation7 + $0x8] sm:$0xff] }
 0x923   :  { %6113 = vmatpush1.bf16.msra.mxu0 %v6040_v61  ;;  %6186 = vmatpush1.bf16.msra.mxu1 %v6042_v27  ;;  %v6290_v61 = vld [vmem:[#allocation8 + $0x70] sm:$0xff]  ;;  %v6293_v27 = vld [vmem:[#allocation8 + $0x88] sm:$0xff]  ;;  %v12812_v57 = vld [vmem:[#allocation7 + $0x18] sm:$0xff] }
 0x924   :  { %6114 = vmatprep.subr.bf16.mxu0 %v6045_v29  ;;  %6187 = vmatprep.subr.bf16.mxu1 %v6047_v26  ;;  %v6295_v29 = vld [vmem:[#allocation8 + $0x98] sm:$0xff]  ;;  %v14411_v26 = vld [vmem:[#allocation93_spill] sm:$0xff] }
 0x927   :  { %6115 = vmatpush1.bf16.msra.mxu0 %v6044_v47  ;;  %6188 = vmatpush1.bf16.msra.mxu1 %v6046_v6  ;;  %v14412_v47 = vld [vmem:[#allocation96_spill] sm:$0xff] }
 0x928   :  { %6116 = vmatprep.subr.bf16.mxu0 %v6049_v32  ;;  %6189 = vmatprep.subr.bf16.mxu1 %v6051_v8  ;;  %v12792_v6 = vpack.c.bf16 %v14412_v47, %v14411_v26  ;;  %v6292_v32 = vld [vmem:[#allocation8 + $0x80] sm:$0xff]  ;;  %v6294_v8 = vld [vmem:[#allocation8 + $0x90] sm:$0xff] }
 0x929   :  { %v12830_v26 = vld [vmem:[#allocation7 + $0x20] sm:$0xff]  ;;  %v12832_v47 = vld [vmem:[#allocation7 + $0x30] sm:$0xff] }
 0x92a   :  { %14418 = vst [vmem:[#allocation51_spill] sm:$0xff] %v12830_v26  ;;  %14419 = vst [vmem:[#allocation52_spill] sm:$0xff] %v12832_v47 }
 0x92b   :  { %6117 = vmatpush1.bf16.msra.mxu0 %v6048_v44  ;;  %6190 = vmatpush1.bf16.msra.mxu1 %v6050_v36  ;;  %v6297_v44 = vld [vmem:[#allocation8 + $0xa8] sm:$0xff]  ;;  %v6299_v36 = vld [vmem:[#allocation8 + $0xb8] sm:$0xff] }
 0x92c   :  { %6118 = vmatprep.subr.bf16.mxu0 %v6053_v35  ;;  %6191 = vmatprep.subr.bf16.mxu1 %v6055_v11  ;;  %v14413_v35 = vld [vmem:[#allocation98_spill] sm:$0xff]  ;;  %v14414_v11 = vld [vmem:[#allocation36_spill] sm:$0xff] }
 0x92f   :  { %6119 = vmatpush1.bf16.msra.mxu0 %v6052_v18  ;;  %6192 = vmatpush1.bf16.msra.mxu1 %v6054_v46  ;;  %v12796_v18 = vpack.c.bf16 %v14414_v11, %v14413_v35  ;;  %v6296_v46 = vld [vmem:[#allocation8 + $0xa0] sm:$0xff]  ;;  %v12850_v35 = vld [vmem:[#allocation7 + $0x78] sm:$0xff]  ;;  %v12860_v11 = vld [vmem:[#allocation7 + $0x70] sm:$0xff] }
 0x930   :  { %6120 = vmatprep.subr.bf16.mxu0 %v6057_v58  ;;  %6193 = vmatprep.subr.bf16.mxu1 %v6059_v1  ;;  %v6298_v58 = vld [vmem:[#allocation8 + $0xb0] sm:$0xff]  ;;  %v6301_v1 = vld [vmem:[#allocation8 + $0xc8] sm:$0xff]  ;;  %14425 = vst [vmem:[#allocation45_spill] sm:$0xff] %v12850_v35  ;;  %14427 = vst [vmem:[#allocation87_spill] sm:$0xff] %v12860_v11 }
 0x933   :  { %6121 = vmatpush1.bf16.msra.mxu0 %v6056_v62  ;;  %6194 = vmatpush1.bf16.msra.mxu1 %v6058_v10  ;;  %v6303_v62 = vld [vmem:[#allocation8 + $0xd8] sm:$0xff]  ;;  %v12804_v10 = vpack.c.bf16 %v12758_v25, %v12693_v22  ;;  %v6309_v22 = vld [vmem:[#allocation8 + $0x108] sm:$0xff] }
 0x934   :  { %6122 = vmatprep.subr.bf16.mxu0 %v6061_v14  ;;  %6195 = vmatprep.subr.bf16.mxu1 %v6063_v15  ;;  %v6300_v14 = vld [vmem:[#allocation8 + $0xc0] sm:$0xff]  ;;  %v6302_v15 = vld [vmem:[#allocation8 + $0xd0] sm:$0xff]  ;;  %v6311_v25 = vld [vmem:[#allocation8 + $0x118] sm:$0xff] }
 0x937   :  { %6123 = vmatpush1.bf16.msra.mxu0 %v6060_v31  ;;  %6196 = vmatpush1.bf16.msra.mxu1 %v6062_v3  ;;  %v6305_v31 = vld [vmem:[#allocation8 + $0xe8] sm:$0xff]  ;;  %v6307_v3 = vld [vmem:[#allocation8 + $0xf8] sm:$0xff] }
 0x938   :  { %6124 = vmatprep.subr.bf16.mxu0 %v6065_v12  ;;  %6197 = vmatprep.subr.bf16.mxu1 %v6067_v19  ;;  %v6304_v12 = vld [vmem:[#allocation8 + $0xe0] sm:$0xff]  ;;  %v6306_v19 = vld [vmem:[#allocation8 + $0xf0] sm:$0xff] }
 0x93b   :  { %6125 = vmatpush1.bf16.msra.mxu0 %v6064_v43  ;;  %6198 = vmatpush1.bf16.msra.mxu1 %v6066_v34  ;;  %v6308_v43 = vld [vmem:[#allocation8 + $0x100] sm:$0xff]  ;;  %v6310_v34 = vld [vmem:[#allocation8 + $0x110] sm:$0xff] }
 0x93c   :  { %6126 = vmatprep.subr.bf16.mxu0 %v6069_v24  ;;  %6199 = vmatprep.subr.bf16.mxu1 %v6071_v37  ;;  %v6313_v24 = vld [vmem:[#allocation8 + $0x128] sm:$0xff]  ;;  %v6315_v37 = vld [vmem:[#allocation8 + $0x138] sm:$0xff] }
 0x93f   :  { %6127 = vmatpush1.bf16.msra.mxu0 %v6068_v48  ;;  %6200 = vmatpush1.bf16.msra.mxu1 %v6070_v23  ;;  %v6312_v48 = vld [vmem:[#allocation8 + $0x120] sm:$0xff]  ;;  %v6314_v23 = vld [vmem:[#allocation8 + $0x130] sm:$0xff] }
 0x940   :  { %6128 = vmatprep.subr.bf16.mxu0 %v6073_v17  ;;  %6201 = vmatprep.subr.bf16.mxu1 %v6075_v45  ;;  %v6317_v17 = vld [vmem:[#allocation8 + $0x148] sm:$0xff]  ;;  %v6319_v45 = vld [vmem:[#allocation8 + $0x158] sm:$0xff] }
 0x943   :  { %6129 = vmatpush1.bf16.msra.mxu0 %v6072_v21  ;;  %6202 = vmatpush1.bf16.msra.mxu1 %v6074_v9  ;;  %v6318_v21 = vld [vmem:[#allocation8 + $0x150] sm:$0xff]  ;;  %v6321_v9 = vld [vmem:[#allocation8 + $0x168] sm:$0xff] }
 0x944   :  { %6362 = vmatprep.subr.bf16.mxu0 %v6277_v50  ;;  %6435 = vmatprep.subr.bf16.mxu1 %v6279_v38  ;;  %v6323_v50 = vld [vmem:[#allocation8 + $0x178] sm:$0xff]  ;;  %v6320_v38 = vld [vmem:[#allocation8 + $0x160] sm:$0xff] }
 0x946   :  { %6131 = vmatmul.mubr.bf16.vlgmr.msra.gmra.mrb[96].mxu0 %v12768_v13  ;;  %6204 = vmatmul.mubr.bf16.vlgmr.msra.gmra.mrb[96].mxu1 %v12768_v13 }
 0x947   :  { %6363 = vmatpush1.bf16.msra.mxu0 %v6276_v49  ;;  %6436 = vmatpush1.bf16.msra.mxu1 %v6278_v28  ;;  %v6327_v49 = vld [vmem:[#allocation8 + $0x198] sm:$0xff]  ;;  %v6324_v28 = vld [vmem:[#allocation8 + $0x180] sm:$0xff] }
 0x948   :  { %6364 = vmatprep.subr.bf16.mxu0 %v6281_v42  ;;  %6437 = vmatprep.subr.bf16.mxu1 %v6283_v20  ;;  %v6326_v42 = vld [vmem:[#allocation8 + $0x190] sm:$0xff]  ;;  %v6329_v20 = vld [vmem:[#allocation8 + $0x1a8] sm:$0xff] }
 0x949   :  { %6140 = vmatprep.mubr.bf16.mxu0 %v12772_v5  ;;  %6213 = vmatprep.mubr.bf16.mxu1 %v12772_v5 }
 0x94b   :  { %6365 = vmatpush1.bf16.msra.mxu0 %v6280_v30  ;;  %6438 = vmatpush1.bf16.msra.mxu1 %v6282_v2  ;;  %v6328_v30 = vld [vmem:[#allocation8 + $0x1a0] sm:$0xff]  ;;  %v6330_v2 = vld [vmem:[#allocation8 + $0x1b0] sm:$0xff] }
 0x94c   :  { %6366 = vmatprep.subr.bf16.mxu0 %v6285_v41  ;;  %6439 = vmatprep.subr.bf16.mxu1 %v6287_v51  ;;  %v6333_v41 = vld [vmem:[#allocation8 + $0x1c8] sm:$0xff]  ;;  %v6335_v51 = vld [vmem:[#allocation8 + $0x1d8] sm:$0xff] }
 0x94e   :  { %6141 = vmatmul.mubr.bf16.gmra.mrb[100].mxu0 %v12780_v16  ;;  %6214 = vmatmul.mubr.bf16.gmra.mrb[100].mxu1 %v12780_v16 }
 0x94f   :  { %6367 = vmatpush1.bf16.msra.mxu0 %v6284_v53  ;;  %6440 = vmatpush1.bf16.msra.mxu1 %v6286_v54  ;;  %v6337_v53 = vld [vmem:[#allocation8 + $0x1e8] sm:$0xff]  ;;  %v6339_v54 = vld [vmem:[#allocation8 + $0x1f8] sm:$0xff] }
 0x950   :  { %6368 = vmatprep.subr.bf16.mxu0 %v6289_v0  ;;  %6441 = vmatprep.subr.bf16.mxu1 %v6291_v55  ;;  %v6336_v0 = vld [vmem:[#allocation8 + $0x1e0] sm:$0xff]  ;;  %v6338_v55 = vld [vmem:[#allocation8 + $0x1f0] sm:$0xff] }
 0x951   :  { %6150 = vmatprep.mubr.bf16.mxu0 %v12784_v59  ;;  %6223 = vmatprep.mubr.bf16.mxu1 %v12784_v59 }
 0x953   :  { %6369 = vmatpush1.bf16.msra.mxu0 %v6288_v60  ;;  %6442 = vmatpush1.bf16.msra.mxu1 %v6290_v61  ;;  %v12816_v60 = vld [vmem:[#allocation7] sm:$0xff]  ;;  %v12818_v61 = vld [vmem:[#allocation7 + $0x10] sm:$0xff] }
 0x954   :  { %6370 = vmatprep.subr.bf16.mxu0 %v6293_v27  ;;  %6443 = vmatprep.subr.bf16.mxu1 %v6295_v29  ;;  %14415 = vst [vmem:[#allocation84_spill] sm:$0xff] %v12818_v61  ;;  %v12820_v27 = vld [vmem:[#allocation7 + $0x28] sm:$0xff]  ;;  %v12822_v29 = vld [vmem:[#allocation7 + $0x38] sm:$0xff] }
 0x955   :  { %14416 = vst [vmem:[#allocation85_spill] sm:$0xff] %v12820_v27  ;;  %14417 = vst [vmem:[#allocation50_spill] sm:$0xff] %v12822_v29 }
 0x956   :  { %6151 = vmatmul.mubr.bf16.gmra.mrb[104].mxu0 %v12792_v6  ;;  %6224 = vmatmul.mubr.bf16.gmra.mrb[104].mxu1 %v12792_v6 }
 0x957   :  { %6371 = vmatpush1.bf16.msra.mxu0 %v6292_v32  ;;  %6444 = vmatpush1.bf16.msra.mxu1 %v6294_v8  ;;  %v12836_v32 = vld [vmem:[#allocation7 + $0x48] sm:$0xff]  ;;  %v12838_v8 = vld [vmem:[#allocation7 + $0x58] sm:$0xff] }
 0x958   :  { %6372 = vmatprep.subr.bf16.mxu0 %v6297_v44  ;;  %6445 = vmatprep.subr.bf16.mxu1 %v6299_v36  ;;  %14420 = vst [vmem:[#allocation53_spill] sm:$0xff] %v12836_v32  ;;  %14421 = vst [vmem:[#allocation78_spill] sm:$0xff] %v12838_v8  ;;  %v12846_v44 = vld [vmem:[#allocation7 + $0x50] sm:$0xff]  ;;  %v12848_v36 = vld [vmem:[#allocation7 + $0x68] sm:$0xff] }
 0x959   :  { %6160 = vmatprep.mubr.bf16.mxu0 %v12796_v18  ;;  %6233 = vmatprep.mubr.bf16.mxu1 %v12796_v18  ;;  %14423 = vst [vmem:[#allocation80_spill] sm:$0xff] %v12846_v44  ;;  %14424 = vst [vmem:[#allocation81_spill] sm:$0xff] %v12848_v36 }
 0x95b   :  { %6373 = vmatpush1.bf16.msra.mxu0 %v6296_v46  ;;  %6446 = vmatpush1.bf16.msra.mxu1 %v6298_v58  ;;  %v12864_v46 = vld [vmem:[#allocation7 + $0x88] sm:$0xff]  ;;  %v12866_v58 = vld [vmem:[#allocation7 + $0x98] sm:$0xff] }
 0x95c   :  { %6374 = vmatprep.subr.bf16.mxu0 %v6301_v1  ;;  %6447 = vmatprep.subr.bf16.mxu1 %v6303_v62  ;;  %v12874_v1 = vld [vmem:[#allocation7 + $0x90] sm:$0xff]  ;;  %v12876_v62 = vld [vmem:[#allocation7 + $0xa8] sm:$0xff] }
 0x95e   :  { %6161 = vmatmul.mubr.bf16.gmra.mrb[108].mxu0 %v12804_v10  ;;  %6234 = vmatmul.mubr.bf16.gmra.mrb[108].mxu1 %v12804_v10 }
 0x95f   :  { %6375 = vmatpush1.bf16.msra.mxu0 %v6300_v14  ;;  %6448 = vmatpush1.bf16.msra.mxu1 %v6302_v15  ;;  %v12878_v14 = vld [vmem:[#allocation7 + $0xb8] sm:$0xff]  ;;  %v12888_v15 = vld [vmem:[#allocation7 + $0xb0] sm:$0xff] }
 0x960   :  { %6376 = vmatprep.subr.bf16.mxu0 %v6305_v31  ;;  %6449 = vmatprep.subr.bf16.mxu1 %v6307_v3  ;;  %v12892_v31 = vld [vmem:[#allocation7 + $0xc8] sm:$0xff]  ;;  %v12894_v3 = vld [vmem:[#allocation7 + $0xd8] sm:$0xff] }
 0x961   :  { %6394 = vmatprep.mubr.bf16.mxu0 %v12762_v33  ;;  %6467 = vmatprep.mubr.bf16.mxu1 %v12762_v33  ;;  %v6316_v33 = vld [vmem:[#allocation8 + $0x140] sm:$0xff] }
 0x963   :  { %6377 = vmatpush1.bf16.msra.mxu0 %v6304_v12  ;;  %6450 = vmatpush1.bf16.msra.mxu1 %v6306_v19  ;;  %v12902_v12 = vld [vmem:[#allocation7 + $0xd0] sm:$0xff]  ;;  %v12904_v19 = vld [vmem:[#allocation7 + $0xe8] sm:$0xff] }
 0x964   :  { %6378 = vmatprep.subr.bf16.mxu0 %v6309_v22  ;;  %6451 = vmatprep.subr.bf16.mxu1 %v6311_v25  ;;  %v12906_v22 = vld [vmem:[#allocation7 + $0xf8] sm:$0xff]  ;;  %v12916_v25 = vld [vmem:[#allocation7 + $0xf0] sm:$0xff] }
 0x967   :  { %6379 = vmatpush1.bf16.msra.mxu0 %v6308_v43  ;;  %6452 = vmatpush1.bf16.msra.mxu1 %v6310_v34  ;;  %v12920_v43 = vld [vmem:[#allocation9 + $0x8] sm:$0xff]  ;;  %v12922_v34 = vld [vmem:[#allocation9 + $0x18] sm:$0xff] }
 0x968   :  { %6380 = vmatprep.subr.bf16.mxu0 %v6313_v24  ;;  %6453 = vmatprep.subr.bf16.mxu1 %v6315_v37  ;;  %v12930_v24 = vld [vmem:[#allocation9 + $0x10] sm:$0xff]  ;;  %v12932_v37 = vld [vmem:[#allocation9 + $0x28] sm:$0xff] }
 0x96b   :  { %6381 = vmatpush1.bf16.msra.mxu0 %v6312_v48  ;;  %6454 = vmatpush1.bf16.msra.mxu1 %v6314_v23  ;;  %v12934_v48 = vld [vmem:[#allocation9 + $0x38] sm:$0xff]  ;;  %v12942_v23 = vld [vmem:[#allocation9 + $0x20] sm:$0xff] }
 0x96c   :  { %6382 = vmatprep.subr.bf16.mxu0 %v6317_v17  ;;  %6455 = vmatprep.subr.bf16.mxu1 %v6319_v45  ;;  %v12944_v17 = vld [vmem:[#allocation9 + $0x30] sm:$0xff]  ;;  %v12946_v45 = vld [vmem:[#allocation9 + $0x48] sm:$0xff] }
 0x96f   :  { %6383 = vmatpush1.bf16.msra.mxu0 %v6316_v33  ;;  %6456 = vmatpush1.bf16.msra.mxu1 %v6318_v21  ;;  %v12948_v33 = vld [vmem:[#allocation9 + $0x58] sm:$0xff]  ;;  %v12956_v21 = vld [vmem:[#allocation9 + $0x40] sm:$0xff] }
 0x970   :  { %6384 = vmatprep.subr.bf16.mxu0 %v6321_v9  ;;  %6457 = vmatprep.subr.bf16.mxu1 %v6323_v50  ;;  %v12958_v9 = vld [vmem:[#allocation9 + $0x50] sm:$0xff]  ;;  %v12960_v50 = vld [vmem:[#allocation9 + $0x68] sm:$0xff] }
 0x973   :  { %6385 = vmatpush1.bf16.msra.mxu0 %v6320_v38  ;;  %6458 = vmatpush1.bf16.msra.mxu1 %v6322_v7  ;;  %v12962_v38 = vld [vmem:[#allocation9 + $0x78] sm:$0xff]  ;;  %v12968_v7 = vld [vmem:[#allocation9 + $0x60] sm:$0xff] }
 0x974   :  { %6386 = vmatprep.subr.bf16.mxu0 %v6325_v39  ;;  %6459 = vmatprep.subr.bf16.mxu1 %v6327_v49  ;;  %v12970_v39 = vld [vmem:[#allocation9 + $0x70] sm:$0xff]  ;;  %v12972_v49 = vld [vmem:[#allocation9 + $0x88] sm:$0xff] }
 0x977   :  { %6387 = vmatpush1.bf16.msra.mxu0 %v6324_v28  ;;  %6460 = vmatpush1.bf16.msra.mxu1 %v6326_v42  ;;  %v12974_v28 = vld [vmem:[#allocation9 + $0x98] sm:$0xff]  ;;  %v12980_v42 = vld [vmem:[#allocation9 + $0x80] sm:$0xff] }
 0x978   :  { %6388 = vmatprep.subr.bf16.mxu0 %v6329_v20  ;;  %6461 = vmatprep.subr.bf16.mxu1 %v6331_v40  ;;  %v12982_v20 = vld [vmem:[#allocation9 + $0x90] sm:$0xff]  ;;  %v12984_v40 = vld [vmem:[#allocation9 + $0xa8] sm:$0xff] }
 0x97b   :  { %6389 = vmatpush1.bf16.msra.mxu0 %v6328_v30  ;;  %6462 = vmatpush1.bf16.msra.mxu1 %v6330_v2  ;;  %v12986_v30 = vld [vmem:[#allocation9 + $0xb8] sm:$0xff]  ;;  %v12992_v2 = vld [vmem:[#allocation9 + $0xa0] sm:$0xff] }
 0x97c   :  { %6390 = vmatprep.subr.bf16.mxu0 %v6333_v41  ;;  %6463 = vmatprep.subr.bf16.mxu1 %v6335_v51  ;;  %v12994_v41 = vld [vmem:[#allocation9 + $0xb0] sm:$0xff]  ;;  %v12996_v51 = vld [vmem:[#allocation9 + $0xc8] sm:$0xff] }
 0x97d   :  { %14428 = vst [vmem:[#allocation88_spill] sm:$0xff] %v12996_v51 }
 0x97f   :  { %6391 = vmatpush1.bf16.msra.mxu0 %v6332_v52  ;;  %6464 = vmatpush1.bf16.msra.mxu1 %v6334_v4  ;;  %v12998_v52 = vld [vmem:[#allocation9 + $0xd8] sm:$0xff]  ;;  %v13004_v4 = vld [vmem:[#allocation9 + $0xc0] sm:$0xff] }
 0x980   :  { %6392 = vmatprep.subr.bf16.mxu0 %v6337_v53  ;;  %6465 = vmatprep.subr.bf16.mxu1 %v6339_v54  ;;  %v13006_v53 = vld [vmem:[#allocation9 + $0xd0] sm:$0xff]  ;;  %v13008_v54 = vld [vmem:[#allocation9 + $0xe8] sm:$0xff] }
 0x983   :  { %6393 = vmatpush1.bf16.msra.mxu0 %v6336_v0  ;;  %6466 = vmatpush1.bf16.msra.mxu1 %v6338_v55  ;;  %v13010_v0 = vld [vmem:[#allocation9 + $0xf8] sm:$0xff]  ;;  %v13016_v55 = vld [vmem:[#allocation9 + $0xe0] sm:$0xff] }
 0x984   :  { %6576 = vmatprep.subr.bf16.mxu0 %v12810_v56  ;;  %6617 = vmatprep.subr.bf16.mxu1 %v12812_v57 }
 0x986   :  { %6395 = vmatmul.mubr.bf16.vlgmr.msra.gmra.mrb[112].mxu0 %v12768_v13  ;;  %6468 = vmatmul.mubr.bf16.vlgmr.msra.gmra.mrb[112].mxu1 %v12768_v13  ;;  %v12844_v13 = vld [vmem:[#allocation7 + $0x40] sm:$0xff] }
 0x987   :  { %6577 = vmatpush1.bf16.msra.mxu0 %v12816_v60  ;;  %6618 = vmatpush1.bf16.msra.mxu1 %v12818_v61  ;;  %14422 = vst [vmem:[#allocation79_spill] sm:$0xff] %v12844_v13 }
 0x988   :  { %6578 = vmatprep.subr.bf16.mxu0 %v12820_v27  ;;  %6619 = vmatprep.subr.bf16.mxu1 %v12822_v29 }
 0x989   :  { %6404 = vmatprep.mubr.bf16.mxu0 %v12772_v5  ;;  %6477 = vmatprep.mubr.bf16.mxu1 %v12772_v5  ;;  %v12858_v5 = vld [vmem:[#allocation7 + $0x60] sm:$0xff] }
 0x98a   :  { %14426 = vst [vmem:[#allocation86_spill] sm:$0xff] %v12858_v5 }
 0x98b   :  { %6579 = vmatpush1.bf16.msra.mxu0 %v12830_v26  ;;  %6620 = vmatpush1.bf16.msra.mxu1 %v12832_v47 }
 0x98c   :  { %6580 = vmatprep.subr.bf16.mxu0 %v12836_v32  ;;  %6621 = vmatprep.subr.bf16.mxu1 %v12838_v8 }
 0x98e   :  { %6405 = vmatmul.mubr.bf16.gmra.mrb[116].mxu0 %v12780_v16  ;;  %6478 = vmatmul.mubr.bf16.gmra.mrb[116].mxu1 %v12780_v16  ;;  %v12872_v16 = vld [vmem:[#allocation7 + $0x80] sm:$0xff] }
 0x98f   :  { %6581 = vmatpush1.bf16.msra.mxu0 %v12844_v13  ;;  %6622 = vmatpush1.bf16.msra.mxu1 %v12846_v44 }
 0x990   :  { %6582 = vmatprep.subr.bf16.mxu0 %v12848_v36  ;;  %6623 = vmatprep.subr.bf16.mxu1 %v12850_v35 }
 0x991   :  { %6414 = vmatprep.mubr.bf16.mxu0 %v12784_v59  ;;  %6487 = vmatprep.mubr.bf16.mxu1 %v12784_v59  ;;  %v12886_v59 = vld [vmem:[#allocation7 + $0xa0] sm:$0xff] }
 0x993   :  { %6583 = vmatpush1.bf16.msra.mxu0 %v12858_v5  ;;  %6624 = vmatpush1.bf16.msra.mxu1 %v12860_v11 }
 0x994   :  { %6584 = vmatprep.subr.bf16.mxu0 %v12864_v46  ;;  %6625 = vmatprep.subr.bf16.mxu1 %v12866_v58 }
 0x996   :  { %6415 = vmatmul.mubr.bf16.gmra.mrb[120].mxu0 %v12792_v6  ;;  %6488 = vmatmul.mubr.bf16.gmra.mrb[120].mxu1 %v12792_v6  ;;  %v12900_v6 = vld [vmem:[#allocation7 + $0xc0] sm:$0xff] }
 0x997   :  { %6585 = vmatpush1.bf16.msra.mxu0 %v12872_v16  ;;  %6626 = vmatpush1.bf16.msra.mxu1 %v12874_v1 }
 0x998   :  { %6586 = vmatprep.subr.bf16.mxu0 %v12876_v62  ;;  %6627 = vmatprep.subr.bf16.mxu1 %v12878_v14 }
 0x999   :  { %6424 = vmatprep.mubr.bf16.mxu0 %v12796_v18  ;;  %6497 = vmatprep.mubr.bf16.mxu1 %v12796_v18  ;;  %v12914_v18 = vld [vmem:[#allocation7 + $0xe0] sm:$0xff] }
 0x99b   :  { %6587 = vmatpush1.bf16.msra.mxu0 %v12886_v59  ;;  %6628 = vmatpush1.bf16.msra.mxu1 %v12888_v15 }
 0x99c   :  { %6588 = vmatprep.subr.bf16.mxu0 %v12892_v31  ;;  %6629 = vmatprep.subr.bf16.mxu1 %v12894_v3 }
 0x99e   :  { %6425 = vmatmul.mubr.bf16.gmra.mrb[124].mxu0 %v12804_v10  ;;  %6498 = vmatmul.mubr.bf16.gmra.mrb[124].mxu1 %v12804_v10  ;;  %v12928_v10 = vld [vmem:[#allocation9] sm:$0xff] }
 0x99f   :  { %6589 = vmatpush1.bf16.msra.mxu0 %v12900_v6  ;;  %6630 = vmatpush1.bf16.msra.mxu1 %v12902_v12 }
 0x9a0   :  { %6590 = vmatprep.subr.bf16.mxu0 %v12904_v19  ;;  %6631 = vmatprep.subr.bf16.mxu1 %v12906_v22 }
 0x9a1   :  { %6608 = vmatprep.mubr.bf16.mxu0 %v14239_v63  ;;  %6649 = vmatprep.mubr.bf16.mxu1 %v14239_v63 }
 0x9a3   :  { %6591 = vmatpush1.bf16.msra.mxu0 %v12914_v18  ;;  %6632 = vmatpush1.bf16.msra.mxu1 %v12916_v25 }
 0x9a4   :  { %6698 = vmatprep.subr.bf16.mxu0 %v12920_v43  ;;  %6739 = vmatprep.subr.bf16.mxu1 %v12922_v34 }
 0x9a6   :  { %6609 = vmatmul.mubr.bf16.vlgmr.msra.gmra.mrb[128].mxu0 %v14239_v63  ;;  %6650 = vmatmul.mubr.bf16.vlgmr.msra.gmra.mrb[128].mxu1 %v14239_v63 }
 0x9a7   :  { %6699 = vmatpush1.bf16.msra.mxu0 %v12928_v10  ;;  %6740 = vmatpush1.bf16.msra.mxu1 %v12930_v24 }
 0x9a8   :  { %6700 = vmatprep.subr.bf16.mxu0 %v12932_v37  ;;  %6741 = vmatprep.subr.bf16.mxu1 %v12934_v48 }
 0x9a9   :  { %6730 = vmatprep.mubr.bf16.mxu0 %v14239_v63  ;;  %6771 = vmatprep.mubr.bf16.mxu1 %v14239_v63 }
 0x9ab   :  { %6701 = vmatpush1.bf16.msra.mxu0 %v12942_v23  ;;  %6742 = vmatpush1.bf16.msra.mxu1 %v12944_v17 }
 0x9ac   :  { %6702 = vmatprep.subr.bf16.mxu0 %v12946_v45  ;;  %6743 = vmatprep.subr.bf16.mxu1 %v12948_v33 }
 0x9af   :  { %6703 = vmatpush1.bf16.msra.mxu0 %v12956_v21  ;;  %6744 = vmatpush1.bf16.msra.mxu1 %v12958_v9 }
 0x9b0   :  { %6704 = vmatprep.subr.bf16.mxu0 %v12960_v50  ;;  %6745 = vmatprep.subr.bf16.mxu1 %v12962_v38 }
 0x9b3   :  { %6705 = vmatpush1.bf16.msra.mxu0 %v12968_v7  ;;  %6746 = vmatpush1.bf16.msra.mxu1 %v12970_v39 }
 0x9b4   :  { %6706 = vmatprep.subr.bf16.mxu0 %v12972_v49  ;;  %6747 = vmatprep.subr.bf16.mxu1 %v12974_v28 }
 0x9b7   :  { %6707 = vmatpush1.bf16.msra.mxu0 %v12980_v42  ;;  %6748 = vmatpush1.bf16.msra.mxu1 %v12982_v20 }
 0x9b8   :  { %6708 = vmatprep.subr.bf16.mxu0 %v12984_v40  ;;  %6749 = vmatprep.subr.bf16.mxu1 %v12986_v30 }
 0x9bb   :  { %6709 = vmatpush1.bf16.msra.mxu0 %v12992_v2  ;;  %6750 = vmatpush1.bf16.msra.mxu1 %v12994_v41 }
 0x9bc   :  { %6710 = vmatprep.subr.bf16.mxu0 %v12996_v51  ;;  %6751 = vmatprep.subr.bf16.mxu1 %v12998_v52  ;;  %v13018_v51 = vld [vmem:[#allocation9 + $0xf0] sm:$0xff] }
 0x9bf   :  { %6711 = vmatpush1.bf16.msra.mxu0 %v13004_v4  ;;  %6752 = vmatpush1.bf16.msra.mxu1 %v13006_v53 }
 0x9c0   :  { %6712 = vmatprep.subr.bf16.mxu0 %v13008_v54  ;;  %6753 = vmatprep.subr.bf16.mxu1 %v13010_v0 }
 0x9c3   :  { %6713 = vmatpush1.bf16.msra.mxu0 %v13016_v55  ;;  %6754 = vmatpush1.bf16.msra.mxu1 %v13018_v51 }
 0x9c4   :  { %6871 = vmatprep.subr.bf16.mxu0 %v12810_v56  ;;  %6912 = vmatprep.subr.bf16.mxu1 %v12812_v57 }
 0x9c6   :  { %6731 = vmatmul.mubr.bf16.vlgmr.msra.gmra.mrb[132].mxu0 %v14239_v63  ;;  %6772 = vmatmul.mubr.bf16.vlgmr.msra.gmra.mrb[132].mxu1 %v14239_v63 }
 0x9c7   :  { %6872 = vmatpush1.bf16.msra.mxu0 %v12816_v60  ;;  %6913 = vmatpush1.bf16.msra.mxu1 %v12818_v61 }
 0x9c8   :  { %6873 = vmatprep.subr.bf16.mxu0 %v12820_v27  ;;  %6914 = vmatprep.subr.bf16.mxu1 %v12822_v29 }
 0x9c9   :  { %6903 = vmatprep.mubr.bf16.mxu0 %v14239_v63  ;;  %6944 = vmatprep.mubr.bf16.mxu1 %v14239_v63 }
 0x9cb   :  { %6874 = vmatpush1.bf16.msra.mxu0 %v12830_v26  ;;  %6915 = vmatpush1.bf16.msra.mxu1 %v12832_v47 }
 0x9cc   :  { %6875 = vmatprep.subr.bf16.mxu0 %v12836_v32  ;;  %6916 = vmatprep.subr.bf16.mxu1 %v12838_v8 }
 0x9cf   :  { %6876 = vmatpush1.bf16.msra.mxu0 %v12844_v13  ;;  %6917 = vmatpush1.bf16.msra.mxu1 %v12846_v44 }
 0x9d0   :  { %6877 = vmatprep.subr.bf16.mxu0 %v12848_v36  ;;  %6918 = vmatprep.subr.bf16.mxu1 %v12850_v35 }
 0x9d3   :  { %6878 = vmatpush1.bf16.msra.mxu0 %v12858_v5  ;;  %6919 = vmatpush1.bf16.msra.mxu1 %v12860_v11 }
 0x9d4   :  { %6879 = vmatprep.subr.bf16.mxu0 %v12864_v46  ;;  %6920 = vmatprep.subr.bf16.mxu1 %v12866_v58  ;;  %v6076_v46 = vld [vmem:[%s14115_s9] sm:$0xf]  ;;  %v14429_v58 = vld [vmem:[#allocation37_spill] sm:$0xff] }
 0x9d7   :  { %6880 = vmatpush1.bf16.msra.mxu0 %v12872_v16  ;;  %6921 = vmatpush1.bf16.msra.mxu1 %v12874_v1  ;;  %v13064_v16 = vrot.slane %v6076_v46, %v14429_v58  ;;  %v14430_v1 = vld [vmem:[#allocation38_spill] sm:$0xff] }
 0x9d8   :  { %6881 = vmatprep.subr.bf16.mxu0 %v12876_v62  ;;  %6922 = vmatprep.subr.bf16.mxu1 %v12878_v14  ;;  %v13067_v62 = vrot.slane %v6076_v46, %v14430_v1 }
 0x9db   :  { %6882 = vmatpush1.bf16.msra.mxu0 %v12886_v59  ;;  %6923 = vmatpush1.bf16.msra.mxu1 %v12888_v15  ;;  %v14431_v15 = vld [vmem:[#allocation39_spill] sm:$0xff] }
 0x9dc   :  { %6883 = vmatprep.subr.bf16.mxu0 %v12892_v31  ;;  %6924 = vmatprep.subr.bf16.mxu1 %v12894_v3  ;;  %v13074_v31 = vrot.slane %v6076_v46, %v14431_v15 }
 0x9df   :  { %6884 = vmatpush1.bf16.msra.mxu0 %v12900_v6  ;;  %6925 = vmatpush1.bf16.msra.mxu1 %v12902_v12  ;;  %v14432_v12 = vld [vmem:[#allocation40_spill] sm:$0xff] }
 0x9e0   :  { %6885 = vmatprep.subr.bf16.mxu0 %v12904_v19  ;;  %6926 = vmatprep.subr.bf16.mxu1 %v12906_v22  ;;  %v13081_v19 = vrot.slane %v6076_v46, %v14432_v12 }
 0x9e3   :  { %6886 = vmatpush1.bf16.msra.mxu0 %v12914_v18  ;;  %6927 = vmatpush1.bf16.msra.mxu1 %v12916_v25 }
 0x9e4   :  { %6994 = vmatprep.subr.bf16.mxu0 %v12920_v43  ;;  %7035 = vmatprep.subr.bf16.mxu1 %v12922_v34 }
 0xa19   :  { %v13069_v14 = vpop.f32.mrb[96].mxu0  ;;  %v13071_v59 = vpop.f32.mrb[96].mxu1 }
 0xa1a   :  { %v13076_v3 = vpop.f32.mrb[97].mxu0  ;;  %v13078_v6 = vpop.f32.mrb[97].mxu1  ;;  %v6133_v8 = vadd.f32 %v13069_v14, %v13064_v16 }
 0xa1b   :  { %v6136_v22 = vpop.f32.mrb[98].mxu0  ;;  %v6209_v18 = vpop.f32.mrb[98].mxu1 }
 0xa1c   :  { %v13084_v25 = vadd.f32 %v6136_v22, %v13064_v16  ;;  %v6138_v43 = vpop.f32.mrb[99].mxu0  ;;  %v13087_v34 = vadd.f32 %v6209_v18, %v13067_v62  ;;  %v6211_v11 = vpop.f32.mrb[99].mxu1 }
 0xa1d   :  { %v13090_v5 = vadd.f32 %v6138_v43, %v13081_v19  ;;  %v13093_v35 = vadd.f32 %v6211_v11, %v13074_v31 }
 0xa1e   :  { %14433 = vst [vmem:[#allocation89_spill] sm:$0xff] %v13084_v25  ;;  %14434 = vst [vmem:[#allocation90_spill] sm:$0xff] %v13087_v34 }
 0xa1f   :  { %14435 = vst [vmem:[#allocation91_spill] sm:$0xff] %v13090_v5  ;;  %14436 = vst [vmem:[#allocation54_spill] sm:$0xff] %v13093_v35 }
 0xa21   :  { %v6142_v36 = vpop.f32.mrb[100].mxu0  ;;  %v6215_v44 = vpop.f32.mrb[100].mxu1 }
 0xa22   :  { %v13096_v46 = vadd.f32 %v6142_v36, %v13064_v16  ;;  %v6144_v13 = vpop.f32.mrb[101].mxu0  ;;  %v13099_v22 = vadd.f32 %v6215_v44, %v13067_v62  ;;  %v6217_v25 = vpop.f32.mrb[101].mxu1 }
 0xa23   :  { %v13102_v18 = vadd.f32 %v6144_v13, %v13081_v19  ;;  %v6146_v34 = vpop.f32.mrb[102].mxu0  ;;  %v13105_v43 = vadd.f32 %v6217_v25, %v13074_v31  ;;  %v6219_v5 = vpop.f32.mrb[102].mxu1 }
 0xa24   :  { %14437 = vst [vmem:[#allocation55_spill] sm:$0xff] %v13096_v46  ;;  %14438 = vst [vmem:[#allocation56_spill] sm:$0xff] %v13099_v22  ;;  %v13108_v11 = vadd.f32 %v6146_v34, %v13064_v16  ;;  %v6148_v35 = vpop.f32.mrb[103].mxu0  ;;  %v13111_v36 = vadd.f32 %v6219_v5, %v13067_v62  ;;  %v6221_v46 = vpop.f32.mrb[103].mxu1 }
 0xa25   :  { %14439 = vst [vmem:[#allocation57_spill] sm:$0xff] %v13102_v18  ;;  %14440 = vst [vmem:[#allocation74_spill] sm:$0xff] %v13105_v43  ;;  %v13114_v44 = vadd.f32 %v6148_v35, %v13081_v19  ;;  %v13117_v22 = vadd.f32 %v6221_v46, %v13074_v31 }
 0xa26   :  { %14441 = vst [vmem:[#allocation75_spill] sm:$0xff] %v13108_v11  ;;  %14442 = vst [vmem:[#allocation76_spill] sm:$0xff] %v13111_v36 }
 0xa27   :  { %14443 = vst [vmem:[#allocation77_spill] sm:$0xff] %v13114_v44  ;;  %14444 = vst [vmem:[#allocation58_spill] sm:$0xff] %v13117_v22 }
 0xa29   :  { %v6152_v13 = vpop.f32.mrb[104].mxu0  ;;  %v6225_v18 = vpop.f32.mrb[104].mxu1 }
 0xa2a   :  { %v13120_v25 = vadd.f32 %v6152_v13, %v13064_v16  ;;  %v6154_v43 = vpop.f32.mrb[105].mxu0  ;;  %v13123_v34 = vadd.f32 %v6225_v18, %v13067_v62  ;;  %v6227_v11 = vpop.f32.mrb[105].mxu1 }
 0xa2b   :  { %v13126_v5 = vadd.f32 %v6154_v43, %v13081_v19  ;;  %v6156_v36 = vpop.f32.mrb[106].mxu0  ;;  %v13129_v35 = vadd.f32 %v6227_v11, %v13074_v31  ;;  %v6229_v44 = vpop.f32.mrb[106].mxu1 }
 0xa2c   :  { %14445 = vst [vmem:[#allocation59_spill] sm:$0xff] %v13120_v25  ;;  %14446 = vst [vmem:[#allocation60_spill] sm:$0xff] %v13123_v34  ;;  %v13132_v46 = vadd.f32 %v6156_v36, %v13064_v16  ;;  %v6158_v22 = vpop.f32.mrb[107].mxu0  ;;  %v13135_v13 = vadd.f32 %v6229_v44, %v13067_v62  ;;  %v6231_v25 = vpop.f32.mrb[107].mxu1 }
 0xa2d   :  { %14447 = vst [vmem:[#allocation61_spill] sm:$0xff] %v13126_v5  ;;  %14448 = vst [vmem:[#allocation70_spill] sm:$0xff] %v13129_v35  ;;  %v13138_v18 = vadd.f32 %v6158_v22, %v13081_v19  ;;  %v13141_v34 = vadd.f32 %v6231_v25, %v13074_v31 }
 0xa2e   :  { %14449 = vst [vmem:[#allocation71_spill] sm:$0xff] %v13132_v46  ;;  %14450 = vst [vmem:[#allocation72_spill] sm:$0xff] %v13135_v13 }
 0xa2f   :  { %14451 = vst [vmem:[#allocation73_spill] sm:$0xff] %v13138_v18  ;;  %14452 = vst [vmem:[#allocation97_spill] sm:$0xff] %v13141_v34 }
 0xa31   :  { %v6162_v43 = vpop.f32.mrb[108].mxu0  ;;  %v6235_v5 = vpop.f32.mrb[108].mxu1 }
 0xa32   :  { %v13144_v11 = vadd.f32 %v6162_v43, %v13064_v16  ;;  %v6164_v35 = vpop.f32.mrb[109].mxu0  ;;  %v13147_v36 = vadd.f32 %v6235_v5, %v13067_v62  ;;  %v6237_v46 = vpop.f32.mrb[109].mxu1 }
 0xa33   :  { %v13150_v44 = vadd.f32 %v6164_v35, %v13081_v19  ;;  %v6166_v13 = vpop.f32.mrb[110].mxu0  ;;  %v13153_v22 = vadd.f32 %v6237_v46, %v13074_v31  ;;  %v6239_v18 = vpop.f32.mrb[110].mxu1  ;;  %v6340_v35 = vld [vmem:[%s14118_s12] sm:$0xf] }
 0xa34   :  { %14453 = vst [vmem:[#allocation46_spill] sm:$0xff] %v13144_v11  ;;  %14454 = vst [vmem:[#allocation47_spill] sm:$0xff] %v13147_v36  ;;  %v13156_v25 = vadd.f32 %v6166_v13, %v13064_v16  ;;  %v6168_v34 = vpop.f32.mrb[111].mxu0  ;;  %v13159_v43 = vadd.f32 %v6239_v18, %v13067_v62  ;;  %v6241_v11 = vpop.f32.mrb[111].mxu1  ;;  %v13171_v46 = vrot.slane %v6340_v35, %v14429_v58 }
 0xa35   :  { %14455 = vst [vmem:[#allocation48_spill] sm:$0xff] %v13150_v44  ;;  %14456 = vst [vmem:[#allocation49_spill] sm:$0xff] %v13153_v22  ;;  %v13162_v5 = vadd.f32 %v6168_v34, %v13081_v19  ;;  %v13165_v36 = vadd.f32 %v6241_v11, %v13074_v31  ;;  %v13174_v13 = vrot.slane %v6340_v35, %v14430_v1 }
 0xa36   :  { %14457 = vst [vmem:[#allocation82_spill] sm:$0xff] %v13156_v25  ;;  %14458 = vst [vmem:[#allocation83_spill] sm:$0xff] %v13159_v43  ;;  %v13177_v18 = vrot.slane %v6340_v35, %v14432_v12  ;;  %v13180_v43 = vrot.slane %v6340_v35, %v14431_v15 }
 0xa37   :  { %14459 = vst [vmem:[#allocation62_spill] sm:$0xff] %v13162_v5  ;;  %14460 = vst [vmem:[#allocation63_spill] sm:$0xff] %v13165_v36 }
 0xa59   :  { %v6396_v34 = vpop.f32.mrb[112].mxu0  ;;  %v6469_v5 = vpop.f32.mrb[112].mxu1 }
 0xa5a   :  { %v13183_v11 = vadd.f32 %v6396_v34, %v13171_v46  ;;  %v6398_v36 = vpop.f32.mrb[113].mxu0  ;;  %v13186_v25 = vadd.f32 %v6469_v5, %v13174_v13  ;;  %v6471_v58 = vpop.f32.mrb[113].mxu1 }
 0xa5b   :  { %v13189_v22 = vadd.f32 %v6398_v36, %v13177_v18  ;;  %v6400_v1 = vpop.f32.mrb[114].mxu0  ;;  %v13192_v12 = vadd.f32 %v6471_v58, %v13180_v43  ;;  %v6473_v44 = vpop.f32.mrb[114].mxu1 }
 0xa5c   :  { %14461 = vst [vmem:[#allocation64_spill] sm:$0xff] %v13183_v11  ;;  %14462 = vst [vmem:[#allocation65_spill] sm:$0xff] %v13186_v25  ;;  %v13195_v15 = vadd.f32 %v6400_v1, %v13171_v46  ;;  %v6402_v35 = vpop.f32.mrb[115].mxu0  ;;  %v13198_v34 = vadd.f32 %v6473_v44, %v13174_v13  ;;  %v6475_v11 = vpop.f32.mrb[115].mxu1 }
 0xa5d   :  { %14463 = vst [vmem:[#allocation66_spill] sm:$0xff] %v13189_v22  ;;  %14464 = vst [vmem:[#allocation67_spill] sm:$0xff] %v13192_v12  ;;  %v13201_v5 = vadd.f32 %v6402_v35, %v13177_v18  ;;  %v13204_v25 = vadd.f32 %v6475_v11, %v13180_v43 }
 0xa5e   :  { %14465 = vst [vmem:[#allocation68_spill] sm:$0xff] %v13195_v15  ;;  %14466 = vst [vmem:[#allocation69_spill] sm:$0xff] %v13198_v34 }
 0xa5f   :  { %14467 = vst [vmem:[#allocation94_spill] sm:$0xff] %v13201_v5  ;;  %14468 = vst [vmem:[#allocation41_spill] sm:$0xff] %v13204_v25 }
 0xa61   :  { %v6406_v36 = vpop.f32.mrb[116].mxu0  ;;  %v6479_v22 = vpop.f32.mrb[116].mxu1 }
 0xa62   :  { %v13207_v58 = vadd.f32 %v6406_v36, %v13171_v46  ;;  %v6408_v12 = vpop.f32.mrb[117].mxu0  ;;  %v13210_v1 = vadd.f32 %v6479_v22, %v13174_v13  ;;  %v6481_v15 = vpop.f32.mrb[117].mxu1 }
 0xa63   :  { %v13213_v44 = vadd.f32 %v6408_v12, %v13177_v18  ;;  %v6410_v34 = vpop.f32.mrb[118].mxu0  ;;  %v13216_v35 = vadd.f32 %v6481_v15, %v13180_v43  ;;  %v6483_v5 = vpop.f32.mrb[118].mxu1 }
 0xa64   :  { %14469 = vst [vmem:[#allocation95_spill] sm:$0xff] %v13207_v58  ;;  %14470 = vst [vmem:[#allocation42_spill] sm:$0xff] %v13210_v1  ;;  %v13219_v11 = vadd.f32 %v6410_v34, %v13171_v46  ;;  %v6412_v25 = vpop.f32.mrb[119].mxu0  ;;  %v13222_v36 = vadd.f32 %v6483_v5, %v13174_v13  ;;  %v6485_v58 = vpop.f32.mrb[119].mxu1 }
 0xa65   :  { %14471 = vst [vmem:[#allocation44_spill] sm:$0xff] %v13213_v44  ;;  %14472 = vst [vmem:[#allocation92_spill] sm:$0xff] %v13216_v35  ;;  %v13225_v22 = vadd.f32 %v6412_v25, %v13177_v18  ;;  %v13228_v1 = vadd.f32 %v6485_v58, %v13180_v43 }
 0xa66   :  { %14473 = vst [vmem:[#allocation43_spill] sm:$0xff] %v13219_v11  ;;  %14474 = vst [vmem:[#allocation93_spill] sm:$0xff] %v13222_v36 }
 0xa67   :  { %14475 = vst [vmem:[#allocation96_spill] sm:$0xff] %v13225_v22  ;;  %14476 = vst [vmem:[#allocation98_spill] sm:$0xff] %v13228_v1 }
 0xa69   :  { %v6416_v12 = vpop.f32.mrb[120].mxu0  ;;  %v6489_v44 = vpop.f32.mrb[120].mxu1 }
 0xa6a   :  { %v13231_v15 = vadd.f32 %v6416_v12, %v13171_v46  ;;  %v6418_v35 = vpop.f32.mrb[121].mxu0  ;;  %v13234_v34 = vadd.f32 %v6489_v44, %v13174_v13  ;;  %v6491_v11 = vpop.f32.mrb[121].mxu1 }
 0xa6b   :  { %v13237_v5 = vadd.f32 %v6418_v35, %v13177_v18  ;;  %v6420_v36 = vpop.f32.mrb[122].mxu0  ;;  %v13240_v25 = vadd.f32 %v6491_v11, %v13180_v43  ;;  %v6493_v22 = vpop.f32.mrb[122].mxu1 }
 0xa6c   :  { %14477 = vst [vmem:[#allocation36_spill] sm:$0xff] %v13231_v15  ;;  %14478 = vst [vmem:[#allocation37_spill] sm:$0xff] %v13234_v34  ;;  %v13243_v58 = vadd.f32 %v6420_v36, %v13171_v46  ;;  %v6422_v1 = vpop.f32.mrb[123].mxu0  ;;  %v13246_v12 = vadd.f32 %v6493_v22, %v13174_v13  ;;  %v6495_v15 = vpop.f32.mrb[123].mxu1 }
 0xa6d   :  { %14479 = vst [vmem:[#allocation38_spill] sm:$0xff] %v13237_v5  ;;  %14480 = vst [vmem:[#allocation39_spill] sm:$0xff] %v13240_v25  ;;  %v13249_v44 = vadd.f32 %v6422_v1, %v13177_v18  ;;  %v13252_v34 = vadd.f32 %v6495_v15, %v13180_v43 }
 0xa6e   :  { %14481 = vst [vmem:[#allocation40_spill] sm:$0xff] %v13243_v58  ;;  %14482 = vst [vmem:[#allocation99_spill] sm:$0xff] %v13246_v12 }
 0xa6f   :  { %14483 = vst [vmem:[#allocation100_spill] sm:$0xff] %v13249_v44  ;;  %14484 = vst [vmem:[#allocation101_spill] sm:$0xff] %v13252_v34 }
 0xa71   :  { %v6426_v35 = vpop.f32.mrb[124].mxu0  ;;  %v6499_v5 = vpop.f32.mrb[124].mxu1 }
 0xa72   :  { %v13255_v11 = vadd.f32 %v6426_v35, %v13171_v46  ;;  %v6428_v25 = vpop.f32.mrb[125].mxu0  ;;  %v13258_v36 = vadd.f32 %v6499_v5, %v13174_v13  ;;  %v6501_v58 = vpop.f32.mrb[125].mxu1  ;;  %v6206_v35 = vadd.f32 %v13071_v59, %v13067_v62  ;;  %v6135_v5 = vadd.f32 %v13076_v3, %v13081_v19 }
 0xa73   :  { %v13261_v22 = vadd.f32 %v6428_v25, %v13177_v18  ;;  %v6430_v12 = vpop.f32.mrb[126].mxu0  ;;  %v13264_v1 = vadd.f32 %v6501_v58, %v13180_v43  ;;  %v6503_v44 = vpop.f32.mrb[126].mxu1  ;;  %v6208_v25 = vadd.f32 %v13078_v6, %v13074_v31 }
 0xa74   :  { %14485 = vst [vmem:[#allocation102_spill] sm:$0xff] %v13255_v11  ;;  %14486 = vst [vmem:[#allocation103_spill] sm:$0xff] %v13258_v36  ;;  %v6432_v15 = vpop.f32.mrb[127].mxu0  ;;  %v6505_v34 = vpop.f32.mrb[127].mxu1 }
 0xa75   :  { %14487 = vst [vmem:[#allocation104_spill] sm:$0xff] %v13261_v22  ;;  %14488 = vst [vmem:[#allocation105_spill] sm:$0xff] %v13264_v1 }
 0xa79   :  { %v6610_v22 = vpop.f32.mrb[128].mxu0  ;;  %v6651_v36 = vpop.f32.mrb[128].mxu1 }
 0xa7a   :  { %v6658_v11 = vadd.f32 %v6610_v22, %v6133_v8  ;;  %v6660_v58 = vadd.f32 %v6651_v36, %v6206_v35  ;;  %v6612_v1 = vpop.f32.mrb[129].mxu0  ;;  %v6653_v32 = vpop.f32.mrb[129].mxu1 }
 0xa7b   :  { %v6659_v47 = vadd.f32 %v6612_v1, %v6135_v5  ;;  %v6661_v26 = vadd.f32 %v6653_v32, %v6208_v25  ;;  %v6614_v29 = vpop.f32.mrb[130].mxu0  ;;  %v6655_v27 = vpop.f32.mrb[130].mxu1  ;;  %v6506_v1 = vadd.f32 %v6505_v34, %v13180_v43 }
 0xa7c   :  { %v9715_v16 = vmul.f32 -1.442695, %v6658_v11  ;;  %v6615_v14 = vpop.f32.mrb[131].mxu0  ;;  %v6656_v61 = vpop.f32.mrb[131].mxu1 }
 0xa7d   :  { %v9716_v62 = vmul.f32 -1.442695, %v6659_v47  ;;  %v9717_v59 = vmul.f32 -1.442695, %v6661_v26  ;;  %v6431_v61 = vadd.f32 %v6430_v12, %v13171_v46  ;;  %v6504_v47 = vadd.f32 %v6503_v44, %v13174_v13 }
 0xa7e   :  { %10577 = vpow2.f32 %v9715_v16  ;;  %v6433_v26 = vadd.f32 %v6432_v15, %v13177_v18 }
 0xa7f   :  { %10579 = vpow2.f32 %v9716_v62 }
 0xa80   :  { %10581 = vpow2.f32 %v9717_v59 }
 0xa81   :  { %10583 = vtanh.f32 %v6660_v58 }
 0xa88   :  { %v10578_v3 = vpop.eup %10577 }
 0xa89   :  { %v10580_v19 = vpop.eup %10579  ;;  %v6790_v31 = vadd.f32 1.0, %v10578_v3 }
 0xa8a   :  { %v6791_v8 = vadd.f32 1.0, %v10580_v19  ;;  %v10582_v6 = vpop.eup %10581 }
 0xa8b   :  { %10585 = vrcp.f32 %v6790_v31  ;;  %v10584_v36 = vpop.eup %10583  ;;  %v6800_v11 = vadd.f32 1.0, %v10582_v6 }
 0xa8c   :  { %10587 = vrcp.f32 %v6791_v8 }
 0xa8d   :  { %10589 = vrcp.f32 %v6800_v11 }
 0xa95   :  { %v10586_v32 = vpop.eup %10585 }
 0xa96   :  { %v10588_v29 = vpop.eup %10587  ;;  %v6804_v27 = vmul.f32 %v10586_v32, %v10584_v36 }
 0xa97   :  { %v6803_v22 = vmul.f32 0.0, %v10588_v29  ;;  %v10590_v43 = vpop.eup %10589 }
 0xa99   :  { %v13278_v35 = vadd.f32 %v6804_v27, %v6803_v22  ;;  %v6732_v5 = vpop.f32.mrb[132].mxu0  ;;  %v6773_v25 = vpop.f32.mrb[132].mxu1  ;;  %v13366_v22 = vld [vmem:[#allocation7 + $0xc8] sm:$0xff] }
 0xa9a   :  { %v6780_v58 = vadd.f32 %v6732_v5, %v6431_v61  ;;  %v6782_v16 = vadd.f32 %v6773_v25, %v6504_v47  ;;  %v6734_v14 = vpop.f32.mrb[133].mxu0  ;;  %v6775_v62 = vpop.f32.mrb[133].mxu1  ;;  %v13368_v61 = vld [vmem:[#allocation7 + $0xd8] sm:$0xff]  ;;  %v13372_v47 = vld [vmem:[#allocation7 + $0xc0] sm:$0xff] }
 0xa9b   :  { %10591 = vtanh.f32 %v13278_v35  ;;  %v6781_v59 = vadd.f32 %v6734_v14, %v6433_v26  ;;  %v6783_v3 = vadd.f32 %v6775_v62, %v6506_v1  ;;  %v6736_v46 = vpop.f32.mrb[134].mxu0  ;;  %v6777_v12 = vpop.f32.mrb[134].mxu1  ;;  %v13374_v26 = vld [vmem:[#allocation7 + $0xd0] sm:$0xff]  ;;  %v13378_v1 = vld [vmem:[#allocation7 + $0xe8] sm:$0xff]  ;;  %v13380_v5 = vld [vmem:[#allocation7 + $0xf8] sm:$0xff] }
 0xa9c   :  { %v9718_v13 = vmul.f32 -1.442695, %v6780_v58  ;;  %v6737_v44 = vpop.f32.mrb[135].mxu0  ;;  %v6778_v18 = vpop.f32.mrb[135].mxu1  ;;  %14518 = vst [vmem:[#allocation107_spill] sm:$0xff] %v13380_v5  ;;  %v13384_v25 = vld [vmem:[#allocation7 + $0xe0] sm:$0xff] }
 0xa9d   :  { %v9719_v15 = vmul.f32 -1.442695, %v6781_v59  ;;  %v9720_v19 = vmul.f32 -1.442695, %v6783_v3  ;;  %14519 = vst [vmem:[#allocation108_spill] sm:$0xff] %v13384_v25  ;;  %v13386_v58 = vld [vmem:[#allocation7 + $0xf0] sm:$0xff] }
 0xa9e   :  { %10593 = vpow2.f32 %v9718_v13  ;;  %14520 = vst [vmem:[#allocation109_spill] sm:$0xff] %v13386_v58  ;;  %v13392_v14 = vld [vmem:[#allocation9 + $0x18] sm:$0xff]  ;;  %v14523_v3 = vld [vmem:[#allocation89_spill] sm:$0xff]  ;;  %v14524_v12 = vld [vmem:[#allocation90_spill] sm:$0xff] }
 0xa9f   :  { %10595 = vpow2.f32 %v9719_v15  ;;  %14522 = vst [vmem:[#allocation111_spill] sm:$0xff] %v13392_v14  ;;  %v14525_v15 = vld [vmem:[#allocation91_spill] sm:$0xff] }
 0xaa0   :  { %10597 = vpow2.f32 %v9720_v19 }
 0xaa1   :  { %10599 = vtanh.f32 %v6782_v16  ;;  %v13390_v16 = vld [vmem:[#allocation9 + $0x8] sm:$0xff] }
 0xaa2   :  { %14521 = vst [vmem:[#allocation110_spill] sm:$0xff] %v13390_v16 }
 0xaa5   :  { %v10592_v34 = vpop.eup %10591 }
 0xaa6   :  { %v6807_v31 = vmul.f32 %v10592_v34, %v10590_v43  ;;  %v14526_v34 = vld [vmem:[#allocation54_spill] sm:$0xff] }
 0xaa8   :  { %v10594_v8 = vpop.eup %10593  ;;  %v13281_v6 = vpack.c.bf16 %v6807_v31, %v6807_v31 }
 0xaa9   :  { %v10596_v36 = vpop.eup %10595  ;;  %v6815_v32 = vadd.f32 1.0, %v10594_v8 }
 0xaaa   :  { %14489 = vst [vmem:[#allocation106_spill] sm:$0xff] %v13281_v6  ;;  %v6816_v29 = vadd.f32 1.0, %v10596_v36  ;;  %6904 = vmatmul.mubr.bf16.vlgmr.msra.gmra.mrb[136].mxu0 %v13281_v6  ;;  %6945 = vmatmul.mubr.bf16.vlgmr.msra.gmra.mrb[136].mxu1 %v13281_v6  ;;  %v13538_v6 = vld [vmem:[#allocation7 + $0x50] sm:$0xff] }
 0xaab   :  { %10601 = vrcp.f32 %v6815_v32  ;;  %6995 = vmatpush1.bf16.msra.mxu0 %v12928_v10  ;;  %7036 = vmatpush1.bf16.msra.mxu1 %v12930_v24  ;;  %v10598_v10 = vpop.eup %10597 }
 0xaac   :  { %10603 = vrcp.f32 %v6816_v29  ;;  %6996 = vmatprep.subr.bf16.mxu0 %v12932_v37  ;;  %7037 = vmatprep.subr.bf16.mxu1 %v12934_v48  ;;  %v10600_v24 = vpop.eup %10599 }
 0xaad   :  { %7026 = vmatprep.mubr.bf16.mxu0 %v14239_v63  ;;  %7067 = vmatprep.mubr.bf16.mxu1 %v14239_v63 }
 0xaaf   :  { %6997 = vmatpush1.bf16.msra.mxu0 %v12942_v23  ;;  %7038 = vmatpush1.bf16.msra.mxu1 %v12944_v17  ;;  %v6825_v23 = vadd.f32 1.0, %v10598_v10 }
 0xab0   :  { %6998 = vmatprep.subr.bf16.mxu0 %v12946_v45  ;;  %7039 = vmatprep.subr.bf16.mxu1 %v12948_v33  ;;  %v14490_v45 = vld [vmem:[#allocation88_spill] sm:$0xff] }
 0xab1   :  { %10605 = vrcp.f32 %v6825_v23 }
 0xab3   :  { %6999 = vmatpush1.bf16.msra.mxu0 %v12956_v21  ;;  %7040 = vmatpush1.bf16.msra.mxu1 %v12958_v9 }
 0xab4   :  { %7000 = vmatprep.subr.bf16.mxu0 %v12960_v50  ;;  %7041 = vmatprep.subr.bf16.mxu1 %v12962_v38  ;;  %v14492_v38 = vld [vmem:[#allocation84_spill] sm:$0xff] }
 0xab5   :  { %v10602_v37 = vpop.eup %10601 }
 0xab6   :  { %v10604_v48 = vpop.eup %10603  ;;  %v6829_v27 = vmul.f32 %v10602_v37, %v10600_v24 }
 0xab7   :  { %v6828_v11 = vmul.f32 0.0, %v10604_v48  ;;  %7001 = vmatpush1.bf16.msra.mxu0 %v12968_v7  ;;  %7042 = vmatpush1.bf16.msra.mxu1 %v12970_v39  ;;  %v14493_v7 = vld [vmem:[#allocation85_spill] sm:$0xff]  ;;  %v14494_v39 = vld [vmem:[#allocation50_spill] sm:$0xff] }
 0xab8   :  { %7002 = vmatprep.subr.bf16.mxu0 %v12972_v49  ;;  %7043 = vmatprep.subr.bf16.mxu1 %v12974_v28  ;;  %v14495_v49 = vld [vmem:[#allocation51_spill] sm:$0xff]  ;;  %v14498_v28 = vld [vmem:[#allocation78_spill] sm:$0xff] }
 0xab9   :  { %v13303_v17 = vadd.f32 %v6829_v27, %v6828_v11 }
 0xabb   :  { %10607 = vtanh.f32 %v13303_v17  ;;  %7003 = vmatpush1.bf16.msra.mxu0 %v12980_v42  ;;  %7044 = vmatpush1.bf16.msra.mxu1 %v12982_v20  ;;  %v10606_v33 = vpop.eup %10605  ;;  %v14499_v42 = vld [vmem:[#allocation79_spill] sm:$0xff]  ;;  %v14501_v20 = vld [vmem:[#allocation81_spill] sm:$0xff] }
 0xabc   :  { %7004 = vmatprep.subr.bf16.mxu0 %v12984_v40  ;;  %7045 = vmatprep.subr.bf16.mxu1 %v12986_v30  ;;  %v14502_v40 = vld [vmem:[#allocation45_spill] sm:$0xff]  ;;  %v14503_v30 = vld [vmem:[#allocation86_spill] sm:$0xff]  ;;  %14514 = vst [vmem:[#allocation81_spill] sm:$0xff] %v13368_v61 }
 0xabd   :  { %14515 = vst [vmem:[#allocation45_spill] sm:$0xff] %v13372_v47  ;;  %14516 = vst [vmem:[#allocation86_spill] sm:$0xff] %v13374_v26 }
 0xabf   :  { %7005 = vmatpush1.bf16.msra.mxu0 %v12992_v2  ;;  %7046 = vmatpush1.bf16.msra.mxu1 %v12994_v41  ;;  %v14504_v2 = vld [vmem:[#allocation87_spill] sm:$0xff]  ;;  %v13342_v41 = vld [vmem:[#allocation7 + $0x88] sm:$0xff] }
 0xac0   :  { %7006 = vmatprep.subr.bf16.mxu0 %v14490_v45  ;;  %7047 = vmatprep.subr.bf16.mxu1 %v12998_v52  ;;  %14505 = vst [vmem:[#allocation84_spill] sm:$0xff] %v13342_v41  ;;  %v13348_v52 = vld [vmem:[#allocation7 + $0x80] sm:$0xff]  ;;  %14517 = vst [vmem:[#allocation87_spill] sm:$0xff] %v13378_v1 }
 0xac1   :  { %14507 = vst [vmem:[#allocation50_spill] sm:$0xff] %v13348_v52 }
 0xac3   :  { %7007 = vmatpush1.bf16.msra.mxu0 %v13004_v4  ;;  %7048 = vmatpush1.bf16.msra.mxu1 %v13006_v53  ;;  %v13350_v4 = vld [vmem:[#allocation7 + $0x90] sm:$0xff]  ;;  %v13354_v53 = vld [vmem:[#allocation7 + $0xa8] sm:$0xff] }
 0xac4   :  { %7008 = vmatprep.subr.bf16.mxu0 %v13008_v54  ;;  %7049 = vmatprep.subr.bf16.mxu1 %v13010_v0  ;;  %14508 = vst [vmem:[#allocation51_spill] sm:$0xff] %v13350_v4  ;;  %v13356_v54 = vld [vmem:[#allocation7 + $0xb8] sm:$0xff]  ;;  %v13360_v0 = vld [vmem:[#allocation7 + $0xa0] sm:$0xff] }
 0xac5   :  { %v10608_v21 = vpop.eup %10607  ;;  %14511 = vst [vmem:[#allocation78_spill] sm:$0xff] %v13360_v0 }
 0xac6   :  { %v6832_v9 = vmul.f32 %v10608_v21, %v10606_v33 }
 0xac7   :  { %7009 = vmatpush1.bf16.msra.mxu0 %v13016_v55  ;;  %7050 = vmatpush1.bf16.msra.mxu1 %v13018_v51  ;;  %v13344_v51 = vld [vmem:[#allocation7 + $0x98] sm:$0xff]  ;;  %v13362_v55 = vld [vmem:[#allocation7 + $0xb0] sm:$0xff] }
 0xac8   :  { %v13320_v50 = vpack.c.bf16 %v6832_v9, %v6832_v9  ;;  %7167 = vmatprep.subr.bf16.mxu0 %v12810_v56  ;;  %7208 = vmatprep.subr.bf16.mxu1 %v12812_v57  ;;  %v14496_v56 = vld [vmem:[#allocation52_spill] sm:$0xff]  ;;  %v14497_v57 = vld [vmem:[#allocation53_spill] sm:$0xff]  ;;  %14506 = vst [vmem:[#allocation85_spill] sm:$0xff] %v13344_v51  ;;  %14512 = vst [vmem:[#allocation79_spill] sm:$0xff] %v13362_v55 }
 0xac9   :  { %14509 = vst [vmem:[#allocation52_spill] sm:$0xff] %v13354_v53  ;;  %14510 = vst [vmem:[#allocation53_spill] sm:$0xff] %v13356_v54 }
 0xaca   :  { %14491 = vst [vmem:[#allocation88_spill] sm:$0xff] %v13320_v50  ;;  %7027 = vmatmul.mubr.bf16.vlgmr.msra.gmra.mrb[140].mxu0 %v13320_v50  ;;  %7068 = vmatmul.mubr.bf16.vlgmr.msra.gmra.mrb[140].mxu1 %v13320_v50  ;;  %v13542_v50 = vld [vmem:[#allocation7 + $0x68] sm:$0xff] }
 0xacb   :  { %7168 = vmatpush1.bf16.msra.mxu0 %v12816_v60  ;;  %7209 = vmatpush1.bf16.msra.mxu1 %v14492_v38  ;;  %v14500_v60 = vld [vmem:[#allocation80_spill] sm:$0xff] }
 0xacc   :  { %7169 = vmatprep.subr.bf16.mxu0 %v14493_v7  ;;  %7210 = vmatprep.subr.bf16.mxu1 %v14494_v39  ;;  %14513 = vst [vmem:[#allocation80_spill] sm:$0xff] %v13366_v22 }
 0xacd   :  { %7199 = vmatprep.mubr.bf16.mxu0 %v14239_v63  ;;  %7240 = vmatprep.mubr.bf16.mxu1 %v14239_v63 }
 0xacf   :  { %7170 = vmatpush1.bf16.msra.mxu0 %v14495_v49  ;;  %7211 = vmatpush1.bf16.msra.mxu1 %v14496_v56 }
 0xad0   :  { %7171 = vmatprep.subr.bf16.mxu0 %v14497_v57  ;;  %7212 = vmatprep.subr.bf16.mxu1 %v14498_v28  ;;  %v14527_v57 = vld [vmem:[#allocation102_spill] sm:$0xff] }
 0xad1   :  { %14535 = vst [vmem:[#allocation102_spill] sm:$0xff] %v13538_v6 }
 0xad3   :  { %7172 = vmatpush1.bf16.msra.mxu0 %v14499_v42  ;;  %7213 = vmatpush1.bf16.msra.mxu1 %v14500_v60  ;;  %v14528_v42 = vld [vmem:[#allocation103_spill] sm:$0xff] }
 0xad4   :  { %7173 = vmatprep.subr.bf16.mxu0 %v14501_v20  ;;  %7214 = vmatprep.subr.bf16.mxu1 %v14502_v40  ;;  %14536 = vst [vmem:[#allocation103_spill] sm:$0xff] %v13542_v50 }
 0xad7   :  { %7174 = vmatpush1.bf16.msra.mxu0 %v14503_v30  ;;  %7215 = vmatpush1.bf16.msra.mxu1 %v14504_v2  ;;  %v14529_v30 = vld [vmem:[#allocation104_spill] sm:$0xff] }
 0xad8   :  { %7175 = vmatprep.subr.bf16.mxu0 %v13342_v41  ;;  %7216 = vmatprep.subr.bf16.mxu1 %v13344_v51 }
 0xadb   :  { %7176 = vmatpush1.bf16.msra.mxu0 %v13348_v52  ;;  %7217 = vmatpush1.bf16.msra.mxu1 %v13350_v4 }
 0xadc   :  { %7177 = vmatprep.subr.bf16.mxu0 %v13354_v53  ;;  %7218 = vmatprep.subr.bf16.mxu1 %v13356_v54 }
 0xadf   :  { %7178 = vmatpush1.bf16.msra.mxu0 %v13360_v0  ;;  %7219 = vmatpush1.bf16.msra.mxu1 %v13362_v55 }
 0xae0   :  { %7179 = vmatprep.subr.bf16.mxu0 %v13366_v22  ;;  %7220 = vmatprep.subr.bf16.mxu1 %v13368_v61 }
 0xae3   :  { %7180 = vmatpush1.bf16.msra.mxu0 %v13372_v47  ;;  %7221 = vmatpush1.bf16.msra.mxu1 %v13374_v26 }
 0xae4   :  { %7181 = vmatprep.subr.bf16.mxu0 %v13378_v1  ;;  %7222 = vmatprep.subr.bf16.mxu1 %v13380_v5 }
 0xae7   :  { %7182 = vmatpush1.bf16.msra.mxu0 %v13384_v25  ;;  %7223 = vmatpush1.bf16.msra.mxu1 %v13386_v58 }
 0xae8   :  { %7290 = vmatprep.subr.bf16.mxu0 %v13390_v16  ;;  %7331 = vmatprep.subr.bf16.mxu1 %v13392_v14 }
 0xb7d   :  { %v6905_v62 = vpop.f32.mrb[136].mxu0  ;;  %v6946_v59 = vpop.f32.mrb[136].mxu1 }
 0xb7e   :  { %v6953_v46 = vadd.f32 %v6905_v62, %v14523_v3  ;;  %v6955_v13 = vadd.f32 %v6946_v59, %v14524_v12  ;;  %v6907_v44 = vpop.f32.mrb[137].mxu0  ;;  %v6948_v18 = vpop.f32.mrb[137].mxu1  ;;  %v14530_v62 = vld [vmem:[#allocation105_spill] sm:$0xff] }
 0xb7f   :  { %v6954_v43 = vadd.f32 %v6907_v44, %v14525_v15  ;;  %v6956_v19 = vadd.f32 %v6948_v18, %v14526_v34  ;;  %v6909_v31 = vpop.f32.mrb[138].mxu0  ;;  %v6950_v8 = vpop.f32.mrb[138].mxu1 }
 0xb80   :  { %v9721_v36 = vmul.f32 -1.442695, %v6953_v46  ;;  %v6910_v32 = vpop.f32.mrb[139].mxu0  ;;  %v6951_v29 = vpop.f32.mrb[139].mxu1  ;;  %v13408_v8 = vld [vmem:[#allocation9] sm:$0xff] }
 0xb81   :  { %v9722_v10 = vmul.f32 -1.442695, %v6954_v43  ;;  %v9723_v24 = vmul.f32 -1.442695, %v6956_v19 }
 0xb82   :  { %10609 = vpow2.f32 %v9721_v36  ;;  %v13410_v36 = vld [vmem:[#allocation9 + $0x10] sm:$0xff] }
 0xb83   :  { %10611 = vpow2.f32 %v9722_v10  ;;  %v13412_v10 = vld [vmem:[#allocation9 + $0x28] sm:$0xff] }
 0xb84   :  { %10613 = vpow2.f32 %v9723_v24  ;;  %v13414_v24 = vld [vmem:[#allocation9 + $0x38] sm:$0xff] }
 0xb85   :  { %10615 = vtanh.f32 %v6955_v13 }
 0xb8c   :  { %v10610_v37 = vpop.eup %10609 }
 0xb8d   :  { %v10612_v48 = vpop.eup %10611  ;;  %v7086_v27 = vadd.f32 1.0, %v10610_v37 }
 0xb8e   :  { %v7087_v23 = vadd.f32 1.0, %v10612_v48  ;;  %v10614_v11 = vpop.eup %10613  ;;  %v13420_v48 = vld [vmem:[#allocation9 + $0x20] sm:$0xff] }
 0xb8f   :  { %10617 = vrcp.f32 %v7086_v27  ;;  %v10616_v45 = vpop.eup %10615  ;;  %v7096_v38 = vadd.f32 1.0, %v10614_v11  ;;  %v13422_v27 = vld [vmem:[#allocation9 + $0x30] sm:$0xff]  ;;  %v13426_v11 = vld [vmem:[#allocation9 + $0x58] sm:$0xff] }
 0xb90   :  { %10619 = vrcp.f32 %v7087_v23  ;;  %v13424_v23 = vld [vmem:[#allocation9 + $0x48] sm:$0xff] }
 0xb91   :  { %10621 = vrcp.f32 %v7096_v38 }
 0xb99   :  { %v10618_v33 = vpop.eup %10617 }
 0xb9a   :  { %v10620_v21 = vpop.eup %10619  ;;  %v7100_v9 = vmul.f32 %v10618_v33, %v10616_v45  ;;  %v13434_v45 = vld [vmem:[#allocation9 + $0x40] sm:$0xff]  ;;  %v13436_v33 = vld [vmem:[#allocation9 + $0x50] sm:$0xff] }
 0xb9b   :  { %v7099_v7 = vmul.f32 %v10620_v21, %v13278_v35  ;;  %v10622_v18 = vpop.eup %10621  ;;  %v13438_v21 = vld [vmem:[#allocation9 + $0x68] sm:$0xff] }
 0xb9d   :  { %v13401_v39 = vadd.f32 %v7100_v9, %v7099_v7  ;;  %v7028_v49 = vpop.f32.mrb[140].mxu0  ;;  %v7069_v56 = vpop.f32.mrb[140].mxu1  ;;  %v13440_v9 = vld [vmem:[#allocation9 + $0x78] sm:$0xff] }
 0xb9e   :  { %v7076_v28 = vadd.f32 %v7028_v49, %v14527_v57  ;;  %v7078_v60 = vadd.f32 %v7069_v56, %v14528_v42  ;;  %v7030_v20 = vpop.f32.mrb[141].mxu0  ;;  %v7071_v40 = vpop.f32.mrb[141].mxu1  ;;  %v13446_v49 = vld [vmem:[#allocation9 + $0x60] sm:$0xff]  ;;  %v13448_v56 = vld [vmem:[#allocation9 + $0x70] sm:$0xff]  ;;  %v13452_v42 = vld [vmem:[#allocation9 + $0x98] sm:$0xff] }
 0xb9f   :  { %v7077_v2 = vadd.f32 %v7030_v20, %v14529_v30  ;;  %v7079_v59 = vadd.f32 %v7071_v40, %v14530_v62  ;;  %v7032_v3 = vpop.f32.mrb[142].mxu0  ;;  %v7073_v46 = vpop.f32.mrb[142].mxu1  ;;  %10623 = vtanh.f32 %v13401_v39  ;;  %v13461_v62 = vld [vmem:[#allocation9 + $0x90] sm:$0xff] }
 0xba0   :  { %v9724_v35 = vmul.f32 -1.442695, %v7076_v28  ;;  %v7033_v12 = vpop.f32.mrb[143].mxu0  ;;  %v7074_v13 = vpop.f32.mrb[143].mxu1  ;;  %v13450_v28 = vld [vmem:[#allocation9 + $0x88] sm:$0xff]  ;;  %v13467_v46 = vld [vmem:[#allocation9 + $0xb8] sm:$0xff] }
 0xba1   :  { %v9725_v44 = vmul.f32 -1.442695, %v7077_v2  ;;  %v9726_v43 = vmul.f32 -1.442695, %v7079_v59  ;;  %v13459_v2 = vld [vmem:[#allocation9 + $0x80] sm:$0xff]  ;;  %v13465_v3 = vld [vmem:[#allocation9 + $0xa8] sm:$0xff] }
 0xba2   :  { %10625 = vpow2.f32 %v9724_v35  ;;  %v13476_v35 = vld [vmem:[#allocation9 + $0xb0] sm:$0xff]  ;;  %v13478_v12 = vld [vmem:[#allocation9 + $0xc8] sm:$0xff]  ;;  %v13480_v13 = vld [vmem:[#allocation9 + $0xd8] sm:$0xff] }
 0xba3   :  { %10627 = vpow2.f32 %v9725_v44  ;;  %v13486_v44 = vld [vmem:[#allocation9 + $0xc0] sm:$0xff] }
 0xba4   :  { %10629 = vpow2.f32 %v9726_v43  ;;  %v13492_v43 = vld [vmem:[#allocation9 + $0xf8] sm:$0xff] }
 0xba5   :  { %10631 = vtanh.f32 %v7078_v60 }
 0xba9   :  { %v10624_v15 = vpop.eup %10623 }
 0xbaa   :  { %v7103_v34 = vmul.f32 %v10624_v15, %v10622_v18  ;;  %v13488_v18 = vld [vmem:[#allocation9 + $0xd0] sm:$0xff]  ;;  %v13490_v15 = vld [vmem:[#allocation9 + $0xe8] sm:$0xff] }
 0xbac   :  { %v10626_v19 = vpop.eup %10625  ;;  %v7134_v31 = vpack.c.bf16 %v7103_v34, %v7103_v34 }
 0xbad   :  { %v10628_v32 = vpop.eup %10627  ;;  %v7111_v29 = vadd.f32 1.0, %v10626_v19  ;;  %v13498_v19 = vld [vmem:[#allocation9 + $0xe0] sm:$0xff] }
 0xbae   :  { %v7112_v37 = vadd.f32 1.0, %v10628_v32  ;;  %7200 = vmatmul.mubr.bf16.vlgmr.msra.gmra.mrb[144].mxu0 %v7134_v31  ;;  %7241 = vmatmul.mubr.bf16.vlgmr.msra.gmra.mrb[144].mxu1 %v7134_v31  ;;  %v10630_v38 = vpop.eup %10629  ;;  %v13500_v31 = vld [vmem:[#allocation9 + $0xf0] sm:$0xff] }
 0xbaf   :  { %10633 = vrcp.f32 %v7111_v29  ;;  %7291 = vmatpush1.bf16.msra.mxu0 %v13408_v8  ;;  %7332 = vmatpush1.bf16.msra.mxu1 %v13410_v36  ;;  %v10632_v7 = vpop.eup %10631  ;;  %v7121_v40 = vadd.f32 1.0, %v10630_v38  ;;  %v13506_v38 = vld [vmem:[#allocation7 + $0x8] sm:$0xff] }
 0xbb0   :  { %10635 = vrcp.f32 %v7112_v37  ;;  %7292 = vmatprep.subr.bf16.mxu0 %v13412_v10  ;;  %7333 = vmatprep.subr.bf16.mxu1 %v13414_v24 }
 0xbb1   :  { %7322 = vmatprep.mubr.bf16.mxu0 %v14239_v63  ;;  %7363 = vmatprep.mubr.bf16.mxu1 %v14239_v63  ;;  %10637 = vrcp.f32 %v7121_v40  ;;  %v13520_v40 = vld [vmem:[#allocation7 + $0x38] sm:$0xff] }
 0xbb3   :  { %7293 = vmatpush1.bf16.msra.mxu0 %v13420_v48  ;;  %7334 = vmatpush1.bf16.msra.mxu1 %v13422_v27 }
 0xbb4   :  { %7294 = vmatprep.subr.bf16.mxu0 %v13424_v23  ;;  %7335 = vmatprep.subr.bf16.mxu1 %v13426_v11 }
 0xbb7   :  { %7295 = vmatpush1.bf16.msra.mxu0 %v13434_v45  ;;  %7336 = vmatpush1.bf16.msra.mxu1 %v13436_v33 }
 0xbb8   :  { %7296 = vmatprep.subr.bf16.mxu0 %v13438_v21  ;;  %7337 = vmatprep.subr.bf16.mxu1 %v13440_v9 }
 0xbb9   :  { %v10634_v57 = vpop.eup %10633 }
 0xbba   :  { %v10636_v60 = vpop.eup %10635  ;;  %v7125_v20 = vmul.f32 %v10634_v57, %v10632_v7  ;;  %v13508_v7 = vld [vmem:[#allocation7 + $0x18] sm:$0xff]  ;;  %v13512_v57 = vld [vmem:[#allocation7] sm:$0xff] }
 0xbbb   :  { %v7124_v30 = vmul.f32 %v10636_v60, %v13303_v17  ;;  %7297 = vmatpush1.bf16.msra.mxu0 %v13446_v49  ;;  %7338 = vmatpush1.bf16.msra.mxu1 %v13448_v56  ;;  %v13474_v17 = vld [vmem:[#allocation9 + $0xa0] sm:$0xff]  ;;  %v10638_v34 = vpop.eup %10637  ;;  %v13514_v60 = vld [vmem:[#allocation7 + $0x10] sm:$0xff] }
 0xbbc   :  { %7298 = vmatprep.subr.bf16.mxu0 %v13450_v28  ;;  %7339 = vmatprep.subr.bf16.mxu1 %v13452_v42 }
 0xbbd   :  { %v13463_v59 = vadd.f32 %v7125_v20, %v7124_v30  ;;  %v13518_v20 = vld [vmem:[#allocation7 + $0x28] sm:$0xff]  ;;  %v13524_v30 = vld [vmem:[#allocation7 + $0x20] sm:$0xff] }
 0xbbe   :  { %14531 = vst [vmem:[#allocation89_spill] sm:$0xff] %v13524_v30 }
 0xbbf   :  { %7299 = vmatpush1.bf16.msra.mxu0 %v13459_v2  ;;  %7340 = vmatpush1.bf16.msra.mxu1 %v13461_v62  ;;  %10639 = vtanh.f32 %v13463_v59 }
 0xbc0   :  { %7300 = vmatprep.subr.bf16.mxu0 %v13465_v3  ;;  %7341 = vmatprep.subr.bf16.mxu1 %v13467_v46 }
 0xbc3   :  { %7301 = vmatpush1.bf16.msra.mxu0 %v13474_v17  ;;  %7342 = vmatpush1.bf16.msra.mxu1 %v13476_v35 }
 0xbc4   :  { %7302 = vmatprep.subr.bf16.mxu0 %v13478_v12  ;;  %7343 = vmatprep.subr.bf16.mxu1 %v13480_v13 }
 0xbc7   :  { %7303 = vmatpush1.bf16.msra.mxu0 %v13486_v44  ;;  %7344 = vmatpush1.bf16.msra.mxu1 %v13488_v18 }
 0xbc8   :  { %7304 = vmatprep.subr.bf16.mxu0 %v13490_v15  ;;  %7345 = vmatprep.subr.bf16.mxu1 %v13492_v43 }
 0xbc9   :  { %v10640_v32 = vpop.eup %10639 }
 0xbca   :  { %v7128_v29 = vmul.f32 %v10640_v32, %v10638_v34  ;;  %v13526_v34 = vld [vmem:[#allocation7 + $0x30] sm:$0xff]  ;;  %v13530_v32 = vld [vmem:[#allocation7 + $0x48] sm:$0xff] }
 0xbcb   :  { %7305 = vmatpush1.bf16.msra.mxu0 %v13498_v19  ;;  %7346 = vmatpush1.bf16.msra.mxu1 %v13500_v31  ;;  %14532 = vst [vmem:[#allocation90_spill] sm:$0xff] %v13526_v34  ;;  %14533 = vst [vmem:[#allocation91_spill] sm:$0xff] %v13530_v32 }
 0xbcc   :  { %v7257_v37 = vpack.c.bf16 %v7128_v29, %v7128_v29  ;;  %7463 = vmatprep.subr.bf16.mxu0 %v13506_v38  ;;  %7504 = vmatprep.subr.bf16.mxu1 %v13508_v7  ;;  %v13532_v29 = vld [vmem:[#allocation7 + $0x58] sm:$0xff] }
 0xbce   :  { %7323 = vmatmul.mubr.bf16.vlgmr.msra.gmra.mrb[148].mxu0 %v7257_v37  ;;  %7364 = vmatmul.mubr.bf16.vlgmr.msra.gmra.mrb[148].mxu1 %v7257_v37  ;;  %v13536_v37 = vld [vmem:[#allocation7 + $0x40] sm:$0xff] }
 0xbcf   :  { %7495 = vmatprep.mubr.bf16.mxu0 %v14239_v63  ;;  %7536 = vmatprep.mubr.bf16.mxu1 %v14239_v63  ;;  %14534 = vst [vmem:[#allocation54_spill] sm:$0xff] %v13536_v37 }
 0xbd0   :  { %7464 = vmatpush1.bf16.msra.mxu0 %v13512_v57  ;;  %7505 = vmatpush1.bf16.msra.mxu1 %v13514_v60 }
 0xbd1   :  { %7465 = vmatprep.subr.bf16.mxu0 %v13518_v20  ;;  %7506 = vmatprep.subr.bf16.mxu1 %v13520_v40 }
 0xbd4   :  { %7466 = vmatpush1.bf16.msra.mxu0 %v13524_v30  ;;  %7507 = vmatpush1.bf16.msra.mxu1 %v13526_v34  ;;  %v13544_v30 = vld [vmem:[#allocation7 + $0x78] sm:$0xff]  ;;  %v13548_v34 = vld [vmem:[#allocation7 + $0x60] sm:$0xff] }
 0xbd5   :  { %7467 = vmatprep.subr.bf16.mxu0 %v13530_v32  ;;  %7508 = vmatprep.subr.bf16.mxu1 %v13532_v29  ;;  %14537 = vst [vmem:[#allocation104_spill] sm:$0xff] %v13544_v30  ;;  %14538 = vst [vmem:[#allocation105_spill] sm:$0xff] %v13548_v34  ;;  %v13550_v32 = vld [vmem:[#allocation7 + $0x70] sm:$0xff] }
 0xbd6   :  { %14539 = vst [vmem:[#allocation112_spill] sm:$0xff] %v13550_v32 }
 0xbd8   :  { %7468 = vmatpush1.bf16.msra.mxu0 %v13536_v37  ;;  %7509 = vmatpush1.bf16.msra.mxu1 %v13538_v6 }
 0xbd9   :  { %7469 = vmatprep.subr.bf16.mxu0 %v13542_v50  ;;  %7510 = vmatprep.subr.bf16.mxu1 %v13544_v30 }
 0xbdc   :  { %7470 = vmatpush1.bf16.msra.mxu0 %v13548_v34  ;;  %7511 = vmatpush1.bf16.msra.mxu1 %v13550_v32 }
 0xbdd   :  { %7471 = vmatprep.subr.bf16.mxu0 %v13342_v41  ;;  %7512 = vmatprep.subr.bf16.mxu1 %v13344_v51 }
 0xbe0   :  { %7472 = vmatpush1.bf16.msra.mxu0 %v13348_v52  ;;  %7513 = vmatpush1.bf16.msra.mxu1 %v13350_v4  ;;  %v14542_v4 = vld [vmem:[#allocation57_spill] sm:$0xff]  ;;  %v14543_v52 = vld [vmem:[#allocation74_spill] sm:$0xff] }
 0xbe1   :  { %7473 = vmatprep.subr.bf16.mxu0 %v13354_v53  ;;  %7514 = vmatprep.subr.bf16.mxu1 %v13356_v54  ;;  %v14541_v54 = vld [vmem:[#allocation56_spill] sm:$0xff] }
 0xbe4   :  { %7474 = vmatpush1.bf16.msra.mxu0 %v13360_v0  ;;  %7515 = vmatpush1.bf16.msra.mxu1 %v13362_v55  ;;  %v14540_v0 = vld [vmem:[#allocation55_spill] sm:$0xff] }
 0xbe5   :  { %7475 = vmatprep.subr.bf16.mxu0 %v13366_v22  ;;  %7516 = vmatprep.subr.bf16.mxu1 %v13368_v61 }
 0xbe8   :  { %7476 = vmatpush1.bf16.msra.mxu0 %v13372_v47  ;;  %7517 = vmatpush1.bf16.msra.mxu1 %v13374_v26 }
 0xbe9   :  { %7477 = vmatprep.subr.bf16.mxu0 %v13378_v1  ;;  %7518 = vmatprep.subr.bf16.mxu1 %v13380_v5 }
 0xbec   :  { %7478 = vmatpush1.bf16.msra.mxu0 %v13384_v25  ;;  %7519 = vmatpush1.bf16.msra.mxu1 %v13386_v58 }
 0xbed   :  { %7586 = vmatprep.subr.bf16.mxu0 %v13390_v16  ;;  %7627 = vmatprep.subr.bf16.mxu1 %v13392_v14 }
 0xc81   :  { %v7201_v55 = vpop.f32.mrb[144].mxu0  ;;  %v7242_v22 = vpop.f32.mrb[144].mxu1 }
 0xc82   :  { %v7249_v61 = vadd.f32 %v7201_v55, %v14540_v0  ;;  %v7251_v47 = vadd.f32 %v7242_v22, %v14541_v54  ;;  %v7203_v53 = vpop.f32.mrb[145].mxu0  ;;  %v7244_v26 = vpop.f32.mrb[145].mxu1 }
 0xc83   :  { %v7250_v1 = vadd.f32 %v7203_v53, %v14542_v4  ;;  %v7252_v5 = vadd.f32 %v7244_v26, %v14543_v52  ;;  %v7205_v51 = vpop.f32.mrb[146].mxu0  ;;  %v7246_v25 = vpop.f32.mrb[146].mxu1 }
 0xc84   :  { %v9727_v41 = vmul.f32 -1.442695, %v7249_v61  ;;  %v7206_v58 = vpop.f32.mrb[147].mxu0  ;;  %v7247_v32 = vpop.f32.mrb[147].mxu1 }
 0xc85   :  { %v9728_v16 = vmul.f32 -1.442695, %v7250_v1  ;;  %v9729_v14 = vmul.f32 -1.442695, %v7252_v5  ;;  %v14544_v5 = vld [vmem:[#allocation40_spill] sm:$0xff]  ;;  %v14545_v58 = vld [vmem:[#allocation99_spill] sm:$0xff] }
 0xc86   :  { %10641 = vpow2.f32 %v9727_v41  ;;  %v14547_v32 = vld [vmem:[#allocation101_spill] sm:$0xff] }
 0xc87   :  { %10643 = vpow2.f32 %v9728_v16 }
 0xc88   :  { %10645 = vpow2.f32 %v9729_v14 }
 0xc89   :  { %10647 = vtanh.f32 %v7251_v47 }
 0xc90   :  { %v10642_v34 = vpop.eup %10641 }
 0xc91   :  { %v10644_v30 = vpop.eup %10643  ;;  %v7382_v0 = vadd.f32 1.0, %v10642_v34 }
 0xc92   :  { %v7383_v54 = vadd.f32 1.0, %v10644_v30  ;;  %v10646_v4 = vpop.eup %10645  ;;  %v14546_v30 = vld [vmem:[#allocation100_spill] sm:$0xff] }
 0xc93   :  { %10649 = vrcp.f32 %v7382_v0  ;;  %v10648_v53 = vpop.eup %10647  ;;  %v7392_v22 = vadd.f32 1.0, %v10646_v4 }
 0xc94   :  { %10651 = vrcp.f32 %v7383_v54 }
 0xc95   :  { %10653 = vrcp.f32 %v7392_v22 }
 0xc9d   :  { %v10650_v52 = vpop.eup %10649 }
 0xc9e   :  { %v10652_v51 = vpop.eup %10651  ;;  %v7396_v55 = vmul.f32 %v10650_v52, %v10648_v53 }
 0xc9f   :  { %v7395_v61 = vmul.f32 %v10652_v51, %v13401_v39 }
 0xca1   :  { %v13577_v26 = vadd.f32 %v7396_v55, %v7395_v61  ;;  %v7324_v41 = vpop.f32.mrb[148].mxu0  ;;  %v7365_v1 = vpop.f32.mrb[148].mxu1 }
 0xca2   :  { %v7372_v25 = vadd.f32 %v7324_v41, %v14544_v5  ;;  %v7374_v47 = vadd.f32 %v7365_v1, %v14545_v58  ;;  %v7326_v16 = vpop.f32.mrb[149].mxu0  ;;  %v7367_v14 = vpop.f32.mrb[149].mxu1 }
 0xca3   :  { %v7373_v34 = vadd.f32 %v7326_v16, %v14546_v30  ;;  %v7375_v0 = vadd.f32 %v7367_v14, %v14547_v32  ;;  %v7328_v54 = vpop.f32.mrb[150].mxu0  ;;  %v7369_v53 = vpop.f32.mrb[150].mxu1  ;;  %10655 = vtanh.f32 %v13577_v26 }
 0xca4   :  { %v9730_v39 = vmul.f32 -1.442695, %v7372_v25  ;;  %v7329_v4 = vpop.f32.mrb[151].mxu0  ;;  %v7370_v52 = vpop.f32.mrb[151].mxu1 }
 0xca5   :  { %v9731_v51 = vmul.f32 -1.442695, %v7373_v34  ;;  %v10654_v55 = vpop.eup %10653  ;;  %v9732_v61 = vmul.f32 -1.442695, %v7375_v0 }
 0xca6   :  { %10657 = vpow2.f32 %v9730_v39 }
 0xca7   :  { %10659 = vpow2.f32 %v9731_v51  ;;  %v14548_v51 = vld [vmem:[#allocation89_spill] sm:$0xff] }
 0xca8   :  { %10661 = vpow2.f32 %v9732_v61  ;;  %v14551_v61 = vld [vmem:[#allocation104_spill] sm:$0xff] }
 0xca9   :  { %10663 = vtanh.f32 %v7374_v47 }
 0xcad   :  { %v10656_v22 = vpop.eup %10655 }
 0xcae   :  { %v7399_v41 = vmul.f32 %v10656_v22, %v10654_v55  ;;  %v14549_v55 = vld [vmem:[#allocation90_spill] sm:$0xff]  ;;  %v14550_v22 = vld [vmem:[#allocation91_spill] sm:$0xff] }
 0xcb0   :  { %v10658_v1 = vpop.eup %10657  ;;  %v7430_v5 = vpack.c.bf16 %v7399_v41, %v7399_v41  ;;  %v14552_v41 = vld [vmem:[#allocation105_spill] sm:$0xff] }
 0xcb1   :  { %v10660_v58 = vpop.eup %10659  ;;  %v7407_v16 = vadd.f32 1.0, %v10658_v1  ;;  %v14553_v1 = vld [vmem:[#allocation112_spill] sm:$0xff] }
 0xcb2   :  { %v7408_v14 = vadd.f32 1.0, %v10660_v58  ;;  %7496 = vmatmul.mubr.bf16.vlgmr.msra.gmra.mrb[152].mxu0 %v7430_v5  ;;  %7537 = vmatmul.mubr.bf16.vlgmr.msra.gmra.mrb[152].mxu1 %v7430_v5  ;;  %v10662_v25 = vpop.eup %10661  ;;  %v14554_v5 = vld [vmem:[#allocation84_spill] sm:$0xff]  ;;  %v14555_v58 = vld [vmem:[#allocation85_spill] sm:$0xff] }
 0xcb3   :  { %10665 = vrcp.f32 %v7407_v16  ;;  %7587 = vmatpush1.bf16.msra.mxu0 %v13408_v8  ;;  %7628 = vmatpush1.bf16.msra.mxu1 %v13410_v36  ;;  %v10664_v47 = vpop.eup %10663  ;;  %v7417_v0 = vadd.f32 1.0, %v10662_v25  ;;  %v14556_v16 = vld [vmem:[#allocation50_spill] sm:$0xff]  ;;  %v14558_v25 = vld [vmem:[#allocation52_spill] sm:$0xff] }
 0xcb4   :  { %10667 = vrcp.f32 %v7408_v14  ;;  %7588 = vmatprep.subr.bf16.mxu0 %v13412_v10  ;;  %7629 = vmatprep.subr.bf16.mxu1 %v13414_v24  ;;  %v14557_v14 = vld [vmem:[#allocation51_spill] sm:$0xff] }
 0xcb5   :  { %7618 = vmatprep.mubr.bf16.mxu0 %v14239_v63  ;;  %7659 = vmatprep.mubr.bf16.mxu1 %v14239_v63  ;;  %10669 = vrcp.f32 %v7417_v0  ;;  %v14563_v0 = vld [vmem:[#allocation81_spill] sm:$0xff] }
 0xcb7   :  { %7589 = vmatpush1.bf16.msra.mxu0 %v13420_v48  ;;  %7630 = vmatpush1.bf16.msra.mxu1 %v13422_v27 }
 0xcb8   :  { %7590 = vmatprep.subr.bf16.mxu0 %v13424_v23  ;;  %7631 = vmatprep.subr.bf16.mxu1 %v13426_v11 }
 0xcbb   :  { %7591 = vmatpush1.bf16.msra.mxu0 %v13434_v45  ;;  %7632 = vmatpush1.bf16.msra.mxu1 %v13436_v33 }
 0xcbc   :  { %7592 = vmatprep.subr.bf16.mxu0 %v13438_v21  ;;  %7633 = vmatprep.subr.bf16.mxu1 %v13440_v9 }
 0xcbd   :  { %v10666_v30 = vpop.eup %10665 }
 0xcbe   :  { %v10668_v34 = vpop.eup %10667  ;;  %v7421_v32 = vmul.f32 %v10666_v30, %v10664_v47  ;;  %v14559_v47 = vld [vmem:[#allocation53_spill] sm:$0xff]  ;;  %v14560_v30 = vld [vmem:[#allocation78_spill] sm:$0xff] }
 0xcbf   :  { %v7420_v54 = vmul.f32 %v10668_v34, %v13463_v59  ;;  %7593 = vmatpush1.bf16.msra.mxu0 %v13446_v49  ;;  %7634 = vmatpush1.bf16.msra.mxu1 %v13448_v56  ;;  %v10670_v59 = vpop.eup %10669  ;;  %v14561_v34 = vld [vmem:[#allocation79_spill] sm:$0xff] }
 0xcc0   :  { %7594 = vmatprep.subr.bf16.mxu0 %v13450_v28  ;;  %7635 = vmatprep.subr.bf16.mxu1 %v13452_v42 }
 0xcc1   :  { %v13603_v53 = vadd.f32 %v7421_v32, %v7420_v54  ;;  %v14562_v32 = vld [vmem:[#allocation80_spill] sm:$0xff]  ;;  %v14564_v54 = vld [vmem:[#allocation45_spill] sm:$0xff] }
 0xcc3   :  { %7595 = vmatpush1.bf16.msra.mxu0 %v13459_v2  ;;  %7636 = vmatpush1.bf16.msra.mxu1 %v13461_v62  ;;  %10671 = vtanh.f32 %v13603_v53 }
 0xcc4   :  { %7596 = vmatprep.subr.bf16.mxu0 %v13465_v3  ;;  %7637 = vmatprep.subr.bf16.mxu1 %v13467_v46 }
 0xcc7   :  { %7597 = vmatpush1.bf16.msra.mxu0 %v13474_v17  ;;  %7638 = vmatpush1.bf16.msra.mxu1 %v13476_v35 }
 0xcc8   :  { %7598 = vmatprep.subr.bf16.mxu0 %v13478_v12  ;;  %7639 = vmatprep.subr.bf16.mxu1 %v13480_v13 }
 0xccb   :  { %7599 = vmatpush1.bf16.msra.mxu0 %v13486_v44  ;;  %7640 = vmatpush1.bf16.msra.mxu1 %v13488_v18 }
 0xccc   :  { %7600 = vmatprep.subr.bf16.mxu0 %v13490_v15  ;;  %7641 = vmatprep.subr.bf16.mxu1 %v13492_v43 }
 0xccd   :  { %v10672_v39 = vpop.eup %10671 }
 0xcce   :  { %v7424_v4 = vmul.f32 %v10672_v39, %v10670_v59  ;;  %v14565_v59 = vld [vmem:[#allocation86_spill] sm:$0xff]  ;;  %v14566_v39 = vld [vmem:[#allocation87_spill] sm:$0xff] }
 0xccf   :  { %7601 = vmatpush1.bf16.msra.mxu0 %v13498_v19  ;;  %7642 = vmatpush1.bf16.msra.mxu1 %v13500_v31 }
 0xcd0   :  { %v7553_v52 = vpack.c.bf16 %v7424_v4, %v7424_v4  ;;  %7759 = vmatprep.subr.bf16.mxu0 %v13506_v38  ;;  %7800 = vmatprep.subr.bf16.mxu1 %v13508_v7  ;;  %v14567_v4 = vld [vmem:[#allocation107_spill] sm:$0xff] }
 0xcd2   :  { %7619 = vmatmul.mubr.bf16.vlgmr.msra.gmra.mrb[156].mxu0 %v7553_v52  ;;  %7660 = vmatmul.mubr.bf16.vlgmr.msra.gmra.mrb[156].mxu1 %v7553_v52  ;;  %v14568_v52 = vld [vmem:[#allocation108_spill] sm:$0xff] }
 0xcd3   :  { %7760 = vmatpush1.bf16.msra.mxu0 %v13512_v57  ;;  %7801 = vmatpush1.bf16.msra.mxu1 %v13514_v60 }
 0xcd4   :  { %7761 = vmatprep.subr.bf16.mxu0 %v13518_v20  ;;  %7802 = vmatprep.subr.bf16.mxu1 %v13520_v40 }
 0xcd5   :  { %7791 = vmatprep.mubr.bf16.mxu0 %v14239_v63  ;;  %7832 = vmatprep.mubr.bf16.mxu1 %v14239_v63 }
 0xcd7   :  { %7762 = vmatpush1.bf16.msra.mxu0 %v14548_v51  ;;  %7803 = vmatpush1.bf16.msra.mxu1 %v14549_v55 }
 0xcd8   :  { %7763 = vmatprep.subr.bf16.mxu0 %v14550_v22  ;;  %7804 = vmatprep.subr.bf16.mxu1 %v13532_v29 }
 0xcdb   :  { %7764 = vmatpush1.bf16.msra.mxu0 %v13536_v37  ;;  %7805 = vmatpush1.bf16.msra.mxu1 %v13538_v6 }
 0xcdc   :  { %7765 = vmatprep.subr.bf16.mxu0 %v13542_v50  ;;  %7806 = vmatprep.subr.bf16.mxu1 %v14551_v61 }
 0xcdf   :  { %7766 = vmatpush1.bf16.msra.mxu0 %v14552_v41  ;;  %7807 = vmatpush1.bf16.msra.mxu1 %v14553_v1  ;;  %v14575_v1 = vld [vmem:[#allocation58_spill] sm:$0xff] }
 0xce0   :  { %7767 = vmatprep.subr.bf16.mxu0 %v14554_v5  ;;  %7808 = vmatprep.subr.bf16.mxu1 %v14555_v58  ;;  %v14569_v5 = vld [vmem:[#allocation109_spill] sm:$0xff]  ;;  %v14570_v58 = vld [vmem:[#allocation110_spill] sm:$0xff] }
 0xce3   :  { %7768 = vmatpush1.bf16.msra.mxu0 %v14556_v16  ;;  %7809 = vmatpush1.bf16.msra.mxu1 %v14557_v14  ;;  %v14571_v16 = vld [vmem:[#allocation111_spill] sm:$0xff] }
 0xce4   :  { %7769 = vmatprep.subr.bf16.mxu0 %v14558_v25  ;;  %7810 = vmatprep.subr.bf16.mxu1 %v14559_v47  ;;  %v14572_v47 = vld [vmem:[#allocation75_spill] sm:$0xff] }
 0xce7   :  { %7770 = vmatpush1.bf16.msra.mxu0 %v14560_v30  ;;  %7811 = vmatpush1.bf16.msra.mxu1 %v14561_v34  ;;  %v14573_v34 = vld [vmem:[#allocation76_spill] sm:$0xff] }
 0xce8   :  { %7771 = vmatprep.subr.bf16.mxu0 %v14562_v32  ;;  %7812 = vmatprep.subr.bf16.mxu1 %v14563_v0 }
 0xceb   :  { %7772 = vmatpush1.bf16.msra.mxu0 %v14564_v54  ;;  %7813 = vmatpush1.bf16.msra.mxu1 %v14565_v59  ;;  %v14574_v59 = vld [vmem:[#allocation77_spill] sm:$0xff] }
 0xcec   :  { %7773 = vmatprep.subr.bf16.mxu0 %v14566_v39  ;;  %7814 = vmatprep.subr.bf16.mxu1 %v14567_v4 }
 0xcef   :  { %7774 = vmatpush1.bf16.msra.mxu0 %v14568_v52  ;;  %7815 = vmatpush1.bf16.msra.mxu1 %v14569_v5 }
 0xcf0   :  { %7882 = vmatprep.subr.bf16.mxu0 %v14570_v58  ;;  %7923 = vmatprep.subr.bf16.mxu1 %v14571_v16 }
 0xd85   :  { %v7497_v14 = vpop.f32.mrb[152].mxu0  ;;  %v7538_v25 = vpop.f32.mrb[152].mxu1 }
 0xd86   :  { %v7545_v30 = vadd.f32 %v7497_v14, %v14572_v47  ;;  %v7547_v32 = vadd.f32 %v7538_v25, %v14573_v34  ;;  %v7499_v0 = vpop.f32.mrb[153].mxu0  ;;  %v7540_v54 = vpop.f32.mrb[153].mxu1 }
 0xd87   :  { %v7546_v39 = vadd.f32 %v7499_v0, %v14574_v59  ;;  %v7548_v4 = vadd.f32 %v7540_v54, %v14575_v1  ;;  %v7501_v41 = vpop.f32.mrb[154].mxu0  ;;  %v7542_v52 = vpop.f32.mrb[154].mxu1 }
 0xd88   :  { %v9733_v61 = vmul.f32 -1.442695, %v7545_v30  ;;  %v7502_v5 = vpop.f32.mrb[155].mxu0  ;;  %v7543_v50 = vpop.f32.mrb[155].mxu1 }
 0xd89   :  { %v9734_v58 = vmul.f32 -1.442695, %v7546_v39  ;;  %v9735_v16 = vmul.f32 -1.442695, %v7548_v4  ;;  %v14576_v39 = vld [vmem:[#allocation36_spill] sm:$0xff]  ;;  %v14577_v4 = vld [vmem:[#allocation37_spill] sm:$0xff] }
 0xd8a   :  { %10673 = vpow2.f32 %v9733_v61  ;;  %v14578_v5 = vld [vmem:[#allocation38_spill] sm:$0xff] }
 0xd8b   :  { %10675 = vpow2.f32 %v9734_v58 }
 0xd8c   :  { %10677 = vpow2.f32 %v9735_v16  ;;  %v14579_v16 = vld [vmem:[#allocation39_spill] sm:$0xff] }
 0xd8d   :  { %10679 = vtanh.f32 %v7547_v32 }
 0xd94   :  { %v10674_v6 = vpop.eup %10673 }
 0xd95   :  { %v10676_v37 = vpop.eup %10675  ;;  %v7678_v14 = vadd.f32 1.0, %v10674_v6 }
 0xd96   :  { %v7679_v25 = vadd.f32 1.0, %v10676_v37  ;;  %v10678_v47 = vpop.eup %10677 }
 0xd97   :  { %10681 = vrcp.f32 %v7678_v14  ;;  %v10680_v34 = vpop.eup %10679  ;;  %v7688_v30 = vadd.f32 1.0, %v10678_v47 }
 0xd98   :  { %10683 = vrcp.f32 %v7679_v25 }
 0xd99   :  { %10685 = vrcp.f32 %v7688_v30 }
 0xda1   :  { %v10682_v1 = vpop.eup %10681 }
 0xda2   :  { %v10684_v41 = vpop.eup %10683  ;;  %v7692_v0 = vmul.f32 %v10682_v1, %v10680_v34 }
 0xda3   :  { %v7691_v50 = vmul.f32 %v10684_v41, %v13577_v26 }
 0xda5   :  { %v13661_v54 = vadd.f32 %v7692_v0, %v7691_v50  ;;  %v7620_v61 = vpop.f32.mrb[156].mxu0  ;;  %v7661_v59 = vpop.f32.mrb[156].mxu1 }
 0xda6   :  { %v7668_v6 = vadd.f32 %v7620_v61, %v14576_v39  ;;  %v7670_v32 = vadd.f32 %v7661_v59, %v14577_v4  ;;  %v7622_v37 = vpop.f32.mrb[157].mxu0  ;;  %v7663_v52 = vpop.f32.mrb[157].mxu1 }
 0xda7   :  { %v7669_v58 = vadd.f32 %v7622_v37, %v14578_v5  ;;  %v7671_v14 = vadd.f32 %v7663_v52, %v14579_v16  ;;  %v7624_v25 = vpop.f32.mrb[158].mxu0  ;;  %v7665_v34 = vpop.f32.mrb[158].mxu1  ;;  %10687 = vtanh.f32 %v13661_v54 }
 0xda8   :  { %v9736_v26 = vmul.f32 -1.442695, %v7668_v6  ;;  %v7625_v47 = vpop.f32.mrb[159].mxu0  ;;  %v7666_v1 = vpop.f32.mrb[159].mxu1 }
 0xda9   :  { %v9737_v41 = vmul.f32 -1.442695, %v7669_v58  ;;  %v10686_v0 = vpop.eup %10685  ;;  %v9738_v50 = vmul.f32 -1.442695, %v7671_v14  ;;  %v14606_v58 = vld [vmem:[#allocation61_spill] sm:$0xff]  ;;  %v14607_v14 = vld [vmem:[#allocation70_spill] sm:$0xff] }
 0xdaa   :  { %10689 = vpow2.f32 %v9736_v26 }
 0xdab   :  { %10691 = vpow2.f32 %v9737_v41 }
 0xdac   :  { %10693 = vpow2.f32 %v9738_v50 }
 0xdad   :  { %10695 = vtanh.f32 %v7670_v32 }
 0xdb1   :  { %v10688_v30 = vpop.eup %10687 }
 0xdb2   :  { %v7695_v61 = vmul.f32 %v10688_v30, %v10686_v0 }
 0xdb4   :  { %v10690_v59 = vpop.eup %10689  ;;  %v7726_v39 = vpack.c.bf16 %v7695_v61, %v7695_v61 }
 0xdb5   :  { %v10692_v4 = vpop.eup %10691  ;;  %v7703_v37 = vadd.f32 1.0, %v10690_v59 }
 0xdb6   :  { %v7704_v52 = vadd.f32 1.0, %v10692_v4  ;;  %7792 = vmatmul.mubr.bf16.vlgmr.msra.gmra.mrb[160].mxu0 %v7726_v39  ;;  %7833 = vmatmul.mubr.bf16.vlgmr.msra.gmra.mrb[160].mxu1 %v7726_v39 }
 0xdb7   :  { %10697 = vrcp.f32 %v7703_v37  ;;  %7883 = vmatpush1.bf16.msra.mxu0 %v13408_v8  ;;  %7924 = vmatpush1.bf16.msra.mxu1 %v13410_v36  ;;  %v10694_v8 = vpop.eup %10693 }
 0xdb8   :  { %10699 = vrcp.f32 %v7704_v52  ;;  %7884 = vmatprep.subr.bf16.mxu0 %v13412_v10  ;;  %7925 = vmatprep.subr.bf16.mxu1 %v13414_v24  ;;  %v10696_v36 = vpop.eup %10695 }
 0xdb9   :  { %7914 = vmatprep.mubr.bf16.mxu0 %v14239_v63  ;;  %7955 = vmatprep.mubr.bf16.mxu1 %v14239_v63 }
 0xdbb   :  { %7885 = vmatpush1.bf16.msra.mxu0 %v13420_v48  ;;  %7926 = vmatpush1.bf16.msra.mxu1 %v13422_v27  ;;  %v7713_v48 = vadd.f32 1.0, %v10694_v8 }
 0xdbc   :  { %7886 = vmatprep.subr.bf16.mxu0 %v13424_v23  ;;  %7927 = vmatprep.subr.bf16.mxu1 %v13426_v11 }
 0xdbd   :  { %10701 = vrcp.f32 %v7713_v48 }
 0xdbf   :  { %7887 = vmatpush1.bf16.msra.mxu0 %v13434_v45  ;;  %7928 = vmatpush1.bf16.msra.mxu1 %v13436_v33 }
 0xdc0   :  { %7888 = vmatprep.subr.bf16.mxu0 %v13438_v21  ;;  %7929 = vmatprep.subr.bf16.mxu1 %v13440_v9  ;;  %v14580_v9 = vld [vmem:[#allocation54_spill] sm:$0xff] }
 0xdc1   :  { %v10698_v10 = vpop.eup %10697 }
 0xdc2   :  { %v10700_v24 = vpop.eup %10699  ;;  %v7717_v6 = vmul.f32 %v10698_v10, %v10696_v36 }
 0xdc3   :  { %v7716_v27 = vmul.f32 %v10700_v24, %v13603_v53  ;;  %7889 = vmatpush1.bf16.msra.mxu0 %v13446_v49  ;;  %7930 = vmatpush1.bf16.msra.mxu1 %v13448_v56  ;;  %v14581_v49 = vld [vmem:[#allocation102_spill] sm:$0xff]  ;;  %v14582_v56 = vld [vmem:[#allocation103_spill] sm:$0xff] }
 0xdc4   :  { %7890 = vmatprep.subr.bf16.mxu0 %v13450_v28  ;;  %7931 = vmatprep.subr.bf16.mxu1 %v13452_v42  ;;  %v14583_v28 = vld [vmem:[#allocation104_spill] sm:$0xff]  ;;  %v14584_v42 = vld [vmem:[#allocation105_spill] sm:$0xff]  ;;  %v14604_v53 = vld [vmem:[#allocation59_spill] sm:$0xff] }
 0xdc5   :  { %v13687_v23 = vadd.f32 %v7717_v6, %v7716_v27 }
 0xdc7   :  { %7891 = vmatpush1.bf16.msra.mxu0 %v13459_v2  ;;  %7932 = vmatpush1.bf16.msra.mxu1 %v13461_v62  ;;  %10703 = vtanh.f32 %v13687_v23  ;;  %v10702_v11 = vpop.eup %10701  ;;  %v14585_v2 = vld [vmem:[#allocation112_spill] sm:$0xff]  ;;  %v13722_v62 = vld [vmem:[#allocation7 + $0x88] sm:$0xff] }
 0xdc8   :  { %7892 = vmatprep.subr.bf16.mxu0 %v13465_v3  ;;  %7933 = vmatprep.subr.bf16.mxu1 %v13467_v46  ;;  %14586 = vst [vmem:[#allocation55_spill] sm:$0xff] %v13722_v62  ;;  %v13724_v3 = vld [vmem:[#allocation7 + $0x98] sm:$0xff]  ;;  %v13728_v46 = vld [vmem:[#allocation7 + $0x80] sm:$0xff] }
 0xdc9   :  { %14587 = vst [vmem:[#allocation56_spill] sm:$0xff] %v13724_v3  ;;  %14588 = vst [vmem:[#allocation57_spill] sm:$0xff] %v13728_v46 }
 0xdcb   :  { %7893 = vmatpush1.bf16.msra.mxu0 %v13474_v17  ;;  %7934 = vmatpush1.bf16.msra.mxu1 %v13476_v35  ;;  %v13730_v17 = vld [vmem:[#allocation7 + $0x90] sm:$0xff]  ;;  %v13734_v35 = vld [vmem:[#allocation7 + $0xa8] sm:$0xff] }
 0xdcc   :  { %7894 = vmatprep.subr.bf16.mxu0 %v13478_v12  ;;  %7935 = vmatprep.subr.bf16.mxu1 %v13480_v13  ;;  %14589 = vst [vmem:[#allocation74_spill] sm:$0xff] %v13730_v17  ;;  %14590 = vst [vmem:[#allocation40_spill] sm:$0xff] %v13734_v35  ;;  %v13736_v12 = vld [vmem:[#allocation7 + $0xb8] sm:$0xff]  ;;  %v13740_v13 = vld [vmem:[#allocation7 + $0xa0] sm:$0xff] }
 0xdcd   :  { %14591 = vst [vmem:[#allocation99_spill] sm:$0xff] %v13736_v12  ;;  %14592 = vst [vmem:[#allocation100_spill] sm:$0xff] %v13740_v13 }
 0xdcf   :  { %7895 = vmatpush1.bf16.msra.mxu0 %v13486_v44  ;;  %7936 = vmatpush1.bf16.msra.mxu1 %v13488_v18  ;;  %v13742_v44 = vld [vmem:[#allocation7 + $0xb0] sm:$0xff]  ;;  %v13746_v18 = vld [vmem:[#allocation7 + $0xc8] sm:$0xff] }
 0xdd0   :  { %7896 = vmatprep.subr.bf16.mxu0 %v13490_v15  ;;  %7937 = vmatprep.subr.bf16.mxu1 %v13492_v43  ;;  %14593 = vst [vmem:[#allocation101_spill] sm:$0xff] %v13742_v44  ;;  %14594 = vst [vmem:[#allocation89_spill] sm:$0xff] %v13746_v18  ;;  %v13748_v15 = vld [vmem:[#allocation7 + $0xd8] sm:$0xff]  ;;  %v13752_v43 = vld [vmem:[#allocation7 + $0xc0] sm:$0xff] }
 0xdd1   :  { %v10704_v45 = vpop.eup %10703  ;;  %14595 = vst [vmem:[#allocation90_spill] sm:$0xff] %v13748_v15  ;;  %14596 = vst [vmem:[#allocation91_spill] sm:$0xff] %v13752_v43 }
 0xdd2   :  { %v7720_v33 = vmul.f32 %v10704_v45, %v10702_v11  ;;  %v14608_v11 = vld [vmem:[#allocation43_spill] sm:$0xff] }
 0xdd3   :  { %7897 = vmatpush1.bf16.msra.mxu0 %v13498_v19  ;;  %7938 = vmatpush1.bf16.msra.mxu1 %v13500_v31  ;;  %v13754_v19 = vld [vmem:[#allocation7 + $0xd0] sm:$0xff]  ;;  %v13758_v31 = vld [vmem:[#allocation7 + $0xe8] sm:$0xff] }
 0xdd4   :  { %v7849_v21 = vpack.c.bf16 %v7720_v33, %v7720_v33  ;;  %8055 = vmatprep.subr.bf16.mxu0 %v13506_v38  ;;  %8096 = vmatprep.subr.bf16.mxu1 %v13508_v7  ;;  %14597 = vst [vmem:[#allocation84_spill] sm:$0xff] %v13754_v19  ;;  %14598 = vst [vmem:[#allocation85_spill] sm:$0xff] %v13758_v31  ;;  %v13760_v38 = vld [vmem:[#allocation7 + $0xf8] sm:$0xff]  ;;  %v13764_v7 = vld [vmem:[#allocation7 + $0xe0] sm:$0xff] }
 0xdd5   :  { %14599 = vst [vmem:[#allocation50_spill] sm:$0xff] %v13760_v38  ;;  %14600 = vst [vmem:[#allocation51_spill] sm:$0xff] %v13764_v7  ;;  %v14609_v33 = vld [vmem:[#allocation93_spill] sm:$0xff] }
 0xdd6   :  { %7915 = vmatmul.mubr.bf16.vlgmr.msra.gmra.mrb[164].mxu0 %v7849_v21  ;;  %7956 = vmatmul.mubr.bf16.vlgmr.msra.gmra.mrb[164].mxu1 %v7849_v21 }
 0xdd7   :  { %8056 = vmatpush1.bf16.msra.mxu0 %v13512_v57  ;;  %8097 = vmatpush1.bf16.msra.mxu1 %v13514_v60  ;;  %v13766_v57 = vld [vmem:[#allocation7 + $0xf0] sm:$0xff]  ;;  %v13770_v60 = vld [vmem:[#allocation9 + $0x8] sm:$0xff] }
 0xdd8   :  { %8057 = vmatprep.subr.bf16.mxu0 %v13518_v20  ;;  %8098 = vmatprep.subr.bf16.mxu1 %v13520_v40  ;;  %14601 = vst [vmem:[#allocation52_spill] sm:$0xff] %v13766_v57  ;;  %14602 = vst [vmem:[#allocation53_spill] sm:$0xff] %v13770_v60  ;;  %v13772_v20 = vld [vmem:[#allocation9 + $0x18] sm:$0xff] }
 0xdd9   :  { %8087 = vmatprep.mubr.bf16.mxu0 %v14239_v63  ;;  %8128 = vmatprep.mubr.bf16.mxu1 %v14239_v63  ;;  %14603 = vst [vmem:[#allocation78_spill] sm:$0xff] %v13772_v20 }
 0xddb   :  { %8058 = vmatpush1.bf16.msra.mxu0 %v14548_v51  ;;  %8099 = vmatpush1.bf16.msra.mxu1 %v14549_v55  ;;  %v14605_v55 = vld [vmem:[#allocation60_spill] sm:$0xff] }
 0xddc   :  { %8059 = vmatprep.subr.bf16.mxu0 %v14550_v22  ;;  %8100 = vmatprep.subr.bf16.mxu1 %v13532_v29 }
 0xddf   :  { %8060 = vmatpush1.bf16.msra.mxu0 %v14580_v9  ;;  %8101 = vmatpush1.bf16.msra.mxu1 %v14581_v49 }
 0xde0   :  { %8061 = vmatprep.subr.bf16.mxu0 %v14582_v56  ;;  %8102 = vmatprep.subr.bf16.mxu1 %v14583_v28  ;;  %v14610_v56 = vld [vmem:[#allocation96_spill] sm:$0xff] }
 0xde3   :  { %8062 = vmatpush1.bf16.msra.mxu0 %v14584_v42  ;;  %8103 = vmatpush1.bf16.msra.mxu1 %v14585_v2  ;;  %v14611_v42 = vld [vmem:[#allocation98_spill] sm:$0xff] }
 0xde4   :  { %8063 = vmatprep.subr.bf16.mxu0 %v13722_v62  ;;  %8104 = vmatprep.subr.bf16.mxu1 %v13724_v3 }
 0xde7   :  { %8064 = vmatpush1.bf16.msra.mxu0 %v13728_v46  ;;  %8105 = vmatpush1.bf16.msra.mxu1 %v13730_v17 }
 0xde8   :  { %8065 = vmatprep.subr.bf16.mxu0 %v13734_v35  ;;  %8106 = vmatprep.subr.bf16.mxu1 %v13736_v12 }
 0xdeb   :  { %8066 = vmatpush1.bf16.msra.mxu0 %v13740_v13  ;;  %8107 = vmatpush1.bf16.msra.mxu1 %v13742_v44 }
 0xdec   :  { %8067 = vmatprep.subr.bf16.mxu0 %v13746_v18  ;;  %8108 = vmatprep.subr.bf16.mxu1 %v13748_v15 }
 0xdef   :  { %8068 = vmatpush1.bf16.msra.mxu0 %v13752_v43  ;;  %8109 = vmatpush1.bf16.msra.mxu1 %v13754_v19 }
 0xdf0   :  { %8069 = vmatprep.subr.bf16.mxu0 %v13758_v31  ;;  %8110 = vmatprep.subr.bf16.mxu1 %v13760_v38 }
 0xdf3   :  { %8070 = vmatpush1.bf16.msra.mxu0 %v13764_v7  ;;  %8111 = vmatpush1.bf16.msra.mxu1 %v13766_v57 }
 0xdf4   :  { %8178 = vmatprep.subr.bf16.mxu0 %v13770_v60  ;;  %8219 = vmatprep.subr.bf16.mxu1 %v13772_v20 }
 0xe89   :  { %v7793_v40 = vpop.f32.mrb[160].mxu0  ;;  %v7834_v29 = vpop.f32.mrb[160].mxu1 }
 0xe8a   :  { %v7841_v51 = vadd.f32 %v7793_v40, %v14604_v53  ;;  %v7843_v22 = vadd.f32 %v7834_v29, %v14605_v55  ;;  %v7795_v32 = vpop.f32.mrb[161].mxu0  ;;  %v7836_v5 = vpop.f32.mrb[161].mxu1 }
 0xe8b   :  { %v7842_v16 = vadd.f32 %v7795_v32, %v14606_v58  ;;  %v7844_v25 = vadd.f32 %v7836_v5, %v14607_v14  ;;  %v7797_v34 = vpop.f32.mrb[162].mxu0  ;;  %v7838_v26 = vpop.f32.mrb[162].mxu1 }
 0xe8c   :  { %v9739_v47 = vmul.f32 -1.442695, %v7841_v51  ;;  %v7798_v1 = vpop.f32.mrb[163].mxu0  ;;  %v7839_v41 = vpop.f32.mrb[163].mxu1  ;;  %v13790_v34 = vld [vmem:[#allocation9 + $0x10] sm:$0xff] }
 0xe8d   :  { %v9740_v0 = vmul.f32 -1.442695, %v7842_v16  ;;  %v9741_v30 = vmul.f32 -1.442695, %v7844_v25  ;;  %v13788_v25 = vld [vmem:[#allocation9] sm:$0xff]  ;;  %v13792_v1 = vld [vmem:[#allocation9 + $0x28] sm:$0xff] }
 0xe8e   :  { %10705 = vpow2.f32 %v9739_v47  ;;  %v13794_v41 = vld [vmem:[#allocation9 + $0x38] sm:$0xff] }
 0xe8f   :  { %10707 = vpow2.f32 %v9740_v0 }
 0xe90   :  { %10709 = vpow2.f32 %v9741_v30  ;;  %v13800_v30 = vld [vmem:[#allocation9 + $0x20] sm:$0xff] }
 0xe91   :  { %10711 = vtanh.f32 %v7843_v22 }
 0xe98   :  { %v10706_v50 = vpop.eup %10705 }
 0xe99   :  { %v10708_v61 = vpop.eup %10707  ;;  %v7974_v59 = vadd.f32 1.0, %v10706_v50  ;;  %v13802_v50 = vld [vmem:[#allocation9 + $0x30] sm:$0xff] }
 0xe9a   :  { %v7975_v39 = vadd.f32 1.0, %v10708_v61  ;;  %v10710_v4 = vpop.eup %10709  ;;  %v13804_v61 = vld [vmem:[#allocation9 + $0x48] sm:$0xff] }
 0xe9b   :  { %10713 = vrcp.f32 %v7974_v59  ;;  %v10712_v37 = vpop.eup %10711  ;;  %v7984_v10 = vadd.f32 1.0, %v10710_v4  ;;  %v13806_v59 = vld [vmem:[#allocation9 + $0x58] sm:$0xff]  ;;  %v13816_v4 = vld [vmem:[#allocation9 + $0x50] sm:$0xff] }
 0xe9c   :  { %10715 = vrcp.f32 %v7975_v39  ;;  %v13814_v39 = vld [vmem:[#allocation9 + $0x40] sm:$0xff] }
 0xe9d   :  { %10717 = vrcp.f32 %v7984_v10  ;;  %v13826_v10 = vld [vmem:[#allocation9 + $0x60] sm:$0xff] }
 0xea5   :  { %v10714_v52 = vpop.eup %10713 }
 0xea6   :  { %v10716_v8 = vpop.eup %10715  ;;  %v7988_v36 = vmul.f32 %v10714_v52, %v10712_v37  ;;  %v13818_v37 = vld [vmem:[#allocation9 + $0x68] sm:$0xff]  ;;  %v13820_v52 = vld [vmem:[#allocation9 + $0x78] sm:$0xff] }
 0xea7   :  { %v7987_v24 = vmul.f32 %v10716_v8, %v13661_v54  ;;  %v10718_v22 = vpop.eup %10717 }
 0xea9   :  { %v13781_v6 = vadd.f32 %v7988_v36, %v7987_v24  ;;  %v7916_v48 = vpop.f32.mrb[164].mxu0  ;;  %v7957_v27 = vpop.f32.mrb[164].mxu1  ;;  %v13828_v24 = vld [vmem:[#allocation9 + $0x70] sm:$0xff] }
 0xeaa   :  { %v7964_v45 = vadd.f32 %v7916_v48, %v14608_v11  ;;  %v7966_v21 = vadd.f32 %v7957_v27, %v14609_v33  ;;  %v7918_v9 = vpop.f32.mrb[165].mxu0  ;;  %v7959_v49 = vpop.f32.mrb[165].mxu1  ;;  %v13830_v27 = vld [vmem:[#allocation9 + $0x88] sm:$0xff]  ;;  %v13832_v11 = vld [vmem:[#allocation9 + $0x98] sm:$0xff] }
 0xeab   :  { %v7965_v28 = vadd.f32 %v7918_v9, %v14610_v56  ;;  %v7967_v2 = vadd.f32 %v7959_v49, %v14611_v42  ;;  %v7920_v40 = vpop.f32.mrb[166].mxu0  ;;  %v7961_v29 = vpop.f32.mrb[166].mxu1  ;;  %10719 = vtanh.f32 %v13781_v6  ;;  %v13839_v49 = vld [vmem:[#allocation9 + $0x80] sm:$0xff]  ;;  %v13841_v56 = vld [vmem:[#allocation9 + $0x90] sm:$0xff]  ;;  %v13845_v42 = vld [vmem:[#allocation9 + $0xa8] sm:$0xff] }
 0xeac   :  { %v9742_v54 = vmul.f32 -1.442695, %v7964_v45  ;;  %v7921_v53 = vpop.f32.mrb[167].mxu0  ;;  %v7962_v51 = vpop.f32.mrb[167].mxu1  ;;  %v13856_v40 = vld [vmem:[#allocation9 + $0xb0] sm:$0xff]  ;;  %v13858_v29 = vld [vmem:[#allocation9 + $0xc8] sm:$0xff] }
 0xead   :  { %v9743_v55 = vmul.f32 -1.442695, %v7965_v28  ;;  %v9744_v5 = vmul.f32 -1.442695, %v7967_v2  ;;  %v13847_v2 = vld [vmem:[#allocation9 + $0xb8] sm:$0xff]  ;;  %v13866_v53 = vld [vmem:[#allocation9 + $0xc0] sm:$0xff] }
 0xeae   :  { %10721 = vpow2.f32 %v9742_v54  ;;  %v13860_v54 = vld [vmem:[#allocation9 + $0xd8] sm:$0xff]  ;;  %v13868_v51 = vld [vmem:[#allocation9 + $0xd0] sm:$0xff] }
 0xeaf   :  { %10723 = vpow2.f32 %v9743_v55  ;;  %v13870_v55 = vld [vmem:[#allocation9 + $0xe8] sm:$0xff] }
 0xeb0   :  { %10725 = vpow2.f32 %v9744_v5  ;;  %v13878_v5 = vld [vmem:[#allocation9 + $0xe0] sm:$0xff] }
 0xeb1   :  { %10727 = vtanh.f32 %v7966_v21 }
 0xeb5   :  { %v10720_v32 = vpop.eup %10719 }
 0xeb6   :  { %v7991_v58 = vmul.f32 %v10720_v32, %v10718_v22  ;;  %v13872_v22 = vld [vmem:[#allocation9 + $0xf8] sm:$0xff] }
 0xeb8   :  { %v10722_v16 = vpop.eup %10721  ;;  %v8022_v14 = vpack.c.bf16 %v7991_v58, %v7991_v58  ;;  %v13880_v58 = vld [vmem:[#allocation9 + $0xf0] sm:$0xff] }
 0xeb9   :  { %v10724_v26 = vpop.eup %10723  ;;  %v7999_v47 = vadd.f32 1.0, %v10722_v16 }
 0xeba   :  { %v8000_v0 = vadd.f32 1.0, %v10724_v26  ;;  %8088 = vmatmul.mubr.bf16.vlgmr.msra.gmra.mrb[168].mxu0 %v8022_v14  ;;  %8129 = vmatmul.mubr.bf16.vlgmr.msra.gmra.mrb[168].mxu1 %v8022_v14  ;;  %v10726_v8 = vpop.eup %10725 }
 0xebb   :  { %10729 = vrcp.f32 %v7999_v47  ;;  %8179 = vmatpush1.bf16.msra.mxu0 %v13788_v25  ;;  %8220 = vmatpush1.bf16.msra.mxu1 %v13790_v34  ;;  %v10728_v36 = vpop.eup %10727  ;;  %v8009_v21 = vadd.f32 1.0, %v10726_v8  ;;  %v13886_v47 = vld [vmem:[#allocation7 + $0x8] sm:$0xff]  ;;  %v13892_v8 = vld [vmem:[#allocation7] sm:$0xff] }
 0xebc   :  { %10731 = vrcp.f32 %v8000_v0  ;;  %8180 = vmatprep.subr.bf16.mxu0 %v13792_v1  ;;  %8221 = vmatprep.subr.bf16.mxu1 %v13794_v41  ;;  %v13888_v0 = vld [vmem:[#allocation7 + $0x18] sm:$0xff] }
 0xebd   :  { %8210 = vmatprep.mubr.bf16.mxu0 %v14239_v63  ;;  %8251 = vmatprep.mubr.bf16.mxu1 %v14239_v63  ;;  %10733 = vrcp.f32 %v8009_v21  ;;  %v13906_v21 = vld [vmem:[#allocation7 + $0x30] sm:$0xff] }
 0xebe   :  { %14613 = vst [vmem:[#allocation80_spill] sm:$0xff] %v13906_v21 }
 0xebf   :  { %8181 = vmatpush1.bf16.msra.mxu0 %v13800_v30  ;;  %8222 = vmatpush1.bf16.msra.mxu1 %v13802_v50 }
 0xec0   :  { %8182 = vmatprep.subr.bf16.mxu0 %v13804_v61  ;;  %8223 = vmatprep.subr.bf16.mxu1 %v13806_v59 }
 0xec3   :  { %8183 = vmatpush1.bf16.msra.mxu0 %v13814_v39  ;;  %8224 = vmatpush1.bf16.msra.mxu1 %v13816_v4 }
 0xec4   :  { %8184 = vmatprep.subr.bf16.mxu0 %v13818_v37  ;;  %8225 = vmatprep.subr.bf16.mxu1 %v13820_v52 }
 0xec5   :  { %v10730_v48 = vpop.eup %10729 }
 0xec6   :  { %v10732_v45 = vpop.eup %10731  ;;  %v8013_v33 = vmul.f32 %v10730_v48, %v10728_v36  ;;  %v13894_v36 = vld [vmem:[#allocation7 + $0x10] sm:$0xff]  ;;  %v13898_v48 = vld [vmem:[#allocation7 + $0x28] sm:$0xff] }
 0xec7   :  { %v8012_v9 = vmul.f32 %v10732_v45, %v13687_v23  ;;  %8185 = vmatpush1.bf16.msra.mxu0 %v13826_v10  ;;  %8226 = vmatpush1.bf16.msra.mxu1 %v13828_v24  ;;  %v13854_v23 = vld [vmem:[#allocation9 + $0xa0] sm:$0xff]  ;;  %v10734_v32 = vpop.eup %10733  ;;  %v13900_v45 = vld [vmem:[#allocation7 + $0x38] sm:$0xff] }
 0xec8   :  { %8186 = vmatprep.subr.bf16.mxu0 %v13830_v27  ;;  %8227 = vmatprep.subr.bf16.mxu1 %v13832_v11 }
 0xec9   :  { %v13843_v28 = vadd.f32 %v8013_v33, %v8012_v9  ;;  %v13904_v33 = vld [vmem:[#allocation7 + $0x20] sm:$0xff]  ;;  %v13910_v9 = vld [vmem:[#allocation7 + $0x48] sm:$0xff] }
 0xeca   :  { %14612 = vst [vmem:[#allocation79_spill] sm:$0xff] %v13904_v33  ;;  %14614 = vst [vmem:[#allocation81_spill] sm:$0xff] %v13910_v9 }
 0xecb   :  { %8187 = vmatpush1.bf16.msra.mxu0 %v13839_v49  ;;  %8228 = vmatpush1.bf16.msra.mxu1 %v13841_v56  ;;  %10735 = vtanh.f32 %v13843_v28 }
 0xecc   :  { %8188 = vmatprep.subr.bf16.mxu0 %v13845_v42  ;;  %8229 = vmatprep.subr.bf16.mxu1 %v13847_v2 }
 0xecf   :  { %8189 = vmatpush1.bf16.msra.mxu0 %v13854_v23  ;;  %8230 = vmatpush1.bf16.msra.mxu1 %v13856_v40 }
 0xed0   :  { %8190 = vmatprep.subr.bf16.mxu0 %v13858_v29  ;;  %8231 = vmatprep.subr.bf16.mxu1 %v13860_v54 }
 0xed3   :  { %8191 = vmatpush1.bf16.msra.mxu0 %v13866_v53  ;;  %8232 = vmatpush1.bf16.msra.mxu1 %v13868_v51 }
 0xed4   :  { %8192 = vmatprep.subr.bf16.mxu0 %v13870_v55  ;;  %8233 = vmatprep.subr.bf16.mxu1 %v13872_v22 }
 0xed5   :  { %v10736_v16 = vpop.eup %10735 }
 0xed6   :  { %v8016_v14 = vmul.f32 %v10736_v16, %v10734_v32  ;;  %v13912_v32 = vld [vmem:[#allocation7 + $0x58] sm:$0xff]  ;;  %v13916_v16 = vld [vmem:[#allocation7 + $0x40] sm:$0xff] }
 0xed7   :  { %8193 = vmatpush1.bf16.msra.mxu0 %v13878_v5  ;;  %8234 = vmatpush1.bf16.msra.mxu1 %v13880_v58 }
 0xed8   :  { %v8145_v26 = vpack.c.bf16 %v8016_v14, %v8016_v14  ;;  %8351 = vmatprep.subr.bf16.mxu0 %v13886_v47  ;;  %8392 = vmatprep.subr.bf16.mxu1 %v13888_v0  ;;  %v13918_v14 = vld [vmem:[#allocation7 + $0x50] sm:$0xff] }
 0xeda   :  { %8211 = vmatmul.mubr.bf16.vlgmr.msra.gmra.mrb[172].mxu0 %v8145_v26  ;;  %8252 = vmatmul.mubr.bf16.vlgmr.msra.gmra.mrb[172].mxu1 %v8145_v26  ;;  %v13922_v26 = vld [vmem:[#allocation7 + $0x68] sm:$0xff] }
 0xedb   :  { %8383 = vmatprep.mubr.bf16.mxu0 %v14239_v63  ;;  %8424 = vmatprep.mubr.bf16.mxu1 %v14239_v63 }
 0xedc   :  { %8352 = vmatpush1.bf16.msra.mxu0 %v13892_v8  ;;  %8393 = vmatpush1.bf16.msra.mxu1 %v13894_v36 }
 0xedd   :  { %8353 = vmatprep.subr.bf16.mxu0 %v13898_v48  ;;  %8394 = vmatprep.subr.bf16.mxu1 %v13900_v45 }
 0xee0   :  { %8354 = vmatpush1.bf16.msra.mxu0 %v13904_v33  ;;  %8395 = vmatpush1.bf16.msra.mxu1 %v13906_v21  ;;  %v13924_v33 = vld [vmem:[#allocation7 + $0x78] sm:$0xff]  ;;  %v13928_v21 = vld [vmem:[#allocation7 + $0x60] sm:$0xff] }
 0xee1   :  { %8355 = vmatprep.subr.bf16.mxu0 %v13910_v9  ;;  %8396 = vmatprep.subr.bf16.mxu1 %v13912_v32  ;;  %14615 = vst [vmem:[#allocation45_spill] sm:$0xff] %v13924_v33  ;;  %14616 = vst [vmem:[#allocation86_spill] sm:$0xff] %v13928_v21  ;;  %v13930_v9 = vld [vmem:[#allocation7 + $0x70] sm:$0xff] }
 0xee2   :  { %14617 = vst [vmem:[#allocation87_spill] sm:$0xff] %v13930_v9 }
 0xee4   :  { %8356 = vmatpush1.bf16.msra.mxu0 %v13916_v16  ;;  %8397 = vmatpush1.bf16.msra.mxu1 %v13918_v14 }
 0xee5   :  { %8357 = vmatprep.subr.bf16.mxu0 %v13922_v26  ;;  %8398 = vmatprep.subr.bf16.mxu1 %v13924_v33 }
 0xee8   :  { %8358 = vmatpush1.bf16.msra.mxu0 %v13928_v21  ;;  %8399 = vmatpush1.bf16.msra.mxu1 %v13930_v9 }
 0xee9   :  { %8359 = vmatprep.subr.bf16.mxu0 %v13722_v62  ;;  %8400 = vmatprep.subr.bf16.mxu1 %v13724_v3 }
 0xeec   :  { %8360 = vmatpush1.bf16.msra.mxu0 %v13728_v46  ;;  %8401 = vmatpush1.bf16.msra.mxu1 %v13730_v17  ;;  %v14620_v17 = vld [vmem:[#allocation73_spill] sm:$0xff] }
 0xeed   :  { %8361 = vmatprep.subr.bf16.mxu0 %v13734_v35  ;;  %8402 = vmatprep.subr.bf16.mxu1 %v13736_v12  ;;  %v14619_v12 = vld [vmem:[#allocation72_spill] sm:$0xff]  ;;  %v14621_v46 = vld [vmem:[#allocation97_spill] sm:$0xff] }
 0xef0   :  { %8362 = vmatpush1.bf16.msra.mxu0 %v13740_v13  ;;  %8403 = vmatpush1.bf16.msra.mxu1 %v13742_v44  ;;  %v14618_v13 = vld [vmem:[#allocation71_spill] sm:$0xff] }
 0xef1   :  { %8363 = vmatprep.subr.bf16.mxu0 %v13746_v18  ;;  %8404 = vmatprep.subr.bf16.mxu1 %v13748_v15 }
 0xef4   :  { %8364 = vmatpush1.bf16.msra.mxu0 %v13752_v43  ;;  %8405 = vmatpush1.bf16.msra.mxu1 %v13754_v19 }
 0xef5   :  { %8365 = vmatprep.subr.bf16.mxu0 %v13758_v31  ;;  %8406 = vmatprep.subr.bf16.mxu1 %v13760_v38 }
 0xef8   :  { %8366 = vmatpush1.bf16.msra.mxu0 %v13764_v7  ;;  %8407 = vmatpush1.bf16.msra.mxu1 %v13766_v57 }
 0xef9   :  { %8474 = vmatprep.subr.bf16.mxu0 %v13770_v60  ;;  %8515 = vmatprep.subr.bf16.mxu1 %v13772_v20 }
 0xf8d   :  { %v8089_v44 = vpop.f32.mrb[168].mxu0  ;;  %v8130_v18 = vpop.f32.mrb[168].mxu1 }
 0xf8e   :  { %v8137_v15 = vadd.f32 %v8089_v44, %v14618_v13  ;;  %v8139_v43 = vadd.f32 %v8130_v18, %v14619_v12  ;;  %v8091_v35 = vpop.f32.mrb[169].mxu0  ;;  %v8132_v19 = vpop.f32.mrb[169].mxu1 }
 0xf8f   :  { %v8138_v31 = vadd.f32 %v8091_v35, %v14620_v17  ;;  %v8140_v38 = vadd.f32 %v8132_v19, %v14621_v46  ;;  %v8093_v3 = vpop.f32.mrb[170].mxu0  ;;  %v8134_v7 = vpop.f32.mrb[170].mxu1 }
 0xf90   :  { %v9745_v62 = vmul.f32 -1.442695, %v8137_v15  ;;  %v8094_v57 = vpop.f32.mrb[171].mxu0  ;;  %v8135_v9 = vpop.f32.mrb[171].mxu1 }
 0xf91   :  { %v9746_v60 = vmul.f32 -1.442695, %v8138_v31  ;;  %v9747_v20 = vmul.f32 -1.442695, %v8140_v38  ;;  %v14622_v38 = vld [vmem:[#allocation95_spill] sm:$0xff]  ;;  %v14623_v57 = vld [vmem:[#allocation42_spill] sm:$0xff] }
 0xf92   :  { %10737 = vpow2.f32 %v9745_v62  ;;  %v14625_v9 = vld [vmem:[#allocation92_spill] sm:$0xff] }
 0xf93   :  { %10739 = vpow2.f32 %v9746_v60 }
 0xf94   :  { %10741 = vpow2.f32 %v9747_v20 }
 0xf95   :  { %10743 = vtanh.f32 %v8139_v43 }
 0xf9c   :  { %v10738_v21 = vpop.eup %10737 }
 0xf9d   :  { %v10740_v33 = vpop.eup %10739  ;;  %v8270_v13 = vadd.f32 1.0, %v10738_v21 }
 0xf9e   :  { %v8271_v12 = vadd.f32 1.0, %v10740_v33  ;;  %v10742_v17 = vpop.eup %10741  ;;  %v14624_v33 = vld [vmem:[#allocation44_spill] sm:$0xff] }
 0xf9f   :  { %10745 = vrcp.f32 %v8270_v13  ;;  %v10744_v35 = vpop.eup %10743  ;;  %v8280_v18 = vadd.f32 1.0, %v10742_v17 }
 0xfa0   :  { %10747 = vrcp.f32 %v8271_v12 }
 0xfa1   :  { %10749 = vrcp.f32 %v8280_v18 }
 0xfa9   :  { %v10746_v46 = vpop.eup %10745 }
 0xfaa   :  { %v10748_v3 = vpop.eup %10747  ;;  %v8284_v44 = vmul.f32 %v10746_v46, %v10744_v35 }
 0xfab   :  { %v8283_v15 = vmul.f32 %v10748_v3, %v13781_v6 }
 0xfad   :  { %v13957_v19 = vadd.f32 %v8284_v44, %v8283_v15  ;;  %v8212_v62 = vpop.f32.mrb[172].mxu0  ;;  %v8253_v31 = vpop.f32.mrb[172].mxu1 }
 0xfae   :  { %v8260_v7 = vadd.f32 %v8212_v62, %v14622_v38  ;;  %v8262_v43 = vadd.f32 %v8253_v31, %v14623_v57  ;;  %v8214_v60 = vpop.f32.mrb[173].mxu0  ;;  %v8255_v20 = vpop.f32.mrb[173].mxu1 }
 0xfaf   :  { %v8261_v21 = vadd.f32 %v8214_v60, %v14624_v33  ;;  %v8263_v13 = vadd.f32 %v8255_v20, %v14625_v9  ;;  %v8216_v12 = vpop.f32.mrb[174].mxu0  ;;  %v8257_v35 = vpop.f32.mrb[174].mxu1  ;;  %10751 = vtanh.f32 %v13957_v19 }
 0xfb0   :  { %v9748_v6 = vmul.f32 -1.442695, %v8260_v7  ;;  %v8217_v17 = vpop.f32.mrb[175].mxu0  ;;  %v8258_v46 = vpop.f32.mrb[175].mxu1 }
 0xfb1   :  { %v9749_v3 = vmul.f32 -1.442695, %v8261_v21  ;;  %v10750_v44 = vpop.eup %10749  ;;  %v9750_v15 = vmul.f32 -1.442695, %v8263_v13 }
 0xfb2   :  { %10753 = vpow2.f32 %v9748_v6 }
 0xfb3   :  { %10755 = vpow2.f32 %v9749_v3  ;;  %v14626_v3 = vld [vmem:[#allocation79_spill] sm:$0xff] }
 0xfb4   :  { %10757 = vpow2.f32 %v9750_v15  ;;  %v14635_v15 = vld [vmem:[#allocation74_spill] sm:$0xff] }
 0xfb5   :  { %10759 = vtanh.f32 %v8262_v43 }
 0xfb9   :  { %v10752_v18 = vpop.eup %10751 }
 0xfba   :  { %v8287_v62 = vmul.f32 %v10752_v18, %v10750_v44  ;;  %v14627_v44 = vld [vmem:[#allocation80_spill] sm:$0xff]  ;;  %v14634_v18 = vld [vmem:[#allocation57_spill] sm:$0xff] }
 0xfbc   :  { %v10754_v31 = vpop.eup %10753  ;;  %v8318_v38 = vpack.c.bf16 %v8287_v62, %v8287_v62  ;;  %v14640_v62 = vld [vmem:[#allocation89_spill] sm:$0xff] }
 0xfbd   :  { %v10756_v57 = vpop.eup %10755  ;;  %v8295_v60 = vadd.f32 1.0, %v10754_v31  ;;  %v14641_v31 = vld [vmem:[#allocation90_spill] sm:$0xff] }
 0xfbe   :  { %v8296_v20 = vadd.f32 1.0, %v10756_v57  ;;  %8384 = vmatmul.mubr.bf16.vlgmr.msra.gmra.mrb[176].mxu0 %v8318_v38  ;;  %8425 = vmatmul.mubr.bf16.vlgmr.msra.gmra.mrb[176].mxu1 %v8318_v38  ;;  %v10758_v7 = vpop.eup %10757  ;;  %v14642_v38 = vld [vmem:[#allocation91_spill] sm:$0xff]  ;;  %v14643_v57 = vld [vmem:[#allocation84_spill] sm:$0xff] }
 0xfbf   :  { %10761 = vrcp.f32 %v8295_v60  ;;  %8475 = vmatpush1.bf16.msra.mxu0 %v13788_v25  ;;  %8516 = vmatpush1.bf16.msra.mxu1 %v13790_v34  ;;  %v10760_v43 = vpop.eup %10759  ;;  %v8305_v13 = vadd.f32 1.0, %v10758_v7  ;;  %v14644_v60 = vld [vmem:[#allocation85_spill] sm:$0xff]  ;;  %v14646_v7 = vld [vmem:[#allocation51_spill] sm:$0xff] }
 0xfc0   :  { %10763 = vrcp.f32 %v8296_v20  ;;  %8476 = vmatprep.subr.bf16.mxu0 %v13792_v1  ;;  %8517 = vmatprep.subr.bf16.mxu1 %v13794_v41  ;;  %v14645_v20 = vld [vmem:[#allocation50_spill] sm:$0xff] }
 0xfc1   :  { %8506 = vmatprep.mubr.bf16.mxu0 %v14239_v63  ;;  %8547 = vmatprep.mubr.bf16.mxu1 %v14239_v63  ;;  %10765 = vrcp.f32 %v8305_v13 }
 0xfc3   :  { %8477 = vmatpush1.bf16.msra.mxu0 %v13800_v30  ;;  %8518 = vmatpush1.bf16.msra.mxu1 %v13802_v50 }
 0xfc4   :  { %8478 = vmatprep.subr.bf16.mxu0 %v13804_v61  ;;  %8519 = vmatprep.subr.bf16.mxu1 %v13806_v59 }
 0xfc7   :  { %8479 = vmatpush1.bf16.msra.mxu0 %v13814_v39  ;;  %8520 = vmatpush1.bf16.msra.mxu1 %v13816_v4 }
 0xfc8   :  { %8480 = vmatprep.subr.bf16.mxu0 %v13818_v37  ;;  %8521 = vmatprep.subr.bf16.mxu1 %v13820_v52 }
 0xfc9   :  { %v10762_v33 = vpop.eup %10761 }
 0xfca   :  { %v10764_v21 = vpop.eup %10763  ;;  %v8309_v9 = vmul.f32 %v10762_v33, %v10760_v43  ;;  %v14647_v43 = vld [vmem:[#allocation52_spill] sm:$0xff]  ;;  %v14648_v33 = vld [vmem:[#allocation53_spill] sm:$0xff] }
 0xfcb   :  { %v8308_v12 = vmul.f32 %v10764_v21, %v13843_v28  ;;  %8481 = vmatpush1.bf16.msra.mxu0 %v13826_v10  ;;  %8522 = vmatpush1.bf16.msra.mxu1 %v13828_v24  ;;  %v10766_v28 = vpop.eup %10765  ;;  %v14649_v21 = vld [vmem:[#allocation78_spill] sm:$0xff] }
 0xfcc   :  { %8482 = vmatprep.subr.bf16.mxu0 %v13830_v27  ;;  %8523 = vmatprep.subr.bf16.mxu1 %v13832_v11 }
 0xfcd   :  { %v13983_v35 = vadd.f32 %v8309_v9, %v8308_v12  ;;  %v14650_v12 = vld [vmem:[#allocation46_spill] sm:$0xff] }
 0xfcf   :  { %8483 = vmatpush1.bf16.msra.mxu0 %v13839_v49  ;;  %8524 = vmatpush1.bf16.msra.mxu1 %v13841_v56  ;;  %10767 = vtanh.f32 %v13983_v35 }
 0xfd0   :  { %8484 = vmatprep.subr.bf16.mxu0 %v13845_v42  ;;  %8525 = vmatprep.subr.bf16.mxu1 %v13847_v2 }
 0xfd3   :  { %8485 = vmatpush1.bf16.msra.mxu0 %v13854_v23  ;;  %8526 = vmatpush1.bf16.msra.mxu1 %v13856_v40 }
 0xfd4   :  { %8486 = vmatprep.subr.bf16.mxu0 %v13858_v29  ;;  %8527 = vmatprep.subr.bf16.mxu1 %v13860_v54 }
 0xfd7   :  { %8487 = vmatpush1.bf16.msra.mxu0 %v13866_v53  ;;  %8528 = vmatpush1.bf16.msra.mxu1 %v13868_v51 }
 0xfd8   :  { %8488 = vmatprep.subr.bf16.mxu0 %v13870_v55  ;;  %8529 = vmatprep.subr.bf16.mxu1 %v13872_v22 }
 0xfd9   :  { %v10768_v6 = vpop.eup %10767 }
 0xfda   :  { %v8312_v17 = vmul.f32 %v10768_v6, %v10766_v28  ;;  %v14651_v6 = vld [vmem:[#allocation47_spill] sm:$0xff] }
 0xfdb   :  { %8489 = vmatpush1.bf16.msra.mxu0 %v13878_v5  ;;  %8530 = vmatpush1.bf16.msra.mxu1 %v13880_v58 }
 0xfdc   :  { %v8441_v46 = vpack.c.bf16 %v8312_v17, %v8312_v17  ;;  %8647 = vmatprep.subr.bf16.mxu0 %v13886_v47  ;;  %8688 = vmatprep.subr.bf16.mxu1 %v13888_v0  ;;  %v14628_v47 = vld [vmem:[#allocation81_spill] sm:$0xff] }
 0xfdd   :  { %v14629_v0 = vld [vmem:[#allocation45_spill] sm:$0xff] }
 0xfde   :  { %8507 = vmatmul.mubr.bf16.vlgmr.msra.gmra.mrb[180].mxu0 %v8441_v46  ;;  %8548 = vmatmul.mubr.bf16.vlgmr.msra.gmra.mrb[180].mxu1 %v8441_v46 }
 0xfdf   :  { %8648 = vmatpush1.bf16.msra.mxu0 %v13892_v8  ;;  %8689 = vmatpush1.bf16.msra.mxu1 %v13894_v36  ;;  %v14630_v8 = vld [vmem:[#allocation86_spill] sm:$0xff]  ;;  %v14631_v36 = vld [vmem:[#allocation87_spill] sm:$0xff] }
 0xfe0   :  { %8649 = vmatprep.subr.bf16.mxu0 %v13898_v48  ;;  %8690 = vmatprep.subr.bf16.mxu1 %v13900_v45  ;;  %v14632_v48 = vld [vmem:[#allocation55_spill] sm:$0xff]  ;;  %v14633_v45 = vld [vmem:[#allocation56_spill] sm:$0xff] }
 0xfe1   :  { %8679 = vmatprep.mubr.bf16.mxu0 %v14239_v63  ;;  %8720 = vmatprep.mubr.bf16.mxu1 %v14239_v63 }
 0xfe3   :  { %8650 = vmatpush1.bf16.msra.mxu0 %v14626_v3  ;;  %8691 = vmatpush1.bf16.msra.mxu1 %v14627_v44  ;;  %v14652_v44 = vld [vmem:[#allocation48_spill] sm:$0xff] }
 0xfe4   :  { %8651 = vmatprep.subr.bf16.mxu0 %v14628_v47  ;;  %8692 = vmatprep.subr.bf16.mxu1 %v13912_v32  ;;  %v14636_v32 = vld [vmem:[#allocation40_spill] sm:$0xff] }
 0xfe7   :  { %8652 = vmatpush1.bf16.msra.mxu0 %v13916_v16  ;;  %8693 = vmatpush1.bf16.msra.mxu1 %v13918_v14  ;;  %v14637_v16 = vld [vmem:[#allocation99_spill] sm:$0xff]  ;;  %v14638_v14 = vld [vmem:[#allocation100_spill] sm:$0xff] }
 0xfe8   :  { %8653 = vmatprep.subr.bf16.mxu0 %v13922_v26  ;;  %8694 = vmatprep.subr.bf16.mxu1 %v14629_v0  ;;  %v14639_v26 = vld [vmem:[#allocation101_spill] sm:$0xff] }
 0xfe9   :  { %v14653_v0 = vld [vmem:[#allocation49_spill] sm:$0xff] }
 0xfeb   :  { %8654 = vmatpush1.bf16.msra.mxu0 %v14630_v8  ;;  %8695 = vmatpush1.bf16.msra.mxu1 %v14631_v36 }
 0xfec   :  { %8655 = vmatprep.subr.bf16.mxu0 %v14632_v48  ;;  %8696 = vmatprep.subr.bf16.mxu1 %v14633_v45 }
 0xfef   :  { %8656 = vmatpush1.bf16.msra.mxu0 %v14634_v18  ;;  %8697 = vmatpush1.bf16.msra.mxu1 %v14635_v15 }
 0xff0   :  { %8657 = vmatprep.subr.bf16.mxu0 %v14636_v32  ;;  %8698 = vmatprep.subr.bf16.mxu1 %v14637_v16 }
 0xff3   :  { %8658 = vmatpush1.bf16.msra.mxu0 %v14638_v14  ;;  %8699 = vmatpush1.bf16.msra.mxu1 %v14639_v26 }
 0xff4   :  { %8659 = vmatprep.subr.bf16.mxu0 %v14640_v62  ;;  %8700 = vmatprep.subr.bf16.mxu1 %v14641_v31 }
 0xff7   :  { %8660 = vmatpush1.bf16.msra.mxu0 %v14642_v38  ;;  %8701 = vmatpush1.bf16.msra.mxu1 %v14643_v57 }
 0xff8   :  { %8661 = vmatprep.subr.bf16.mxu0 %v14644_v60  ;;  %8702 = vmatprep.subr.bf16.mxu1 %v14645_v20 }
 0xffb   :  { %8662 = vmatpush1.bf16.msra.mxu0 %v14646_v7  ;;  %8703 = vmatpush1.bf16.msra.mxu1 %v14647_v43 }
 0xffc   :  { %8770 = vmatprep.subr.bf16.mxu0 %v14648_v33  ;;  %8811 = vmatprep.subr.bf16.mxu1 %v14649_v21 }
0x1091   :  { %v8385_v9 = vpop.f32.mrb[176].mxu0  ;;  %v8426_v13 = vpop.f32.mrb[176].mxu1 }
0x1092   :  { %v8433_v28 = vadd.f32 %v8385_v9, %v14650_v12  ;;  %v8435_v17 = vadd.f32 %v8426_v13, %v14651_v6  ;;  %v8387_v46 = vpop.f32.mrb[177].mxu0  ;;  %v8428_v3 = vpop.f32.mrb[177].mxu1  ;;  %v14654_v12 = vld [vmem:[#allocation68_spill] sm:$0xff]  ;;  %v14655_v6 = vld [vmem:[#allocation69_spill] sm:$0xff] }
0x1093   :  { %v8434_v47 = vadd.f32 %v8387_v46, %v14652_v44  ;;  %v8436_v8 = vadd.f32 %v8428_v3, %v14653_v0  ;;  %v8389_v36 = vpop.f32.mrb[178].mxu0  ;;  %v8430_v48 = vpop.f32.mrb[178].mxu1  ;;  %v14656_v44 = vld [vmem:[#allocation94_spill] sm:$0xff]  ;;  %v14657_v0 = vld [vmem:[#allocation41_spill] sm:$0xff] }
0x1094   :  { %v9751_v45 = vmul.f32 -1.442695, %v8433_v28  ;;  %v8390_v18 = vpop.f32.mrb[179].mxu0  ;;  %v8431_v15 = vpop.f32.mrb[179].mxu1 }
0x1095   :  { %v9752_v32 = vmul.f32 -1.442695, %v8434_v47  ;;  %v9753_v16 = vmul.f32 -1.442695, %v8436_v8 }
0x1096   :  { %10769 = vpow2.f32 %v9751_v45 }
0x1097   :  { %10771 = vpow2.f32 %v9752_v32 }
0x1098   :  { %10773 = vpow2.f32 %v9753_v16 }
0x1099   :  { %10775 = vtanh.f32 %v8435_v17 }
0x10a0   :  { %v10770_v14 = vpop.eup %10769 }
0x10a1   :  { %v10772_v26 = vpop.eup %10771  ;;  %v8566_v62 = vadd.f32 1.0, %v10770_v14 }
0x10a2   :  { %v8567_v31 = vadd.f32 1.0, %v10772_v26  ;;  %v10774_v38 = vpop.eup %10773 }
0x10a3   :  { %10777 = vrcp.f32 %v8566_v62  ;;  %v10776_v57 = vpop.eup %10775  ;;  %v8576_v43 = vadd.f32 1.0, %v10774_v38 }
0x10a4   :  { %10779 = vrcp.f32 %v8567_v31 }
0x10a5   :  { %10781 = vrcp.f32 %v8576_v43 }
0x10ad   :  { %v10778_v60 = vpop.eup %10777 }
0x10ae   :  { %v10780_v20 = vpop.eup %10779  ;;  %v8580_v7 = vmul.f32 %v10778_v60, %v10776_v57 }
0x10af   :  { %v8579_v33 = vmul.f32 %v10780_v20, %v13957_v19  ;;  %v10782_v32 = vpop.eup %10781 }
0x10b1   :  { %v14041_v21 = vadd.f32 %v8580_v7, %v8579_v33  ;;  %v8508_v9 = vpop.f32.mrb[180].mxu0  ;;  %v8549_v13 = vpop.f32.mrb[180].mxu1 }
0x10b2   :  { %v8556_v28 = vadd.f32 %v8508_v9, %v14654_v12  ;;  %v8558_v17 = vadd.f32 %v8549_v13, %v14655_v6  ;;  %v8510_v46 = vpop.f32.mrb[181].mxu0  ;;  %v8551_v3 = vpop.f32.mrb[181].mxu1 }
0x10b3   :  { %v8557_v47 = vadd.f32 %v8510_v46, %v14656_v44  ;;  %v8559_v8 = vadd.f32 %v8551_v3, %v14657_v0  ;;  %v8512_v36 = vpop.f32.mrb[182].mxu0  ;;  %v8553_v48 = vpop.f32.mrb[182].mxu1  ;;  %10783 = vtanh.f32 %v14041_v21 }
0x10b4   :  { %v9754_v19 = vmul.f32 -1.442695, %v8556_v28  ;;  %v8513_v45 = vpop.f32.mrb[183].mxu0  ;;  %v8554_v18 = vpop.f32.mrb[183].mxu1 }
0x10b5   :  { %v9755_v15 = vmul.f32 -1.442695, %v8557_v47  ;;  %v9756_v14 = vmul.f32 -1.442695, %v8559_v8  ;;  %v14662_v47 = vld [vmem:[#allocation64_spill] sm:$0xff]  ;;  %v14663_v8 = vld [vmem:[#allocation65_spill] sm:$0xff] }
0x10b6   :  { %10785 = vpow2.f32 %v9754_v19  ;;  %v14664_v45 = vld [vmem:[#allocation66_spill] sm:$0xff] }
0x10b7   :  { %10787 = vpow2.f32 %v9755_v15  ;;  %v14665_v15 = vld [vmem:[#allocation67_spill] sm:$0xff] }
0x10b8   :  { %10789 = vpow2.f32 %v9756_v14 }
0x10b9   :  { %10791 = vtanh.f32 %v8558_v17 }
0x10bd   :  { %v10784_v16 = vpop.eup %10783 }
0x10be   :  { %v8583_v26 = vmul.f32 %v10784_v16, %v10782_v32 }
0x10c0   :  { %v10786_v62 = vpop.eup %10785  ;;  %v8614_v31 = vpack.c.bf16 %v8583_v26, %v8583_v26 }
0x10c1   :  { %v10788_v38 = vpop.eup %10787  ;;  %v8591_v57 = vadd.f32 1.0, %v10786_v62 }
0x10c2   :  { %v8592_v60 = vadd.f32 1.0, %v10788_v38  ;;  %8680 = vmatmul.mubr.bf16.vlgmr.msra.gmra.mrb[184].mxu0 %v8614_v31  ;;  %8721 = vmatmul.mubr.bf16.vlgmr.msra.gmra.mrb[184].mxu1 %v8614_v31 }
0x10c3   :  { %10793 = vrcp.f32 %v8591_v57  ;;  %8771 = vmatpush1.bf16.msra.mxu0 %v13788_v25  ;;  %8812 = vmatpush1.bf16.msra.mxu1 %v13790_v34  ;;  %v10790_v25 = vpop.eup %10789 }
0x10c4   :  { %10795 = vrcp.f32 %v8592_v60  ;;  %8772 = vmatprep.subr.bf16.mxu0 %v13792_v1  ;;  %8813 = vmatprep.subr.bf16.mxu1 %v13794_v41  ;;  %v10792_v34 = vpop.eup %10791 }
0x10c5   :  { %8802 = vmatprep.mubr.bf16.mxu0 %v14239_v63  ;;  %8843 = vmatprep.mubr.bf16.mxu1 %v14239_v63 }
0x10c7   :  { %8773 = vmatpush1.bf16.msra.mxu0 %v13800_v30  ;;  %8814 = vmatpush1.bf16.msra.mxu1 %v13802_v50  ;;  %v8601_v30 = vadd.f32 1.0, %v10790_v25 }
0x10c8   :  { %8774 = vmatprep.subr.bf16.mxu0 %v13804_v61  ;;  %8815 = vmatprep.subr.bf16.mxu1 %v13806_v59 }
0x10c9   :  { %10797 = vrcp.f32 %v8601_v30 }
0x10cb   :  { %8775 = vmatpush1.bf16.msra.mxu0 %v13814_v39  ;;  %8816 = vmatpush1.bf16.msra.mxu1 %v13816_v4 }
0x10cc   :  { %8776 = vmatprep.subr.bf16.mxu0 %v13818_v37  ;;  %8817 = vmatprep.subr.bf16.mxu1 %v13820_v52 }
0x10cd   :  { %v10794_v1 = vpop.eup %10793 }
0x10ce   :  { %v10796_v63 = vpop.eup %10795  ;;  %v8605_v41 = vmul.f32 %v10794_v1, %v10792_v34 }
0x10cf   :  { %v8604_v50 = vmul.f32 %v10796_v63, %v13983_v35  ;;  %8777 = vmatpush1.bf16.msra.mxu0 %v13826_v10  ;;  %8818 = vmatpush1.bf16.msra.mxu1 %v13828_v24  ;;  %v14658_v24 = vld [vmem:[#allocation82_spill] sm:$0xff] }
0x10d0   :  { %8778 = vmatprep.subr.bf16.mxu0 %v13830_v27  ;;  %8819 = vmatprep.subr.bf16.mxu1 %v13832_v11  ;;  %v14659_v11 = vld [vmem:[#allocation83_spill] sm:$0xff] }
0x10d1   :  { %v14067_v61 = vadd.f32 %v8605_v41, %v8604_v50 }
0x10d3   :  { %8779 = vmatpush1.bf16.msra.mxu0 %v13839_v49  ;;  %8820 = vmatpush1.bf16.msra.mxu1 %v13841_v56  ;;  %10799 = vtanh.f32 %v14067_v61  ;;  %v10798_v59 = vpop.eup %10797 }
0x10d4   :  { %8780 = vmatprep.subr.bf16.mxu0 %v13845_v42  ;;  %8821 = vmatprep.subr.bf16.mxu1 %v13847_v2  ;;  %v14660_v2 = vld [vmem:[#allocation62_spill] sm:$0xff] }
0x10d7   :  { %8781 = vmatpush1.bf16.msra.mxu0 %v13854_v23  ;;  %8822 = vmatpush1.bf16.msra.mxu1 %v13856_v40  ;;  %v14661_v40 = vld [vmem:[#allocation63_spill] sm:$0xff] }
0x10d8   :  { %8782 = vmatprep.subr.bf16.mxu0 %v13858_v29  ;;  %8823 = vmatprep.subr.bf16.mxu1 %v13860_v54 }
0x10db   :  { %8783 = vmatpush1.bf16.msra.mxu0 %v13866_v53  ;;  %8824 = vmatpush1.bf16.msra.mxu1 %v13868_v51 }
0x10dc   :  { %8784 = vmatprep.subr.bf16.mxu0 %v13870_v55  ;;  %8825 = vmatprep.subr.bf16.mxu1 %v13872_v22 }
0x10dd   :  { %v10800_v39 = vpop.eup %10799 }
0x10de   :  { %v8608_v4 = vmul.f32 %v10800_v39, %v10798_v59 }
0x10df   :  { %8785 = vmatpush1.bf16.msra.mxu0 %v13878_v5  ;;  %8826 = vmatpush1.bf16.msra.mxu1 %v13880_v58 }
0x10e0   :  { %v8737_v37 = vpack.c.bf16 %v8608_v4, %v8608_v4 }
0x10e2   :  { %8803 = vmatmul.mubr.bf16.vlgmr.msra.gmra.mrb[188].mxu0 %v8737_v37  ;;  %8844 = vmatmul.mubr.bf16.vlgmr.msra.gmra.mrb[188].mxu1 %v8737_v37 }
0x1195   :  { %v8681_v52 = vpop.f32.mrb[184].mxu0  ;;  %v8722_v10 = vpop.f32.mrb[184].mxu1 }
0x1196   :  { %v8729_v27 = vadd.f32 %v8681_v52, %v14658_v24  ;;  %v8731_v49 = vadd.f32 %v8722_v10, %v14659_v11  ;;  %v8683_v56 = vpop.f32.mrb[185].mxu0  ;;  %v8724_v42 = vpop.f32.mrb[185].mxu1 }
0x1197   :  { %v8730_v23 = vadd.f32 %v8683_v56, %v14660_v2  ;;  %v8732_v29 = vadd.f32 %v8724_v42, %v14661_v40  ;;  %v8685_v54 = vpop.f32.mrb[186].mxu0  ;;  %v8726_v53 = vpop.f32.mrb[186].mxu1 }
0x1198   :  { %v9757_v51 = vmul.f32 -1.442695, %v8729_v27  ;;  %v8686_v55 = vpop.f32.mrb[187].mxu0  ;;  %v8727_v22 = vpop.f32.mrb[187].mxu1 }
0x1199   :  { %v9758_v5 = vmul.f32 -1.442695, %v8730_v23  ;;  %v9759_v58 = vmul.f32 -1.442695, %v8732_v29 }
0x119a   :  { %10801 = vpow2.f32 %v9757_v51 }
0x119b   :  { %10803 = vpow2.f32 %v9758_v5 }
0x119c   :  { %10805 = vpow2.f32 %v9759_v58 }
0x119d   :  { %10807 = vtanh.f32 %v8731_v49 }
0x11a4   :  { %v10802_v35 = vpop.eup %10801 }
0x11a5   :  { %v10804_v20 = vpop.eup %10803  ;;  %v8862_v7 = vadd.f32 1.0, %v10802_v35 }
0x11a6   :  { %v8863_v43 = vadd.f32 1.0, %v10804_v20  ;;  %v10806_v33 = vpop.eup %10805 }
0x11a7   :  { %10809 = vrcp.f32 %v8862_v7  ;;  %v10808_v9 = vpop.eup %10807  ;;  %v8872_v6 = vadd.f32 1.0, %v10806_v33 }
0x11a8   :  { %10811 = vrcp.f32 %v8863_v43 }
0x11a9   :  { %10813 = vrcp.f32 %v8872_v6 }
0x11b1   :  { %v10810_v13 = vpop.eup %10809 }
0x11b2   :  { %v10812_v12 = vpop.eup %10811  ;;  %v8876_v28 = vmul.f32 %v10810_v13, %v10808_v9 }
0x11b3   :  { %v8875_v17 = vmul.f32 %v10812_v12, %v14041_v21  ;;  %v10814_v38 = vpop.eup %10813 }
0x11b5   :  { %v8877_v46 = vadd.f32 %v8876_v28, %v8875_v17  ;;  %v8804_v3 = vpop.f32.mrb[188].mxu0  ;;  %v8845_v44 = vpop.f32.mrb[188].mxu1 }
0x11b6   :  { %v8852_v0 = vadd.f32 %v8804_v3, %v14662_v47  ;;  %v8854_v36 = vadd.f32 %v8845_v44, %v14663_v8  ;;  %v8806_v48 = vpop.f32.mrb[189].mxu0  ;;  %v8847_v19 = vpop.f32.mrb[189].mxu1 }
0x11b7   :  { %10815 = vtanh.f32 %v8877_v46  ;;  %v8853_v18 = vadd.f32 %v8806_v48, %v14664_v45  ;;  %v8855_v32 = vadd.f32 %v8847_v19, %v14665_v15  ;;  %v8808_v16 = vpop.f32.mrb[190].mxu0  ;;  %v8849_v14 = vpop.f32.mrb[190].mxu1 }
0x11b8   :  { %v9760_v26 = vmul.f32 -1.442695, %v8852_v0  ;;  %v8809_v62 = vpop.f32.mrb[191].mxu0  ;;  %v8850_v21 = vpop.f32.mrb[191].mxu1 }
0x11b9   :  { %v9761_v31 = vmul.f32 -1.442695, %v8853_v18  ;;  %v9762_v60 = vmul.f32 -1.442695, %v8855_v32 }
0x11ba   :  { %10817 = vpow2.f32 %v9760_v26 }
0x11bb   :  { %10819 = vpow2.f32 %v9761_v31 }
0x11bc   :  { %10821 = vpow2.f32 %v9762_v60 }
0x11bd   :  { %10823 = vtanh.f32 %v8854_v36 }
0x11c1   :  { %v10816_v57 = vpop.eup %10815 }
0x11c2   :  { %v14093_v25 = vmul.f32 %v10816_v57, %v10814_v38 }
0x11c4   :  { %v10818_v34 = vpop.eup %10817 }
0x11c5   :  { %v10820_v1 = vpop.eup %10819  ;;  %v8887_v63 = vadd.f32 1.0, %v10818_v34 }
0x11c6   :  { %v8888_v41 = vadd.f32 1.0, %v10820_v1  ;;  %v10822_v30 = vpop.eup %10821 }
0x11c7   :  { %10825 = vrcp.f32 %v8887_v63  ;;  %v10824_v50 = vpop.eup %10823  ;;  %v8897_v37 = vadd.f32 1.0, %v10822_v30 }
0x11c8   :  { %10827 = vrcp.f32 %v8888_v41 }
0x11c9   :  { %10829 = vrcp.f32 %v8897_v37 }
0x11d1   :  { %v10826_v59 = vpop.eup %10825 }
0x11d2   :  { %v10828_v39 = vpop.eup %10827  ;;  %v8901_v4 = vmul.f32 %v10826_v59, %v10824_v50 }
0x11d3   :  { %v8900_v52 = vmul.f32 %v10828_v39, %v14067_v61  ;;  %v10830_v24 = vpop.eup %10829 }
0x11d5   :  { %v8902_v10 = vadd.f32 %v8901_v4, %v8900_v52 }
0x11d7   :  { %10831 = vtanh.f32 %v8902_v10 }
0x11e1   :  { %v10832_v27 = vpop.eup %10831 }
0x11e2   :  { %v8904_v11 = vmul.f32 %v10832_v27, %v10830_v24 }
0x11e3   :  { %10933 = dma.done.wait [#allocation11 + $0x4], 4096 }
0x11e4   :  { %10934 = vsyncadd [#allocation11 + $0x4], 4294963200  ;;  %v14666_v49 = vld [vmem:[#allocation88_spill] sm:$0xff]  ;;  %v8913_v56 = vpack.c.bf16 %v8904_v11, %v8904_v11  ;;  %v8943_v29 = vld [vmem:[#allocation10 + $0xc8] sm:$0xff]  ;;  %v8916_v19 = vpack.c.bf16 %v14093_v25, %v14093_v25 }
0x11e5   :  { %8982 = vmatprep.mubr.bf16.mxu0 %v14666_v49  ;;  %v8942_v42 = vld [vmem:[#allocation10 + $0xc0] sm:$0xff]  ;;  %v8927_v61 = vld [vmem:[#allocation10 + $0x48] sm:$0xff]  ;;  %v8944_v51 = vld [vmem:[#allocation10 + $0xd0] sm:$0xff] }
0x11e6   :  { %9022 = vmatprep.mubr.bf16.mxu1 %v8913_v56  ;;  %v8926_v2 = vld [vmem:[#allocation10 + $0x40] sm:$0xff]  ;;  %9769 = vmatprep.subr.bf16.mxu0 %v8942_v42  ;;  %v8935_v54 = vld [vmem:[#allocation10 + $0x88] sm:$0xff]  ;;  %v8928_v55 = vld [vmem:[#allocation10 + $0x50] sm:$0xff] }
0x11e7   :  { %v8934_v23 = vld [vmem:[#allocation10 + $0x80] sm:$0xff]  ;;  %9791 = vmatprep.subr.bf16.mxu1 %v8926_v2  ;;  %v8919_v53 = vld [vmem:[#allocation10 + $0x8] sm:$0xff]  ;;  %v8936_v22 = vld [vmem:[#allocation10 + $0x90] sm:$0xff] }
0x11e8   :  { %v8918_v40 = vld [vmem:[#allocation10] sm:$0xff]  ;;  %9770 = vmatpush3.bf16.msra.mxu0 %v8934_v23  ;;  %v8920_v5 = vld [vmem:[#allocation10 + $0x10] sm:$0xff]  ;;  %v8945_v58 = vld [vmem:[#allocation10 + $0xd8] sm:$0xff] }
0x11e9   :  { %9792 = vmatpush3.bf16.msra.mxu1 %v8918_v40  ;;  %9771 = vmatprep.subr.bf16.mxu0 %v8943_v29  ;;  %v8929_v35 = vld [vmem:[#allocation10 + $0x58] sm:$0xff]  ;;  %v8946_v43 = vld [vmem:[#allocation10 + $0xe0] sm:$0xff]  ;;  %v8947_v12 = vld [vmem:[#allocation10 + $0xe8] sm:$0xff] }
0x11ea   :  { %9793 = vmatprep.subr.bf16.mxu1 %v8927_v61  ;;  %v8937_v20 = vld [vmem:[#allocation10 + $0x98] sm:$0xff]  ;;  %v8930_v33 = vld [vmem:[#allocation10 + $0x60] sm:$0xff]  ;;  %v8931_v28 = vld [vmem:[#allocation10 + $0x68] sm:$0xff] }
0x11eb   :  { %v8921_v7 = vld [vmem:[#allocation10 + $0x18] sm:$0xff]  ;;  %v8938_v9 = vld [vmem:[#allocation10 + $0xa0] sm:$0xff]  ;;  %v8939_v6 = vld [vmem:[#allocation10 + $0xa8] sm:$0xff] }
0x11ec   :  { %9772 = vmatpush3.bf16.msra.mxu0 %v8935_v54  ;;  %v8922_v13 = vld [vmem:[#allocation10 + $0x20] sm:$0xff]  ;;  %v8923_v17 = vld [vmem:[#allocation10 + $0x28] sm:$0xff]  ;;  %v8948_v46 = vld [vmem:[#allocation10 + $0xf0] sm:$0xff] }
0x11ed   :  { %9794 = vmatpush3.bf16.msra.mxu1 %v8919_v53  ;;  %9773 = vmatprep.subr.bf16.mxu0 %v8944_v51  ;;  %v8932_v3 = vld [vmem:[#allocation10 + $0x70] sm:$0xff]  ;;  %v8949_v0 = vld [vmem:[#allocation10 + $0xf8] sm:$0xff]  ;;  %v9763_v31 = vld [vmem:[%s14120_s14] ss:$0 sm:$0xff] }
0x11ee   :  { %9795 = vmatprep.subr.bf16.mxu1 %v8928_v55  ;;  %v8940_v44 = vld [vmem:[#allocation10 + $0xb0] sm:$0xff]  ;;  %v8933_v8 = vld [vmem:[#allocation10 + $0x78] sm:$0xff] }
0x11ef   :  { %v8924_v47 = vld [vmem:[#allocation10 + $0x30] sm:$0xff]  ;;  %v8941_v36 = vld [vmem:[#allocation10 + $0xb8] sm:$0xff] }
0x11f0   :  { %9774 = vmatpush3.bf16.msra.mxu0 %v8936_v22  ;;  %v8925_v48 = vld [vmem:[#allocation10 + $0x38] sm:$0xff]  ;;  %v14667_v45 = vld [vmem:[#allocation106_spill] sm:$0xff] }
0x11f1   :  { %9796 = vmatpush3.bf16.msra.mxu1 %v8920_v5  ;;  %9775 = vmatprep.subr.bf16.mxu0 %v8945_v58 }
0x11f2   :  { %9797 = vmatprep.subr.bf16.mxu1 %v8929_v35 }
0x11f4   :  { %9776 = vmatpush3.bf16.msra.mxu0 %v8937_v20 }
0x11f5   :  { %9798 = vmatpush3.bf16.msra.mxu1 %v8921_v7  ;;  %9777 = vmatprep.subr.bf16.mxu0 %v8946_v43 }
0x11f6   :  { %9799 = vmatprep.subr.bf16.mxu1 %v8930_v33 }
0x11f8   :  { %9778 = vmatpush3.bf16.msra.mxu0 %v8938_v9 }
0x11f9   :  { %9800 = vmatpush3.bf16.msra.mxu1 %v8922_v13  ;;  %9779 = vmatprep.subr.bf16.mxu0 %v8947_v12 }
0x11fa   :  { %9801 = vmatprep.subr.bf16.mxu1 %v8931_v28 }
0x11fc   :  { %9780 = vmatpush3.bf16.msra.mxu0 %v8939_v6 }
0x11fd   :  { %9802 = vmatpush3.bf16.msra.mxu1 %v8923_v17  ;;  %9781 = vmatprep.subr.bf16.mxu0 %v8948_v46 }
0x11fe   :  { %9803 = vmatprep.subr.bf16.mxu1 %v8932_v3 }
0x1200   :  { %9782 = vmatpush3.bf16.msra.mxu0 %v8940_v44 }
0x1201   :  { %9804 = vmatpush3.bf16.msra.mxu1 %v8924_v47  ;;  %9783 = vmatprep.subr.bf16.mxu0 %v8949_v0 }
0x1202   :  { %9805 = vmatprep.subr.bf16.mxu1 %v8933_v8 }
0x1204   :  { %9784 = vmatpush3.bf16.msra.mxu0 %v8941_v36 }
0x1205   :  { %9806 = vmatpush3.bf16.msra.mxu1 %v8925_v48 }
0x1207   :  { %8983 = vmatmul.mubr.bf16.vlgmr.msra.gmra.mrb[192].mxu0 %v8916_v19 }
0x1208   :  { %9023 = vmatmul.mubr.bf16.vlgmr.msra.gmra.mrb[192].mxu1 %v14667_v45 }
0x12da   :  { %v9785_v18 = vpop.f32.mrb[192].mxu0 }
0x12db   :  { %v9807_v15 = vpop.f32.mrb[192].mxu1  ;;  %v9786_v32 = vpop.f32.mrb[193].mxu0 }
0x12dc   :  { %v9808_v16 = vpop.f32.mrb[193].mxu1  ;;  %v9787_v14 = vadd.f32 %v9786_v32, %v9785_v18  ;;  %v9788_v62 = vpop.f32.mrb[194].mxu0 }
0x12dd   :  { %v9809_v26 = vadd.f32 %v9808_v16, %v9807_v15  ;;  %v9810_v21 = vpop.f32.mrb[194].mxu1  ;;  %v9789_v38 = vpop.f32.mrb[195].mxu0 }
0x12de   :  { %v9811_v57 = vpop.f32.mrb[195].mxu1 }
0x12df   :  { %v9025_v60 = vadd.f32 %v9809_v26, %v9787_v14 }
0x12e1   :  { %v9037_v25 = vadd.f32 %v9763_v31, %v9025_v60 }
0x12e3   :  { %9038 = vst [vmem:[%s14121_s15] sm:$0xff] %v9037_v25 }
0x12e4   :  { %9043 = vsyncpa [#allocation13], 1 }
0x12e5   :  { %9044 = vsyncpa [#allocation15], 1 }
0x12e6   :  { %9045 = vsyncmov [#allocation11] }
0x12e9   :  { %s9046_s21 = vpop.sfrf %9045 }
0x12ea   :  { %p9764_p4 = scmp.ne.s32.totalorder %s9046_s21, 0 }
0x12ec   :  { %9050 = shalt.err (%p9764_p4)  }
0x12ed   :  { %9052 = vsyncmov [#allocation11 + $0x1] }
0x12f0   :  { %s9053_s28 = vpop.sfrf %9052 }
0x12f1   :  { %p9765_p5 = scmp.ne.s32.totalorder %s9053_s28, 0 }
0x12f3   :  { %9057 = shalt.err (%p9765_p5)  }
0x12f4   :  { %9059 = vsyncmov [#allocation11 + $0x2] }
0x12f7   :  { %s9060_s14 = vpop.sfrf %9059 }
0x12f8   :  { %p9766_p6 = scmp.ne.s32.totalorder %s9060_s14, 0 }
0x12fa   :  { %9064 = shalt.err (%p9766_p6)  }
0x12fb   :  { %9066 = vsyncmov [#allocation11 + $0x3] }
0x12fe   :  { %s9067_s20 = vpop.sfrf %9066 }
0x12ff   :  { %p9767_p7 = scmp.ne.s32.totalorder %s9067_s20, 0 }
0x1301   :  { %9071 = shalt.err (%p9767_p7)  }
0x1302   :  { %9073 = vsyncmov [#allocation11 + $0x4] }
0x1305   :  { %s9074_s15 = vpop.sfrf %9073 }
0x1306   :  { %p9768_p8 = scmp.ne.s32.totalorder %s9074_s15, 0 }
0x1308   :  { %9078 = shalt.err (%p9768_p8)  }

</bundles_post_ra>
